<compile_context>
chip_gen: v6e
topology: v6e:2x2x1
jax: 0.10.0
libtpu: 0.0.40
codegen_flags: <defaults>
</compile_context>

<pallas_src>
import functools

import jax
import jax.numpy as jnp
from jax.experimental import pallas as pl
from jax.experimental.pallas import tpu as pltpu

EPS = 1e-5
_W_OFF = 8           # sublane-aligned offset of the tile interior in the pad scratch
_W_PAD_EXTRA = 16    # pad scratch width = W + 16 (8 zero columns each side)


# --------------------------------------------------------------------------- #
# conv pass kernel: (affine + PReLU pre-activation) -> 3x3 conv -> partial stats
# (pass 1 uses identity pre-activation: scale=1, shift=0, alpha=1)
# --------------------------------------------------------------------------- #
def _conv_tile_kernel(x_ref, top_ref, bot_ref, w_ref, scale_ref, shift_ref,
                      alpha_ref, y_ref, stats_ref, pad_ref):
    _, TH, W, C = x_ref.shape
    ht = pl.program_id(1)
    n_ht = pl.num_programs(1)

    scale = scale_ref[...]          # (1, C) f32
    shift = shift_ref[...]          # (1, C) f32
    alpha = alpha_ref[...]          # (1, C) f32

    def pre_act(v):                 # BN affine + PReLU in f32, bf16 for the MXU
        v = v.astype(jnp.float32) * scale + shift
        v = jnp.where(v >= 0.0, v, alpha * v)
        return v.astype(jnp.bfloat16)

    # Zero only the W-border columns the taps actually read (8 each side).
    pad_ref[:, 0:_W_OFF, :] = jnp.zeros((TH + 2, _W_OFF, C), jnp.bfloat16)
    pad_ref[:, _W_OFF + W:W + _W_PAD_EXTRA, :] = jnp.zeros(
        (TH + 2, _W_PAD_EXTRA - _W_OFF, C), jnp.bfloat16)

    # Interior rows 1..TH (8-aligned full-width store) and the two halo rows.
    pad_ref[1:TH + 1, _W_OFF:_W_OFF + W, :] = pre_act(x_ref[0])
    pad_ref[0:1, _W_OFF:_W_OFF + W, :] = pre_act(top_ref[0])
    pad_ref[TH + 1:TH + 2, _W_OFF:_W_OFF + W, :] = pre_act(bot_ref[0])

    # Conv zero-padding at the image's first/last row must be applied AFTER the
    # pre-activation (padding pads the activated tensor, not BN(0)).
    @pl.when(ht == 0)
    def _():
        pad_ref[0:1, :, :] = jnp.zeros((1, W + _W_PAD_EXTRA, C), jnp.bfloat16)

    @pl.when(ht == n_ht - 1)
    def _():
        pad_ref[TH + 1:TH + 2, :, :] = jnp.zeros((1, W + _W_PAD_EXTRA, C),
                                                 jnp.bfloat16)

    # 3x3 conv = 9 accumulating MXU matmuls (bf16 x bf16 -> f32), K = C.
    acc = jnp.zeros((TH * W, C), jnp.float32)
    for dh in range(3):
        for dw in range(3):
            w0 = _W_OFF - 1 + dw
            slab = pad_ref[dh:dh + TH, w0:w0 + W, :].reshape(TH * W, C)
            acc = acc + jnp.dot(slab, w_ref[dh * 3 + dw],
                                preferred_element_type=jnp.float32)

    # Per-tile BN partial stats from the resident f32 accumulator (single pass):
    # row 0 = sum, row 1 = tile-centered sum of squares (safe cross-tile combine).
    s = jnp.sum(acc, axis=0, keepdims=True)                     # (1, C)
    d = acc - s * (1.0 / float(TH * W))
    css = jnp.sum(d * d, axis=0, keepdims=True)                 # (1, C)
    stats_ref[...] = jnp.concatenate([s, css], axis=0).reshape(1, 1, 2, C)

    y_ref[0] = acc.reshape(TH, W, C).astype(y_ref.dtype)


# --------------------------------------------------------------------------- #
# finalize kernel: out = scale2 * conv2_out + shift2 + x   (lane-dense W*C views)
# --------------------------------------------------------------------------- #
def _bn_residual_kernel(y_ref, x_ref, scale_ref, shift_ref, o_ref):
    y = y_ref[...].astype(jnp.float32)
    o_ref[...] = (y * scale_ref[...] + shift_ref[...]
                  + x_ref[...].astype(jnp.float32)).astype(o_ref.dtype)


# --------------------------------------------------------------------------- #
# sizing helpers
# --------------------------------------------------------------------------- #
def _round_up(x, m):
    return -(-x // m) * m


def _vmem_capacity():
    try:
        return int(pltpu.get_tpu_info().vmem_capacity_bytes)
    except Exception:
        return 64 << 20          # v7x-safe fallback


def _conv_tile_vmem_bytes(th, W, C):
    lane_c = _round_up(C, 128)
    w8 = _round_up(W, 8)
    in_tile = 4 * th * w8 * lane_c                                   # f32 input tile
    out_tile = 4 * th * w8 * lane_c                                  # f32 output (worst)
    halo = 2 * 4 * 8 * lane_c                                        # two halo rows
    pad = 2 * (th + 2) * _round_up(W + _W_PAD_EXTRA, 8) * lane_c     # bf16 scratch
    acc = 4 * _round_up(th * W, 8) * lane_c                          # f32 accumulator
    slab = 2 * _round_up(th * W, 8) * lane_c                         # bf16 tap slab
    wts = 2 * 9 * _round_up(C, 8) * lane_c
    # x2 on the pipelined inputs/outputs for double buffering.
    return 2 * (in_tile + out_tile + halo) + pad + acc + 2 * slab + wts + (1 << 20)


def _pick_tile_h(H, W, C):
    budget = int(0.6 * _vmem_capacity())
    for th in range(H, 0, -1):
        if H % th:
            continue
        if th != H and th % 8:          # (8,128) rule for the lane-dense final pass
            continue
        if _conv_tile_vmem_bytes(th, W, C) <= budget:
            return th
    # TODO(synk): shapes whose smallest legal row tile still exceeds VMEM would
    # additionally need W tiling; fall back to the smallest legal row tile.
    return 8 if H % 8 == 0 else H


def _vmem_limit(est):
    cap = _vmem_capacity()
    return int(min(max(2 * est, 32 << 20), int(0.9 * cap)))


# --------------------------------------------------------------------------- #
# wrapper-side plumbing
# --------------------------------------------------------------------------- #
def _make_halos(y, th):
    """Row above / row below each (image, row-tile); zeros at image boundaries."""
    N, H, W, C = y.shape
    n_ht = H // th
    zero = jnp.zeros((N, 1, W, C), y.dtype)
    if n_ht == 1:
        return zero, zero
    top = jnp.concatenate([zero, y[:, th - 1:H - 1:th]], axis=1)   # (N, n_ht, W, C)
    bot = jnp.concatenate([y[:, th::th], zero], axis=1)            # (N, n_ht, W, C)
    return top, bot


def _conv_pass(x, top, bot, w9, scale, shift, alpha, out_dtype, th):
    N, H, W, C = x.shape
    n_ht = H // th
    est = _conv_tile_vmem_bytes(th, W, C)
    flops = 2 * N * H * W * 9 * C * C
    bytes_accessed = int(
        x.size * x.dtype.itemsize
        + top.size * top.dtype.itemsize + bot.size * bot.dtype.itemsize
        + w9.size * 2 + (scale.size + shift.size + alpha.size) * 4
        + N * H * W * C * jnp.dtype(out_dtype).itemsize
        + N * n_ht * 2 * C * 4)

    return pl.pallas_call(
        _conv_tile_kernel,
        grid=(N, n_ht),
        out_shape=(jax.ShapeDtypeStruct((N, H, W, C), out_dtype),
                   jax.ShapeDtypeStruct((N, n_ht, 2, C), jnp.float32)),
        in_specs=[
            pl.BlockSpec((1, th, W, C), lambda n, t: (n, t, 0, 0)),   # tile
            pl.BlockSpec((1, 1, W, C), lambda n, t: (n, t, 0, 0)),    # halo above
            pl.BlockSpec((1, 1, W, C), lambda n, t: (n, t, 0, 0)),    # halo below
            pl.BlockSpec((9, C, C), lambda n, t: (0, 0, 0)),          # weights (resident)
            pl.BlockSpec((1, C), lambda n, t: (0, 0)),                # pre-act scale
            pl.BlockSpec((1, C), lambda n, t: (0, 0)),                # pre-act shift
            pl.BlockSpec((1, C), lambda n, t: (0, 0)),                # PReLU alpha
        ],
        out_specs=(
            pl.BlockSpec((1, th, W, C), lambda n, t: (n, t, 0, 0)),
            pl.BlockSpec((1, 1, 2, C), lambda n, t: (n, t, 0, 0)),
        ),
        scratch_shapes=[pltpu.VMEM((th + 2, W + _W_PAD_EXTRA, C), jnp.bfloat16)],
        compiler_params=pltpu.CompilerParams(
            dimension_semantics=("parallel", "parallel"),
            vmem_limit_bytes=_vmem_limit(est)),
        cost_estimate=pl.CostEstimate(flops=flops, transcendentals=0,
                                      bytes_accessed=bytes_accessed),
    )(x, top, bot, w9, scale, shift, alpha)


def _bn_affine_from_stats(stats, gamma, beta, th, W):
    """Combine per-tile (sum, centered sumsq) into per-channel BN scale/shift."""
    N, n_ht, _, C = stats.shape
    cnt_tile = th * W
    cnt = N * n_ht * cnt_tile
    sums = stats[:, :, 0, :]                               # (N, n_ht, C)
    css = stats[:, :, 1, :]
    mean = jnp.sum(sums, axis=(0, 1)) / cnt                # (C,)
    m_t = sums / cnt_tile
    var = (jnp.sum(css, axis=(0, 1))
           + cnt_tile * jnp.sum((m_t - mean) ** 2, axis=(0, 1))) / cnt
    var = jnp.maximum(var, 0.0)                            # biased variance
    inv = jax.lax.rsqrt(var + EPS)
    g = gamma.reshape(-1).astype(jnp.float32)
    b = beta.reshape(-1).astype(jnp.float32)
    scale = (g * inv).reshape(1, C)
    shift = (b - mean * g * inv).reshape(1, C)
    return scale, shift


def _finalize_pass(y2, x, scale2, shift2, th):
    N, H, W, C = x.shape
    n_ht = H // th
    WC = W * C
    y2f = y2.reshape(N, H, WC)          # free reshapes (same HBM bytes)
    xf = x.reshape(N, H, WC)
    scale_wc = jnp.tile(scale2, (1, W))  # per-channel pattern repeated across W
    shift_wc = jnp.tile(shift2, (1, W))

    est = 2 * 3 * 4 * th * _round_up(WC, 128) + (1 << 20)
    flops = 3 * N * H * WC
    bytes_accessed = int(y2f.size * 4 + xf.size * 4 + N * H * WC * 4 + 2 * WC * 4)

    out = pl.pallas_call(
        _bn_residual_kernel,
        grid=(N, n_ht),
        out_shape=jax.ShapeDtypeStruct((N, H, WC), jnp.float32),
        in_specs=[
            pl.BlockSpec((1, th, WC), lambda n, t: (n, t, 0)),
            pl.BlockSpec((1, th, WC), lambda n, t: (n, t, 0)),
            pl.BlockSpec((1, WC), lambda n, t: (0, 0)),
            pl.BlockSpec((1, WC), lambda n, t: (0, 0)),
        ],
        out_specs=pl.BlockSpec((1, th, WC), lambda n, t: (n, t, 0)),
        compiler_params=pltpu.CompilerParams(
            dimension_semantics=("parallel", "parallel"),
            vmem_limit_bytes=_vmem_limit(est)),
        cost_estimate=pl.CostEstimate(flops=flops, transcendentals=0,
                                      bytes_accessed=bytes_accessed),
    )(y2f, xf, scale_wc, shift_wc)
    return out.reshape(N, H, W, C)


def _residual_block_nhwc(x_nhwc, params, tile_h=None):
    N, H, W, C = x_nhwc.shape
    x = x_nhwc.astype(jnp.float32)

    th = tile_h if tile_h is not None else _pick_tile_h(H, W, C)
    assert H % th == 0 and (th % 8 == 0 or th == H), "invalid row tile"

    # PyTorch conv weight (Cout, Cin, 3, 3) -> tap-major (9, Cin, Cout), bf16 for MXU.
    def prep_w(w):
        return jnp.transpose(w, (2, 3, 1, 0)).reshape(9, C, C).astype(jnp.bfloat16)

    w1 = prep_w(params["w1"])
    w2 = prep_w(params["w2"])
    ones_c = jnp.ones((1, C), jnp.float32)
    zeros_c = jnp.zeros((1, C), jnp.float32)
    a = params["alpha"].astype(jnp.float32).reshape(1, -1)
    alpha_c = jnp.broadcast_to(a, (1, C)) if a.shape[1] == 1 else a

    # ---- pass 1: conv1 + BN1 partial stats (identity pre-activation) --------
    top_x, bot_x = _make_halos(x, th)
    y1, st1 = _conv_pass(x, top_x, bot_x, w1, ones_c, zeros_c, ones_c,
                         jnp.bfloat16, th)
    scale1, shift1 = _bn_affine_from_stats(st1, params["gamma1"],
                                           params["beta1"], th, W)

    # ---- pass 2: BN1 + PReLU + conv2 + BN2 partial stats ---------------------
    top_y, bot_y = _make_halos(y1, th)
    y2, st2 = _conv_pass(y1, top_y, bot_y, w2, scale1, shift1, alpha_c,
                         jnp.float32, th)
    scale2, shift2 = _bn_affine_from_stats(st2, params["gamma2"],
                                           params["beta2"], th, W)

    # ---- pass 3: BN2 + residual add (lane-dense elementwise) -----------------
    return _finalize_pass(y2, x, scale2, shift2, th)


@functools.partial(jax.jit, static_argnames=("tile_h",))
def residual_block(x_nchw, params, tile_h=None):
    """PyTorch-layout adapter: (N, C, H, W) -> (N, C, H, W).

    The kernels are NHWC-native; in a full NHWC model these two boundary
    transposes disappear.
    """
    # TODO(synk): BatchNorm running-stats update (training side effect) is not modeled.
    x = jnp.transpose(x_nchw, (0, 2, 3, 1))
    out = _residual_block_nhwc(x, params, tile_h)
    return jnp.transpose(out, (0, 3, 1, 2))


# --------------------------------------------------------------------------- #
# reference (pure JAX, f32) for a sanity check
# --------------------------------------------------------------------------- #
def _reference(x_nchw, params):
    def conv(v, w):
        return jax.lax.conv_general_dilated(
            v, w, window_strides=(1, 1), padding=((1, 1), (1, 1)),
            dimension_numbers=("NCHW", "OIHW", "NCHW"),
            precision=jax.lax.Precision.HIGHEST)

    def bn(v, g, b):
        mean = jnp.mean(v, axis=(0, 2, 3), keepdims=True)
        var = jnp.mean((v - mean) ** 2, axis=(0, 2, 3), keepdims=True)
        return ((v - mean) * jax.lax.rsqrt(var + EPS) * g.reshape(1, -1, 1, 1)
                + b.reshape(1, -1, 1, 1))

    h = bn(conv(x_nchw, params["w1"]), params["gamma1"], params["beta1"])
    h = jnp.where(h >= 0, h, params["alpha"][0] * h)
    h = bn(conv(h, params["w2"]), params["gamma2"], params["beta2"])
    return h + x_nchw


if __name__ == "__main__":
    N, C, H, W = 2, 4, 16, 16
    key = jax.random.PRNGKey(0)
    kx, kw1, kw2 = jax.random.split(key, 3)

    x = jax.random.normal(kx, (N, C, H, W), dtype=jnp.float32)

    # Deterministic parameter init mimicking PyTorch defaults:
    #   Conv2d: U(-1/sqrt(fan_in), 1/sqrt(fan_in)), no bias
    #   BatchNorm2d: gamma=1, beta=0; PReLU: alpha=0.25 (single parameter)
    fan_in = C * 3 * 3
    bound = 1.0 / (fan_in ** 0.5)
    params = {
        "w1": jax.random.uniform(kw1, (C, C, 3, 3), jnp.float32, -bound, bound),
        "w2": jax.random.uniform(kw2, (C, C, 3, 3), jnp.float32, -bound, bound),
        "gamma1": jnp.ones((C,), jnp.float32),
        "beta1": jnp.zeros((C,), jnp.float32),
        "gamma2": jnp.ones((C,), jnp.float32),
        "beta2": jnp.zeros((C,), jnp.float32),
        "alpha": jnp.array([0.25], jnp.float32),
    }

    # tile_h=8 -> two row-tiles per image: exercises the halo / boundary path.
    out = residual_block(x, params, tile_h=8)
    jax.block_until_ready(out)
    assert out.shape == (N, C, H, W) and out.dtype == jnp.float32

    ref = _reference(x, params)
    err = float(jnp.max(jnp.abs(out - ref)))
    # bf16 MXU operands + bf16 intermediate activation -> generous numeric budget.
    assert err < 0.2, f"max abs error {err}"
    print("KERNEL_OK")
</pallas_src>

<mosaic_0001>
module attributes {stable_mosaic.version = 11 : i64} {
  func.func @_conv_tile_kernel(%arg0: i32, %arg1: i32, %arg2: memref<1x8x16x4xf32, #tpu.memory_space<vmem>>, %arg3: memref<1x1x16x4xf32, #tpu.memory_space<vmem>>, %arg4: memref<1x1x16x4xf32, #tpu.memory_space<vmem>>, %arg5: memref<9x4x4xbf16, #tpu.memory_space<vmem>>, %arg6: memref<1x4xf32, #tpu.memory_space<vmem>>, %arg7: memref<1x4xf32, #tpu.memory_space<vmem>>, %arg8: memref<1x4xf32, #tpu.memory_space<vmem>>, %arg9: memref<1x8x16x4xbf16, #tpu.memory_space<vmem>>, %arg10: memref<1x1x2x4xf32, #tpu.memory_space<vmem>>, %arg11: memref<10x32x4xbf16, #tpu.memory_space<vmem>>) attributes {dimension_semantics = [#tpu.dimension_semantics<parallel>, #tpu.dimension_semantics<parallel>], iteration_bounds = array<i64: 2, 2>, scalar_prefetch = 0 : i64, scratch_operands = 1 : i64, tpu.core_type = #tpu.core_type<tc>, window_params = [{transform_indices = @transform_0, window_bounds = array<i64: 1, 8, 16, 4>}, {transform_indices = @transform_1, window_bounds = array<i64: 1, 1, 16, 4>}, {transform_indices = @transform_2, window_bounds = array<i64: 1, 1, 16, 4>}, {pipeline_mode = #tpu.pipeline_mode<synchronous>, transform_indices = @transform_3, window_bounds = array<i64: 9, 4, 4>}, {pipeline_mode = #tpu.pipeline_mode<synchronous>, transform_indices = @transform_4, window_bounds = array<i64: 1, 4>}, {pipeline_mode = #tpu.pipeline_mode<synchronous>, transform_indices = @transform_5, window_bounds = array<i64: 1, 4>}, {pipeline_mode = #tpu.pipeline_mode<synchronous>, transform_indices = @transform_6, window_bounds = array<i64: 1, 4>}, {transform_indices = @transform_7, window_bounds = array<i64: 1, 8, 16, 4>}, {transform_indices = @transform_8, window_bounds = array<i64: 1, 1, 2, 4>}]} {
    %c0 = arith.constant 0 : index
    %c0_0 = arith.constant 0 : index
    %0 = vector.load %arg6[%c0, %c0_0] : memref<1x4xf32, #tpu.memory_space<vmem>>, vector<1x4xf32>
    %c0_1 = arith.constant 0 : index
    %c0_2 = arith.constant 0 : index
    %1 = vector.load %arg7[%c0_1, %c0_2] : memref<1x4xf32, #tpu.memory_space<vmem>>, vector<1x4xf32>
    %c0_3 = arith.constant 0 : index
    %c0_4 = arith.constant 0 : index
    %2 = vector.load %arg8[%c0_3, %c0_4] : memref<1x4xf32, #tpu.memory_space<vmem>>, vector<1x4xf32>
    %cst = arith.constant 0.000000e+00 : bf16
    %3 = vector.broadcast %cst : bf16 to vector<10x8x4xbf16>
    %c0_5 = arith.constant 0 : index
    %c0_6 = arith.constant 0 : index
    %c0_7 = arith.constant 0 : index
    %4 = vector.load %arg11[%c0_5, %c0_6, %c0_7] : memref<10x32x4xbf16, #tpu.memory_space<vmem>>, vector<10x8x4xbf16>
    tpu.vector_store %arg11[%c0_5, %c0_6, %c0_7], %3 {strides = array<i32>} : memref<10x32x4xbf16, #tpu.memory_space<vmem>>, vector<10x8x4xbf16>,
    %cst_8 = arith.constant 0.000000e+00 : bf16
    %5 = vector.broadcast %cst_8 : bf16 to vector<10x8x4xbf16>
    %c0_9 = arith.constant 0 : index
    %c24 = arith.constant 24 : index
    %c0_10 = arith.constant 0 : index
    %6 = vector.load %arg11[%c0_9, %c24, %c0_10] : memref<10x32x4xbf16, #tpu.memory_space<vmem>>, vector<10x8x4xbf16>
    tpu.vector_store %arg11[%c0_9, %c24, %c0_10], %5 {strides = array<i32>} : memref<10x32x4xbf16, #tpu.memory_space<vmem>>, vector<10x8x4xbf16>,
    %c0_11 = arith.constant 0 : index
    %c0_12 = arith.constant 0 : index
    %c0_13 = arith.constant 0 : index
    %c0_14 = arith.constant 0 : index
    %7 = vector.load %arg2[%c0_11, %c0_12, %c0_13, %c0_14] : memref<1x8x16x4xf32, #tpu.memory_space<vmem>>, vector<1x8x16x4xf32>
    %8 = vector.shape_cast %7 : vector<1x8x16x4xf32> to vector<8x16x4xf32>
    %9 = vector.shape_cast %0 : vector<1x4xf32> to vector<1x1x4xf32>
    %10 = vector.broadcast %9 : vector<1x1x4xf32> to vector<8x16x4xf32>
    %11 = arith.mulf %8, %10 : vector<8x16x4xf32>
    %12 = vector.shape_cast %1 : vector<1x4xf32> to vector<1x1x4xf32>
    %13 = vector.broadcast %12 : vector<1x1x4xf32> to vector<8x16x4xf32>
    %14 = arith.addf %11, %13 : vector<8x16x4xf32>
    %cst_15 = arith.constant 0.000000e+00 : f32
    %15 = vector.broadcast %cst_15 : f32 to vector<8x16x4xf32>
    %16 = arith.cmpf oge, %14, %15 : vector<8x16x4xf32>
    %17 = vector.shape_cast %2 : vector<1x4xf32> to vector<1x1x4xf32>
    %18 = vector.broadcast %17 : vector<1x1x4xf32> to vector<8x16x4xf32>
    %19 = arith.mulf %18, %14 : vector<8x16x4xf32>
    %20 = arith.select %16, %14, %19 : vector<8x16x4xi1>, vector<8x16x4xf32>
    %21 = arith.truncf %20 : vector<8x16x4xf32> to vector<8x16x4xbf16>
    %c1 = arith.constant 1 : index
    %c8 = arith.constant 8 : index
    %c0_16 = arith.constant 0 : index
    %22 = vector.load %arg11[%c1, %c8, %c0_16] : memref<10x32x4xbf16, #tpu.memory_space<vmem>>, vector<8x16x4xbf16>
    tpu.vector_store %arg11[%c1, %c8, %c0_16], %21 {strides = array<i32>} : memref<10x32x4xbf16, #tpu.memory_space<vmem>>, vector<8x16x4xbf16>,
    %c0_17 = arith.constant 0 : index
    %c0_18 = arith.constant 0 : index
    %c0_19 = arith.constant 0 : index
    %c0_20 = arith.constant 0 : index
    %23 = vector.load %arg3[%c0_17, %c0_18, %c0_19, %c0_20] : memref<1x1x16x4xf32, #tpu.memory_space<vmem>>, vector<1x1x16x4xf32>
    %24 = vector.shape_cast %23 : vector<1x1x16x4xf32> to vector<1x16x4xf32>
    %25 = vector.shape_cast %0 : vector<1x4xf32> to vector<1x1x4xf32>
    %26 = vector.broadcast %25 : vector<1x1x4xf32> to vector<1x16x4xf32>
    %27 = arith.mulf %24, %26 : vector<1x16x4xf32>
    %28 = vector.shape_cast %1 : vector<1x4xf32> to vector<1x1x4xf32>
    %29 = vector.broadcast %28 : vector<1x1x4xf32> to vector<1x16x4xf32>
    %30 = arith.addf %27, %29 : vector<1x16x4xf32>
    %cst_21 = arith.constant 0.000000e+00 : f32
    %31 = vector.broadcast %cst_21 : f32 to vector<1x16x4xf32>
    %32 = arith.cmpf oge, %30, %31 : vector<1x16x4xf32>
    %33 = vector.shape_cast %2 : vector<1x4xf32> to vector<1x1x4xf32>
    %34 = vector.broadcast %33 : vector<1x1x4xf32> to vector<1x16x4xf32>
    %35 = arith.mulf %34, %30 : vector<1x16x4xf32>
    %36 = arith.select %32, %30, %35 : vector<1x16x4xi1>, vector<1x16x4xf32>
    %37 = arith.truncf %36 : vector<1x16x4xf32> to vector<1x16x4xbf16>
    %c0_22 = arith.constant 0 : index
    %c8_23 = arith.constant 8 : index
    %c0_24 = arith.constant 0 : index
    %38 = vector.load %arg11[%c0_22, %c8_23, %c0_24] : memref<10x32x4xbf16, #tpu.memory_space<vmem>>, vector<1x16x4xbf16>
    tpu.vector_store %arg11[%c0_22, %c8_23, %c0_24], %37 {strides = array<i32>} : memref<10x32x4xbf16, #tpu.memory_space<vmem>>, vector<1x16x4xbf16>,
    %c0_25 = arith.constant 0 : index
    %c0_26 = arith.constant 0 : index
    %c0_27 = arith.constant 0 : index
    %c0_28 = arith.constant 0 : index
    %39 = vector.load %arg4[%c0_25, %c0_26, %c0_27, %c0_28] : memref<1x1x16x4xf32, #tpu.memory_space<vmem>>, vector<1x1x16x4xf32>
    %40 = vector.shape_cast %39 : vector<1x1x16x4xf32> to vector<1x16x4xf32>
    %41 = vector.shape_cast %0 : vector<1x4xf32> to vector<1x1x4xf32>
    %42 = vector.broadcast %41 : vector<1x1x4xf32> to vector<1x16x4xf32>
    %43 = arith.mulf %40, %42 : vector<1x16x4xf32>
    %44 = vector.shape_cast %1 : vector<1x4xf32> to vector<1x1x4xf32>
    %45 = vector.broadcast %44 : vector<1x1x4xf32> to vector<1x16x4xf32>
    %46 = arith.addf %43, %45 : vector<1x16x4xf32>
    %cst_29 = arith.constant 0.000000e+00 : f32
    %47 = vector.broadcast %cst_29 : f32 to vector<1x16x4xf32>
    %48 = arith.cmpf oge, %46, %47 : vector<1x16x4xf32>
    %49 = vector.shape_cast %2 : vector<1x4xf32> to vector<1x1x4xf32>
    %50 = vector.broadcast %49 : vector<1x1x4xf32> to vector<1x16x4xf32>
    %51 = arith.mulf %50, %46 : vector<1x16x4xf32>
    %52 = arith.select %48, %46, %51 : vector<1x16x4xi1>, vector<1x16x4xf32>
    %53 = arith.truncf %52 : vector<1x16x4xf32> to vector<1x16x4xbf16>
    %c9 = arith.constant 9 : index
    %c8_30 = arith.constant 8 : index
    %c0_31 = arith.constant 0 : index
    %54 = vector.load %arg11[%c9, %c8_30, %c0_31] : memref<10x32x4xbf16, #tpu.memory_space<vmem>>, vector<1x16x4xbf16>
    tpu.vector_store %arg11[%c9, %c8_30, %c0_31], %53 {strides = array<i32>} : memref<10x32x4xbf16, #tpu.memory_space<vmem>>, vector<1x16x4xbf16>,
    %c0_i32 = arith.constant 0 : i32
    %55 = arith.cmpi eq, %arg1, %c0_i32 : i32
    %56 = arith.extui %55 : i1 to i32
    %c0_i32_32 = arith.constant 0 : i32
    %57 = arith.cmpi ne, %56, %c0_i32_32 : i32
    scf.if %57 {
      %cst_103 = arith.constant 0.000000e+00 : bf16
      %133 = vector.broadcast %cst_103 : bf16 to vector<1x32x4xbf16>
      %c0_104 = arith.constant 0 : index
      %c0_105 = arith.constant 0 : index
      %c0_106 = arith.constant 0 : index
      %134 = vector.load %arg11[%c0_104, %c0_105, %c0_106] : memref<10x32x4xbf16, #tpu.memory_space<vmem>>, vector<1x32x4xbf16>
      tpu.vector_store %arg11[%c0_104, %c0_105, %c0_106], %133 {strides = array<i32>} : memref<10x32x4xbf16, #tpu.memory_space<vmem>>, vector<1x32x4xbf16>,
    } else {
    }
    %c1_i32 = arith.constant 1 : i32
    %58 = arith.cmpi eq, %arg1, %c1_i32 : i32
    %59 = arith.extui %58 : i1 to i32
    %c0_i32_33 = arith.constant 0 : i32
    %60 = arith.cmpi ne, %59, %c0_i32_33 : i32
    scf.if %60 {
      %cst_103 = arith.constant 0.000000e+00 : bf16
      %133 = vector.broadcast %cst_103 : bf16 to vector<1x32x4xbf16>
      %c9_104 = arith.constant 9 : index
      %c0_105 = arith.constant 0 : index
      %c0_106 = arith.constant 0 : index
      %134 = vector.load %arg11[%c9_104, %c0_105, %c0_106] : memref<10x32x4xbf16, #tpu.memory_space<vmem>>, vector<1x32x4xbf16>
      tpu.vector_store %arg11[%c9_104, %c0_105, %c0_106], %133 {strides = array<i32>} : memref<10x32x4xbf16, #tpu.memory_space<vmem>>, vector<1x32x4xbf16>,
    } else {
    }
    %cst_34 = arith.constant 0.000000e+00 : f32
    %61 = vector.broadcast %cst_34 : f32 to vector<128x4xf32>
    %c0_35 = arith.constant 0 : index
    %c7 = arith.constant 7 : index
    %c0_36 = arith.constant 0 : index
    %62 = vector.load %arg11[%c0_35, %c7, %c0_36] : memref<10x32x4xbf16, #tpu.memory_space<vmem>>, vector<8x16x4xbf16>
    %63 = vector.shape_cast %62 : vector<8x16x4xbf16> to vector<128x4xbf16>
    %c0_37 = arith.constant 0 : index
    %c0_38 = arith.constant 0 : index
    %c0_39 = arith.constant 0 : index
    %64 = vector.load %arg5[%c0_37, %c0_38, %c0_39] : memref<9x4x4xbf16, #tpu.memory_space<vmem>>, vector<1x4x4xbf16>
    %65 = vector.shape_cast %64 : vector<1x4x4xbf16> to vector<4x4xbf16>
    %cst_40 = arith.constant dense<0.000000e+00> : vector<128x4xf32>
    %66 = tpu.matmul %63, %65, %cst_40 {dimension_numbers = #tpu.dot_dimension_numbers<[1], [0], [0], [1], [0, 0, 1, 1], [], []>} : vector<128x4xbf16>, vector<4x4xbf16>, vector<128x4xf32> -> vector<128x4xf32>
    %67 = arith.addf %61, %66 : vector<128x4xf32>
    %c0_41 = arith.constant 0 : index
    %c8_42 = arith.constant 8 : index
    %c0_43 = arith.constant 0 : index
    %68 = vector.load %arg11[%c0_41, %c8_42, %c0_43] : memref<10x32x4xbf16, #tpu.memory_space<vmem>>, vector<8x16x4xbf16>
    %69 = vector.shape_cast %68 : vector<8x16x4xbf16> to vector<128x4xbf16>
    %c1_44 = arith.constant 1 : index
    %c0_45 = arith.constant 0 : index
    %c0_46 = arith.constant 0 : index
    %70 = vector.load %arg5[%c1_44, %c0_45, %c0_46] : memref<9x4x4xbf16, #tpu.memory_space<vmem>>, vector<1x4x4xbf16>
    %71 = vector.shape_cast %70 : vector<1x4x4xbf16> to vector<4x4xbf16>
    %cst_47 = arith.constant dense<0.000000e+00> : vector<128x4xf32>
    %72 = tpu.matmul %69, %71, %cst_47 {dimension_numbers = #tpu.dot_dimension_numbers<[1], [0], [0], [1], [0, 0, 1, 1], [], []>} : vector<128x4xbf16>, vector<4x4xbf16>, vector<128x4xf32> -> vector<128x4xf32>
    %73 = arith.addf %67, %72 : vector<128x4xf32>
    %c0_48 = arith.constant 0 : index
    %c9_49 = arith.constant 9 : index
    %c0_50 = arith.constant 0 : index
    %74 = vector.load %arg11[%c0_48, %c9_49, %c0_50] : memref<10x32x4xbf16, #tpu.memory_space<vmem>>, vector<8x16x4xbf16>
    %75 = vector.shape_cast %74 : vector<8x16x4xbf16> to vector<128x4xbf16>
    %c2 = arith.constant 2 : index
    %c0_51 = arith.constant 0 : index
    %c0_52 = arith.constant 0 : index
    %76 = vector.load %arg5[%c2, %c0_51, %c0_52] : memref<9x4x4xbf16, #tpu.memory_space<vmem>>, vector<1x4x4xbf16>
    %77 = vector.shape_cast %76 : vector<1x4x4xbf16> to vector<4x4xbf16>
    %cst_53 = arith.constant dense<0.000000e+00> : vector<128x4xf32>
    %78 = tpu.matmul %75, %77, %cst_53 {dimension_numbers = #tpu.dot_dimension_numbers<[1], [0], [0], [1], [0, 0, 1, 1], [], []>} : vector<128x4xbf16>, vector<4x4xbf16>, vector<128x4xf32> -> vector<128x4xf32>
    %79 = arith.addf %73, %78 : vector<128x4xf32>
    %c1_54 = arith.constant 1 : index
    %c7_55 = arith.constant 7 : index
    %c0_56 = arith.constant 0 : index
    %80 = vector.load %arg11[%c1_54, %c7_55, %c0_56] : memref<10x32x4xbf16, #tpu.memory_space<vmem>>, vector<8x16x4xbf16>
    %81 = vector.shape_cast %80 : vector<8x16x4xbf16> to vector<128x4xbf16>
    %c3 = arith.constant 3 : index
    %c0_57 = arith.constant 0 : index
    %c0_58 = arith.constant 0 : index
    %82 = vector.load %arg5[%c3, %c0_57, %c0_58] : memref<9x4x4xbf16, #tpu.memory_space<vmem>>, vector<1x4x4xbf16>
    %83 = vector.shape_cast %82 : vector<1x4x4xbf16> to vector<4x4xbf16>
    %cst_59 = arith.constant dense<0.000000e+00> : vector<128x4xf32>
    %84 = tpu.matmul %81, %83, %cst_59 {dimension_numbers = #tpu.dot_dimension_numbers<[1], [0], [0], [1], [0, 0, 1, 1], [], []>} : vector<128x4xbf16>, vector<4x4xbf16>, vector<128x4xf32> -> vector<128x4xf32>
    %85 = arith.addf %79, %84 : vector<128x4xf32>
    %c1_60 = arith.constant 1 : index
    %c8_61 = arith.constant 8 : index
    %c0_62 = arith.constant 0 : index
    %86 = vector.load %arg11[%c1_60, %c8_61, %c0_62] : memref<10x32x4xbf16, #tpu.memory_space<vmem>>, vector<8x16x4xbf16>
    %87 = vector.shape_cast %86 : vector<8x16x4xbf16> to vector<128x4xbf16>
    %c4 = arith.constant 4 : index
    %c0_63 = arith.constant 0 : index
    %c0_64 = arith.constant 0 : index
    %88 = vector.load %arg5[%c4, %c0_63, %c0_64] : memref<9x4x4xbf16, #tpu.memory_space<vmem>>, vector<1x4x4xbf16>
    %89 = vector.shape_cast %88 : vector<1x4x4xbf16> to vector<4x4xbf16>
    %cst_65 = arith.constant dense<0.000000e+00> : vector<128x4xf32>
    %90 = tpu.matmul %87, %89, %cst_65 {dimension_numbers = #tpu.dot_dimension_numbers<[1], [0], [0], [1], [0, 0, 1, 1], [], []>} : vector<128x4xbf16>, vector<4x4xbf16>, vector<128x4xf32> -> vector<128x4xf32>
    %91 = arith.addf %85, %90 : vector<128x4xf32>
    %c1_66 = arith.constant 1 : index
    %c9_67 = arith.constant 9 : index
    %c0_68 = arith.constant 0 : index
    %92 = vector.load %arg11[%c1_66, %c9_67, %c0_68] : memref<10x32x4xbf16, #tpu.memory_space<vmem>>, vector<8x16x4xbf16>
    %93 = vector.shape_cast %92 : vector<8x16x4xbf16> to vector<128x4xbf16>
    %c5 = arith.constant 5 : index
    %c0_69 = arith.constant 0 : index
    %c0_70 = arith.constant 0 : index
    %94 = vector.load %arg5[%c5, %c0_69, %c0_70] : memref<9x4x4xbf16, #tpu.memory_space<vmem>>, vector<1x4x4xbf16>
    %95 = vector.shape_cast %94 : vector<1x4x4xbf16> to vector<4x4xbf16>
    %cst_71 = arith.constant dense<0.000000e+00> : vector<128x4xf32>
    %96 = tpu.matmul %93, %95, %cst_71 {dimension_numbers = #tpu.dot_dimension_numbers<[1], [0], [0], [1], [0, 0, 1, 1], [], []>} : vector<128x4xbf16>, vector<4x4xbf16>, vector<128x4xf32> -> vector<128x4xf32>
    %97 = arith.addf %91, %96 : vector<128x4xf32>
    %c2_72 = arith.constant 2 : index
    %c7_73 = arith.constant 7 : index
    %c0_74 = arith.constant 0 : index
    %98 = vector.load %arg11[%c2_72, %c7_73, %c0_74] : memref<10x32x4xbf16, #tpu.memory_space<vmem>>, vector<8x16x4xbf16>
    %99 = vector.shape_cast %98 : vector<8x16x4xbf16> to vector<128x4xbf16>
    %c6 = arith.constant 6 : index
    %c0_75 = arith.constant 0 : index
    %c0_76 = arith.constant 0 : index
    %100 = vector.load %arg5[%c6, %c0_75, %c0_76] : memref<9x4x4xbf16, #tpu.memory_space<vmem>>, vector<1x4x4xbf16>
    %101 = vector.shape_cast %100 : vector<1x4x4xbf16> to vector<4x4xbf16>
    %cst_77 = arith.constant dense<0.000000e+00> : vector<128x4xf32>
    %102 = tpu.matmul %99, %101, %cst_77 {dimension_numbers = #tpu.dot_dimension_numbers<[1], [0], [0], [1], [0, 0, 1, 1], [], []>} : vector<128x4xbf16>, vector<4x4xbf16>, vector<128x4xf32> -> vector<128x4xf32>
    %103 = arith.addf %97, %102 : vector<128x4xf32>
    %c2_78 = arith.constant 2 : index
    %c8_79 = arith.constant 8 : index
    %c0_80 = arith.constant 0 : index
    %104 = vector.load %arg11[%c2_78, %c8_79, %c0_80] : memref<10x32x4xbf16, #tpu.memory_space<vmem>>, vector<8x16x4xbf16>
    %105 = vector.shape_cast %104 : vector<8x16x4xbf16> to vector<128x4xbf16>
    %c7_81 = arith.constant 7 : index
    %c0_82 = arith.constant 0 : index
    %c0_83 = arith.constant 0 : index
    %106 = vector.load %arg5[%c7_81, %c0_82, %c0_83] : memref<9x4x4xbf16, #tpu.memory_space<vmem>>, vector<1x4x4xbf16>
    %107 = vector.shape_cast %106 : vector<1x4x4xbf16> to vector<4x4xbf16>
    %cst_84 = arith.constant dense<0.000000e+00> : vector<128x4xf32>
    %108 = tpu.matmul %105, %107, %cst_84 {dimension_numbers = #tpu.dot_dimension_numbers<[1], [0], [0], [1], [0, 0, 1, 1], [], []>} : vector<128x4xbf16>, vector<4x4xbf16>, vector<128x4xf32> -> vector<128x4xf32>
    %109 = arith.addf %103, %108 : vector<128x4xf32>
    %c2_85 = arith.constant 2 : index
    %c9_86 = arith.constant 9 : index
    %c0_87 = arith.constant 0 : index
    %110 = vector.load %arg11[%c2_85, %c9_86, %c0_87] : memref<10x32x4xbf16, #tpu.memory_space<vmem>>, vector<8x16x4xbf16>
    %111 = vector.shape_cast %110 : vector<8x16x4xbf16> to vector<128x4xbf16>
    %c8_88 = arith.constant 8 : index
    %c0_89 = arith.constant 0 : index
    %c0_90 = arith.constant 0 : index
    %112 = vector.load %arg5[%c8_88, %c0_89, %c0_90] : memref<9x4x4xbf16, #tpu.memory_space<vmem>>, vector<1x4x4xbf16>
    %113 = vector.shape_cast %112 : vector<1x4x4xbf16> to vector<4x4xbf16>
    %cst_91 = arith.constant dense<0.000000e+00> : vector<128x4xf32>
    %114 = tpu.matmul %111, %113, %cst_91 {dimension_numbers = #tpu.dot_dimension_numbers<[1], [0], [0], [1], [0, 0, 1, 1], [], []>} : vector<128x4xbf16>, vector<4x4xbf16>, vector<128x4xf32> -> vector<128x4xf32>
    %115 = arith.addf %109, %114 : vector<128x4xf32>
    %cst_92 = arith.constant dense<0.000000e+00> : vector<4xf32>
    %116 = vector.multi_reduction <add>, %115, %cst_92 [0] : vector<128x4xf32> to vector<4xf32>
    %117 = vector.shape_cast %116 : vector<4xf32> to vector<1x4xf32>
    %cst_93 = arith.constant 7.812500e-03 : f32
    %118 = vector.broadcast %cst_93 : f32 to vector<1x4xf32>
    %119 = arith.mulf %117, %118 : vector<1x4xf32>
    %120 = vector.broadcast %119 : vector<1x4xf32> to vector<128x4xf32>
    %121 = arith.subf %115, %120 : vector<128x4xf32>
    %122 = arith.mulf %121, %121 : vector<128x4xf32>
    %cst_94 = arith.constant dense<0.000000e+00> : vector<4xf32>
    %123 = vector.multi_reduction <add>, %122, %cst_94 [0] : vector<128x4xf32> to vector<4xf32>
    %124 = vector.shape_cast %123 : vector<4xf32> to vector<1x4xf32>
    %125 = tpu.concatenate %117, %124 in 0 : vector<1x4xf32>, vector<1x4xf32> -> vector<2x4xf32>
    %126 = vector.shape_cast %125 : vector<2x4xf32> to vector<1x1x2x4xf32>
    %c0_95 = arith.constant 0 : index
    %c0_96 = arith.constant 0 : index
    %c0_97 = arith.constant 0 : index
    %c0_98 = arith.constant 0 : index
    %127 = vector.load %arg10[%c0_95, %c0_96, %c0_97, %c0_98] : memref<1x1x2x4xf32, #tpu.memory_space<vmem>>, vector<1x1x2x4xf32>
    tpu.vector_store %arg10[%c0_95, %c0_96, %c0_97, %c0_98], %126 {strides = array<i32>} : memref<1x1x2x4xf32, #tpu.memory_space<vmem>>, vector<1x1x2x4xf32>,
    %128 = vector.shape_cast %115 : vector<128x4xf32> to vector<8x16x4xf32>
    %129 = arith.truncf %128 : vector<8x16x4xf32> to vector<8x16x4xbf16>
    %c0_99 = arith.constant 0 : index
    %c0_100 = arith.constant 0 : index
    %c0_101 = arith.constant 0 : index
    %c0_102 = arith.constant 0 : index
    %130 = vector.load %arg9[%c0_99, %c0_100, %c0_101, %c0_102] : memref<1x8x16x4xbf16, #tpu.memory_space<vmem>>, vector<1x8x16x4xbf16>
    %131 = vector.shape_cast %130 : vector<1x8x16x4xbf16> to vector<8x16x4xbf16>
    %132 = vector.shape_cast %129 : vector<8x16x4xbf16> to vector<1x8x16x4xbf16>
    tpu.vector_store %arg9[%c0_99, %c0_100, %c0_101, %c0_102], %132 {strides = array<i32>} : memref<1x8x16x4xbf16, #tpu.memory_space<vmem>>, vector<1x8x16x4xbf16>,
    return
  }
  func.func @transform_0(%arg0: i32, %arg1: i32) -> (i32, i32, i32, i32) {
    %c0_i32 = arith.constant 0 : i32
    %c0_i32_0 = arith.constant 0 : i32
    %c0_i32_1 = arith.constant 0 : i32
    return %arg0, %arg1, %c0_i32, %c0_i32_0 : i32, i32, i32, i32
  }
  func.func @transform_1(%arg0: i32, %arg1: i32) -> (i32, i32, i32, i32) {
    %c0_i32 = arith.constant 0 : i32
    %c0_i32_0 = arith.constant 0 : i32
    %c0_i32_1 = arith.constant 0 : i32
    return %arg0, %arg1, %c0_i32, %c0_i32_0 : i32, i32, i32, i32
  }
  func.func @transform_2(%arg0: i32, %arg1: i32) -> (i32, i32, i32, i32) {
    %c0_i32 = arith.constant 0 : i32
    %c0_i32_0 = arith.constant 0 : i32
    %c0_i32_1 = arith.constant 0 : i32
    return %arg0, %arg1, %c0_i32, %c0_i32_0 : i32, i32, i32, i32
  }
  func.func @transform_3(%arg0: i32, %arg1: i32) -> (i32, i32, i32) {
    %c0_i32 = arith.constant 0 : i32
    %c0_i32_0 = arith.constant 0 : i32
    %c0_i32_1 = arith.constant 0 : i32
    %c0_i32_2 = arith.constant 0 : i32
    return %c0_i32, %c0_i32_0, %c0_i32_1 : i32, i32, i32
  }
  func.func @transform_4(%arg0: i32, %arg1: i32) -> (i32, i32) {
    %c0_i32 = arith.constant 0 : i32
    %c0_i32_0 = arith.constant 0 : i32
    %c0_i32_1 = arith.constant 0 : i32
    return %c0_i32, %c0_i32_0 : i32, i32
  }
  func.func @transform_5(%arg0: i32, %arg1: i32) -> (i32, i32) {
    %c0_i32 = arith.constant 0 : i32
    %c0_i32_0 = arith.constant 0 : i32
    %c0_i32_1 = arith.constant 0 : i32
    return %c0_i32, %c0_i32_0 : i32, i32
  }
  func.func @transform_6(%arg0: i32, %arg1: i32) -> (i32, i32) {
    %c0_i32 = arith.constant 0 : i32
    %c0_i32_0 = arith.constant 0 : i32
    %c0_i32_1 = arith.constant 0 : i32
    return %c0_i32, %c0_i32_0 : i32, i32
  }
  func.func @transform_7(%arg0: i32, %arg1: i32) -> (i32, i32, i32, i32) {
    %c0_i32 = arith.constant 0 : i32
    %c0_i32_0 = arith.constant 0 : i32
    %c0_i32_1 = arith.constant 0 : i32
    return %arg0, %arg1, %c0_i32, %c0_i32_0 : i32, i32, i32, i32
  }
  func.func @transform_8(%arg0: i32, %arg1: i32) -> (i32, i32, i32, i32) {
    %c0_i32 = arith.constant 0 : i32
    %c0_i32_0 = arith.constant 0 : i32
    %c0_i32_1 = arith.constant 0 : i32
    return %arg0, %arg1, %c0_i32, %c0_i32_0 : i32, i32, i32, i32
  }
}

module attributes {stable_mosaic.version = 11 : i64} {
  func.func @_conv_tile_kernel(%arg0: i32, %arg1: i32, %arg2: memref<1x8x16x4xbf16, #tpu.memory_space<vmem>>, %arg3: memref<1x1x16x4xbf16, #tpu.memory_space<vmem>>, %arg4: memref<1x1x16x4xbf16, #tpu.memory_space<vmem>>, %arg5: memref<9x4x4xbf16, #tpu.memory_space<vmem>>, %arg6: memref<1x4xf32, #tpu.memory_space<vmem>>, %arg7: memref<1x4xf32, #tpu.memory_space<vmem>>, %arg8: memref<1x4xf32, #tpu.memory_space<vmem>>, %arg9: memref<1x8x16x4xf32, #tpu.memory_space<vmem>>, %arg10: memref<1x1x2x4xf32, #tpu.memory_space<vmem>>, %arg11: memref<10x32x4xbf16, #tpu.memory_space<vmem>>) attributes {dimension_semantics = [#tpu.dimension_semantics<parallel>, #tpu.dimension_semantics<parallel>], iteration_bounds = array<i64: 2, 2>, scalar_prefetch = 0 : i64, scratch_operands = 1 : i64, tpu.core_type = #tpu.core_type<tc>, window_params = [{transform_indices = @transform_0, window_bounds = array<i64: 1, 8, 16, 4>}, {transform_indices = @transform_1, window_bounds = array<i64: 1, 1, 16, 4>}, {transform_indices = @transform_2, window_bounds = array<i64: 1, 1, 16, 4>}, {pipeline_mode = #tpu.pipeline_mode<synchronous>, transform_indices = @transform_3, window_bounds = array<i64: 9, 4, 4>}, {pipeline_mode = #tpu.pipeline_mode<synchronous>, transform_indices = @transform_4, window_bounds = array<i64: 1, 4>}, {pipeline_mode = #tpu.pipeline_mode<synchronous>, transform_indices = @transform_5, window_bounds = array<i64: 1, 4>}, {pipeline_mode = #tpu.pipeline_mode<synchronous>, transform_indices = @transform_6, window_bounds = array<i64: 1, 4>}, {transform_indices = @transform_7, window_bounds = array<i64: 1, 8, 16, 4>}, {transform_indices = @transform_8, window_bounds = array<i64: 1, 1, 2, 4>}]} {
    %c0 = arith.constant 0 : index
    %c0_0 = arith.constant 0 : index
    %0 = vector.load %arg6[%c0, %c0_0] : memref<1x4xf32, #tpu.memory_space<vmem>>, vector<1x4xf32>
    %c0_1 = arith.constant 0 : index
    %c0_2 = arith.constant 0 : index
    %1 = vector.load %arg7[%c0_1, %c0_2] : memref<1x4xf32, #tpu.memory_space<vmem>>, vector<1x4xf32>
    %c0_3 = arith.constant 0 : index
    %c0_4 = arith.constant 0 : index
    %2 = vector.load %arg8[%c0_3, %c0_4] : memref<1x4xf32, #tpu.memory_space<vmem>>, vector<1x4xf32>
    %cst = arith.constant 0.000000e+00 : bf16
    %3 = vector.broadcast %cst : bf16 to vector<10x8x4xbf16>
    %c0_5 = arith.constant 0 : index
    %c0_6 = arith.constant 0 : index
    %c0_7 = arith.constant 0 : index
    %4 = vector.load %arg11[%c0_5, %c0_6, %c0_7] : memref<10x32x4xbf16, #tpu.memory_space<vmem>>, vector<10x8x4xbf16>
    tpu.vector_store %arg11[%c0_5, %c0_6, %c0_7], %3 {strides = array<i32>} : memref<10x32x4xbf16, #tpu.memory_space<vmem>>, vector<10x8x4xbf16>,
    %cst_8 = arith.constant 0.000000e+00 : bf16
    %5 = vector.broadcast %cst_8 : bf16 to vector<10x8x4xbf16>
    %c0_9 = arith.constant 0 : index
    %c24 = arith.constant 24 : index
    %c0_10 = arith.constant 0 : index
    %6 = vector.load %arg11[%c0_9, %c24, %c0_10] : memref<10x32x4xbf16, #tpu.memory_space<vmem>>, vector<10x8x4xbf16>
    tpu.vector_store %arg11[%c0_9, %c24, %c0_10], %5 {strides = array<i32>} : memref<10x32x4xbf16, #tpu.memory_space<vmem>>, vector<10x8x4xbf16>,
    %c0_11 = arith.constant 0 : index
    %c0_12 = arith.constant 0 : index
    %c0_13 = arith.constant 0 : index
    %c0_14 = arith.constant 0 : index
    %7 = vector.load %arg2[%c0_11, %c0_12, %c0_13, %c0_14] : memref<1x8x16x4xbf16, #tpu.memory_space<vmem>>, vector<1x8x16x4xbf16>
    %8 = vector.shape_cast %7 : vector<1x8x16x4xbf16> to vector<8x16x4xbf16>
    %9 = arith.extf %8 : vector<8x16x4xbf16> to vector<8x16x4xf32>
    %10 = vector.shape_cast %0 : vector<1x4xf32> to vector<1x1x4xf32>
    %11 = vector.broadcast %10 : vector<1x1x4xf32> to vector<8x16x4xf32>
    %12 = arith.mulf %9, %11 : vector<8x16x4xf32>
    %13 = vector.shape_cast %1 : vector<1x4xf32> to vector<1x1x4xf32>
    %14 = vector.broadcast %13 : vector<1x1x4xf32> to vector<8x16x4xf32>
    %15 = arith.addf %12, %14 : vector<8x16x4xf32>
    %cst_15 = arith.constant 0.000000e+00 : f32
    %16 = vector.broadcast %cst_15 : f32 to vector<8x16x4xf32>
    %17 = arith.cmpf oge, %15, %16 : vector<8x16x4xf32>
    %18 = vector.shape_cast %2 : vector<1x4xf32> to vector<1x1x4xf32>
    %19 = vector.broadcast %18 : vector<1x1x4xf32> to vector<8x16x4xf32>
    %20 = arith.mulf %19, %15 : vector<8x16x4xf32>
    %21 = arith.select %17, %15, %20 : vector<8x16x4xi1>, vector<8x16x4xf32>
    %22 = arith.truncf %21 : vector<8x16x4xf32> to vector<8x16x4xbf16>
    %c1 = arith.constant 1 : index
    %c8 = arith.constant 8 : index
    %c0_16 = arith.constant 0 : index
    %23 = vector.load %arg11[%c1, %c8, %c0_16] : memref<10x32x4xbf16, #tpu.memory_space<vmem>>, vector<8x16x4xbf16>
    tpu.vector_store %arg11[%c1, %c8, %c0_16], %22 {strides = array<i32>} : memref<10x32x4xbf16, #tpu.memory_space<vmem>>, vector<8x16x4xbf16>,
    %c0_17 = arith.constant 0 : index
    %c0_18 = arith.constant 0 : index
    %c0_19 = arith.constant 0 : index
    %c0_20 = arith.constant 0 : index
    %24 = vector.load %arg3[%c0_17, %c0_18, %c0_19, %c0_20] : memref<1x1x16x4xbf16, #tpu.memory_space<vmem>>, vector<1x1x16x4xbf16>
    %25 = vector.shape_cast %24 : vector<1x1x16x4xbf16> to vector<1x16x4xbf16>
    %26 = arith.extf %25 : vector<1x16x4xbf16> to vector<1x16x4xf32>
    %27 = vector.shape_cast %0 : vector<1x4xf32> to vector<1x1x4xf32>
    %28 = vector.broadcast %27 : vector<1x1x4xf32> to vector<1x16x4xf32>
    %29 = arith.mulf %26, %28 : vector<1x16x4xf32>
    %30 = vector.shape_cast %1 : vector<1x4xf32> to vector<1x1x4xf32>
    %31 = vector.broadcast %30 : vector<1x1x4xf32> to vector<1x16x4xf32>
    %32 = arith.addf %29, %31 : vector<1x16x4xf32>
    %cst_21 = arith.constant 0.000000e+00 : f32
    %33 = vector.broadcast %cst_21 : f32 to vector<1x16x4xf32>
    %34 = arith.cmpf oge, %32, %33 : vector<1x16x4xf32>
    %35 = vector.shape_cast %2 : vector<1x4xf32> to vector<1x1x4xf32>
    %36 = vector.broadcast %35 : vector<1x1x4xf32> to vector<1x16x4xf32>
    %37 = arith.mulf %36, %32 : vector<1x16x4xf32>
    %38 = arith.select %34, %32, %37 : vector<1x16x4xi1>, vector<1x16x4xf32>
    %39 = arith.truncf %38 : vector<1x16x4xf32> to vector<1x16x4xbf16>
    %c0_22 = arith.constant 0 : index
    %c8_23 = arith.constant 8 : index
    %c0_24 = arith.constant 0 : index
    %40 = vector.load %arg11[%c0_22, %c8_23, %c0_24] : memref<10x32x4xbf16, #tpu.memory_space<vmem>>, vector<1x16x4xbf16>
    tpu.vector_store %arg11[%c0_22, %c8_23, %c0_24], %39 {strides = array<i32>} : memref<10x32x4xbf16, #tpu.memory_space<vmem>>, vector<1x16x4xbf16>,
    %c0_25 = arith.constant 0 : index
    %c0_26 = arith.constant 0 : index
    %c0_27 = arith.constant 0 : index
    %c0_28 = arith.constant 0 : index
    %41 = vector.load %arg4[%c0_25, %c0_26, %c0_27, %c0_28] : memref<1x1x16x4xbf16, #tpu.memory_space<vmem>>, vector<1x1x16x4xbf16>
    %42 = vector.shape_cast %41 : vector<1x1x16x4xbf16> to vector<1x16x4xbf16>
    %43 = arith.extf %42 : vector<1x16x4xbf16> to vector<1x16x4xf32>
    %44 = vector.shape_cast %0 : vector<1x4xf32> to vector<1x1x4xf32>
    %45 = vector.broadcast %44 : vector<1x1x4xf32> to vector<1x16x4xf32>
    %46 = arith.mulf %43, %45 : vector<1x16x4xf32>
    %47 = vector.shape_cast %1 : vector<1x4xf32> to vector<1x1x4xf32>
    %48 = vector.broadcast %47 : vector<1x1x4xf32> to vector<1x16x4xf32>
    %49 = arith.addf %46, %48 : vector<1x16x4xf32>
    %cst_29 = arith.constant 0.000000e+00 : f32
    %50 = vector.broadcast %cst_29 : f32 to vector<1x16x4xf32>
    %51 = arith.cmpf oge, %49, %50 : vector<1x16x4xf32>
    %52 = vector.shape_cast %2 : vector<1x4xf32> to vector<1x1x4xf32>
    %53 = vector.broadcast %52 : vector<1x1x4xf32> to vector<1x16x4xf32>
    %54 = arith.mulf %53, %49 : vector<1x16x4xf32>
    %55 = arith.select %51, %49, %54 : vector<1x16x4xi1>, vector<1x16x4xf32>
    %56 = arith.truncf %55 : vector<1x16x4xf32> to vector<1x16x4xbf16>
    %c9 = arith.constant 9 : index
    %c8_30 = arith.constant 8 : index
    %c0_31 = arith.constant 0 : index
    %57 = vector.load %arg11[%c9, %c8_30, %c0_31] : memref<10x32x4xbf16, #tpu.memory_space<vmem>>, vector<1x16x4xbf16>
    tpu.vector_store %arg11[%c9, %c8_30, %c0_31], %56 {strides = array<i32>} : memref<10x32x4xbf16, #tpu.memory_space<vmem>>, vector<1x16x4xbf16>,
    %c0_i32 = arith.constant 0 : i32
    %58 = arith.cmpi eq, %arg1, %c0_i32 : i32
    %59 = arith.extui %58 : i1 to i32
    %c0_i32_32 = arith.constant 0 : i32
    %60 = arith.cmpi ne, %59, %c0_i32_32 : i32
    scf.if %60 {
      %cst_103 = arith.constant 0.000000e+00 : bf16
      %135 = vector.broadcast %cst_103 : bf16 to vector<1x32x4xbf16>
      %c0_104 = arith.constant 0 : index
      %c0_105 = arith.constant 0 : index
      %c0_106 = arith.constant 0 : index
      %136 = vector.load %arg11[%c0_104, %c0_105, %c0_106] : memref<10x32x4xbf16, #tpu.memory_space<vmem>>, vector<1x32x4xbf16>
      tpu.vector_store %arg11[%c0_104, %c0_105, %c0_106], %135 {strides = array<i32>} : memref<10x32x4xbf16, #tpu.memory_space<vmem>>, vector<1x32x4xbf16>,
    } else {
    }
    %c1_i32 = arith.constant 1 : i32
    %61 = arith.cmpi eq, %arg1, %c1_i32 : i32
    %62 = arith.extui %61 : i1 to i32
    %c0_i32_33 = arith.constant 0 : i32
    %63 = arith.cmpi ne, %62, %c0_i32_33 : i32
    scf.if %63 {
      %cst_103 = arith.constant 0.000000e+00 : bf16
      %135 = vector.broadcast %cst_103 : bf16 to vector<1x32x4xbf16>
      %c9_104 = arith.constant 9 : index
      %c0_105 = arith.constant 0 : index
      %c0_106 = arith.constant 0 : index
      %136 = vector.load %arg11[%c9_104, %c0_105, %c0_106] : memref<10x32x4xbf16, #tpu.memory_space<vmem>>, vector<1x32x4xbf16>
      tpu.vector_store %arg11[%c9_104, %c0_105, %c0_106], %135 {strides = array<i32>} : memref<10x32x4xbf16, #tpu.memory_space<vmem>>, vector<1x32x4xbf16>,
    } else {
    }
    %cst_34 = arith.constant 0.000000e+00 : f32
    %64 = vector.broadcast %cst_34 : f32 to vector<128x4xf32>
    %c0_35 = arith.constant 0 : index
    %c7 = arith.constant 7 : index
    %c0_36 = arith.constant 0 : index
    %65 = vector.load %arg11[%c0_35, %c7, %c0_36] : memref<10x32x4xbf16, #tpu.memory_space<vmem>>, vector<8x16x4xbf16>
    %66 = vector.shape_cast %65 : vector<8x16x4xbf16> to vector<128x4xbf16>
    %c0_37 = arith.constant 0 : index
    %c0_38 = arith.constant 0 : index
    %c0_39 = arith.constant 0 : index
    %67 = vector.load %arg5[%c0_37, %c0_38, %c0_39] : memref<9x4x4xbf16, #tpu.memory_space<vmem>>, vector<1x4x4xbf16>
    %68 = vector.shape_cast %67 : vector<1x4x4xbf16> to vector<4x4xbf16>
    %cst_40 = arith.constant dense<0.000000e+00> : vector<128x4xf32>
    %69 = tpu.matmul %66, %68, %cst_40 {dimension_numbers = #tpu.dot_dimension_numbers<[1], [0], [0], [1], [0, 0, 1, 1], [], []>} : vector<128x4xbf16>, vector<4x4xbf16>, vector<128x4xf32> -> vector<128x4xf32>
    %70 = arith.addf %64, %69 : vector<128x4xf32>
    %c0_41 = arith.constant 0 : index
    %c8_42 = arith.constant 8 : index
    %c0_43 = arith.constant 0 : index
    %71 = vector.load %arg11[%c0_41, %c8_42, %c0_43] : memref<10x32x4xbf16, #tpu.memory_space<vmem>>, vector<8x16x4xbf16>
    %72 = vector.shape_cast %71 : vector<8x16x4xbf16> to vector<128x4xbf16>
    %c1_44 = arith.constant 1 : index
    %c0_45 = arith.constant 0 : index
    %c0_46 = arith.constant 0 : index
    %73 = vector.load %arg5[%c1_44, %c0_45, %c0_46] : memref<9x4x4xbf16, #tpu.memory_space<vmem>>, vector<1x4x4xbf16>
    %74 = vector.shape_cast %73 : vector<1x4x4xbf16> to vector<4x4xbf16>
    %cst_47 = arith.constant dense<0.000000e+00> : vector<128x4xf32>
    %75 = tpu.matmul %72, %74, %cst_47 {dimension_numbers = #tpu.dot_dimension_numbers<[1], [0], [0], [1], [0, 0, 1, 1], [], []>} : vector<128x4xbf16>, vector<4x4xbf16>, vector<128x4xf32> -> vector<128x4xf32>
    %76 = arith.addf %70, %75 : vector<128x4xf32>
    %c0_48 = arith.constant 0 : index
    %c9_49 = arith.constant 9 : index
    %c0_50 = arith.constant 0 : index
    %77 = vector.load %arg11[%c0_48, %c9_49, %c0_50] : memref<10x32x4xbf16, #tpu.memory_space<vmem>>, vector<8x16x4xbf16>
    %78 = vector.shape_cast %77 : vector<8x16x4xbf16> to vector<128x4xbf16>
    %c2 = arith.constant 2 : index
    %c0_51 = arith.constant 0 : index
    %c0_52 = arith.constant 0 : index
    %79 = vector.load %arg5[%c2, %c0_51, %c0_52] : memref<9x4x4xbf16, #tpu.memory_space<vmem>>, vector<1x4x4xbf16>
    %80 = vector.shape_cast %79 : vector<1x4x4xbf16> to vector<4x4xbf16>
    %cst_53 = arith.constant dense<0.000000e+00> : vector<128x4xf32>
    %81 = tpu.matmul %78, %80, %cst_53 {dimension_numbers = #tpu.dot_dimension_numbers<[1], [0], [0], [1], [0, 0, 1, 1], [], []>} : vector<128x4xbf16>, vector<4x4xbf16>, vector<128x4xf32> -> vector<128x4xf32>
    %82 = arith.addf %76, %81 : vector<128x4xf32>
    %c1_54 = arith.constant 1 : index
    %c7_55 = arith.constant 7 : index
    %c0_56 = arith.constant 0 : index
    %83 = vector.load %arg11[%c1_54, %c7_55, %c0_56] : memref<10x32x4xbf16, #tpu.memory_space<vmem>>, vector<8x16x4xbf16>
    %84 = vector.shape_cast %83 : vector<8x16x4xbf16> to vector<128x4xbf16>
    %c3 = arith.constant 3 : index
    %c0_57 = arith.constant 0 : index
    %c0_58 = arith.constant 0 : index
    %85 = vector.load %arg5[%c3, %c0_57, %c0_58] : memref<9x4x4xbf16, #tpu.memory_space<vmem>>, vector<1x4x4xbf16>
    %86 = vector.shape_cast %85 : vector<1x4x4xbf16> to vector<4x4xbf16>
    %cst_59 = arith.constant dense<0.000000e+00> : vector<128x4xf32>
    %87 = tpu.matmul %84, %86, %cst_59 {dimension_numbers = #tpu.dot_dimension_numbers<[1], [0], [0], [1], [0, 0, 1, 1], [], []>} : vector<128x4xbf16>, vector<4x4xbf16>, vector<128x4xf32> -> vector<128x4xf32>
    %88 = arith.addf %82, %87 : vector<128x4xf32>
    %c1_60 = arith.constant 1 : index
    %c8_61 = arith.constant 8 : index
    %c0_62 = arith.constant 0 : index
    %89 = vector.load %arg11[%c1_60, %c8_61, %c0_62] : memref<10x32x4xbf16, #tpu.memory_space<vmem>>, vector<8x16x4xbf16>
    %90 = vector.shape_cast %89 : vector<8x16x4xbf16> to vector<128x4xbf16>
    %c4 = arith.constant 4 : index
    %c0_63 = arith.constant 0 : index
    %c0_64 = arith.constant 0 : index
    %91 = vector.load %arg5[%c4, %c0_63, %c0_64] : memref<9x4x4xbf16, #tpu.memory_space<vmem>>, vector<1x4x4xbf16>
    %92 = vector.shape_cast %91 : vector<1x4x4xbf16> to vector<4x4xbf16>
    %cst_65 = arith.constant dense<0.000000e+00> : vector<128x4xf32>
    %93 = tpu.matmul %90, %92, %cst_65 {dimension_numbers = #tpu.dot_dimension_numbers<[1], [0], [0], [1], [0, 0, 1, 1], [], []>} : vector<128x4xbf16>, vector<4x4xbf16>, vector<128x4xf32> -> vector<128x4xf32>
    %94 = arith.addf %88, %93 : vector<128x4xf32>
    %c1_66 = arith.constant 1 : index
    %c9_67 = arith.constant 9 : index
    %c0_68 = arith.constant 0 : index
    %95 = vector.load %arg11[%c1_66, %c9_67, %c0_68] : memref<10x32x4xbf16, #tpu.memory_space<vmem>>, vector<8x16x4xbf16>
    %96 = vector.shape_cast %95 : vector<8x16x4xbf16> to vector<128x4xbf16>
    %c5 = arith.constant 5 : index
    %c0_69 = arith.constant 0 : index
    %c0_70 = arith.constant 0 : index
    %97 = vector.load %arg5[%c5, %c0_69, %c0_70] : memref<9x4x4xbf16, #tpu.memory_space<vmem>>, vector<1x4x4xbf16>
    %98 = vector.shape_cast %97 : vector<1x4x4xbf16> to vector<4x4xbf16>
    %cst_71 = arith.constant dense<0.000000e+00> : vector<128x4xf32>
    %99 = tpu.matmul %96, %98, %cst_71 {dimension_numbers = #tpu.dot_dimension_numbers<[1], [0], [0], [1], [0, 0, 1, 1], [], []>} : vector<128x4xbf16>, vector<4x4xbf16>, vector<128x4xf32> -> vector<128x4xf32>
    %100 = arith.addf %94, %99 : vector<128x4xf32>
    %c2_72 = arith.constant 2 : index
    %c7_73 = arith.constant 7 : index
    %c0_74 = arith.constant 0 : index
    %101 = vector.load %arg11[%c2_72, %c7_73, %c0_74] : memref<10x32x4xbf16, #tpu.memory_space<vmem>>, vector<8x16x4xbf16>
    %102 = vector.shape_cast %101 : vector<8x16x4xbf16> to vector<128x4xbf16>
    %c6 = arith.constant 6 : index
    %c0_75 = arith.constant 0 : index
    %c0_76 = arith.constant 0 : index
    %103 = vector.load %arg5[%c6, %c0_75, %c0_76] : memref<9x4x4xbf16, #tpu.memory_space<vmem>>, vector<1x4x4xbf16>
    %104 = vector.shape_cast %103 : vector<1x4x4xbf16> to vector<4x4xbf16>
    %cst_77 = arith.constant dense<0.000000e+00> : vector<128x4xf32>
    %105 = tpu.matmul %102, %104, %cst_77 {dimension_numbers = #tpu.dot_dimension_numbers<[1], [0], [0], [1], [0, 0, 1, 1], [], []>} : vector<128x4xbf16>, vector<4x4xbf16>, vector<128x4xf32> -> vector<128x4xf32>
    %106 = arith.addf %100, %105 : vector<128x4xf32>
    %c2_78 = arith.constant 2 : index
    %c8_79 = arith.constant 8 : index
    %c0_80 = arith.constant 0 : index
    %107 = vector.load %arg11[%c2_78, %c8_79, %c0_80] : memref<10x32x4xbf16, #tpu.memory_space<vmem>>, vector<8x16x4xbf16>
    %108 = vector.shape_cast %107 : vector<8x16x4xbf16> to vector<128x4xbf16>
    %c7_81 = arith.constant 7 : index
    %c0_82 = arith.constant 0 : index
    %c0_83 = arith.constant 0 : index
    %109 = vector.load %arg5[%c7_81, %c0_82, %c0_83] : memref<9x4x4xbf16, #tpu.memory_space<vmem>>, vector<1x4x4xbf16>
    %110 = vector.shape_cast %109 : vector<1x4x4xbf16> to vector<4x4xbf16>
    %cst_84 = arith.constant dense<0.000000e+00> : vector<128x4xf32>
    %111 = tpu.matmul %108, %110, %cst_84 {dimension_numbers = #tpu.dot_dimension_numbers<[1], [0], [0], [1], [0, 0, 1, 1], [], []>} : vector<128x4xbf16>, vector<4x4xbf16>, vector<128x4xf32> -> vector<128x4xf32>
    %112 = arith.addf %106, %111 : vector<128x4xf32>
    %c2_85 = arith.constant 2 : index
    %c9_86 = arith.constant 9 : index
    %c0_87 = arith.constant 0 : index
    %113 = vector.load %arg11[%c2_85, %c9_86, %c0_87] : memref<10x32x4xbf16, #tpu.memory_space<vmem>>, vector<8x16x4xbf16>
    %114 = vector.shape_cast %113 : vector<8x16x4xbf16> to vector<128x4xbf16>
    %c8_88 = arith.constant 8 : index
    %c0_89 = arith.constant 0 : index
    %c0_90 = arith.constant 0 : index
    %115 = vector.load %arg5[%c8_88, %c0_89, %c0_90] : memref<9x4x4xbf16, #tpu.memory_space<vmem>>, vector<1x4x4xbf16>
    %116 = vector.shape_cast %115 : vector<1x4x4xbf16> to vector<4x4xbf16>
    %cst_91 = arith.constant dense<0.000000e+00> : vector<128x4xf32>
    %117 = tpu.matmul %114, %116, %cst_91 {dimension_numbers = #tpu.dot_dimension_numbers<[1], [0], [0], [1], [0, 0, 1, 1], [], []>} : vector<128x4xbf16>, vector<4x4xbf16>, vector<128x4xf32> -> vector<128x4xf32>
    %118 = arith.addf %112, %117 : vector<128x4xf32>
    %cst_92 = arith.constant dense<0.000000e+00> : vector<4xf32>
    %119 = vector.multi_reduction <add>, %118, %cst_92 [0] : vector<128x4xf32> to vector<4xf32>
    %120 = vector.shape_cast %119 : vector<4xf32> to vector<1x4xf32>
    %cst_93 = arith.constant 7.812500e-03 : f32
    %121 = vector.broadcast %cst_93 : f32 to vector<1x4xf32>
    %122 = arith.mulf %120, %121 : vector<1x4xf32>
    %123 = vector.broadcast %122 : vector<1x4xf32> to vector<128x4xf32>
    %124 = arith.subf %118, %123 : vector<128x4xf32>
    %125 = arith.mulf %124, %124 : vector<128x4xf32>
    %cst_94 = arith.constant dense<0.000000e+00> : vector<4xf32>
    %126 = vector.multi_reduction <add>, %125, %cst_94 [0] : vector<128x4xf32> to vector<4xf32>
    %127 = vector.shape_cast %126 : vector<4xf32> to vector<1x4xf32>
    %128 = tpu.concatenate %120, %127 in 0 : vector<1x4xf32>, vector<1x4xf32> -> vector<2x4xf32>
    %129 = vector.shape_cast %128 : vector<2x4xf32> to vector<1x1x2x4xf32>
    %c0_95 = arith.constant 0 : index
    %c0_96 = arith.constant 0 : index
    %c0_97 = arith.constant 0 : index
    %c0_98 = arith.constant 0 : index
    %130 = vector.load %arg10[%c0_95, %c0_96, %c0_97, %c0_98] : memref<1x1x2x4xf32, #tpu.memory_space<vmem>>, vector<1x1x2x4xf32>
    tpu.vector_store %arg10[%c0_95, %c0_96, %c0_97, %c0_98], %129 {strides = array<i32>} : memref<1x1x2x4xf32, #tpu.memory_space<vmem>>, vector<1x1x2x4xf32>,
    %131 = vector.shape_cast %118 : vector<128x4xf32> to vector<8x16x4xf32>
    %c0_99 = arith.constant 0 : index
    %c0_100 = arith.constant 0 : index
    %c0_101 = arith.constant 0 : index
    %c0_102 = arith.constant 0 : index
    %132 = vector.load %arg9[%c0_99, %c0_100, %c0_101, %c0_102] : memref<1x8x16x4xf32, #tpu.memory_space<vmem>>, vector<1x8x16x4xf32>
    %133 = vector.shape_cast %132 : vector<1x8x16x4xf32> to vector<8x16x4xf32>
    %134 = vector.shape_cast %131 : vector<8x16x4xf32> to vector<1x8x16x4xf32>
    tpu.vector_store %arg9[%c0_99, %c0_100, %c0_101, %c0_102], %134 {strides = array<i32>} : memref<1x8x16x4xf32, #tpu.memory_space<vmem>>, vector<1x8x16x4xf32>,
    return
  }
  func.func @transform_0(%arg0: i32, %arg1: i32) -> (i32, i32, i32, i32) {
    %c0_i32 = arith.constant 0 : i32
    %c0_i32_0 = arith.constant 0 : i32
    %c0_i32_1 = arith.constant 0 : i32
    return %arg0, %arg1, %c0_i32, %c0_i32_0 : i32, i32, i32, i32
  }
  func.func @transform_1(%arg0: i32, %arg1: i32) -> (i32, i32, i32, i32) {
    %c0_i32 = arith.constant 0 : i32
    %c0_i32_0 = arith.constant 0 : i32
    %c0_i32_1 = arith.constant 0 : i32
    return %arg0, %arg1, %c0_i32, %c0_i32_0 : i32, i32, i32, i32
  }
  func.func @transform_2(%arg0: i32, %arg1: i32) -> (i32, i32, i32, i32) {
    %c0_i32 = arith.constant 0 : i32
    %c0_i32_0 = arith.constant 0 : i32
    %c0_i32_1 = arith.constant 0 : i32
    return %arg0, %arg1, %c0_i32, %c0_i32_0 : i32, i32, i32, i32
  }
  func.func @transform_3(%arg0: i32, %arg1: i32) -> (i32, i32, i32) {
    %c0_i32 = arith.constant 0 : i32
    %c0_i32_0 = arith.constant 0 : i32
    %c0_i32_1 = arith.constant 0 : i32
    %c0_i32_2 = arith.constant 0 : i32
    return %c0_i32, %c0_i32_0, %c0_i32_1 : i32, i32, i32
  }
  func.func @transform_4(%arg0: i32, %arg1: i32) -> (i32, i32) {
    %c0_i32 = arith.constant 0 : i32
    %c0_i32_0 = arith.constant 0 : i32
    %c0_i32_1 = arith.constant 0 : i32
    return %c0_i32, %c0_i32_0 : i32, i32
  }
  func.func @transform_5(%arg0: i32, %arg1: i32) -> (i32, i32) {
    %c0_i32 = arith.constant 0 : i32
    %c0_i32_0 = arith.constant 0 : i32
    %c0_i32_1 = arith.constant 0 : i32
    return %c0_i32, %c0_i32_0 : i32, i32
  }
  func.func @transform_6(%arg0: i32, %arg1: i32) -> (i32, i32) {
    %c0_i32 = arith.constant 0 : i32
    %c0_i32_0 = arith.constant 0 : i32
    %c0_i32_1 = arith.constant 0 : i32
    return %c0_i32, %c0_i32_0 : i32, i32
  }
  func.func @transform_7(%arg0: i32, %arg1: i32) -> (i32, i32, i32, i32) {
    %c0_i32 = arith.constant 0 : i32
    %c0_i32_0 = arith.constant 0 : i32
    %c0_i32_1 = arith.constant 0 : i32
    return %arg0, %arg1, %c0_i32, %c0_i32_0 : i32, i32, i32, i32
  }
  func.func @transform_8(%arg0: i32, %arg1: i32) -> (i32, i32, i32, i32) {
    %c0_i32 = arith.constant 0 : i32
    %c0_i32_0 = arith.constant 0 : i32
    %c0_i32_1 = arith.constant 0 : i32
    return %arg0, %arg1, %c0_i32, %c0_i32_0 : i32, i32, i32, i32
  }
}

module attributes {stable_mosaic.version = 11 : i64} {
  func.func @_bn_residual_kernel(%arg0: i32, %arg1: i32, %arg2: memref<1x8x64xf32, #tpu.memory_space<vmem>>, %arg3: memref<1x8x64xf32, #tpu.memory_space<vmem>>, %arg4: memref<1x64xf32, #tpu.memory_space<vmem>>, %arg5: memref<1x64xf32, #tpu.memory_space<vmem>>, %arg6: memref<1x8x64xf32, #tpu.memory_space<vmem>>) attributes {dimension_semantics = [#tpu.dimension_semantics<parallel>, #tpu.dimension_semantics<parallel>], iteration_bounds = array<i64: 2, 2>, scalar_prefetch = 0 : i64, scratch_operands = 0 : i64, tpu.core_type = #tpu.core_type<tc>, window_params = [{transform_indices = @transform_0, window_bounds = array<i64: 1, 8, 64>}, {transform_indices = @transform_1, window_bounds = array<i64: 1, 8, 64>}, {pipeline_mode = #tpu.pipeline_mode<synchronous>, transform_indices = @transform_2, window_bounds = array<i64: 1, 64>}, {pipeline_mode = #tpu.pipeline_mode<synchronous>, transform_indices = @transform_3, window_bounds = array<i64: 1, 64>}, {transform_indices = @transform_4, window_bounds = array<i64: 1, 8, 64>}]} {
    %c0 = arith.constant 0 : index
    %c0_0 = arith.constant 0 : index
    %c0_1 = arith.constant 0 : index
    %0 = vector.load %arg2[%c0, %c0_0, %c0_1] : memref<1x8x64xf32, #tpu.memory_space<vmem>>, vector<1x8x64xf32>
    %c0_2 = arith.constant 0 : index
    %c0_3 = arith.constant 0 : index
    %1 = vector.load %arg4[%c0_2, %c0_3] : memref<1x64xf32, #tpu.memory_space<vmem>>, vector<1x64xf32>
    %2 = vector.shape_cast %1 : vector<1x64xf32> to vector<1x1x64xf32>
    %3 = vector.broadcast %2 : vector<1x1x64xf32> to vector<1x8x64xf32>
    %4 = arith.mulf %0, %3 : vector<1x8x64xf32>
    %c0_4 = arith.constant 0 : index
    %c0_5 = arith.constant 0 : index
    %5 = vector.load %arg5[%c0_4, %c0_5] : memref<1x64xf32, #tpu.memory_space<vmem>>, vector<1x64xf32>
    %6 = vector.shape_cast %5 : vector<1x64xf32> to vector<1x1x64xf32>
    %7 = vector.broadcast %6 : vector<1x1x64xf32> to vector<1x8x64xf32>
    %8 = arith.addf %4, %7 : vector<1x8x64xf32>
    %c0_6 = arith.constant 0 : index
    %c0_7 = arith.constant 0 : index
    %c0_8 = arith.constant 0 : index
    %9 = vector.load %arg3[%c0_6, %c0_7, %c0_8] : memref<1x8x64xf32, #tpu.memory_space<vmem>>, vector<1x8x64xf32>
    %10 = arith.addf %8, %9 : vector<1x8x64xf32>
    %c0_9 = arith.constant 0 : index
    %c0_10 = arith.constant 0 : index
    %c0_11 = arith.constant 0 : index
    %11 = vector.load %arg6[%c0_9, %c0_10, %c0_11] : memref<1x8x64xf32, #tpu.memory_space<vmem>>, vector<1x8x64xf32>
    tpu.vector_store %arg6[%c0_9, %c0_10, %c0_11], %10 {strides = array<i32>} : memref<1x8x64xf32, #tpu.memory_space<vmem>>, vector<1x8x64xf32>,
    return
  }
  func.func @transform_0(%arg0: i32, %arg1: i32) -> (i32, i32, i32) {
    %c0_i32 = arith.constant 0 : i32
    %c0_i32_0 = arith.constant 0 : i32
    return %arg0, %arg1, %c0_i32 : i32, i32, i32
  }
  func.func @transform_1(%arg0: i32, %arg1: i32) -> (i32, i32, i32) {
    %c0_i32 = arith.constant 0 : i32
    %c0_i32_0 = arith.constant 0 : i32
    return %arg0, %arg1, %c0_i32 : i32, i32, i32
  }
  func.func @transform_2(%arg0: i32, %arg1: i32) -> (i32, i32) {
    %c0_i32 = arith.constant 0 : i32
    %c0_i32_0 = arith.constant 0 : i32
    %c0_i32_1 = arith.constant 0 : i32
    return %c0_i32, %c0_i32_0 : i32, i32
  }
  func.func @transform_3(%arg0: i32, %arg1: i32) -> (i32, i32) {
    %c0_i32 = arith.constant 0 : i32
    %c0_i32_0 = arith.constant 0 : i32
    %c0_i32_1 = arith.constant 0 : i32
    return %c0_i32, %c0_i32_0 : i32, i32
  }
  func.func @transform_4(%arg0: i32, %arg1: i32) -> (i32, i32, i32) {
    %c0_i32 = arith.constant 0 : i32
    %c0_i32_0 = arith.constant 0 : i32
    return %arg0, %arg1, %c0_i32 : i32, i32, i32
  }
}

</mosaic_0001>

<bundles_post_ra>
// kernel: residual_block.5
= control target key start
LH: loop header
LB: loop body
LE: loop exit
PB: predicated region body
PF: predicated region fallthrough
CT: control target
= control target key end

     0   :  { %s505_s15 = smov 0   ;;  %s507_s16 = smov 0   ;;  %s562_s0 = inlined_call_operand.vmem [shape: f32[2,16,64], index: 0, kind: input, shape index: {}]   ;;  %s563_s1 = inlined_call_operand.vmem [shape: f32[2,16,64], index: 1, kind: input, shape index: {}]   ;;  %s564_s2 = inlined_call_operand.vmem [shape: f32[1,64], index: 2, kind: input, shape index: {}]   ;;  %s565_s3 = inlined_call_operand.vmem [shape: f32[1,64], index: 3, kind: input, shape index: {}]   ;;  %s566_s4 = inlined_call_operand.vmem [shape: f32[2,16,64], index: 4, kind: output, shape index: {}]  }
   0x1   :  { %s509_s17 = smov 0   ;;  %s511_s18 = smov 0  }
   0x2   :  { %s513_s19 = smov 0  }
   0x3 LB: > { %s23_s20 = sadd.s32 1, %s470_s17  ;;  %s26_s21 = sadd.s32 1, %s474_s18  ;;  %s478_s19 = sphi %s513_s19, %s14_s19   ;;  %s474_s18 = sphi %s511_s18, %s570_s18   ;;  %s470_s17 = sphi %s509_s17, %s569_s17   ;;  %s466_s16 = sphi %s507_s16, %s568_s16   ;;  %s462_s15 = sphi %s505_s15, %s567_s15  }
   0x4   : > { %p24_p0 = scmp.ge.s32.totalorder %s23_s20, 2  ;;  %p389_p1 = scmp.ge.s32.totalorder %s478_s19, 1 }
   0x5   : > { %p196_p2 = scmp.lt.s32.totalorder %s478_s19, 5 }
   0x6   : > { %s572_s20 = smov (%p24_p0, %s23_s20), 0  ;;  %s574_s21 = smov (!%p24_p0, %s26_s21), %s474_s18 }
   0x7   : > { %p197_p3 = pnand %p389_p1, %p196_p2  ;;  %p28_p4 = scmp.ge.s32.totalorder %s574_s21, 2 }
   0x8   : > { %p236_p5 = scmp.lt.s32.totalorder (!%p197_p3), %s466_s16, 1  ;;  %p238_p6 = scmp.lt.s32.totalorder (!%p197_p3), %s462_s15, 1 }
   0x9   : > { %s576_s21 = smov (%p28_p4, %s574_s21), 0  ;;  %200 = sbr.rel (%p197_p3) target bundleno = 27 (0x1b), region = 36 }
   0xe   : > { %s578_s16 = smov (!%p236_p5, %s466_s16), 1  ;;  %s580_s15 = smov (!%p238_p6, %s462_s15), 1  ;;  %v396_v0 = vld [vmem:[%s564_s2] ss:$0 sm:$0xff]  ;;  %vm279_vm0 = vcmask 523264  }
   0xf   : > { %s390_s22 = sshll.u32 %s578_s16, 1  ;;  %v397_v2 = vld [vmem:[%s565_s3] ss:$0 sm:$0xff] }
  0x10   : > { %s241_s23 = sadd.s32 %s390_s22, %s580_s15 }
  0x11   : > { %s391_s24 = sshll.u32 %s241_s23, 3 }
  0x12   : > { %s243_s29 = scalar_lea.vmem %s562_s0, %s391_s24  ;;  %s251_s6 = scalar_lea.vmem %s563_s1, %s391_s24 }
  0x13   : > { %v260_v1 = vld [vmem:[%s243_s29] sm:$0xff]  ;;  %s259_s11 = scalar_lea.vmem %s566_s4, %s391_s24 }
  0x14   : > { %v268_v3 = vmul.f32 %v396_v0, %v260_v1  ;;  %v277_v4 = vld [vmem:[%s251_s6] sm:$0xff] }
  0x16   : > { %v276_v5 = vadd.f32 %v397_v2, %v268_v3 }
  0x18   : > { %v278_v6 = vadd.f32 %v277_v4, %v276_v5 }
  0x1a   : > { %280 = vst.msk [vmem:[%s259_s11] sm:$0xff] %vm279_vm0, %v278_v6 }
  0x1b PF: > { %s14_s19 = sadd.s32 1, %s478_s19   ;;  %s567_s15 = smov %s470_s17 }
  0x1c   : > { %p11_p7 = scmp.ge.s32.totalorder %s14_s19, 6   ;;  %s568_s16 = smov %s474_s18 }
  0x1d   : > { %s569_s17 = smov %s572_s20  ;;  %s570_s18 = smov %s576_s21 }
  0x1e   :  { %13 = sbr.rel (!%p11_p7) target bundleno = 3 (0x3), region = 69 }

// kernel: residual_block.3
= control target key start
LH: loop header
LB: loop body
LE: loop exit
PB: predicated region body
PF: predicated region fallthrough
CT: control target
= control target key end

     0   :  { %s4551_s27 = smov 0   ;;  %s4553_s28 = smov 0   ;;  %s5705_s0 = inlined_call_operand.vmem [shape: f32[2,16,16,4], index: 0, kind: input, shape index: {}]   ;;  %s5706_s1 = inlined_call_operand.vmem [shape: f32[2,2,16,4], index: 1, kind: input, shape index: {}]   ;;  %s5707_s2 = inlined_call_operand.vmem [shape: f32[2,2,16,4], index: 2, kind: input, shape index: {}]   ;;  %s5708_s3 = inlined_call_operand.vmem [shape: bf16[9,4,4], index: 3, kind: input, shape index: {}]   ;;  %s5709_s4 = inlined_call_operand.vmem [shape: f32[1,4], index: 4, kind: input, shape index: {}, may-alias: {4,6}]   ;;  %s5710_s5 = inlined_call_operand.vmem [shape: f32[1,4], index: 5, kind: input, shape index: {}]   ;;  %s5711_s6 = inlined_call_operand.vmem [shape: f32[1,4], index: 6, kind: input, shape index: {}, may-alias: {4,6}]   ;;  %s5712_s7 = inlined_call_operand.vmem [shape: bf16[2,16,16,4], index: 7, kind: output, shape index: {0}]   ;;  %s5713_s8 = inlined_call_operand.vmem [shape: f32[2,2,2,4], index: 8, kind: output, shape index: {1}]  }
   0x1   :  { %s4555_s29 = smov 0   ;;  %s4557_s30 = smov 0  }
   0x2   :  { %s4559_s9 = smov 0  }
   0x3 LB: > { %s28_s10 = sadd.s32 1, %s4493_s29  ;;  %s31_s11 = sadd.s32 1, %s4497_s30  ;;  %s4501_s9 = sphi %s4559_s9, %s19_s9   ;;  %s4497_s30 = sphi %s4557_s30, %s5761_s30   ;;  %s4493_s29 = sphi %s4555_s29, %s5760_s29   ;;  %s4489_s28 = sphi %s4553_s28, %s5759_s28   ;;  %s4485_s27 = sphi %s4551_s27, %s5758_s27  }
   0x4   : > { %p29_p0 = scmp.ge.s32.totalorder %s28_s10, 2  ;;  %p3869_p1 = scmp.ge.s32.totalorder %s4501_s9, 1 }
   0x5   : > { %p321_p2 = scmp.lt.s32.totalorder %s4501_s9, 5 }
   0x6   : > { %s5763_s10 = smov (%p29_p0, %s28_s10), 0  ;;  %s5765_s11 = smov (!%p29_p0, %s31_s11), %s4497_s30 }
   0x7   : > { %p322_p3 = pnand %p3869_p1, %p321_p2  ;;  %p33_p4 = scmp.ge.s32.totalorder %s5765_s11, 2 }
   0x9   : > { %s5767_s11 = smov (%p33_p4, %s5765_s11), 0  ;;  %325 = sbr.rel (%p322_p3) target bundleno = 546 (0x222), region = 48 }
   0xe   : > { %vm443_vm0 = vcmask 27648   ;;  %s3870_s12 = sshll.u32 %s4485_s27, 3  ;;  %p392_p5 = scmp.lt.s32.totalorder %s4489_s28, 1  ;;  %v4503_v0 = vmov 0   ;;  %v4618_v1 = vld [vmem:[%s5709_s4] ss:$0 sm:$0xff] }
   0xf   : > { %444 = vst.msk [vmem:[#allocation2] sm:$0xf] %vm443_vm0, %v4503_v0  ;;  %445 = vst.msk [vmem:[#allocation2 + $0x10] sm:$0xf] %vm443_vm0, %v4503_v0  ;;  %p394_p6 = scmp.lt.s32.totalorder %s3870_s12, 15  ;;  %p404_p7 = scmp.lt.s32.totalorder %s4485_s27, 1 }
  0x10   : > { %446 = vst.msk [vmem:[#allocation2 + $0x20] sm:$0xf] %vm443_vm0, %v4503_v0  ;;  %447 = vst.msk [vmem:[#allocation2 + $0x30] sm:$0xf] %vm443_vm0, %v4503_v0  ;;  %s5769_s28 = smov (!%p392_p5, %s4489_s28), 1  ;;  %p3909_p8 = scmp.ne.s32.totalorder %s4485_s27, 0 }
  0x11   : > { %448 = vst.msk [vmem:[#allocation2 + $0x40] sm:$0xf] %vm443_vm0, %v4503_v0  ;;  %449 = vst.msk [vmem:[#allocation2 + $0x50] sm:$0xf] %vm443_vm0, %v4503_v0  ;;  %s5771_s12 = smov (!%p394_p6, %s3870_s12), 15  ;;  %s3872_s13 = sshll.u32 %s5769_s28, 5 }
  0x12   : > { %450 = vst.msk [vmem:[#allocation2 + $0x60] sm:$0xf] %vm443_vm0, %v4503_v0  ;;  %451 = vst.msk [vmem:[#allocation2 + $0x70] sm:$0xf] %vm443_vm0, %v4503_v0  ;;  %s3871_s14 = sshll.u32 %s5771_s12, 1  ;;  %s3884_s16 = sshll.u32 %s5769_s28, 1 }
  0x13   : > { %452 = vst.msk [vmem:[#allocation2 + $0x80] sm:$0xf] %vm443_vm0, %v4503_v0  ;;  %453 = vst.msk [vmem:[#allocation2 + $0x90] sm:$0xf] %vm443_vm0, %v4503_v0  ;;  %s398_s15 = sadd.s32 %s3872_s13, %s3871_s14  ;;  %v4633_v2 = vld [vmem:[%s5710_s5] ss:$0 sm:$0xff] }
  0x14   : > { %454 = vst.msk [vmem:[#allocation2 + $0xc] sm:$0xf] %vm443_vm0, %v4503_v0  ;;  %455 = vst.msk [vmem:[#allocation2 + $0x1c] sm:$0xf] %vm443_vm0, %v4503_v0  ;;  %s3873_s17 = sshll.u32 %s398_s15, 3  ;;  %s3883_s18 = sshll.u32 %s398_s15, 2 }
  0x15   : > { %456 = vst.msk [vmem:[#allocation2 + $0x2c] sm:$0xf] %vm443_vm0, %v4503_v0  ;;  %457 = vst.msk [vmem:[#allocation2 + $0x3c] sm:$0xf] %vm443_vm0, %v4503_v0  ;;  %s4623_s23 = scalar_lea.vmem %s5705_s0, %s3873_s17  ;;  %s4628_s26 = scalar_lea.vmem %s5712_s7, %s3883_s18  ;;  %v4650_v12 = vld [vmem:[%s5711_s6] ss:$0 sm:$0xff] }
  0x16   : > { %458 = vst.msk [vmem:[#allocation2 + $0x4c] sm:$0xf] %vm443_vm0, %v4503_v0  ;;  %459 = vst.msk [vmem:[#allocation2 + $0x5c] sm:$0xf] %vm443_vm0, %v4503_v0  ;;  %v464_v3 = vld [vmem:[%s4623_s23] sm:$0xff]  ;;  %v465_v4 = vld [vmem:[%s4623_s23 + $0x8] sm:$0xff] }
  0x17   : > { %460 = vst.msk [vmem:[#allocation2 + $0x6c] sm:$0xf] %vm443_vm0, %v4503_v0  ;;  %461 = vst.msk [vmem:[#allocation2 + $0x7c] sm:$0xf] %vm443_vm0, %v4503_v0  ;;  %v466_v5 = vld [vmem:[%s4623_s23 + $0x10] sm:$0xff]  ;;  %s4639_s14 = scalar_select %p404_p7, %s4485_s27, 1  ;;  %v486_v6 = vmul.f32 %v4618_v1, %v464_v3  ;;  %v487_v7 = vmul.f32 %v4618_v1, %v465_v4 }
  0x18   : > { %462 = vst.msk [vmem:[#allocation2 + $0x8c] sm:$0xf] %vm443_vm0, %v4503_v0  ;;  %463 = vst.msk [vmem:[#allocation2 + $0x9c] sm:$0xf] %vm443_vm0, %v4503_v0  ;;  %v488_v8 = vmul.f32 %v4618_v1, %v466_v5  ;;  %v467_v9 = vld [vmem:[%s4623_s23 + $0x18] sm:$0xff]  ;;  %v468_v10 = vld [vmem:[%s4623_s23 + $0x20] sm:$0xff] }
  0x19   : > { %v469_v11 = vld [vmem:[%s4623_s23 + $0x28] sm:$0xff]  ;;  %v489_v13 = vmul.f32 %v4618_v1, %v467_v9  ;;  %v490_v14 = vmul.f32 %v4618_v1, %v468_v10  ;;  %v470_v16 = vld [vmem:[%s4623_s23 + $0x30] sm:$0xff]  ;;  %v471_v17 = vld [vmem:[%s4623_s23 + $0x38] sm:$0xff]  ;;  %s436_s18 = sadd.s32 %s3884_s16, %s4639_s14  ;;  %v508_v18 = vadd.f32 %v4633_v2, %v486_v6  ;;  %v509_v19 = vadd.f32 %v4633_v2, %v487_v7  ;;  %s3874_s22 = sshll.u32 %s4639_s14, 1 }
  0x1a   : > { %v491_v15 = vmul.f32 %v4618_v1, %v469_v11  ;;  %v510_v20 = vadd.f32 %v4633_v2, %v488_v8  ;;  %v492_v21 = vmul.f32 %v4618_v1, %v470_v16  ;;  %s3885_s19 = sshll.u32 %s436_s18, 1  ;;  %v493_v25 = vmul.f32 %v4618_v1, %v471_v17  ;;  %s3875_s24 = sshll.u32 %s5769_s28, 2  ;;  %v472_v33 = vld [vmem:[%s4623_s23 + $0x40] sm:$0xff]  ;;  %v473_v38 = vld [vmem:[%s4623_s23 + $0x48] sm:$0xff]  ;;  %v474_v39 = vld [vmem:[%s4623_s23 + $0x50] sm:$0xff] }
  0x1b   : > { %v511_v22 = vadd.f32 %v4633_v2, %v489_v13  ;;  %v512_v23 = vadd.f32 %v4633_v2, %v490_v14  ;;  %s4669_s21 = scalar_lea.vmem %s5713_s8, %s3885_s19  ;;  %vm524_vm1 = vcmp.ge.f32.partialorder %v508_v18, 0.0  ;;  %v546_v26 = vmul.f32 %v4650_v12, %v508_v18  ;;  %v475_v40 = vld [vmem:[%s4623_s23 + $0x58] sm:$0xff]  ;;  %s4682_s25 = sadd.s32 %s3875_s24, %s3874_s22  ;;  %v476_v52 = vld [vmem:[%s4623_s23 + $0x60] sm:$0xff]  ;;  %v477_v4 = vld [vmem:[%s4623_s23 + $0x68] sm:$0xff] }
  0x1c   : > { %v513_v24 = vadd.f32 %v4633_v2, %v491_v15  ;;  %vm525_vm2 = vcmp.ge.f32.partialorder %v509_v19, 0.0  ;;  %v547_v27 = vmul.f32 %v4650_v12, %v509_v19  ;;  %vm526_vm3 = vcmp.ge.f32.partialorder %v510_v20, 0.0  ;;  %s3876_s28 = sshll.u32 %s4682_s25, 3  ;;  %v478_v7 = vld [vmem:[%s4623_s23 + $0x70] sm:$0xff]  ;;  %v479_v16 = vld [vmem:[%s4623_s23 + $0x78] sm:$0xff] }
  0x1d   : > { %v548_v28 = vmul.f32 %v4650_v12, %v510_v20  ;;  %vm527_vm4 = vcmp.ge.f32.partialorder %v511_v22, 0.0  ;;  %v549_v29 = vmul.f32 %v4650_v12, %v511_v22  ;;  %v562_v30 = vsel %vm524_vm1, %v508_v18, %v546_v26  ;;  %s410_s14 = scalar_lea.vmem %s5706_s1, %s3876_s28  ;;  %s419_s18 = scalar_lea.vmem %s5707_s2, %s3876_s28 }
  0x1e   : > { %v563_v31 = vsel %vm525_vm2, %v509_v19, %v547_v27  ;;  %vm528_vm5 = vcmp.ge.f32.partialorder %v512_v23, 0.0  ;;  %v550_v32 = vmul.f32 %v4650_v12, %v512_v23  ;;  %v4105_v34 = vpack.c.bf16 %v562_v30, %v562_v30  ;;  %v659_v17 = vld [vmem:[%s410_s14] sm:$0xff] }
  0x1f   : > { %v4106_v35 = vpack.c.bf16 %v563_v31, %v563_v31  ;;  %v564_v36 = vsel %vm526_vm3, %v510_v20, %v548_v28  ;;  %v565_v37 = vsel %vm527_vm4, %v511_v22, %v549_v29  ;;  %vm529_vm6 = vcmp.ge.f32.partialorder %v513_v24, 0.0  ;;  %v660_v22 = vld [vmem:[%s410_s14 + $0x8] sm:$0xff] }
  0x20   : > { %v4107_v41 = vpack.c.bf16 %v564_v36, %v564_v36  ;;  %v4108_v42 = vpack.c.bf16 %v565_v37, %v565_v37  ;;  %v566_v43 = vsel %vm528_vm5, %v512_v23, %v550_v32  ;;  %643 = vst.msk [vmem:[#allocation2 + $0x14] sm:$0xf] %vm443_vm0, %v4105_v34  ;;  %v551_v45 = vmul.f32 %v4650_v12, %v513_v24  ;;  %v681_v23 = vld [vmem:[%s419_s18] sm:$0xff] }
  0x21   : > { %644 = vst.msk [vmem:[#allocation2 + $0x18] sm:$0xf] %vm443_vm0, %v4106_v35  ;;  %v4109_v44 = vpack.c.bf16 %v566_v43, %v566_v43  ;;  %v514_v46 = vadd.f32 %v4633_v2, %v492_v21  ;;  %v515_v47 = vadd.f32 %v4633_v2, %v493_v25  ;;  %v494_v48 = vmul.f32 %v4618_v1, %v472_v33 }
  0x22   : > { %645 = vst.msk [vmem:[#allocation2 + $0x24] sm:$0xf] %vm443_vm0, %v4107_v41  ;;  %646 = vst.msk [vmem:[#allocation2 + $0x28] sm:$0xf] %vm443_vm0, %v4108_v42  ;;  %v495_v49 = vmul.f32 %v4618_v1, %v473_v38  ;;  %v496_v50 = vmul.f32 %v4618_v1, %v474_v39  ;;  %v497_v51 = vmul.f32 %v4618_v1, %v475_v40 }
  0x23   : > { %647 = vst.msk [vmem:[#allocation2 + $0x34] sm:$0xf] %vm443_vm0, %v4109_v44  ;;  %v567_v53 = vsel %vm529_vm6, %v513_v24, %v551_v45  ;;  %vm530_vm7 = vcmp.ge.f32.partialorder %v514_v46, 0.0  ;;  %v552_v54 = vmul.f32 %v4650_v12, %v514_v46  ;;  %vm531_vm8 = vcmp.ge.f32.partialorder %v515_v47, 0.0  ;;  %v682_v24 = vld [vmem:[%s419_s18 + $0x8] sm:$0xff] }
  0x24   : > { %v4110_v55 = vpack.c.bf16 %v567_v53, %v567_v53  ;;  %v553_v56 = vmul.f32 %v4650_v12, %v515_v47  ;;  %v516_v57 = vadd.f32 %v4633_v2, %v494_v48  ;;  %v517_v58 = vadd.f32 %v4633_v2, %v495_v49 }
  0x25   : > { %v568_v59 = vsel %vm530_vm7, %v514_v46, %v552_v54  ;;  %v518_v60 = vadd.f32 %v4633_v2, %v496_v50  ;;  %v519_v61 = vadd.f32 %v4633_v2, %v497_v51  ;;  %v498_v62 = vmul.f32 %v4618_v1, %v476_v52 }
  0x26   : > { %648 = vst.msk [vmem:[#allocation2 + $0x38] sm:$0xf] %vm443_vm0, %v4110_v55  ;;  %v4111_v63 = vpack.c.bf16 %v568_v59, %v568_v59  ;;  %v569_v0 = vsel %vm531_vm8, %v515_v47, %v553_v56  ;;  %vm532_vm9 = vcmp.ge.f32.partialorder %v516_v57, 0.0  ;;  %v554_v3 = vmul.f32 %v4650_v12, %v516_v57 }
  0x27   : > { %v4112_v5 = vpack.c.bf16 %v569_v0, %v569_v0  ;;  %vm533_vm10 = vcmp.ge.f32.partialorder %v517_v58, 0.0  ;;  %v555_v6 = vmul.f32 %v4650_v12, %v517_v58  ;;  %vm534_vm11 = vcmp.ge.f32.partialorder %v518_v60, 0.0 }
  0x28   : > { %649 = vst.msk [vmem:[#allocation2 + $0x44] sm:$0xf] %vm443_vm0, %v4111_v63  ;;  %v570_v8 = vsel %vm532_vm9, %v516_v57, %v554_v3  ;;  %v556_v9 = vmul.f32 %v4650_v12, %v518_v60  ;;  %vm535_vm12 = vcmp.ge.f32.partialorder %v519_v61, 0.0  ;;  %v557_v10 = vmul.f32 %v4650_v12, %v519_v61 }
  0x29   : > { %650 = vst.msk [vmem:[#allocation2 + $0x48] sm:$0xf] %vm443_vm0, %v4112_v5  ;;  %v4113_v11 = vpack.c.bf16 %v570_v8, %v570_v8  ;;  %v571_v13 = vsel %vm533_vm10, %v517_v58, %v555_v6  ;;  %v520_v14 = vadd.f32 %v4633_v2, %v498_v62  ;;  %v499_v15 = vmul.f32 %v4618_v1, %v477_v4 }
  0x2a   : > { %v4114_v18 = vpack.c.bf16 %v571_v13, %v571_v13  ;;  %v572_v19 = vsel %vm534_vm11, %v518_v60, %v556_v9  ;;  %v573_v20 = vsel %vm535_vm12, %v519_v61, %v557_v10  ;;  %v500_v21 = vmul.f32 %v4618_v1, %v478_v7 }
  0x2b   : > { %651 = vst.msk [vmem:[#allocation2 + $0x54] sm:$0xf] %vm443_vm0, %v4113_v11  ;;  %v4115_v25 = vpack.c.bf16 %v572_v19, %v572_v19  ;;  %v4116_v26 = vpack.c.bf16 %v573_v20, %v573_v20  ;;  %vm536_vm13 = vcmp.ge.f32.partialorder %v520_v14, 0.0  ;;  %v558_v27 = vmul.f32 %v4650_v12, %v520_v14 }
  0x2c   : > { %652 = vst.msk [vmem:[#allocation2 + $0x58] sm:$0xf] %vm443_vm0, %v4114_v18  ;;  %v521_v28 = vadd.f32 %v4633_v2, %v499_v15  ;;  %v522_v29 = vadd.f32 %v4633_v2, %v500_v21  ;;  %v501_v30 = vmul.f32 %v4618_v1, %v479_v16  ;;  %v661_v31 = vmul.f32 %v4618_v1, %v659_v17 }
  0x2d   : > { %653 = vst.msk [vmem:[#allocation2 + $0x64] sm:$0xf] %vm443_vm0, %v4115_v25  ;;  %654 = vst.msk [vmem:[#allocation2 + $0x68] sm:$0xf] %vm443_vm0, %v4116_v26  ;;  %v574_v32 = vsel %vm536_vm13, %v520_v14, %v558_v27  ;;  %v662_v33 = vmul.f32 %v4618_v1, %v660_v22  ;;  %v683_v34 = vmul.f32 %v4618_v1, %v681_v23 }
  0x2e   : > { %v684_v35 = vmul.f32 %v4618_v1, %v682_v24  ;;  %v4117_v36 = vpack.c.bf16 %v574_v32, %v574_v32  ;;  %vm537_vm14 = vcmp.ge.f32.partialorder %v521_v28, 0.0  ;;  %v559_v37 = vmul.f32 %v4650_v12, %v521_v28 }
  0x2f   : > { %vm538_vm15 = vcmp.ge.f32.partialorder %v522_v29, 0.0  ;;  %v560_v38 = vmul.f32 %v4650_v12, %v522_v29  ;;  %v523_v39 = vadd.f32 %v4633_v2, %v501_v30  ;;  %v663_v40 = vadd.f32 %v4633_v2, %v661_v31 }
  0x30   : > { %v664_v41 = vadd.f32 %v4633_v2, %v662_v33  ;;  %655 = vst.msk [vmem:[#allocation2 + $0x74] sm:$0xf] %vm443_vm0, %v4117_v36  ;;  %v575_v42 = vsel %vm537_vm14, %v521_v28, %v559_v37  ;;  %v685_v43 = vadd.f32 %v4633_v2, %v683_v34  ;;  %v686_v1 = vadd.f32 %v4633_v2, %v684_v35 }
  0x31   : > { %v4118_v44 = vpack.c.bf16 %v575_v42, %v575_v42  ;;  %v576_v45 = vsel %vm538_vm15, %v522_v29, %v560_v38  ;;  %vm539_vm1 = vcmp.ge.f32.partialorder %v523_v39, 0.0  ;;  %v561_v46 = vmul.f32 %v4650_v12, %v523_v39 }
  0x32   : > { %v4119_v47 = vpack.c.bf16 %v576_v45, %v576_v45  ;;  %vm665_vm2 = vcmp.ge.f32.partialorder %v663_v40, 0.0  ;;  %v667_v48 = vmul.f32 %v4650_v12, %v663_v40  ;;  %vm666_vm3 = vcmp.ge.f32.partialorder %v664_v41, 0.0 }
  0x33   : > { %656 = vst.msk [vmem:[#allocation2 + $0x78] sm:$0xf] %vm443_vm0, %v4118_v44  ;;  %v577_v49 = vsel %vm539_vm1, %v523_v39, %v561_v46  ;;  %v668_v50 = vmul.f32 %v4650_v12, %v664_v41  ;;  %vm687_vm4 = vcmp.ge.f32.partialorder %v685_v43, 0.0  ;;  %v689_v51 = vmul.f32 %v4650_v12, %v685_v43 }
  0x34   : > { %657 = vst.msk [vmem:[#allocation2 + $0x84] sm:$0xf] %vm443_vm0, %v4119_v47  ;;  %v4120_v2 = vpack.c.bf16 %v577_v49, %v577_v49  ;;  %v669_v52 = vsel %vm665_vm2, %v663_v40, %v667_v48  ;;  %vm688_vm5 = vcmp.ge.f32.partialorder %v686_v1, 0.0  ;;  %v690_v53 = vmul.f32 %v4650_v12, %v686_v1 }
  0x35   : > { %v4121_v54 = vpack.c.bf16 %v669_v52, %v669_v52  ;;  %v670_v55 = vsel %vm666_vm3, %v664_v41, %v668_v50  ;;  %v691_v56 = vsel %vm687_vm4, %v685_v43, %v689_v51  ;;  %707 = sbr.rel (%p3909_p8) target bundleno = 61 (0x3d), region = 52 }
  0x36   : > { %658 = vst.msk [vmem:[#allocation2 + $0x88] sm:$0xf] %vm443_vm0, %v4120_v2  ;;  %v4122_v57 = vpack.c.bf16 %v670_v55, %v670_v55  ;;  %v4123_v58 = vpack.c.bf16 %v691_v56, %v691_v56  ;;  %v692_v59 = vsel %vm688_vm5, %v686_v1, %v690_v53 }
  0x37   : > { %679 = vst.msk [vmem:[#allocation2 + $0x4] sm:$0xf] %vm443_vm0, %v4121_v54  ;;  %v4124_v60 = vpack.c.bf16 %v692_v59, %v692_v59 }
  0x38   : > { %680 = vst.msk [vmem:[#allocation2 + $0x8] sm:$0xf] %vm443_vm0, %v4122_v57  ;;  %702 = vst.msk [vmem:[#allocation2 + $0x94] sm:$0xf] %vm443_vm0, %v4123_v58 }
  0x39   : > { %703 = vst.msk [vmem:[#allocation2 + $0x98] sm:$0xf] %vm443_vm0, %v4124_v60 }
  0x3a   : > { %v4504_v12 = vmov 0  }
  0x3b   : > { %708 = vst.msk [vmem:[#allocation2] sm:$0xf] %vm443_vm0, %v4504_v12  ;;  %709 = vst.msk [vmem:[#allocation2 + $0x4] sm:$0xf] %vm443_vm0, %v4504_v12 }
  0x3c   : > { %710 = vst.msk [vmem:[#allocation2 + $0x8] sm:$0xf] %vm443_vm0, %v4504_v12  ;;  %711 = vst.msk [vmem:[#allocation2 + $0xc] sm:$0xf] %vm443_vm0, %v4504_v12 }
  0x3d PF: > { %p3910_p9 = scmp.ne.s32.totalorder %s4485_s27, 1 }
  0x3f   : > { %715 = sbr.rel (%p3910_p9) target bundleno = 71 (0x47), region = 56 }
  0x44   : > { %v4505_v61 = vmov 0  }
  0x45   : > { %716 = vst.msk [vmem:[#allocation2 + $0x90] sm:$0xf] %vm443_vm0, %v4505_v61  ;;  %717 = vst.msk [vmem:[#allocation2 + $0x94] sm:$0xf] %vm443_vm0, %v4505_v61 }
  0x46   : > { %718 = vst.msk [vmem:[#allocation2 + $0x98] sm:$0xf] %vm443_vm0, %v4505_v61  ;;  %719 = vst.msk [vmem:[#allocation2 + $0x9c] sm:$0xf] %vm443_vm0, %v4505_v61 }
  0x47 PF: > { %v3919_v62 = vld [vmem:[%s5708_s3 + $0x2] sm:$0x3]  ;;  %vm991_vm6 = vcmask 1041408   ;;  %v721_v63 = vld [vmem:[#allocation2 + $0x4] sm:$0xf]  ;;  %vm966_vm7 = vcmask 31744  }
  0x48   : > { %4386 = vmatprep.subr.msk.bf16.mxu0 %vm991_vm6, %v3919_v62  ;;  %4387 = vmatprep.subr.msk.bf16.mxu1 %vm991_vm6, %v3919_v62  ;;  %v993_v0 = vsel %vm991_vm6, %v3919_v62, 0  ;;  %v722_v3 = vld [vmem:[#allocation2 + $0x8] sm:$0xf]  ;;  %v753_v4 = vshrl.u32 %v721_v63, 16  ;;  %v756_v5 = vshll.u32 %v721_v63, 16  ;;  %vm3595_vm14 = vcmask 25600  }
  0x49   : > { %4223 = vmatpush3.bf16.msra.mxu0 %v993_v0  ;;  %4385 = vmatpush3.bf16.msra.mxu1 %v993_v0  ;;  %v762_v6 = vshrl.u32 %v722_v3, 16  ;;  %v765_v7 = vshll.u32 %v722_v3, 16  ;;  %v3920_v8 = vcombine.low %v721_v63, %v722_v3  ;;  %v733_v9 = vld [vmem:[#allocation2 + $0x44] sm:$0xf]  ;;  %v734_v10 = vld [vmem:[#allocation2 + $0x48] sm:$0xf] }
  0x4a   : > { %v4774_v11 = vrot.slane %v753_v4, 7  ;;  %v841_v13 = vshrl.u32 %v733_v9, 16  ;;  %v844_v14 = vshll.u32 %v733_v9, 16  ;;  %v850_v15 = vshrl.u32 %v734_v10, 16  ;;  %v724_v16 = vld [vmem:[#allocation2 + $0x14] sm:$0xf] }
  0x4b   : > { %v764_v17 = vrot.slane %v762_v6, 7  ;;  %4224 = vmatprep.mubr.msk.bf16.mxu0 %vm966_vm7, %v3920_v8  ;;  %v853_v18 = vshll.u32 %v734_v10, 16  ;;  %v3924_v19 = vcombine.low %v733_v9, %v734_v10  ;;  %v725_v20 = vld [vmem:[#allocation2 + $0x18] sm:$0xf]  ;;  %v775_v21 = vshrl.u32 %v724_v16, 16 }
  0x4c   : > { %v4778_v22 = vor.u32 %v756_v5, %v4774_v11  ;;  %v760_v23 = vrot.slane %v4774_v11, 4  ;;  %v4781_v24 = vrot.slane %v841_v13, 7  ;;  %v852_v25 = vrot.slane %v850_v15, 7  ;;  %v4783_v26 = vld [vmem:[#allocation2 + $0x54] sm:$0xf] }
  0x4d   : > { %v4785_v27 = vor.u32 %v765_v7, %v764_v17  ;;  %4232 = vmatprep.mubr.msk.bf16.mxu1 %vm966_vm7, %v3924_v19  ;;  %v4788_v28 = vrot.slane %v775_v21, 7  ;;  %v778_v29 = vshll.u32 %v724_v16, 16  ;;  %v784_v30 = vshrl.u32 %v725_v20, 16  ;;  %v4790_v31 = vld [vmem:[#allocation2 + $0x58] sm:$0xf] }
  0x4e   : > { %v4793_v32 = vor.u32 %v844_v14, %v4781_v24  ;;  %v848_v33 = vrot.slane %v4781_v24, 4  ;;  %v4796_v34 = vor.u32 %v853_v18, %v852_v25  ;;  %v787_v35 = vshll.u32 %v725_v20, 16  ;;  %v923_v36 = vld [vmem:[%s5708_s3] sm:$0x3]  ;;  %v3952_v37 = vld [vmem:[%s5708_s3 + $0x4] sm:$0x3] }
  0x4f   : > { %v4805_v38 = vor.u32 %v778_v29, %v4788_v28  ;;  %v782_v39 = vrot.slane %v4788_v28, 4  ;;  %v786_v40 = vrot.slane %v784_v30, 7  ;;  %v3921_v41 = vcombine.low %v724_v16, %v725_v20  ;;  %4388 = vmatprep.subr.msk.bf16.mxu1 %vm991_vm6, %v923_v36  ;;  %4389 = vmatprep.subr.msk.bf16.mxu0 %vm991_vm6, %v3952_v37  ;;  %v4810_v42 = vld [vmem:[#allocation2 + $0x24] sm:$0xf]  ;;  %v4816_v46 = vld [vmem:[#allocation2 + $0x28] sm:$0xf] }
  0x50   : > { %v863_v43 = vshrl.u32 %v4783_v26, 16  ;;  %v866_v1 = vshll.u32 %v4783_v26, 16  ;;  %v872_v44 = vshrl.u32 %v4790_v31, 16  ;;  %v875_v45 = vshll.u32 %v4790_v31, 16  ;;  %v4825_v51 = vld [vmem:[#allocation2 + $0x64] sm:$0xf] }
  0x51   : > { %v4818_v47 = vor.u32 %v787_v35, %v786_v40  ;;  %4225 = vmatmul.mubr.msk.bf16.vlgmr.msra.gmra.mxu0 %vm966_vm7, %v3921_v41  ;;  %v3925_v48 = vcombine.low %v4783_v26, %v4790_v31  ;;  %v1141_v49 = vsel %vm991_vm6, %v923_v36, 0  ;;  %v1510_v50 = vsel %vm991_vm6, %v3952_v37, 0  ;;  %v4827_v2 = vld [vmem:[#allocation2 + $0x68] sm:$0xf]  ;;  %v4835_v56 = vld [vmem:[#allocation2 + $0x34] sm:$0xf] }
  0x52   : > { %v4829_v52 = vrot.slane %v863_v43, 7  ;;  %v4831_v53 = vrot.slane %v872_v44, 7  ;;  %4259 = vmatpush3.bf16.msra.mxu0 %v1510_v50  ;;  %v797_v54 = vshrl.u32 %v4810_v42, 16  ;;  %v800_v55 = vshll.u32 %v4810_v42, 16  ;;  %v4837_v57 = vld [vmem:[#allocation2 + $0x38] sm:$0xf] }
  0x53   : > { %4233 = vmatmul.mubr.msk.bf16.vlgmr.msra.gmra.mxu1 %vm966_vm7, %v3925_v48  ;;  %v806_v58 = vshrl.u32 %v4816_v46, 16  ;;  %v809_v59 = vshll.u32 %v4816_v46, 16  ;;  %v3922_v60 = vcombine.low %v4810_v42, %v4816_v46  ;;  %v885_v12 = vshrl.u32 %v4825_v51, 16  ;;  %v4845_v61 = vld [vmem:[#allocation2 + $0x74] sm:$0xf] }
  0x54   : > { %4241 = vmatpush3.bf16.msra.mxu1 %v1141_v49  ;;  %v4847_v62 = vrot.slane %v797_v54, 7  ;;  %v888_v63 = vshll.u32 %v4825_v51, 16  ;;  %v894_v0 = vshrl.u32 %v4827_v2, 16  ;;  %v897_v3 = vshll.u32 %v4827_v2, 16  ;;  %v4852_v4 = vld [vmem:[#allocation2 + $0x78] sm:$0xf] }
  0x55   : > { %v4854_v5 = vrot.slane %v806_v58, 7  ;;  %4228 = vmatprep.mubr.msk.bf16.mxu0 %vm966_vm7, %v3922_v60  ;;  %v4857_v6 = vrot.slane %v885_v12, 7  ;;  %v3926_v7 = vcombine.low %v4825_v51, %v4827_v2  ;;  %v819_v8 = vshrl.u32 %v4835_v56, 16  ;;  %v720_v9 = vld [vmem:[#allocation2] sm:$0x8] }
  0x56   : > { %v4862_v10 = vrot.slane %v894_v0, 7  ;;  %v822_v13 = vshll.u32 %v4835_v56, 16  ;;  %v828_v14 = vshrl.u32 %v4837_v57, 16  ;;  %v831_v15 = vshll.u32 %v4837_v57, 16  ;;  %v1240_v16 = vld [vmem:[#allocation2 + $0x4] sm:$0xf] }
  0x57   : > { %4236 = vmatprep.mubr.msk.bf16.mxu1 %vm966_vm7, %v3926_v7  ;;  %v4868_v17 = vrot.slane %v819_v8, 7  ;;  %v3923_v18 = vcombine.low %v4835_v56, %v4837_v57  ;;  %v907_v19 = vshrl.u32 %v4845_v61, 16  ;;  %v910_v20 = vshll.u32 %v4845_v61, 16  ;;  %v1241_v21 = vld [vmem:[#allocation2 + $0x8] sm:$0xf] }
  0x58   : > { %v4874_v25 = vrot.slane %v828_v14, 7  ;;  %v916_v29 = vshrl.u32 %v4852_v4, 16  ;;  %v919_v30 = vshll.u32 %v4852_v4, 16  ;;  %v3927_v35 = vcombine.low %v4845_v61, %v4852_v4  ;;  %v1242_v36 = vld [vmem:[#allocation2 + $0xc] sm:$0x1] }
  0x59   : > { %4229 = vmatmul.mubr.msk.bf16.gmra.mxu0 %vm966_vm7, %v3923_v18  ;;  %v4881_v37 = vrot.slane %v907_v19, 7  ;;  %vm744_vm8 = vsmask.f32 256  ;;  %vm745_vm9 = vsmask.f32 4368  ;;  %v748_v40 = vshrl.u32 %v720_v9, 16 }
  0x5a   : > { %v4883_v41 = vrot.slane %v916_v29, 7  ;;  %vm4885_vm10 = vmor %vm744_vm8, %vm745_vm9  ;;  %vm1264_vm11 = vsmask.f32 3328  ;;  %vm1265_vm12 = vsmask.f32 7440  ;;  %v1268_v44 = vshrl.u32 %v1240_v16, 16 }
  0x5b   : > { %4237 = vmatmul.mubr.msk.bf16.gmra.mxu1 %vm966_vm7, %v3927_v35  ;;  %v3911_v48 = vrot.slane %v748_v40, 11  ;;  %v768_v49 = vsel %vm4885_vm10, %v760_v23, %v4785_v27  ;;  %v1271_v50 = vshll.u32 %v1240_v16, 16  ;;  %v1277_v54 = vshll.u32 %v1241_v21, 16  ;;  %v723_v58 = vld [vmem:[#allocation2 + $0x10] sm:$0x8]  ;;  %vm4913_vm13 = vmor %vm1264_vm11, %vm1265_vm12 }
  0x5c   : > { %v1270_v60 = vrot.slane %v1268_v44, 4  ;;  %v1281_v12 = vshrl.u32 %v1241_v21, 16  ;;  %v1287_v0 = vshll.u32 %v1242_v36, 16  ;;  %v770_v7 = vshrl.u32 %v723_v58, 16  ;;  %v1243_v8 = vld [vmem:[#allocation2 + $0x14] sm:$0xf] }
  0x5d   : > { %v759_v9 = vsel %vm4885_vm10, %v3911_v48, %v4778_v22  ;;  %v1273_v14 = vrot.slane %v1271_v50, 5  ;;  %v1279_v18 = vrot.slane %v1277_v54, 5  ;;  %v790_v11 = vsel %vm4885_vm10, %v782_v39, %v4818_v47  ;;  %v1244_v23 = vld [vmem:[#allocation2 + $0x18] sm:$0xf]  ;;  %v1245_v27 = vld [vmem:[#allocation2 + $0x1c] sm:$0x1] }
  0x5e   : > { %v3936_v16 = vcombine.low %v759_v9, %v768_v49  ;;  %v1283_v19 = vrot.slane %v1281_v12, 4  ;;  %v1289_v21 = vrot.slane %v1287_v0, 5  ;;  %v3912_v29 = vrot.slane %v770_v7, 11  ;;  %v3977_v35 = vld [vmem:[%s5708_s3 + $0x6] sm:$0x3] }
  0x5f   : > { %v1274_v36 = vor.u32 %v1273_v14, %v1270_v60  ;;  %v1292_v22 = vshrl.u32 %v1243_v8, 16  ;;  %v1295_v40 = vshll.u32 %v1243_v8, 16  ;;  %v1301_v44 = vshll.u32 %v1244_v23, 16  ;;  %4390 = vmatprep.subr.msk.bf16.mxu1 %vm991_vm6, %v3977_v35  ;;  %v3994_v28 = vld [vmem:[%s5708_s3 + $0x8] sm:$0x3] }
  0x60   : > { %4242 = vmatprep.mubr.msk.bf16.mxu1 %vm966_vm7, %v3936_v16  ;;  %v1284_v47 = vor.u32 %v1283_v19, %v1279_v18  ;;  %v781_v48 = vsel %vm4885_vm10, %v3912_v29, %v4805_v38  ;;  %v1305_v49 = vshrl.u32 %v1244_v23, 16  ;;  %v1311_v50 = vshll.u32 %v1245_v27, 16  ;;  %4391 = vmatprep.subr.msk.bf16.mxu0 %vm991_vm6, %v3994_v28  ;;  %v726_v0 = vld [vmem:[#allocation2 + $0x20] sm:$0x8]  ;;  %v1246_v27 = vld [vmem:[#allocation2 + $0x24] sm:$0xf] }
  0x61   : > { %v1275_v54 = vrot.slane %v1274_v36, 4  ;;  %v3937_v58 = vcombine.low %v781_v48, %v790_v11  ;;  %v1294_v60 = vrot.slane %v1292_v22, 4  ;;  %v1297_v12 = vrot.slane %v1295_v40, 5  ;;  %v1247_v40 = vld [vmem:[#allocation2 + $0x28] sm:$0xf] }
  0x62   : > { %v1285_v7 = vrot.slane %v1284_v47, 4  ;;  %v1303_v8 = vrot.slane %v1301_v44, 5  ;;  %v1307_v9 = vrot.slane %v1305_v49, 4  ;;  %v1313_v14 = vrot.slane %v1311_v50, 5 }
  0x63   : > { %v1280_v16 = vsel %vm4913_vm13, %v1275_v54, %v1279_v18  ;;  %4243 = vmatmul.mubr.msk.bf16.vlgmr.msra.gmra.mxu1 %vm966_vm7, %v3937_v58  ;;  %v1298_v19 = vor.u32 %v1297_v12, %v1294_v60  ;;  %v1876_v38 = vsel %vm991_vm6, %v3977_v35, 0  ;;  %v2058_v23 = vsel %vm991_vm6, %v3994_v28, 0  ;;  %v1249_v12 = vld [vmem:[#allocation2 + $0x34] sm:$0xf] }
  0x64   : > { %v1290_v11 = vsel %vm4913_vm13, %v1285_v7, %v1289_v21  ;;  %v1308_v29 = vor.u32 %v1307_v9, %v1303_v8  ;;  %4277 = vmatpush3.bf16.msra.mxu1 %v1876_v38  ;;  %v792_v36 = vshrl.u32 %v726_v0, 16  ;;  %v802_v22 = vor.u32 %v800_v55, %v4847_v62  ;;  %v1248_v55 = vld [vmem:[#allocation2 + $0x2c] sm:$0x1] }
  0x65   : > { %v3953_v18 = vcombine.low %v1280_v16, %v1290_v11  ;;  %v1299_v44 = vrot.slane %v1298_v19, 4  ;;  %v804_v47 = vrot.slane %v4847_v62, 4  ;;  %v811_v35 = vor.u32 %v809_v59, %v4854_v5  ;;  %v729_v62 = vld [vmem:[#allocation2 + $0x30] sm:$0x8]  ;;  %v1250_v11 = vld [vmem:[#allocation2 + $0x38] sm:$0xf] }
  0x66   : > { %v1309_v28 = vrot.slane %v1308_v29, 4  ;;  %v3913_v48 = vrot.slane %v792_v36, 11  ;;  %v1316_v49 = vshrl.u32 %v1246_v27, 16  ;;  %v1319_v21 = vshll.u32 %v1246_v27, 16 }
  0x67   : > { %4260 = vmatprep.mubr.msk.bf16.mxu0 %vm966_vm7, %v3953_v18  ;;  %v1304_v50 = vsel %vm4913_vm13, %v1299_v44, %v1303_v8  ;;  %v812_v42 = vsel %vm4885_vm10, %v804_v47, %v811_v35  ;;  %v1325_v54 = vshll.u32 %v1247_v40, 16  ;;  %v1329_v58 = vshrl.u32 %v1247_v40, 16  ;;  %v1251_v47 = vld [vmem:[#allocation2 + $0x3c] sm:$0x1] }
  0x68   : > { %v1314_v46 = vsel %vm4913_vm13, %v1309_v28, %v1313_v14  ;;  %v803_v59 = vsel %vm4885_vm10, %v3913_v48, %v802_v22  ;;  %v1318_v5 = vrot.slane %v1316_v49, 4  ;;  %v1321_v60 = vrot.slane %v1319_v21, 5  ;;  %v732_v49 = vld [vmem:[#allocation2 + $0x40] sm:$0x8] }
  0x69   : > { %v3954_v0 = vcombine.low %v1304_v50, %v1314_v46  ;;  %v3938_v7 = vcombine.low %v803_v59, %v812_v42  ;;  %v1327_v9 = vrot.slane %v1325_v54, 5  ;;  %v1331_v8 = vrot.slane %v1329_v58, 4  ;;  %v1253_v54 = vld [vmem:[#allocation2 + $0x48] sm:$0xf] }
  0x6a   : > { %v1322_v16 = vor.u32 %v1321_v60, %v1318_v5  ;;  %v1335_v19 = vshll.u32 %v1248_v55, 16  ;;  %v814_v38 = vshrl.u32 %v729_v62, 16  ;;  %v824_v27 = vor.u32 %v822_v13, %v4868_v17  ;;  %v1254_v5 = vld [vmem:[#allocation2 + $0x4c] sm:$0x1] }
  0x6b   : > { %4261 = vmatmul.mubr.msk.bf16.vlgmr.msra.gmra.mxu0 %vm966_vm7, %v3954_v0  ;;  %4246 = vmatprep.mubr.msk.bf16.mxu1 %vm966_vm7, %v3938_v7  ;;  %v1332_v14 = vor.u32 %v1331_v8, %v1327_v9  ;;  %v826_v29 = vrot.slane %v4868_v17, 4  ;;  %v833_v36 = vor.u32 %v831_v15, %v4874_v25  ;;  %v1340_v22 = vshrl.u32 %v1249_v12, 16 }
  0x6c   : > { %4295 = vmatpush3.bf16.msra.mxu0 %v2058_v23  ;;  %v1323_v40 = vrot.slane %v1322_v16, 4  ;;  %v1337_v18 = vrot.slane %v1335_v19, 5  ;;  %v3914_v44 = vrot.slane %v814_v38, 11  ;;  %v1343_v56 = vshll.u32 %v1249_v12, 16  ;;  %v1252_v23 = vld [vmem:[#allocation2 + $0x44] sm:$0xf] }
  0x6d   : > { %v1333_v13 = vrot.slane %v1332_v14, 4  ;;  %v834_v35 = vsel %vm4885_vm10, %v826_v29, %v833_v36  ;;  %v1342_v28 = vrot.slane %v1340_v22, 4  ;;  %v1349_v48 = vshll.u32 %v1250_v11, 16 }
  0x6e   : > { %v1328_v17 = vsel %vm4913_vm13, %v1323_v40, %v1327_v9  ;;  %v825_v57 = vsel %vm4885_vm10, %v3914_v44, %v824_v27  ;;  %v1345_v15 = vrot.slane %v1343_v56, 5  ;;  %v1353_v25 = vshrl.u32 %v1250_v11, 16  ;;  %v735_v9 = vld [vmem:[#allocation2 + $0x50] sm:$0x8]  ;;  %v4971_v27 = vld [vmem:[%s5708_s3 + $0xa] sm:$0x3] }
  0x6f   : > { %v1338_v21 = vsel %vm4913_vm13, %v1333_v13, %v1337_v18  ;;  %v3939_v50 = vcombine.low %v825_v57, %v834_v35  ;;  %v1351_v42 = vrot.slane %v1349_v48, 5  ;;  %v1359_v55 = vshll.u32 %v1251_v47, 16  ;;  %4392 = vmatprep.subr.msk.bf16.mxu1 %vm991_vm6, %v4971_v27  ;;  %v1255_v13 = vld [vmem:[#allocation2 + $0x54] sm:$0xf]  ;;  %v1256_v35 = vld [vmem:[#allocation2 + $0x58] sm:$0xf] }
  0x70   : > { %v3955_v58 = vcombine.low %v1328_v17, %v1338_v21  ;;  %v1346_v62 = vor.u32 %v1345_v15, %v1342_v28  ;;  %v1355_v46 = vrot.slane %v1353_v25, 4  ;;  %v836_v59 = vshrl.u32 %v732_v49, 16  ;;  %v1257_v21 = vld [vmem:[#allocation2 + $0x5c] sm:$0x1] }
  0x71   : > { %4247 = vmatmul.mubr.msk.bf16.gmra.mxu1 %vm966_vm7, %v3939_v50  ;;  %v1361_v60 = vrot.slane %v1359_v55, 5  ;;  %v856_v12 = vsel %vm4885_vm10, %v848_v33, %v4796_v34  ;;  %v1364_v0 = vshrl.u32 %v1252_v23, 16  ;;  %v1367_v7 = vshll.u32 %v1252_v23, 16  ;;  %v4978_v33 = vld [vmem:[%s5708_s3 + $0xc] sm:$0x3] }
  0x72   : > { %4264 = vmatprep.mubr.msk.bf16.mxu0 %vm966_vm7, %v3955_v58  ;;  %v1347_v8 = vrot.slane %v1346_v62, 4  ;;  %v1356_v16 = vor.u32 %v1355_v46, %v1351_v42  ;;  %v3915_v19 = vrot.slane %v836_v59, 11  ;;  %v1373_v38 = vshll.u32 %v1253_v54, 16  ;;  %4393 = vmatprep.subr.msk.bf16.mxu0 %vm991_vm6, %v4978_v33  ;;  %v738_v58 = vld [vmem:[#allocation2 + $0x60] sm:$0x8] }
  0x73   : > { %v1366_v11 = vrot.slane %v1364_v0, 4  ;;  %v1369_v14 = vrot.slane %v1367_v7, 5  ;;  %v1377_v24 = vshrl.u32 %v1253_v54, 16  ;;  %v1383_v29 = vshll.u32 %v1254_v5, 16 }
  0x74   : > { %v1352_v34 = vsel %vm4913_vm13, %v1347_v8, %v1351_v42  ;;  %v1357_v36 = vrot.slane %v1356_v16, 4  ;;  %v847_v22 = vsel %vm4885_vm10, %v3915_v19, %v4793_v32  ;;  %v1375_v40 = vrot.slane %v1373_v38, 5  ;;  %v1259_v16 = vld [vmem:[#allocation2 + $0x68] sm:$0xf] }
  0x75   : > { %v3940_v18 = vcombine.low %v847_v22, %v856_v12  ;;  %v1370_v44 = vor.u32 %v1369_v14, %v1366_v11  ;;  %v1379_v47 = vrot.slane %v1377_v24, 4  ;;  %v1385_v56 = vrot.slane %v1383_v29, 5  ;;  %v1258_v12 = vld [vmem:[#allocation2 + $0x64] sm:$0xf] }
  0x76   : > { %v1362_v28 = vsel %vm4913_vm13, %v1357_v36, %v1361_v60  ;;  %v858_v48 = vshrl.u32 %v735_v9, 16  ;;  %v868_v49 = vor.u32 %v866_v1, %v4829_v52  ;;  %v870_v32 = vrot.slane %v4829_v52, 4 }
  0x77   : > { %v3956_v17 = vcombine.low %v1352_v34, %v1362_v28  ;;  %4250 = vmatprep.mubr.msk.bf16.mxu1 %vm966_vm7, %v3940_v18  ;;  %v1371_v57 = vrot.slane %v1370_v44, 4  ;;  %v1380_v15 = vor.u32 %v1379_v47, %v1375_v40  ;;  %v877_v25 = vor.u32 %v875_v45, %v4831_v53  ;;  %v1260_v34 = vld [vmem:[#allocation2 + $0x6c] sm:$0x1]  ;;  %v741_v44 = vld [vmem:[#allocation2 + $0x70] sm:$0x8] }
  0x78   : > { %v3916_v23 = vrot.slane %v858_v48, 11  ;;  %v1388_v50 = vshrl.u32 %v1255_v13, 16  ;;  %v1391_v42 = vshll.u32 %v1255_v13, 16  ;;  %v1397_v55 = vshll.u32 %v1256_v35, 16  ;;  %v1261_v28 = vld [vmem:[#allocation2 + $0x74] sm:$0xf] }
  0x79   : > { %4265 = vmatmul.mubr.msk.bf16.gmra.mxu0 %vm966_vm7, %v3956_v17  ;;  %v1376_v26 = vsel %vm4913_vm13, %v1371_v57, %v1375_v40  ;;  %v1381_v1 = vrot.slane %v1380_v15, 4  ;;  %v878_v52 = vsel %vm4885_vm10, %v870_v32, %v877_v25  ;;  %v1401_v54 = vshrl.u32 %v1256_v35, 16  ;;  %v1262_v57 = vld [vmem:[#allocation2 + $0x78] sm:$0xf] }
  0x7a   : > { %v869_v31 = vsel %vm4885_vm10, %v3916_v23, %v868_v49  ;;  %v1390_v45 = vrot.slane %v1388_v50, 4  ;;  %v1393_v53 = vrot.slane %v1391_v42, 5  ;;  %v1399_v62 = vrot.slane %v1397_v55, 5 }
  0x7b   : > { %v1386_v46 = vsel %vm4913_vm13, %v1381_v1, %v1385_v56  ;;  %v3941_v59 = vcombine.low %v869_v31, %v878_v52  ;;  %v1403_v5 = vrot.slane %v1401_v54, 4  ;;  %v1407_v60 = vshll.u32 %v1257_v21, 16  ;;  %v1626_v31 = vld [vmem:[#allocation2 + $0x14] sm:$0xf] }
  0x7c   : > { %v3957_v0 = vcombine.low %v1376_v26, %v1386_v46  ;;  %v1394_v7 = vor.u32 %v1393_v53, %v1390_v45  ;;  %v880_v9 = vshrl.u32 %v738_v58, 16  ;;  %v890_v8 = vor.u32 %v888_v63, %v4857_v6  ;;  %v1263_v26 = vld [vmem:[#allocation2 + $0x7c] sm:$0x1]  ;;  %v1627_v45 = vld [vmem:[#allocation2 + $0x18] sm:$0xf] }
  0x7d   : > { %4251 = vmatmul.mubr.msk.bf16.gmra.mxu1 %vm966_vm7, %v3941_v59  ;;  %v1404_v19 = vor.u32 %v1403_v5, %v1399_v62  ;;  %v1409_v38 = vrot.slane %v1407_v60, 5  ;;  %v892_v11 = vrot.slane %v4857_v6, 4  ;;  %v899_v14 = vor.u32 %v897_v3, %v4862_v10 }
  0x7e   : > { %4268 = vmatprep.mubr.msk.bf16.mxu0 %vm966_vm7, %v3957_v0  ;;  %v1395_v24 = vrot.slane %v1394_v7, 4  ;;  %v3917_v29 = vrot.slane %v880_v9, 11  ;;  %v1412_v36 = vshrl.u32 %v1258_v12, 16  ;;  %v1415_v22 = vshll.u32 %v1258_v12, 16  ;;  %v1628_v7 = vld [vmem:[#allocation2 + $0x20] sm:$0x8] }
  0x7f   : > { %v1405_v51 = vrot.slane %v1404_v19, 4  ;;  %v900_v63 = vsel %vm4885_vm10, %v892_v11, %v899_v14  ;;  %v1421_v40 = vshll.u32 %v1259_v16, 16  ;;  %v1425_v18 = vshrl.u32 %v1259_v16, 16 }
  0x80   : > { %v1400_v6 = vsel %vm4913_vm13, %v1395_v24, %v1399_v62  ;;  %v891_v2 = vsel %vm4885_vm10, %v3917_v29, %v890_v8  ;;  %v1414_v3 = vrot.slane %v1412_v36, 4  ;;  %v1417_v10 = vrot.slane %v1415_v22, 5 }
  0x81   : > { %v1410_v47 = vsel %vm4913_vm13, %v1405_v51, %v1409_v38  ;;  %v3942_v56 = vcombine.low %v891_v2, %v900_v63  ;;  %v1423_v13 = vrot.slane %v1421_v40, 5  ;;  %v1427_v35 = vrot.slane %v1425_v18, 4  ;;  %v5041_v38 = vld [vmem:[#allocation2 + $0x24] sm:$0xf]  ;;  %v5044_v63 = vld [vmem:[#allocation2 + $0x28] sm:$0xf] }
  0x82   : > { %v3958_v48 = vcombine.low %v1400_v6, %v1410_v47  ;;  %v1418_v49 = vor.u32 %v1417_v10, %v1414_v3  ;;  %v1431_v32 = vshll.u32 %v1260_v34, 16  ;;  %v902_v17 = vshrl.u32 %v741_v44, 16 }
  0x83   : > { %4254 = vmatprep.mubr.msk.bf16.mxu1 %vm966_vm7, %v3942_v56  ;;  %v1428_v15 = vor.u32 %v1427_v35, %v1423_v13  ;;  %v912_v25 = vor.u32 %v910_v20, %v4881_v37  ;;  %v914_v23 = vrot.slane %v4881_v37, 4  ;;  %v921_v21 = vor.u32 %v919_v30, %v4883_v41  ;;  %v1625_v20 = vld [vmem:[#allocation2 + $0x10] sm:$0x8] }
  0x84   : > { %4269 = vmatmul.mubr.msk.bf16.gmra.mxu0 %vm966_vm7, %v3958_v48  ;;  %v1419_v50 = vrot.slane %v1418_v49, 4  ;;  %v1433_v42 = vrot.slane %v1431_v32, 5  ;;  %v3918_v55 = vrot.slane %v902_v17, 11  ;;  %v1436_v1 = vshrl.u32 %v1261_v28, 16  ;;  %v1631_v48 = vld [vmem:[#allocation2 + $0x30] sm:$0x8] }
  0x85   : > { %v1429_v52 = vrot.slane %v1428_v15, 4  ;;  %v922_v54 = vsel %vm4885_vm10, %v914_v23, %v921_v21  ;;  %v1439_v58 = vshll.u32 %v1261_v28, 16  ;;  %v1445_v61 = vshll.u32 %v1262_v57, 16  ;;  %v1632_v15 = vld [vmem:[#allocation2 + $0x34] sm:$0xf] }
  0x86   : > { %v1424_v37 = vsel %vm4913_vm13, %v1419_v50, %v1423_v13  ;;  %v913_v4 = vsel %vm4885_vm10, %v3918_v55, %v912_v25  ;;  %v1438_v30 = vrot.slane %v1436_v1, 4  ;;  %v1449_v41 = vshrl.u32 %v1262_v57, 16  ;;  %v1634_v55 = vld [vmem:[#allocation2 + $0x40] sm:$0x8] }
  0x87   : > { %v1434_v53 = vsel %vm4913_vm13, %v1429_v52, %v1433_v42  ;;  %v3943_v62 = vcombine.low %v913_v4, %v922_v54  ;;  %v1441_v46 = vrot.slane %v1439_v58, 5  ;;  %v1447_v59 = vrot.slane %v1445_v61, 5  ;;  %v1633_v42 = vld [vmem:[#allocation2 + $0x38] sm:$0xf]  ;;  %v5065_v58 = vld [vmem:[#allocation2 + $0x44] sm:$0xf] }
  0x88   : > { %v3959_v5 = vcombine.low %v1424_v37, %v1434_v53  ;;  %v1451_v60 = vrot.slane %v1449_v41, 4  ;;  %v1455_v12 = vshll.u32 %v1263_v26, 16  ;;  %v1650_v0 = vshrl.u32 %v1625_v20, 16 }
  0x89   : > { %4255 = vmatmul.mubr.msk.bf16.gmra.mxu1 %vm966_vm7, %v3943_v62  ;;  %v1442_v9 = vor.u32 %v1441_v46, %v1438_v30  ;;  %v1655_v8 = vshrl.u32 %v1626_v31, 16  ;;  %v1658_v16 = vshll.u32 %v1626_v31, 16  ;;  %v1664_v19 = vshrl.u32 %v1627_v45, 16  ;;  %v5071_v30 = vld [vmem:[#allocation2 + $0x48] sm:$0xf] }
  0x8a   : > { %4272 = vmatprep.mubr.msk.bf16.mxu0 %vm966_vm7, %v3959_v5  ;;  %v1452_v11 = vor.u32 %v1451_v60, %v1447_v59  ;;  %v1457_v14 = vrot.slane %v1455_v12, 5  ;;  %v3969_v24 = vrot.slane %v1650_v0, 11  ;;  %v1667_v29 = vshll.u32 %v1627_v45, 16 }
  0x8b   : > { %v1443_v34 = vrot.slane %v1442_v9, 4  ;;  %v1657_v36 = vrot.slane %v1655_v8, 7  ;;  %v1666_v22 = vrot.slane %v1664_v19, 7  ;;  %v3995_v51 = vcombine.low %v1626_v31, %v1627_v45 }
  0x8c   : > { %v1453_v40 = vrot.slane %v1452_v11, 4  ;;  %v1672_v18 = vshrl.u32 %v1628_v7, 16  ;;  %v1677_v44 = vshrl.u32 %v5041_v38, 16  ;;  %v1680_v6 = vshll.u32 %v5041_v38, 16  ;;  %v5078_v7 = vld [vmem:[#allocation2 + $0x54] sm:$0xf] }
  0x8d   : > { %v1448_v2 = vsel %vm4913_vm13, %v1443_v34, %v1447_v59  ;;  %v1660_v3 = vor.u32 %v1658_v16, %v1657_v36  ;;  %v1662_v10 = vrot.slane %v1657_v36, 4  ;;  %v1669_v47 = vor.u32 %v1667_v29, %v1666_v22  ;;  %v1637_v59 = vld [vmem:[#allocation2 + $0x50] sm:$0x8]  ;;  %v1639_v34 = vld [vmem:[#allocation2 + $0x58] sm:$0xf] }
  0x8e   : > { %v1458_v56 = vsel %vm4913_vm13, %v1453_v40, %v1457_v14  ;;  %v3970_v13 = vrot.slane %v1672_v18, 11  ;;  %v1679_v35 = vrot.slane %v1677_v44, 7  ;;  %v1686_v28 = vshrl.u32 %v5044_v63, 16  ;;  %v5094_v40 = vld [vmem:[%s5708_s3 + $0x10] sm:$0x3] }
  0x8f   : > { %v3960_v49 = vcombine.low %v1448_v2, %v1458_v56  ;;  %v1661_v32 = vsel %vm4885_vm10, %v3969_v24, %v1660_v3  ;;  %v1670_v17 = vsel %vm4885_vm10, %v1662_v10, %v1669_v47  ;;  %v1689_v57 = vshll.u32 %v5044_v63, 16  ;;  %v1640_v3 = vld [vmem:[#allocation2 + $0x60] sm:$0x8]  ;;  %v5101_v10 = vld [vmem:[#allocation2 + $0x64] sm:$0xf] }
  0x90   : > { %v3978_v25 = vcombine.low %v1661_v32, %v1670_v17  ;;  %v1682_v23 = vor.u32 %v1680_v6, %v1679_v35  ;;  %v1684_v21 = vrot.slane %v1679_v35, 4  ;;  %v1688_v50 = vrot.slane %v1686_v28, 7  ;;  %v5108_v28 = vld [vmem:[#allocation2 + $0x68] sm:$0xf] }
  0x91   : > { %4273 = vmatmul.mubr.msk.bf16.gmra.mxu0 %vm966_vm7, %v3960_v49  ;;  %v3996_v26 = vcombine.low %v5041_v38, %v5044_v63  ;;  %v2440_v1 = vsel %vm991_vm6, %v4971_v27, 0  ;;  %v2807_v52 = vsel %vm991_vm6, %v4978_v33, 0  ;;  %v1694_v54 = vshrl.u32 %v1631_v48, 16  ;;  %v5083_v38 = vld [vmem:[%s5708_s3 + $0xe] sm:$0x3] }
  0x92   : > { %4278 = vmatprep.mubr.msk.bf16.mxu1 %vm966_vm7, %v3978_v25  ;;  %4296 = vmatprep.mubr.msk.bf16.mxu0 %vm966_vm7, %v3995_v51  ;;  %v1683_v61 = vsel %vm4885_vm10, %v3970_v13, %v1682_v23  ;;  %v1691_v20 = vor.u32 %v1689_v57, %v1688_v50  ;;  %v1699_v37 = vshrl.u32 %v1632_v15, 16  ;;  %v1702_v4 = vshll.u32 %v1632_v15, 16 }
  0x93   : > { %v3971_v41 = vrot.slane %v1694_v54, 11  ;;  %v1708_v27 = vshrl.u32 %v1633_v42, 16  ;;  %v1711_v31 = vshll.u32 %v1633_v42, 16  ;;  %v3997_v45 = vcombine.low %v1632_v15, %v1633_v42 }
  0x94   : > { %v1692_v33 = vsel %vm4885_vm10, %v1684_v21, %v1691_v20  ;;  %v1701_v53 = vrot.slane %v1699_v37, 7  ;;  %v1716_v62 = vshrl.u32 %v1634_v55, 16  ;;  %v1721_v46 = vshrl.u32 %v5065_v58, 16  ;;  %v1643_v21 = vld [vmem:[#allocation2 + $0x70] sm:$0x8] }
  0x95   : > { %v3979_v5 = vcombine.low %v1683_v61, %v1692_v33  ;;  %v1710_v60 = vrot.slane %v1708_v27, 7  ;;  %v1724_v12 = vshll.u32 %v5065_v58, 16  ;;  %v1730_v0 = vshrl.u32 %v5071_v30, 16 }
  0x96   : > { %v1704_v9 = vor.u32 %v1702_v4, %v1701_v53  ;;  %v1706_v8 = vrot.slane %v1701_v53, 4  ;;  %v3972_v16 = vrot.slane %v1716_v62, 11  ;;  %v1723_v19 = vrot.slane %v1721_v46, 7  ;;  %v1646_v53 = vld [vmem:[#allocation2 + $0x80] sm:$0x8] }
  0x97   : > { %4279 = vmatmul.mubr.msk.bf16.vlgmr.msra.gmra.mxu1 %vm966_vm7, %v3979_v5  ;;  %v1713_v11 = vor.u32 %v1711_v31, %v1710_v60  ;;  %v1732_v14 = vrot.slane %v1730_v0, 7  ;;  %v1733_v24 = vshll.u32 %v5071_v30, 16  ;;  %v3998_v29 = vcombine.low %v5065_v58, %v5071_v30  ;;  %v1645_v30 = vld [vmem:[#allocation2 + $0x78] sm:$0xf]  ;;  %v5130_v62 = vld [vmem:[#allocation2 + $0x84] sm:$0xf] }
  0x98   : > { %4313 = vmatpush3.bf16.msra.mxu1 %v2440_v1  ;;  %v1705_v36 = vsel %vm4885_vm10, %v3971_v41, %v1704_v9  ;;  %v1726_v22 = vor.u32 %v1724_v12, %v1723_v19  ;;  %v1728_v51 = vrot.slane %v1723_v19, 4  ;;  %v1738_v63 = vshrl.u32 %v1637_v59, 16  ;;  %v5119_v1 = vld [vmem:[#allocation2 + $0x74] sm:$0xf] }
  0x99   : > { %4297 = vmatmul.mubr.msk.bf16.vlgmr.msra.gmra.mxu0 %vm966_vm7, %v3996_v26  ;;  %v1714_v18 = vsel %vm4885_vm10, %v1706_v8, %v1713_v11  ;;  %v1735_v44 = vor.u32 %v1733_v24, %v1732_v14  ;;  %v1743_v6 = vshrl.u32 %v5078_v7, 16  ;;  %v1746_v2 = vshll.u32 %v5078_v7, 16  ;;  %4394 = vmatprep.subr.msk.bf16.mxu1 %vm991_vm6, %v5083_v38  ;;  %v5137_v8 = vld [vmem:[#allocation2 + $0x88] sm:$0xf] }
  0x9a   : > { %4331 = vmatpush3.bf16.msra.mxu0 %v2807_v52  ;;  %v3980_v47 = vcombine.low %v1705_v36, %v1714_v18  ;;  %4300 = vmatprep.mubr.msk.bf16.mxu0 %vm966_vm7, %v3997_v45  ;;  %v1727_v56 = vsel %vm4885_vm10, %v3972_v16, %v1726_v22  ;;  %v3973_v13 = vrot.slane %v1738_v63, 11  ;;  %v1752_v35 = vshrl.u32 %v1639_v34, 16  ;;  %v2173_v22 = vld [vmem:[#allocation2 + $0x14] sm:$0xf] }
  0x9b   : > { %v1736_v48 = vsel %vm4885_vm10, %v1728_v51, %v1735_v44  ;;  %v1745_v49 = vrot.slane %v1743_v6, 7  ;;  %v1755_v32 = vshll.u32 %v1639_v34, 16  ;;  %v3999_v17 = vcombine.low %v5078_v7, %v1639_v34  ;;  %4395 = vmatprep.subr.msk.bf16.mxu0 %vm991_vm6, %v5094_v40  ;;  %v2174_v6 = vld [vmem:[#allocation2 + $0x18] sm:$0xf] }
  0x9c   : > { %4282 = vmatprep.mubr.msk.bf16.mxu1 %vm966_vm7, %v3980_v47  ;;  %v3981_v57 = vcombine.low %v1727_v56, %v1736_v48  ;;  %v1754_v15 = vrot.slane %v1752_v35, 7  ;;  %v1760_v25 = vshrl.u32 %v1640_v3, 16  ;;  %v1765_v23 = vshrl.u32 %v5101_v10, 16  ;;  %v2175_v56 = vld [vmem:[#allocation2 + $0x1c] sm:$0x1] }
  0x9d   : > { %v1748_v50 = vor.u32 %v1746_v2, %v1745_v49  ;;  %v1750_v42 = vrot.slane %v1745_v49, 4  ;;  %v1768_v55 = vshll.u32 %v5101_v10, 16  ;;  %v1774_v26 = vshrl.u32 %v5108_v28, 16  ;;  %v2556_v49 = vld [vmem:[#allocation2 + $0x20] sm:$0x8] }
  0x9e   : > { %v1757_v52 = vor.u32 %v1755_v32, %v1754_v15  ;;  %v3974_v54 = vrot.slane %v1760_v25, 11  ;;  %v1767_v58 = vrot.slane %v1765_v23, 7  ;;  %v1777_v61 = vshll.u32 %v5108_v28, 16  ;;  %v5154_v25 = vld [vmem:[#allocation2 + $0x24] sm:$0xf] }
  0x9f   : > { %4283 = vmatmul.mubr.msk.bf16.gmra.mxu1 %vm966_vm7, %v3981_v57  ;;  %v1749_v20 = vsel %vm4885_vm10, %v3973_v13, %v1748_v50  ;;  %v1776_v37 = vrot.slane %v1774_v26, 7  ;;  %v4000_v4 = vcombine.low %v5101_v10, %v5108_v28  ;;  %v1782_v41 = vshrl.u32 %v1643_v21, 16 }
  0xa0   : > { %v1758_v27 = vsel %vm4885_vm10, %v1750_v42, %v1757_v52  ;;  %v1770_v31 = vor.u32 %v1768_v55, %v1767_v58  ;;  %v1772_v45 = vrot.slane %v1767_v58, 4  ;;  %v1787_v33 = vshrl.u32 %v5119_v1, 16 }
  0xa1   : > { %4301 = vmatmul.mubr.msk.bf16.gmra.mxu0 %vm966_vm7, %v3998_v29  ;;  %v3982_v46 = vcombine.low %v1749_v20, %v1758_v27  ;;  %v1779_v59 = vor.u32 %v1777_v61, %v1776_v37  ;;  %v3975_v5 = vrot.slane %v1782_v41, 11  ;;  %v1790_v60 = vshll.u32 %v5119_v1, 16 }
  0xa2   : > { %4304 = vmatprep.mubr.msk.bf16.mxu0 %vm966_vm7, %v3999_v17  ;;  %v1771_v12 = vsel %vm4885_vm10, %v3974_v54, %v1770_v31  ;;  %v1789_v0 = vrot.slane %v1787_v33, 7  ;;  %v1796_v7 = vshrl.u32 %v1645_v30, 16  ;;  %v1799_v9 = vshll.u32 %v1645_v30, 16  ;;  %v5160_v54 = vld [vmem:[#allocation2 + $0x28] sm:$0xf] }
  0xa3   : > { %4286 = vmatprep.mubr.msk.bf16.mxu1 %vm966_vm7, %v3982_v46  ;;  %v1780_v16 = vsel %vm4885_vm10, %v1772_v45, %v1779_v59  ;;  %v4001_v19 = vcombine.low %v5119_v1, %v1645_v30  ;;  %v1804_v11 = vshrl.u32 %v1646_v53, 16  ;;  %v1809_v14 = vshrl.u32 %v5130_v62, 16  ;;  %v2177_v45 = vld [vmem:[#allocation2 + $0x28] sm:$0xf] }
  0xa4   : > { %v3983_v24 = vcombine.low %v1771_v12, %v1780_v16  ;;  %v1792_v29 = vor.u32 %v1790_v60, %v1789_v0  ;;  %v1794_v34 = vrot.slane %v1789_v0, 4  ;;  %v1798_v36 = vrot.slane %v1796_v7, 7  ;;  %v2178_v60 = vld [vmem:[#allocation2 + $0x2c] sm:$0x1] }
  0xa5   : > { %v3976_v51 = vrot.slane %v1804_v11, 11  ;;  %v1811_v63 = vrot.slane %v1809_v14, 7  ;;  %v1812_v18 = vshll.u32 %v5130_v62, 16  ;;  %v1818_v44 = vshrl.u32 %v5137_v8, 16 }
  0xa6   : > { %v1793_v2 = vsel %vm4885_vm10, %v3975_v5, %v1792_v29  ;;  %v1801_v3 = vor.u32 %v1799_v9, %v1798_v36  ;;  %v1821_v10 = vshll.u32 %v5137_v8, 16  ;;  %v4002_v47 = vcombine.low %v5130_v62, %v5137_v8  ;;  %v5176_v36 = vld [vmem:[#allocation2 + $0x38] sm:$0xf] }
  0xa7   : > { %4287 = vmatmul.mubr.msk.bf16.gmra.mxu1 %vm966_vm7, %v3983_v24  ;;  %v1814_v13 = vor.u32 %v1812_v18, %v1811_v63  ;;  %v1816_v35 = vrot.slane %v1811_v63, 4  ;;  %v1820_v28 = vrot.slane %v1818_v44, 7  ;;  %v2198_v48 = vshrl.u32 %v2173_v22, 16 }
  0xa8   : > { %v1802_v32 = vsel %vm4885_vm10, %v1794_v34, %v1801_v3  ;;  %v2201_v17 = vshll.u32 %v2173_v22, 16  ;;  %v2207_v57 = vshll.u32 %v2174_v6, 16  ;;  %v2211_v15 = vshrl.u32 %v2174_v6, 16  ;;  %v5174_v34 = vld [vmem:[#allocation2 + $0x34] sm:$0xf] }
  0xa9   : > { %4305 = vmatmul.mubr.msk.bf16.gmra.mxu0 %vm966_vm7, %v4000_v4  ;;  %v3984_v23 = vcombine.low %v1793_v2, %v1802_v32  ;;  %v1815_v21 = vsel %vm4885_vm10, %v3976_v51, %v1814_v13  ;;  %v1823_v50 = vor.u32 %v1821_v10, %v1820_v28  ;;  %v2200_v42 = vrot.slane %v2198_v48, 4  ;;  %v2176_v4 = vld [vmem:[#allocation2 + $0x24] sm:$0xf]  ;;  %v2179_v32 = vld [vmem:[#allocation2 + $0x34] sm:$0xf] }
  0xaa   : > { %4308 = vmatprep.mubr.msk.bf16.mxu0 %vm966_vm7, %v4001_v19  ;;  %v2203_v55 = vrot.slane %v2201_v17, 5  ;;  %v2209_v26 = vrot.slane %v2207_v57, 5  ;;  %v2213_v1 = vrot.slane %v2211_v15, 4  ;;  %v2217_v52 = vshll.u32 %v2175_v56, 16  ;;  %v2559_v19 = vld [vmem:[#allocation2 + $0x30] sm:$0x8] }
  0xab   : > { %4290 = vmatprep.mubr.msk.bf16.mxu1 %vm966_vm7, %v3984_v23  ;;  %v1824_v58 = vsel %vm4885_vm10, %v1816_v35, %v1823_v50  ;;  %v2581_v61 = vshrl.u32 %v2556_v49, 16  ;;  %v2586_v20 = vshrl.u32 %v5154_v25, 16  ;;  %v2589_v37 = vshll.u32 %v5154_v25, 16 }
  0xac   : > { %v3985_v30 = vcombine.low %v1815_v21, %v1824_v58  ;;  %v2204_v41 = vor.u32 %v2203_v55, %v2200_v42  ;;  %v2214_v27 = vor.u32 %v2213_v1, %v2209_v26  ;;  %v2219_v31 = vrot.slane %v2217_v52, 5  ;;  %v2180_v21 = vld [vmem:[#allocation2 + $0x38] sm:$0xf]  ;;  %v2181_v1 = vld [vmem:[#allocation2 + $0x3c] sm:$0x1] }
  0xad   : > { %v4028_v33 = vrot.slane %v2581_v61, 11  ;;  %v2588_v53 = vrot.slane %v2586_v20, 7  ;;  %v2595_v62 = vshrl.u32 %v5160_v54, 16  ;;  %v2598_v46 = vshll.u32 %v5160_v54, 16 }
  0xae   : > { %v2205_v59 = vrot.slane %v2204_v41, 4  ;;  %v2215_v5 = vrot.slane %v2214_v27, 4  ;;  %v2222_v12 = vshrl.u32 %v2176_v4, 16  ;;  %v2225_v0 = vshll.u32 %v2176_v4, 16  ;;  %v2562_v27 = vld [vmem:[#allocation2 + $0x40] sm:$0x8] }
  0xaf   : > { %4291 = vmatmul.mubr.msk.bf16.gmra.mxu1 %vm966_vm7, %v3985_v30  ;;  %v2591_v7 = vor.u32 %v2589_v37, %v2588_v53  ;;  %v2593_v9 = vrot.slane %v2588_v53, 4  ;;  %v2597_v8 = vrot.slane %v2595_v62, 7  ;;  %v2231_v16 = vshll.u32 %v2177_v45, 16  ;;  %v5199_v53 = vld [vmem:[#allocation2 + $0x44] sm:$0xf] }
  0xb0   : > { %v2210_v11 = vsel %vm4913_vm13, %v2205_v59, %v2209_v26  ;;  %v2220_v14 = vsel %vm4913_vm13, %v2215_v5, %v2219_v31  ;;  %v2224_v24 = vrot.slane %v2222_v12, 4  ;;  %v2227_v29 = vrot.slane %v2225_v0, 5 }
  0xb1   : > { %4309 = vmatmul.mubr.msk.bf16.gmra.mxu0 %vm966_vm7, %v4002_v47  ;;  %v4012_v22 = vcombine.low %v2210_v11, %v2220_v14  ;;  %v2592_v51 = vsel %vm4885_vm10, %v4028_v33, %v2591_v7  ;;  %v2600_v63 = vor.u32 %v2598_v46, %v2597_v8  ;;  %v2233_v18 = vrot.slane %v2231_v16, 5  ;;  %v2183_v14 = vld [vmem:[#allocation2 + $0x48] sm:$0xf] }
  0xb2   : > { %v2228_v44 = vor.u32 %v2227_v29, %v2224_v24  ;;  %v2235_v6 = vshrl.u32 %v2177_v45, 16  ;;  %v2241_v2 = vshll.u32 %v2178_v60, 16  ;;  %v2603_v3 = vshrl.u32 %v2559_v19, 16  ;;  %v2182_v60 = vld [vmem:[#allocation2 + $0x44] sm:$0xf] }
  0xb3   : > { %4314 = vmatprep.mubr.msk.bf16.mxu1 %vm966_vm7, %v4012_v22  ;;  %v2601_v10 = vsel %vm4885_vm10, %v2593_v9, %v2600_v63  ;;  %v2608_v56 = vshrl.u32 %v5174_v34, 16  ;;  %v2611_v13 = vshll.u32 %v5174_v34, 16  ;;  %v2617_v47 = vshrl.u32 %v5176_v36, 16 }
  0xb4   : > { %v4037_v35 = vcombine.low %v2592_v51, %v2601_v10  ;;  %v2229_v28 = vrot.slane %v2228_v44, 4  ;;  %v2237_v48 = vrot.slane %v2235_v6, 4  ;;  %v2243_v49 = vrot.slane %v2241_v2, 5 }
  0xb5   : > { %v4029_v17 = vrot.slane %v2603_v3, 11  ;;  %v2610_v57 = vrot.slane %v2608_v56, 7  ;;  %v2619_v15 = vrot.slane %v2617_v47, 7  ;;  %v2620_v23 = vshll.u32 %v5176_v36, 16  ;;  %v2184_v3 = vld [vmem:[#allocation2 + $0x4c] sm:$0x1] }
  0xb6   : > { %4332 = vmatprep.mubr.msk.bf16.mxu0 %vm966_vm7, %v4037_v35  ;;  %v2234_v50 = vsel %vm4913_vm13, %v2229_v28, %v2233_v18  ;;  %v2238_v42 = vor.u32 %v2237_v48, %v2233_v18  ;;  %v2989_v55 = vsel %vm991_vm6, %v5083_v38, 0  ;;  %v3371_v26 = vsel %vm991_vm6, %v5094_v40, 0  ;;  %v5201_v40 = vld [vmem:[#allocation2 + $0x48] sm:$0xf] }
  0xb7   : > { %v2613_v52 = vor.u32 %v2611_v13, %v2610_v57  ;;  %v2615_v58 = vrot.slane %v2610_v57, 4  ;;  %v2622_v61 = vor.u32 %v2620_v23, %v2619_v15  ;;  %v2246_v20 = vshrl.u32 %v2179_v32, 16 }
  0xb8   : > { %v2239_v37 = vrot.slane %v2238_v42, 4  ;;  %v2249_v4 = vshll.u32 %v2179_v32, 16  ;;  %v2255_v30 = vshll.u32 %v2180_v21, 16  ;;  %v2259_v41 = vshrl.u32 %v2180_v21, 16  ;;  %v5213_v32 = vld [vmem:[#allocation2 + $0x54] sm:$0xf] }
  0xb9   : > { %v2614_v31 = vsel %vm4885_vm10, %v4029_v17, %v2613_v52  ;;  %v2623_v45 = vsel %vm4885_vm10, %v2615_v58, %v2622_v61  ;;  %v2248_v38 = vrot.slane %v2246_v20, 4  ;;  %v2265_v33 = vshll.u32 %v2181_v1, 16  ;;  %v5217_v21 = vld [vmem:[#allocation2 + $0x58] sm:$0xf]  ;;  %v2185_v20 = vld [vmem:[#allocation2 + $0x54] sm:$0xf] }
  0xba   : > { %v2244_v62 = vsel %vm4913_vm13, %v2239_v37, %v2243_v49  ;;  %v4038_v46 = vcombine.low %v2614_v31, %v2623_v45  ;;  %v2251_v59 = vrot.slane %v2249_v4, 5  ;;  %v2257_v5 = vrot.slane %v2255_v30, 5  ;;  %v2565_v49 = vld [vmem:[#allocation2 + $0x50] sm:$0x8] }
  0xbb   : > { %v4013_v12 = vcombine.low %v2234_v50, %v2244_v62  ;;  %v2261_v0 = vrot.slane %v2259_v41, 4  ;;  %v2267_v7 = vrot.slane %v2265_v33, 5  ;;  %v2625_v9 = vshrl.u32 %v2562_v27, 16  ;;  %v2186_v27 = vld [vmem:[#allocation2 + $0x58] sm:$0xf] }
  0xbc   : > { %4333 = vmatmul.mubr.msk.bf16.vlgmr.msra.gmra.mxu0 %vm966_vm7, %v4038_v46  ;;  %v2252_v8 = vor.u32 %v2251_v59, %v2248_v38  ;;  %v2630_v16 = vshrl.u32 %v5199_v53, 16  ;;  %v2633_v19 = vshll.u32 %v5199_v53, 16  ;;  %v2639_v11 = vshrl.u32 %v5201_v40, 16 }
  0xbd   : > { %4315 = vmatmul.mubr.msk.bf16.vlgmr.msra.gmra.mxu1 %vm966_vm7, %v4013_v12  ;;  %4367 = vmatpush3.bf16.msra.mxu0 %v3371_v26  ;;  %v2262_v24 = vor.u32 %v2261_v0, %v2257_v5  ;;  %v4030_v29 = vrot.slane %v2625_v9, 11  ;;  %v2642_v22 = vshll.u32 %v5201_v40, 16  ;;  %v2270_v51 = vshrl.u32 %v2182_v60, 16  ;;  %v2187_v0 = vld [vmem:[#allocation2 + $0x5c] sm:$0x1] }
  0xbe   : > { %4349 = vmatpush3.bf16.msra.mxu1 %v2989_v55  ;;  %v2253_v63 = vrot.slane %v2252_v8, 4  ;;  %v2632_v18 = vrot.slane %v2630_v16, 7  ;;  %v2641_v44 = vrot.slane %v2639_v11, 7  ;;  %v2273_v6 = vshll.u32 %v2182_v60, 16  ;;  %v2568_v8 = vld [vmem:[#allocation2 + $0x60] sm:$0x8] }
  0xbf   : > { %v2263_v2 = vrot.slane %v2262_v24, 4  ;;  %v2272_v10 = vrot.slane %v2270_v51, 4  ;;  %v2279_v56 = vshll.u32 %v2183_v14, 16  ;;  %v2283_v13 = vshrl.u32 %v2183_v14, 16  ;;  %v5233_v24 = vld [vmem:[#allocation2 + $0x64] sm:$0xf] }
  0xc0   : > { %v2258_v47 = vsel %vm4913_vm13, %v2253_v63, %v2257_v5  ;;  %v2635_v35 = vor.u32 %v2633_v19, %v2632_v18  ;;  %v2637_v28 = vrot.slane %v2632_v18, 4  ;;  %v2644_v48 = vor.u32 %v2642_v22, %v2641_v44  ;;  %v5235_v18 = vld [vmem:[#allocation2 + $0x68] sm:$0xf] }
  0xc1   : > { %v2268_v17 = vsel %vm4913_vm13, %v2263_v2, %v2267_v7  ;;  %v2275_v57 = vrot.slane %v2273_v6, 5  ;;  %v2281_v15 = vrot.slane %v2279_v56, 5  ;;  %v2285_v23 = vrot.slane %v2283_v13, 4 }
  0xc2   : > { %v4014_v50 = vcombine.low %v2258_v47, %v2268_v17  ;;  %v2636_v42 = vsel %vm4885_vm10, %v4030_v29, %v2635_v35  ;;  %v2645_v55 = vsel %vm4885_vm10, %v2637_v28, %v2644_v48  ;;  %v2289_v26 = vshll.u32 %v2184_v3, 16  ;;  %v2188_v35 = vld [vmem:[#allocation2 + $0x64] sm:$0xf]  ;;  %v2189_v28 = vld [vmem:[#allocation2 + $0x68] sm:$0xf] }
  0xc3   : > { %v4039_v1 = vcombine.low %v2636_v42, %v2645_v55  ;;  %v2276_v52 = vor.u32 %v2275_v57, %v2272_v10  ;;  %v2286_v58 = vor.u32 %v2285_v23, %v2281_v15  ;;  %v2647_v61 = vshrl.u32 %v2565_v49, 16 }
  0xc4   : > { %4318 = vmatprep.mubr.msk.bf16.mxu1 %vm966_vm7, %v4014_v50  ;;  %v2291_v37 = vrot.slane %v2289_v26, 5  ;;  %v2652_v4 = vshrl.u32 %v5213_v32, 16  ;;  %v2655_v30 = vshll.u32 %v5213_v32, 16  ;;  %v2661_v41 = vshrl.u32 %v5217_v21, 16  ;;  %v2190_v26 = vld [vmem:[#allocation2 + $0x6c] sm:$0x1] }
  0xc5   : > { %4336 = vmatprep.mubr.msk.bf16.mxu0 %vm966_vm7, %v4039_v1  ;;  %v2277_v31 = vrot.slane %v2276_v52, 4  ;;  %v2287_v45 = vrot.slane %v2286_v58, 4  ;;  %v4031_v38 = vrot.slane %v2647_v61, 11  ;;  %v2664_v33 = vshll.u32 %v5217_v21, 16 }
  0xc6   : > { %v2654_v62 = vrot.slane %v2652_v4, 7  ;;  %v2663_v46 = vrot.slane %v2661_v41, 7  ;;  %v2294_v59 = vshrl.u32 %v2185_v20, 16  ;;  %v2297_v5 = vshll.u32 %v2185_v20, 16  ;;  %v5251_v41 = vld [vmem:[#allocation2 + $0x74] sm:$0xf] }
  0xc7   : > { %v2282_v60 = vsel %vm4913_vm13, %v2277_v31, %v2281_v15  ;;  %v2292_v12 = vsel %vm4913_vm13, %v2287_v45, %v2291_v37  ;;  %v2303_v7 = vshll.u32 %v2186_v27, 16  ;;  %v2307_v9 = vshrl.u32 %v2186_v27, 16 }
  0xc8   : > { %v4015_v16 = vcombine.low %v2282_v60, %v2292_v12  ;;  %v2657_v19 = vor.u32 %v2655_v30, %v2654_v62  ;;  %v2659_v11 = vrot.slane %v2654_v62, 4  ;;  %v2666_v14 = vor.u32 %v2664_v33, %v2663_v46  ;;  %v2571_v30 = vld [vmem:[#allocation2 + $0x70] sm:$0x8] }
  0xc9   : > { %v2296_v29 = vrot.slane %v2294_v59, 4  ;;  %v2299_v22 = vrot.slane %v2297_v5, 5  ;;  %v2305_v51 = vrot.slane %v2303_v7, 5  ;;  %v2309_v63 = vrot.slane %v2307_v9, 4  ;;  %v5255_v5 = vld [vmem:[#allocation2 + $0x78] sm:$0xf] }
  0xca   : > { %4319 = vmatmul.mubr.msk.bf16.gmra.mxu1 %vm966_vm7, %v4015_v16  ;;  %v2658_v44 = vsel %vm4885_vm10, %v4031_v38, %v2657_v19  ;;  %v2667_v6 = vsel %vm4885_vm10, %v2659_v11, %v2666_v14  ;;  %v2313_v2 = vshll.u32 %v2187_v0, 16  ;;  %v2669_v3 = vshrl.u32 %v2568_v8, 16  ;;  %v2191_v9 = vld [vmem:[#allocation2 + $0x74] sm:$0xf] }
  0xcb   : > { %v4040_v10 = vcombine.low %v2658_v44, %v2667_v6  ;;  %v2300_v56 = vor.u32 %v2299_v22, %v2296_v29  ;;  %v2310_v13 = vor.u32 %v2309_v63, %v2305_v51  ;;  %v2674_v47 = vshrl.u32 %v5233_v24, 16  ;;  %v2192_v63 = vld [vmem:[#allocation2 + $0x78] sm:$0xf] }
  0xcc   : > { %v2315_v48 = vrot.slane %v2313_v2, 5  ;;  %v4032_v49 = vrot.slane %v2669_v3, 11  ;;  %v2677_v17 = vshll.u32 %v5233_v24, 16  ;;  %v2683_v57 = vshrl.u32 %v5235_v18, 16  ;;  %v2193_v2 = vld [vmem:[#allocation2 + $0x7c] sm:$0x1] }
  0xcd   : > { %4337 = vmatmul.mubr.msk.bf16.gmra.mxu0 %vm966_vm7, %v4040_v10  ;;  %v2301_v15 = vrot.slane %v2300_v56, 4  ;;  %v2311_v23 = vrot.slane %v2310_v13, 4  ;;  %v2676_v50 = vrot.slane %v2674_v47, 7  ;;  %v2686_v42 = vshll.u32 %v5235_v18, 16 }
  0xce   : > { %v2685_v55 = vrot.slane %v2683_v57, 7  ;;  %v2318_v1 = vshrl.u32 %v2188_v35, 16  ;;  %v2321_v52 = vshll.u32 %v2188_v35, 16  ;;  %v2327_v58 = vshll.u32 %v2189_v28, 16 }
  0xcf   : > { %v2306_v61 = vsel %vm4913_vm13, %v2301_v15, %v2305_v51  ;;  %v2316_v20 = vsel %vm4913_vm13, %v2311_v23, %v2315_v48  ;;  %v2679_v37 = vor.u32 %v2677_v17, %v2676_v50  ;;  %v2681_v4 = vrot.slane %v2676_v50, 4 }
  0xd0   : > { %v4016_v27 = vcombine.low %v2306_v61, %v2316_v20  ;;  %v2688_v31 = vor.u32 %v2686_v42, %v2685_v55  ;;  %v2320_v45 = vrot.slane %v2318_v1, 4  ;;  %v2323_v38 = vrot.slane %v2321_v52, 5  ;;  %v5269_v55 = vld [vmem:[#allocation2 + $0x84] sm:$0xf] }
  0xd1   : > { %v2680_v33 = vsel %vm4885_vm10, %v4032_v49, %v2679_v37  ;;  %v2329_v62 = vrot.slane %v2327_v58, 5  ;;  %v2331_v46 = vshrl.u32 %v2189_v28, 16  ;;  %v2337_v59 = vshll.u32 %v2190_v26, 16  ;;  %v2574_v28 = vld [vmem:[#allocation2 + $0x80] sm:$0x8] }
  0xd2   : > { %4322 = vmatprep.mubr.msk.bf16.mxu1 %vm966_vm7, %v4016_v27  ;;  %v2689_v60 = vsel %vm4885_vm10, %v2681_v4, %v2688_v31  ;;  %v2324_v12 = vor.u32 %v2323_v38, %v2320_v45  ;;  %v2691_v0 = vshrl.u32 %v2571_v30, 16  ;;  %v2696_v7 = vshrl.u32 %v5251_v41, 16  ;;  %v5273_v58 = vld [vmem:[#allocation2 + $0x88] sm:$0xf]  ;;  %v2194_v27 = vld [vmem:[#allocation2 + $0x84] sm:$0xf] }
  0xd3   : > { %v4041_v8 = vcombine.low %v2680_v33, %v2689_v60  ;;  %v2333_v16 = vrot.slane %v2331_v46, 4  ;;  %v2339_v19 = vrot.slane %v2337_v59, 5  ;;  %v2699_v11 = vshll.u32 %v5251_v41, 16 }
  0xd4   : > { %v2325_v14 = vrot.slane %v2324_v12, 4  ;;  %v4033_v29 = vrot.slane %v2691_v0, 11  ;;  %v2698_v22 = vrot.slane %v2696_v7, 7  ;;  %v2705_v51 = vshrl.u32 %v5255_v5, 16 }
  0xd5   : > { %4340 = vmatprep.mubr.msk.bf16.mxu0 %vm966_vm7, %v4041_v8  ;;  %v2334_v44 = vor.u32 %v2333_v16, %v2329_v62  ;;  %v2708_v6 = vshll.u32 %v5255_v5, 16  ;;  %v2342_v3 = vshrl.u32 %v2191_v9, 16  ;;  %v2345_v10 = vshll.u32 %v2191_v9, 16  ;;  %v2196_v9 = vld [vmem:[#allocation2 + $0x8c] sm:$0x1] }
  0xd6   : > { %v2330_v56 = vsel %vm4913_vm13, %v2325_v14, %v2329_v62  ;;  %v2701_v13 = vor.u32 %v2699_v11, %v2698_v22  ;;  %v2703_v47 = vrot.slane %v2698_v22, 4  ;;  %v2707_v35 = vrot.slane %v2705_v51, 7  ;;  %v2195_v62 = vld [vmem:[#allocation2 + $0x88] sm:$0xf]  ;;  %v2577_v22 = vld [vmem:[#allocation2 + $0x90] sm:$0x8] }
  0xd7   : > { %v2335_v48 = vrot.slane %v2334_v44, 4  ;;  %v2344_v49 = vrot.slane %v2342_v3, 4  ;;  %v2347_v17 = vrot.slane %v2345_v10, 5  ;;  %v2351_v57 = vshll.u32 %v2192_v63, 16 }
  0xd8   : > { %v2702_v15 = vsel %vm4885_vm10, %v4033_v29, %v2701_v13  ;;  %v2710_v23 = vor.u32 %v2708_v6, %v2707_v35  ;;  %v2355_v50 = vshrl.u32 %v2192_v63, 16  ;;  %v2361_v42 = vshll.u32 %v2193_v2, 16  ;;  %v5285_v2 = vld [vmem:[#allocation2 + $0x94] sm:$0xf] }
  0xd9   : > { %v2340_v26 = vsel %vm4913_vm13, %v2335_v48, %v2339_v19  ;;  %v2348_v1 = vor.u32 %v2347_v17, %v2344_v49  ;;  %v2353_v52 = vrot.slane %v2351_v57, 5  ;;  %v2713_v61 = vshrl.u32 %v2574_v28, 16  ;;  %v5291_v49 = vld [vmem:[#allocation2 + $0x98] sm:$0xf] }
  0xda   : > { %v4017_v20 = vcombine.low %v2330_v56, %v2340_v26  ;;  %v2711_v37 = vsel %vm4885_vm10, %v2703_v47, %v2710_v23  ;;  %v2357_v4 = vrot.slane %v2355_v50, 4  ;;  %v2363_v30 = vrot.slane %v2361_v42, 5  ;;  %v3104_v50 = vld [vmem:[#allocation2 + $0x24] sm:$0xf] }
  0xdb   : > { %v4042_v31 = vcombine.low %v2702_v15, %v2711_v37  ;;  %v2349_v45 = vrot.slane %v2348_v1, 4  ;;  %v4034_v38 = vrot.slane %v2713_v61, 11  ;;  %v2718_v33 = vshrl.u32 %v5269_v55, 16 }
  0xdc   : > { %4323 = vmatmul.mubr.msk.bf16.gmra.mxu1 %vm966_vm7, %v4017_v20  ;;  %v2358_v46 = vor.u32 %v2357_v4, %v2353_v52  ;;  %v2721_v59 = vshll.u32 %v5269_v55, 16  ;;  %v2727_v60 = vshrl.u32 %v5273_v58, 16  ;;  %v2730_v12 = vshll.u32 %v5273_v58, 16 }
  0xdd   : > { %4341 = vmatmul.mubr.msk.bf16.gmra.mxu0 %vm966_vm7, %v4042_v31  ;;  %v2354_v0 = vsel %vm4913_vm13, %v2349_v45, %v2353_v52  ;;  %v2720_v7 = vrot.slane %v2718_v33, 7  ;;  %v2366_v8 = vshrl.u32 %v2194_v27, 16  ;;  %v2369_v16 = vshll.u32 %v2194_v27, 16 }
  0xde   : > { %v2359_v19 = vrot.slane %v2358_v46, 4  ;;  %v2729_v11 = vrot.slane %v2727_v60, 7  ;;  %v2375_v14 = vshll.u32 %v2195_v62, 16  ;;  %v2379_v29 = vshrl.u32 %v2195_v62, 16 }
  0xdf   : > { %v2723_v51 = vor.u32 %v2721_v59, %v2720_v7  ;;  %v2725_v63 = vrot.slane %v2720_v7, 4  ;;  %v2368_v44 = vrot.slane %v2366_v8, 4  ;;  %v2371_v6 = vrot.slane %v2369_v16, 5 }
  0xe0   : > { %v2364_v3 = vsel %vm4913_vm13, %v2359_v19, %v2363_v30  ;;  %v2732_v10 = vor.u32 %v2730_v12, %v2729_v11  ;;  %v2377_v56 = vrot.slane %v2375_v14, 5  ;;  %v2381_v13 = vrot.slane %v2379_v29, 4  ;;  %v3105_v30 = vld [vmem:[#allocation2 + $0x28] sm:$0xf]  ;;  %v3107_v12 = vld [vmem:[#allocation2 + $0x34] sm:$0xf] }
  0xe1   : > { %v4018_v47 = vcombine.low %v2354_v0, %v2364_v3  ;;  %v2724_v35 = vsel %vm4885_vm10, %v4034_v38, %v2723_v51  ;;  %v2372_v28 = vor.u32 %v2371_v6, %v2368_v44  ;;  %v2385_v48 = vshll.u32 %v2196_v9, 16  ;;  %v3106_v38 = vld [vmem:[#allocation2 + $0x2c] sm:$0x1]  ;;  %v3109_v51 = vld [vmem:[#allocation2 + $0x3c] sm:$0x1] }
  0xe2   : > { %v2733_v17 = vsel %vm4885_vm10, %v2725_v63, %v2732_v10  ;;  %v2382_v57 = vor.u32 %v2381_v13, %v2377_v56  ;;  %v2735_v15 = vshrl.u32 %v2577_v22, 16  ;;  %v2740_v23 = vshrl.u32 %v5285_v2, 16 }
  0xe3   : > { %4326 = vmatprep.mubr.msk.bf16.mxu1 %vm966_vm7, %v4018_v47  ;;  %v4043_v42 = vcombine.low %v2724_v35, %v2733_v17  ;;  %v2373_v26 = vrot.slane %v2372_v28, 4  ;;  %v2387_v1 = vrot.slane %v2385_v48, 5  ;;  %v2743_v52 = vshll.u32 %v5285_v2, 16 }
  0xe4   : > { %v2383_v61 = vrot.slane %v2382_v57, 4  ;;  %v4035_v20 = vrot.slane %v2735_v15, 11  ;;  %v2742_v37 = vrot.slane %v2740_v23, 7  ;;  %v2749_v4 = vshrl.u32 %v5291_v49, 16 }
  0xe5   : > { %4344 = vmatprep.mubr.msk.bf16.mxu0 %vm966_vm7, %v4043_v42  ;;  %v2378_v27 = vsel %vm4913_vm13, %v2373_v26, %v2377_v56  ;;  %v2752_v31 = vshll.u32 %v5291_v49, 16  ;;  %v4054_v45 = vcombine.low %v5154_v25, %v5160_v54  ;;  %v3129_v33 = vshrl.u32 %v3104_v50, 16  ;;  %v3108_v25 = vld [vmem:[#allocation2 + $0x38] sm:$0xf]  ;;  %v3110_v56 = vld [vmem:[#allocation2 + $0x44] sm:$0xf] }
  0xe6   : > { %v2388_v62 = vsel %vm4913_vm13, %v2383_v61, %v2387_v1  ;;  %v2745_v46 = vor.u32 %v2743_v52, %v2742_v37  ;;  %v2747_v59 = vrot.slane %v2742_v37, 4  ;;  %v2751_v60 = vrot.slane %v2749_v4, 7  ;;  %v3112_v61 = vld [vmem:[#allocation2 + $0x4c] sm:$0x1] }
  0xe7   : > { %v4019_v0 = vcombine.low %v2378_v27, %v2388_v62  ;;  %v3131_v7 = vrot.slane %v3129_v33, 4  ;;  %v3132_v9 = vshll.u32 %v3104_v50, 16  ;;  %v3138_v8 = vshll.u32 %v3105_v30, 16  ;;  %v3113_v33 = vld [vmem:[#allocation2 + $0x54] sm:$0xf] }
  0xe8   : > { %v2746_v16 = vsel %vm4885_vm10, %v4035_v20, %v2745_v46  ;;  %v2754_v19 = vor.u32 %v2752_v31, %v2751_v60  ;;  %v3142_v11 = vshrl.u32 %v3105_v30, 16  ;;  %v3148_v14 = vshll.u32 %v3106_v38, 16 }
  0xe9   : > { %4327 = vmatmul.mubr.msk.bf16.gmra.mxu1 %vm966_vm7, %v4019_v0  ;;  %v3134_v54 = vrot.slane %v3132_v9, 5  ;;  %v3140_v29 = vrot.slane %v3138_v8, 5  ;;  %v4055_v22 = vcombine.low %v5174_v34, %v5176_v36  ;;  %v3153_v63 = vshrl.u32 %v3107_v12, 16  ;;  %v3111_v34 = vld [vmem:[#allocation2 + $0x48] sm:$0xf] }
  0xea   : > { %v2755_v44 = vsel %vm4885_vm10, %v2747_v59, %v2754_v19  ;;  %4350 = vmatprep.mubr.msk.bf16.mxu1 %vm966_vm7, %v4054_v45  ;;  %v3144_v6 = vrot.slane %v3142_v11, 4  ;;  %v3150_v3 = vrot.slane %v3148_v14, 5  ;;  %v3156_v10 = vshll.u32 %v3107_v12, 16  ;;  %v3114_v59 = vld [vmem:[#allocation2 + $0x58] sm:$0xf] }
  0xeb   : > { %v4044_v13 = vcombine.low %v2746_v16, %v2755_v44  ;;  %v3135_v47 = vor.u32 %v3134_v54, %v3131_v7  ;;  %v3155_v35 = vrot.slane %v3153_v63, 4  ;;  %v3162_v28 = vshll.u32 %v3108_v25, 16  ;;  %v3115_v16 = vld [vmem:[#allocation2 + $0x5c] sm:$0x1] }
  0xec   : > { %v3145_v48 = vor.u32 %v3144_v6, %v3140_v29  ;;  %v3158_v17 = vrot.slane %v3156_v10, 5  ;;  %v3166_v57 = vshrl.u32 %v3108_v25, 16  ;;  %v3172_v15 = vshll.u32 %v3109_v51, 16 }
  0xed   : > { %4345 = vmatmul.mubr.msk.bf16.gmra.mxu0 %vm966_vm7, %v4044_v13  ;;  %v3136_v36 = vrot.slane %v3135_v47, 4  ;;  %v3164_v43 = vrot.slane %v3162_v28, 5  ;;  %v4056_v23 = vcombine.low %v5199_v53, %v5201_v40  ;;  %v3177_v50 = vshrl.u32 %v3110_v56, 16  ;;  %v3118_v28 = vld [vmem:[#allocation2 + $0x6c] sm:$0x1] }
  0xee   : > { %v3146_v42 = vrot.slane %v3145_v48, 4  ;;  %v3159_v26 = vor.u32 %v3158_v17, %v3155_v35  ;;  %v3168_v1 = vrot.slane %v3166_v57, 4  ;;  %v3174_v52 = vrot.slane %v3172_v15, 5 }
  0xef   : > { %v3141_v20 = vsel %vm4913_vm13, %v3136_v36, %v3140_v29  ;;  %v3179_v37 = vrot.slane %v3177_v50, 4  ;;  %v3180_v4 = vshll.u32 %v3110_v56, 16  ;;  %v3186_v30 = vshll.u32 %v3111_v34, 16  ;;  %v3117_v56 = vld [vmem:[#allocation2 + $0x68] sm:$0xf] }
  0xf0   : > { %v3151_v27 = vsel %vm4913_vm13, %v3146_v42, %v3150_v3  ;;  %v3160_v31 = vrot.slane %v3159_v26, 4  ;;  %v3169_v45 = vor.u32 %v3168_v1, %v3164_v43  ;;  %v3190_v38 = vshrl.u32 %v3111_v34, 16  ;;  %v3119_v36 = vld [vmem:[#allocation2 + $0x74] sm:$0xf] }
  0xf1   : > { %v4071_v53 = vcombine.low %v3141_v20, %v3151_v27  ;;  %4351 = vmatmul.mubr.msk.bf16.vlgmr.msra.gmra.mxu1 %vm966_vm7, %v4055_v22  ;;  %v3182_v40 = vrot.slane %v3180_v4, 5  ;;  %v3188_v62 = vrot.slane %v3186_v30, 5  ;;  %v3196_v46 = vshll.u32 %v3112_v61, 16  ;;  %v3116_v22 = vld [vmem:[#allocation2 + $0x64] sm:$0xf] }
  0xf2   : > { %v3165_v60 = vsel %vm4913_vm13, %v3160_v31, %v3164_v43  ;;  %v3170_v12 = vrot.slane %v3169_v45, 4  ;;  %4354 = vmatprep.mubr.msk.bf16.mxu1 %vm966_vm7, %v4056_v23  ;;  %v3192_v0 = vrot.slane %v3190_v38, 4  ;;  %v4057_v7 = vcombine.low %v5213_v32, %v5217_v21  ;;  %v3121_v4 = vld [vmem:[#allocation2 + $0x7c] sm:$0x1] }
  0xf3   : > { %4368 = vmatprep.mubr.msk.bf16.mxu0 %vm966_vm7, %v4071_v53  ;;  %v3183_v9 = vor.u32 %v3182_v40, %v3179_v37  ;;  %v3198_v8 = vrot.slane %v3196_v46, 5  ;;  %v3201_v19 = vshrl.u32 %v3113_v33, 16  ;;  %v3204_v11 = vshll.u32 %v3113_v33, 16  ;;  %v3122_v33 = vld [vmem:[#allocation2 + $0x84] sm:$0xf] }
  0xf4   : > { %v3175_v14 = vsel %vm4913_vm13, %v3170_v12, %v3174_v52  ;;  %v3193_v25 = vor.u32 %v3192_v0, %v3188_v62  ;;  %v3210_v54 = vshll.u32 %v3114_v59, 16  ;;  %v3214_v29 = vshrl.u32 %v3114_v59, 16  ;;  %v3120_v52 = vld [vmem:[#allocation2 + $0x78] sm:$0xf] }
  0xf5   : > { %v4072_v51 = vcombine.low %v3165_v60, %v3175_v14  ;;  %v3184_v63 = vrot.slane %v3183_v9, 4  ;;  %v3203_v44 = vrot.slane %v3201_v19, 4  ;;  %v3206_v6 = vrot.slane %v3204_v11, 5 }
  0xf6   : > { %v3194_v3 = vrot.slane %v3193_v25, 4  ;;  %v3212_v32 = vrot.slane %v3210_v54, 5  ;;  %v3216_v21 = vrot.slane %v3214_v29, 4  ;;  %v3220_v10 = vshll.u32 %v3115_v16, 16 }
  0xf7   : > { %4369 = vmatmul.mubr.msk.bf16.vlgmr.msra.gmra.mxu0 %vm966_vm7, %v4072_v51  ;;  %v3189_v13 = vsel %vm4913_vm13, %v3184_v63, %v3188_v62  ;;  %v3207_v47 = vor.u32 %v3206_v6, %v3203_v44  ;;  %v4058_v35 = vcombine.low %v5233_v24, %v5235_v18  ;;  %v3225_v48 = vshrl.u32 %v3116_v22, 16  ;;  %v3125_v6 = vld [vmem:[#allocation2 + $0x94] sm:$0xf] }
  0xf8   : > { %v3199_v17 = vsel %vm4913_vm13, %v3194_v3, %v3198_v8  ;;  %v3217_v57 = vor.u32 %v3216_v21, %v3212_v32  ;;  %v3222_v15 = vrot.slane %v3220_v10, 5  ;;  %v3228_v34 = vshll.u32 %v3116_v22, 16  ;;  %v3124_v8 = vld [vmem:[#allocation2 + $0x8c] sm:$0x1] }
  0xf9   : > { %v4073_v43 = vcombine.low %v3189_v13, %v3199_v17  ;;  %4355 = vmatmul.mubr.msk.bf16.gmra.mxu1 %vm966_vm7, %v4057_v7  ;;  %v3208_v23 = vrot.slane %v3207_v47, 4  ;;  %v3227_v50 = vrot.slane %v3225_v48, 4  ;;  %v3234_v42 = vshll.u32 %v3117_v56, 16  ;;  %v3123_v7 = vld [vmem:[#allocation2 + $0x88] sm:$0xf] }
  0xfa   : > { %v3218_v26 = vrot.slane %v3217_v57, 4  ;;  %4358 = vmatprep.mubr.msk.bf16.mxu1 %vm966_vm7, %v4058_v35  ;;  %v3230_v1 = vrot.slane %v3228_v34, 5  ;;  %v3238_v24 = vshrl.u32 %v3117_v56, 16  ;;  %v3244_v18 = vshll.u32 %v3118_v28, 16  ;;  %v3126_v56 = vld [vmem:[#allocation2 + $0x98] sm:$0xf] }
  0xfb   : > { %4372 = vmatprep.mubr.msk.bf16.mxu0 %vm966_vm7, %v4073_v43  ;;  %v3213_v61 = vsel %vm4913_vm13, %v3208_v23, %v3212_v32  ;;  %v3236_v20 = vrot.slane %v3234_v42, 5  ;;  %v4059_v37 = vcombine.low %v5251_v41, %v5255_v5  ;;  %v3249_v30 = vshrl.u32 %v3119_v36, 16  ;;  %v3127_v57 = vld [vmem:[#allocation2 + $0x9c] sm:$0x1] }
  0xfc   : > { %v3223_v27 = vsel %vm4913_vm13, %v3218_v26, %v3222_v15  ;;  %v3231_v31 = vor.u32 %v3230_v1, %v3227_v50  ;;  %v3240_v45 = vrot.slane %v3238_v24, 4  ;;  %v3246_v38 = vrot.slane %v3244_v18, 5 }
  0xfd   : > { %v4074_v53 = vcombine.low %v3213_v61, %v3223_v27  ;;  %v3251_v40 = vrot.slane %v3249_v30, 4  ;;  %v3252_v62 = vshll.u32 %v3119_v36, 16  ;;  %v3258_v46 = vshll.u32 %v3120_v52, 16 }
  0xfe   : > { %v3232_v59 = vrot.slane %v3231_v31, 4  ;;  %v3241_v60 = vor.u32 %v3240_v45, %v3236_v20  ;;  %v3262_v12 = vshrl.u32 %v3120_v52, 16  ;;  %v3268_v0 = vshll.u32 %v3121_v4, 16 }
  0xff   : > { %4373 = vmatmul.mubr.msk.bf16.gmra.mxu0 %vm966_vm7, %v4074_v53  ;;  %v3254_v41 = vrot.slane %v3252_v62, 5  ;;  %v3260_v5 = vrot.slane %v3258_v46, 5  ;;  %v4060_v9 = vcombine.low %v5269_v55, %v5273_v58  ;;  %v3273_v16 = vshrl.u32 %v3122_v33, 16 }
 0x100   : > { %v3237_v19 = vsel %vm4913_vm13, %v3232_v59, %v3236_v20  ;;  %v3242_v11 = vrot.slane %v3241_v60, 4  ;;  %v3264_v14 = vrot.slane %v3262_v12, 4  ;;  %v3270_v25 = vrot.slane %v3268_v0, 5 }
 0x101   : > { %4359 = vmatmul.mubr.msk.bf16.gmra.mxu1 %vm966_vm7, %v4059_v37  ;;  %v3255_v54 = vor.u32 %v3254_v41, %v3251_v40  ;;  %v3275_v29 = vrot.slane %v3273_v16, 4  ;;  %v3276_v22 = vshll.u32 %v3122_v33, 16  ;;  %v3282_v51 = vshll.u32 %v3123_v7, 16 }
 0x102   : > { %v3247_v63 = vsel %vm4913_vm13, %v3242_v11, %v3246_v38  ;;  %v3265_v44 = vor.u32 %v3264_v14, %v3260_v5  ;;  %4362 = vmatprep.mubr.msk.bf16.mxu1 %vm966_vm7, %v4060_v9  ;;  %v3286_v55 = vshrl.u32 %v3123_v7, 16  ;;  %v3292_v58 = vshll.u32 %v3124_v8, 16 }
 0x103   : > { %v4075_v3 = vcombine.low %v3237_v19, %v3247_v63  ;;  %v3256_v32 = vrot.slane %v3255_v54, 4  ;;  %v3278_v21 = vrot.slane %v3276_v22, 5  ;;  %v3284_v10 = vrot.slane %v3282_v51, 5 }
 0x104   : > { %v3266_v13 = vrot.slane %v3265_v44, 4  ;;  %v3288_v47 = vrot.slane %v3286_v55, 4  ;;  %v3294_v35 = vrot.slane %v3292_v58, 5  ;;  %v4061_v28 = vcombine.low %v5285_v2, %v5291_v49 }
 0x105   : > { %4376 = vmatprep.mubr.msk.bf16.mxu0 %vm966_vm7, %v4075_v3  ;;  %v3261_v48 = vsel %vm4913_vm13, %v3256_v32, %v3260_v5  ;;  %v3279_v17 = vor.u32 %v3278_v21, %v3275_v29  ;;  %v3297_v15 = vshrl.u32 %v3125_v6, 16  ;;  %v3300_v34 = vshll.u32 %v3125_v6, 16 }
 0x106   : > { %v3271_v36 = vsel %vm4913_vm13, %v3266_v13, %v3270_v25  ;;  %v3289_v43 = vor.u32 %v3288_v47, %v3284_v10  ;;  %v3306_v23 = vshll.u32 %v3126_v56, 16  ;;  %v3310_v50 = vshrl.u32 %v3126_v56, 16 }
 0x107   : > { %v4076_v42 = vcombine.low %v3261_v48, %v3271_v36  ;;  %v3280_v26 = vrot.slane %v3279_v17, 4  ;;  %v3299_v1 = vrot.slane %v3297_v15, 4  ;;  %v3302_v24 = vrot.slane %v3300_v34, 5 }
 0x108   : > { %v3290_v2 = vrot.slane %v3289_v43, 4  ;;  %v3308_v49 = vrot.slane %v3306_v23, 5  ;;  %v3312_v18 = vrot.slane %v3310_v50, 4  ;;  %v3316_v52 = vshll.u32 %v3127_v57, 16 }
 0x109   : > { %4377 = vmatmul.mubr.msk.bf16.gmra.mxu0 %vm966_vm7, %v4076_v42  ;;  %v3285_v61 = vsel %vm4913_vm13, %v3280_v26, %v3284_v10  ;;  %4363 = vmatmul.mubr.msk.bf16.gmra.mxu1 %vm966_vm7, %v4061_v28  ;;  %v3303_v20 = vor.u32 %v3302_v24, %v3299_v1 }
 0x10a   : > { %v3295_v37 = vsel %vm4913_vm13, %v3290_v2, %v3294_v35  ;;  %v3313_v4 = vor.u32 %v3312_v18, %v3308_v49  ;;  %v3318_v30 = vrot.slane %v3316_v52, 5 }
 0x10b   : > { %v4077_v27 = vcombine.low %v3285_v61, %v3295_v37  ;;  %v3304_v31 = vrot.slane %v3303_v20, 4 }
 0x10c   : > { %v3314_v45 = vrot.slane %v3313_v4, 4 }
 0x10d   : > { %4380 = vmatprep.mubr.msk.bf16.mxu0 %vm966_vm7, %v4077_v27  ;;  %v3309_v38 = vsel %vm4913_vm13, %v3304_v31, %v3308_v49 }
 0x10e   : > { %v3319_v33 = vsel %vm4913_vm13, %v3314_v45, %v3318_v30 }
 0x10f   : > { %v4078_v53 = vcombine.low %v3309_v38, %v3319_v33 }
 0x111   : > { %4381 = vmatmul.mubr.msk.bf16.gmra.mxu0 %vm966_vm7, %v4078_v53  ;;  %v4226_v40 = vpop.f32.mrf.mxu0 }
 0x113   : > { %v4234_v62 = vpop.f32.mrf.mxu1  ;;  %v1029_v46 = vpop.f32.mrf.mxu0 }
 0x115   : > { %v1061_v59 = vpop.f32.mrf.mxu1  ;;  %v4227_v60 = vpop.f32.mrf.mxu0 }
 0x117   : > { %v4235_v12 = vpop.f32.mrf.mxu1  ;;  %v1032_v0 = vpop.f32.mrf.mxu0 }
 0x119   : > { %v1064_v7 = vpop.f32.mrf.mxu1  ;;  %v4230_v41 = vpop.f32.mrf.mxu0 }
 0x11b   : > { %v4238_v5 = vpop.f32.mrf.mxu1  ;;  %v1045_v8 = vpop.f32.mrf.mxu0 }
 0x11d   : > { %v1077_v9 = vpop.f32.mrf.mxu1  ;;  %v4231_v11 = vpop.f32.mrf.mxu0 }
 0x11f   : > { %v4239_v16 = vpop.f32.mrf.mxu1  ;;  %v1048_v29 = vpop.f32.mrf.mxu0 }
 0x121   : > { %v1080_v19 = vpop.f32.mrf.mxu1 }
 0x123   : > { %v4244_v39 = vpop.f32.mrf.mxu1 }
 0x124   : > { %v1186_v14 = vadd.f32 %v4244_v39, %v4226_v40 }
 0x125   : > { %v1177_v25 = vpop.f32.mrf.mxu1 }
 0x126   : > { %v1178_v54 = vadd.f32 %v1177_v25, %v1029_v46 }
 0x127   : > { %v4245_v22 = vpop.f32.mrf.mxu1 }
 0x128   : > { %v1189_v51 = vadd.f32 %v4245_v22, %v4227_v60 }
 0x129   : > { %v1180_v63 = vpop.f32.mrf.mxu1 }
 0x12a   : > { %v1181_v44 = vadd.f32 %v1180_v63, %v1032_v0 }
 0x12b   : > { %v4262_v55 = vpop.f32.mrf.mxu0 }
 0x12c   : > { %v5375_v58 = vadd.f32 %v4262_v55, %v1186_v14 }
 0x12d   : > { %v1546_v6 = vpop.f32.mrf.mxu0 }
 0x12e   : > { %v5377_v3 = vadd.f32 %v1546_v6, %v1178_v54 }
 0x12f   : > { %v4263_v32 = vpop.f32.mrf.mxu0 }
 0x130   : > { %v5379_v21 = vadd.f32 %v4263_v32, %v1189_v51 }
 0x131   : > { %v1549_v10 = vpop.f32.mrf.mxu0  ;;  %v4248_v56 = vpop.f32.mrf.mxu1 }
 0x132   : > { %v5381_v13 = vadd.f32 %v1549_v10, %v1181_v44  ;;  %v1202_v47 = vadd.f32 %v4248_v56, %v4230_v41 }
 0x133   : > { %v1193_v35 = vpop.f32.mrf.mxu1 }
 0x134   : > { %v1194_v28 = vadd.f32 %v1193_v35, %v1045_v8 }
 0x135   : > { %v4249_v48 = vpop.f32.mrf.mxu1 }
 0x136   : > { %v1205_v17 = vadd.f32 %v4249_v48, %v4231_v11 }
 0x137   : > { %v1196_v57 = vpop.f32.mrf.mxu1 }
 0x138   : > { %v1197_v15 = vadd.f32 %v1196_v57, %v1048_v29 }
 0x139   : > { %v4266_v34 = vpop.f32.mrf.mxu0 }
 0x13a   : > { %v5383_v36 = vadd.f32 %v4266_v34, %v1202_v47 }
 0x13b   : > { %v1562_v43 = vpop.f32.mrf.mxu0 }
 0x13c   : > { %v5385_v23 = vadd.f32 %v1562_v43, %v1194_v28 }
 0x13d   : > { %v4267_v50 = vpop.f32.mrf.mxu0  ;;  %v4252_v42 = vpop.f32.mrf.mxu1 }
 0x13e   : > { %v5387_v26 = vadd.f32 %v4267_v50, %v1205_v17  ;;  %v1218_v1 = vadd.f32 %v4252_v42, %v4234_v62 }
 0x13f   : > { %v1565_v24 = vpop.f32.mrf.mxu0  ;;  %v1209_v2 = vpop.f32.mrf.mxu1 }
 0x140   : > { %v5389_v49 = vadd.f32 %v1565_v24, %v1197_v15  ;;  %v1210_v18 = vadd.f32 %v1209_v2, %v1061_v59 }
 0x141   : > { %v4253_v52 = vpop.f32.mrf.mxu1 }
 0x142   : > { %v1221_v61 = vadd.f32 %v4253_v52, %v4235_v12 }
 0x143   : > { %v1212_v20 = vpop.f32.mrf.mxu1 }
 0x144   : > { %v4270_v37 = vpop.f32.mrf.mxu0  ;;  %v1213_v4 = vadd.f32 %v1212_v20, %v1064_v7 }
 0x145   : > { %v5391_v30 = vadd.f32 %v4270_v37, %v1218_v1 }
 0x146   : > { %v1578_v27 = vpop.f32.mrf.mxu0 }
 0x147   : > { %v5393_v31 = vadd.f32 %v1578_v27, %v1210_v18 }
 0x148   : > { %v4271_v45 = vpop.f32.mrf.mxu0 }
 0x149   : > { %v5395_v38 = vadd.f32 %v4271_v45, %v1221_v61  ;;  %v4256_v33 = vpop.f32.mrf.mxu1 }
 0x14a   : > { %v1581_v53 = vpop.f32.mrf.mxu0  ;;  %v1234_v40 = vadd.f32 %v4256_v33, %v4238_v5 }
 0x14b   : > { %v5397_v62 = vadd.f32 %v1581_v53, %v1213_v4  ;;  %v1225_v46 = vpop.f32.mrf.mxu1 }
 0x14c   : > { %v1226_v59 = vadd.f32 %v1225_v46, %v1077_v9 }
 0x14d   : > { %v4257_v60 = vpop.f32.mrf.mxu1 }
 0x14e   : > { %v1237_v12 = vadd.f32 %v4257_v60, %v4239_v16 }
 0x14f   : > { %v1228_v0 = vpop.f32.mrf.mxu1 }
 0x150   : > { %v1229_v41 = vadd.f32 %v1228_v0, %v1080_v19 }
 0x151   : > { %v4274_v7 = vpop.f32.mrf.mxu0 }
 0x152   : > { %v5399_v8 = vadd.f32 %v4274_v7, %v1234_v40 }
 0x153   : > { %v1594_v11 = vpop.f32.mrf.mxu0 }
 0x154   : > { %v5401_v39 = vadd.f32 %v1594_v11, %v1226_v59 }
 0x155   : > { %v4275_v14 = vpop.f32.mrf.mxu0 }
 0x156   : > { %5718 = vst [vmem:[#allocation3_spill] sm:$0xff] %v5401_v39  ;;  %v5403_v25 = vadd.f32 %v4275_v14, %v1237_v12 }
 0x157   : > { %v1597_v54 = vpop.f32.mrf.mxu0  ;;  %v4280_v29 = vpop.f32.mrf.mxu1 }
 0x158   : > { %5719 = vst [vmem:[#allocation4_spill] sm:$0xff] %v5403_v25  ;;  %v5405_v5 = vadd.f32 %v1597_v54, %v1229_v41 }
 0x159   : > { %v4298_v22 = vpop.f32.mrf.mxu0  ;;  %v1912_v51 = vpop.f32.mrf.mxu1 }
 0x15a   : > { %5720 = vst [vmem:[#allocation5_spill] sm:$0xff] %v5405_v5 }
 0x15b   : > { %v2094_v9 = vpop.f32.mrf.mxu0  ;;  %v4281_v63 = vpop.f32.mrf.mxu1 }
 0x15d   : > { %v5407_v16 = vpop.f32.mrf.mxu0  ;;  %v1915_v19 = vpop.f32.mrf.mxu1 }
 0x15f   : > { %v5409_v44 = vpop.f32.mrf.mxu0  ;;  %v4284_v55 = vpop.f32.mrf.mxu1 }
 0x161   : > { %v5411_v6 = vpop.f32.mrf.mxu0  ;;  %v5413_v32 = vpop.f32.mrf.mxu1 }
 0x163   : > { %v5415_v10 = vpop.f32.mrf.mxu0  ;;  %v5417_v56 = vpop.f32.mrf.mxu1 }
 0x165   : > { %v5419_v47 = vpop.f32.mrf.mxu0  ;;  %v5421_v35 = vpop.f32.mrf.mxu1 }
 0x167   : > { %v5423_v28 = vpop.f32.mrf.mxu0  ;;  %v5425_v48 = vpop.f32.mrf.mxu1 }
 0x169   : > { %v5427_v17 = vpop.f32.mrf.mxu0  ;;  %v5429_v57 = vpop.f32.mrf.mxu1 }
 0x16b   : > { %v5431_v15 = vpop.f32.mrf.mxu0  ;;  %v5433_v34 = vpop.f32.mrf.mxu1 }
 0x16d   : > { %v5435_v43 = vpop.f32.mrf.mxu0  ;;  %v5437_v50 = vpop.f32.mrf.mxu1 }
 0x16e   : > { %5721 = vst [vmem:[#allocation6_spill] sm:$0xff] %v5435_v43 }
 0x16f   : > { %v5439_v42 = vpop.f32.mrf.mxu0  ;;  %v5441_v1 = vpop.f32.mrf.mxu1 }
 0x170   : > { %5722 = vst [vmem:[#allocation7_spill] sm:$0xff] %v5439_v42  ;;  %v1975_v42 = vadd.f32 %v1912_v51, %v5377_v3 }
 0x171   : > { %v5443_v24 = vpop.f32.mrf.mxu0  ;;  %v5445_v2 = vpop.f32.mrf.mxu1 }
 0x172   : > { %5723 = vst [vmem:[#allocation8_spill] sm:$0xff] %v5443_v24  ;;  %5724 = vst [vmem:[#allocation9_spill] sm:$0xff] %v5445_v2  ;;  %v1977_v2 = vadd.f32 %v4280_v29, %v5375_v58  ;;  %v1981_v58 = vadd.f32 %v4284_v55, %v5383_v36  ;;  %v1982_v36 = vadd.f32 %v5417_v56, %v5387_v26 }
 0x173   : > { %v5447_v18 = vpop.f32.mrf.mxu0  ;;  %v5449_v52 = vpop.f32.mrf.mxu1 }
 0x174   : > { %5725 = vst [vmem:[#allocation10_spill] sm:$0xff] %v5447_v18  ;;  %5726 = vst [vmem:[#allocation11_spill] sm:$0xff] %v5449_v52 }
 0x175   : > { %v5451_v61 = vpop.f32.mrf.mxu0  ;;  %v5453_v20 = vpop.f32.mrf.mxu1 }
 0x176   : > { %5727 = vst [vmem:[#allocation12_spill] sm:$0xff] %v5451_v61  ;;  %5728 = vst [vmem:[#allocation13_spill] sm:$0xff] %v5453_v20 }
 0x177   : > { %v5455_v37 = vpop.f32.mrf.mxu0 }
 0x178   : > { %5729 = vst [vmem:[#allocation14_spill] sm:$0xff] %v5455_v37 }
 0x17c   : > { %v4334_v27 = vpop.f32.mrf.mxu0 }
 0x17d   : > { %v4316_v4 = vpop.f32.mrf.mxu1 }
 0x17e   : > { %v2843_v33 = vpop.f32.mrf.mxu0 }
 0x17f   : > { %v2476_v45 = vpop.f32.mrf.mxu1 }
 0x180   : > { %v4335_v40 = vpop.f32.mrf.mxu0 }
 0x181   : > { %v4317_v53 = vpop.f32.mrf.mxu1 }
 0x182   : > { %v2846_v59 = vpop.f32.mrf.mxu0 }
 0x183   : > { %v2479_v46 = vpop.f32.mrf.mxu1 }
 0x18a   : > { %v4320_v60 = vpop.f32.mrf.mxu1 }
 0x18c   : > { %v2492_v0 = vpop.f32.mrf.mxu1 }
 0x18d   : > { %v4338_v12 = vpop.f32.mrf.mxu0 }
 0x18e   : > { %v4321_v7 = vpop.f32.mrf.mxu1 }
 0x18f   : > { %v5457_v41 = vpop.f32.mrf.mxu0 }
 0x190   : > { %v2495_v14 = vpop.f32.mrf.mxu1 }
 0x191   : > { %v5459_v11 = vpop.f32.mrf.mxu0 }
 0x193   : > { %v5461_v54 = vpop.f32.mrf.mxu0 }
 0x19c   : > { %v5463_v37 = vpop.f32.mrf.mxu1 }
 0x19d   : > { %5730 = vst [vmem:[#allocation15_spill] sm:$0xff] %v5463_v37  ;;  %v5465_v61 = vpop.f32.mrf.mxu0 }
 0x19e   : > { %5731 = vst [vmem:[#allocation16_spill] sm:$0xff] %v5465_v61  ;;  %v5467_v20 = vpop.f32.mrf.mxu1  ;;  %v2159_v61 = vadd.f32 %v4298_v22, %v1977_v2 }
 0x19f   : > { %5732 = vst [vmem:[#allocation17_spill] sm:$0xff] %v5467_v20  ;;  %v5469_v5 = vpop.f32.mrf.mxu0  ;;  %v1978_v20 = vadd.f32 %v4281_v63, %v5379_v21 }
 0x1a0   : > { %5733 = vst [vmem:[#allocation18_spill] sm:$0xff] %v5469_v5  ;;  %v5471_v18 = vpop.f32.mrf.mxu1  ;;  %v2541_v37 = vadd.f32 %v4316_v4, %v2159_v61 }
 0x1a1   : > { %5734 = vst [vmem:[#allocation19_spill] sm:$0xff] %v5471_v18  ;;  %v5473_v52 = vpop.f32.mrf.mxu0  ;;  %v2160_v3 = vadd.f32 %v5407_v16, %v1978_v20  ;;  %v1980_v20 = vadd.f32 %v5421_v35, %v5389_v49  ;;  %v1985_v49 = vadd.f32 %v5425_v48, %v5391_v30 }
 0x1a2   : > { %5735 = vst [vmem:[#allocation20_spill] sm:$0xff] %v5473_v52  ;;  %v5475_v25 = vpop.f32.mrf.mxu1  ;;  %v2157_v52 = vadd.f32 %v2094_v9, %v1975_v42  ;;  %v1979_v9 = vadd.f32 %v5413_v32, %v5385_v23  ;;  %v2908_v42 = vadd.f32 %v4334_v27, %v2541_v37 }
 0x1a3   : > { %5736 = vst [vmem:[#allocation21_spill] sm:$0xff] %v5475_v25  ;;  %v5478_v39 = vpop.f32.mrf.mxu0  ;;  %v1976_v25 = vadd.f32 %v1915_v19, %v5381_v13  ;;  %v2542_v13 = vadd.f32 %v4317_v53, %v2160_v3  ;;  %v2163_v19 = vadd.f32 %v5411_v6, %v1981_v58  ;;  %v2164_v6 = vadd.f32 %v5419_v47, %v1982_v36 }
 0x1a4   : > { %5737 = vst [vmem:[#allocation22_spill] sm:$0xff] %v5478_v39  ;;  %v2539_v51 = vadd.f32 %v2476_v45, %v2157_v52  ;;  %v2161_v23 = vadd.f32 %v5415_v10, %v1979_v9  ;;  %v2162_v53 = vadd.f32 %v5423_v28, %v1980_v20  ;;  %v1983_v10 = vadd.f32 %v5429_v57, %v5393_v31 }
 0x1a5   : > { %v2158_v63 = vadd.f32 %v5409_v44, %v1976_v25  ;;  %v2545_v25 = vadd.f32 %v4320_v60, %v2163_v19  ;;  %v2909_v32 = vadd.f32 %v4335_v40, %v2542_v13  ;;  %v2546_v47 = vadd.f32 %v4321_v7, %v2164_v6 }
 0x1a6   : > { %v2906_v16 = vadd.f32 %v2843_v33, %v2539_v51  ;;  %v2543_v56 = vadd.f32 %v2492_v0, %v2161_v23  ;;  %v2544_v58 = vadd.f32 %v2495_v14, %v2162_v53  ;;  %v2167_v57 = vadd.f32 %v5427_v17, %v1985_v49  ;;  %v5745_v49 = vld [vmem:[#allocation16_spill] sm:$0xff] }
 0x1a7   : > { %v2540_v52 = vadd.f32 %v2479_v46, %v2158_v63  ;;  %v2912_v35 = vadd.f32 %v4338_v12, %v2545_v25  ;;  %v2165_v12 = vadd.f32 %v5431_v15, %v1983_v10  ;;  %v1986_v7 = vadd.f32 %v5433_v34, %v5395_v38  ;;  %v5738_v34 = vld [vmem:[#allocation15_spill] sm:$0xff] }
 0x1a8   : > { %v2910_v51 = vadd.f32 %v5457_v41, %v2543_v56  ;;  %v1984_v14 = vadd.f32 %v5437_v50, %v5397_v62  ;;  %v2913_v63 = vadd.f32 %v5459_v11, %v2546_v47  ;;  %v1989_v15 = vadd.f32 %v5441_v1, %v5399_v8  ;;  %v5739_v1 = vld [vmem:[#allocation6_spill] sm:$0xff]  ;;  %v5743_v56 = vld [vmem:[#allocation3_spill] sm:$0xff] }
 0x1a9   : > { %v5480_v24 = vpop.f32.mrf.mxu1  ;;  %v2907_v26 = vadd.f32 %v2846_v59, %v2540_v52  ;;  %v2911_v38 = vadd.f32 %v5461_v54, %v2544_v58  ;;  %v2549_v13 = vadd.f32 %v5738_v34, %v2167_v57  ;;  %v2168_v54 = vadd.f32 %v5739_v1, %v1986_v7  ;;  %v5746_v47 = vld [vmem:[#allocation19_spill] sm:$0xff] }
 0x1ab   : > { %v5483_v43 = vpop.f32.mrf.mxu1  ;;  %v2916_v10 = vadd.f32 %v5745_v49, %v2549_v13  ;;  %v5752_v13 = vld [vmem:[#allocation5_spill] sm:$0xff] }
 0x1ad   : > { %v5486_v5 = vpop.f32.mrf.mxu0  ;;  %v5488_v18 = vpop.f32.mrf.mxu1 }
 0x1af   : > { %v5492_v29 = vpop.f32.mrf.mxu0  ;;  %v5494_v39 = vpop.f32.mrf.mxu1 }
 0x1b1   : > { %v5497_v22 = vpop.f32.mrf.mxu0  ;;  %v4352_v21 = vpop.f32.mrf.mxu1 }
 0x1b2   : > { %v3090_v61 = vadd.f32 %v4352_v21, %v2908_v42 }
 0x1b3   : > { %v5505_v55 = vpop.f32.mrf.mxu0  ;;  %v3025_v2 = vpop.f32.mrf.mxu1 }
 0x1b4   : > { %v3088_v37 = vadd.f32 %v3025_v2, %v2906_v16  ;;  %v5740_v16 = vld [vmem:[#allocation7_spill] sm:$0xff] }
 0x1b5   : > { %v4353_v44 = vpop.f32.mrf.mxu1  ;;  %v2166_v52 = vadd.f32 %v5740_v16, %v1984_v14 }
 0x1b6   : > { %v3091_v33 = vadd.f32 %v4353_v44, %v2909_v32 }
 0x1b7   : > { %v4370_v4 = vpop.f32.mrf.mxu0  ;;  %v3028_v27 = vpop.f32.mrf.mxu1 }
 0x1b8   : > { %v5511_v45 = vadd.f32 %v4370_v4, %v3090_v61  ;;  %v3089_v0 = vadd.f32 %v3028_v27, %v2907_v26  ;;  %v5741_v61 = vld [vmem:[#allocation17_spill] sm:$0xff]  ;;  %v5742_v27 = vld [vmem:[#allocation8_spill] sm:$0xff] }
 0x1b9   : > { %v3407_v40 = vpop.f32.mrf.mxu0  ;;  %v4356_v46 = vpop.f32.mrf.mxu1  ;;  %v2547_v20 = vadd.f32 %v5741_v61, %v2165_v12  ;;  %v2171_v26 = vadd.f32 %v5742_v27, %v1989_v15  ;;  %v5750_v12 = vld [vmem:[#allocation21_spill] sm:$0xff]  ;;  %v5755_v61 = vld [vmem:[#allocation12_spill] sm:$0xff] }
 0x1ba   : > { %v4127_v59 = vpack.c.bf16 %v5511_v45, %v5511_v45  ;;  %v5520_v60 = vadd.f32 %v3407_v40, %v3088_v37  ;;  %v3094_v48 = vadd.f32 %v4356_v46, %v2912_v35  ;;  %v3489_v32 = vsel %vm966_vm7, %v5511_v45, 0.0 }
 0x1bb   : > { %v4371_v3 = vpop.f32.mrf.mxu0  ;;  %v3041_v28 = vpop.f32.mrf.mxu1  ;;  %v2548_v7 = vadd.f32 %v5750_v12, %v2166_v52 }
 0x1bc   : > { %3663 = vst.msk [vmem:[%s4628_s26 + $0x8] sm:$0xf] %vm443_vm0, %v4127_v59  ;;  %v4125_v30 = vpack.c.bf16 %v5520_v60, %v5520_v60  ;;  %v5527_v31 = vadd.f32 %v4371_v3, %v3091_v33  ;;  %v3092_v17 = vadd.f32 %v3041_v28, %v2910_v51  ;;  %v3486_v62 = vsel %vm966_vm7, %v5520_v60, 0.0  ;;  %v5744_v33 = vld [vmem:[#allocation9_spill] sm:$0xff]  ;;  %v5747_v28 = vld [vmem:[#allocation4_spill] sm:$0xff]  ;;  %v5748_v51 = vld [vmem:[#allocation11_spill] sm:$0xff] }
 0x1bd   : > { %v3410_v41 = vpop.f32.mrf.mxu0  ;;  %v4357_v21 = vpop.f32.mrf.mxu1  ;;  %v1987_v53 = vadd.f32 %v5744_v33, %v5743_v56  ;;  %v2550_v59 = vadd.f32 %v5746_v47, %v2168_v54  ;;  %v5757_v56 = vld [vmem:[#allocation14_spill] sm:$0xff] }
 0x1be   : > { %3661 = vst.msk [vmem:[%s4628_s26] sm:$0xf] %vm443_vm0, %v4125_v30  ;;  %v4128_v9 = vpack.c.bf16 %v5527_v31, %v5527_v31  ;;  %v5540_v42 = vadd.f32 %v3410_v41, %v3089_v0  ;;  %v3095_v8 = vadd.f32 %v4357_v21, %v2913_v63  ;;  %v3491_v0 = vsel %vm966_vm7, %v5527_v31, 0.0 }
 0x1bf   : > { %v4374_v50 = vpop.f32.mrf.mxu0  ;;  %v3044_v11 = vpop.f32.mrf.mxu1  ;;  %v1990_v30 = vadd.f32 %v5748_v51, %v5747_v28 }
 0x1c0   : > { %3664 = vst.msk [vmem:[%s4628_s26 + $0xc] sm:$0xf] %vm443_vm0, %v4128_v9  ;;  %v3487_v19 = vsel %vm966_vm7, %v5540_v42, 0.0  ;;  %v4126_v36 = vpack.c.bf16 %v5540_v42, %v5540_v42  ;;  %v5554_v2 = vadd.f32 %v4374_v50, %v3094_v48  ;;  %v3093_v4 = vadd.f32 %v3044_v11, %v2911_v38  ;;  %v5749_v48 = vld [vmem:[#allocation18_spill] sm:$0xff] }
 0x1c1   : > { %v3488_v25 = vadd.f32 %v3487_v19, %v3486_v62  ;;  %v3423_v44 = vpop.f32.mrf.mxu0  ;;  %v4360_v23 = vpop.f32.mrf.mxu1  ;;  %v2914_v57 = vadd.f32 %v5749_v48, %v2547_v20  ;;  %v5751_v38 = vld [vmem:[#allocation10_spill] sm:$0xff]  ;;  %v5753_v62 = vld [vmem:[#allocation13_spill] sm:$0xff]  ;;  %v2553_v11 = vadd.f32 %v5480_v24, %v2171_v26  ;;  %v2172_v20 = vadd.f32 %v5755_v61, %v1990_v30 }
 0x1c2   : > { %3662 = vst.msk [vmem:[%s4628_s26 + $0x4] sm:$0xf] %vm443_vm0, %v4126_v36  ;;  %v4131_v37 = vpack.c.bf16 %v5554_v2, %v5554_v2  ;;  %v5565_v6 = vadd.f32 %v3423_v44, %v3092_v17  ;;  %v3098_v15 = vadd.f32 %v4360_v23, %v2916_v10  ;;  %v2169_v34 = vadd.f32 %v5751_v38, %v1987_v53 }
 0x1c3   : > { %v3490_v35 = vadd.f32 %v3489_v32, %v3488_v25  ;;  %v4375_v40 = vpop.f32.mrf.mxu0  ;;  %v3057_v46 = vpop.f32.mrf.mxu1  ;;  %v1988_v50 = vadd.f32 %v5753_v62, %v5752_v13  ;;  %v5756_v32 = vld [vmem:[#allocation22_spill] sm:$0xff]  ;;  %v2920_v53 = vadd.f32 %v5486_v5, %v2553_v11 }
 0x1c4   : > { %3667 = vst.msk [vmem:[%s4628_s26 + $0x18] sm:$0xf] %vm443_vm0, %v4131_v37  ;;  %v4129_v58 = vpack.c.bf16 %v5565_v6, %v5565_v6  ;;  %v5578_v3 = vadd.f32 %v4375_v40, %v3095_v8  ;;  %v3493_v63 = vsel %vm966_vm7, %v5565_v6, 0.0  ;;  %v5754_v8 = vld [vmem:[#allocation20_spill] sm:$0xff]  ;;  %v3096_v52 = vadd.f32 %v3057_v46, %v2914_v57 }
 0x1c5   : > { %v3492_v14 = vadd.f32 %v3491_v0, %v3490_v35  ;;  %v3426_v41 = vpop.f32.mrf.mxu0  ;;  %v4361_v21 = vpop.f32.mrf.mxu1  ;;  %v2917_v1 = vadd.f32 %v5754_v8, %v2550_v59  ;;  %v2551_v25 = vadd.f32 %v5483_v43, %v2169_v34  ;;  %v2915_v37 = vadd.f32 %v5756_v32, %v2548_v7 }
 0x1c6   : > { %3665 = vst.msk [vmem:[%s4628_s26 + $0x10] sm:$0xf] %vm443_vm0, %v4129_v58  ;;  %v4132_v9 = vpack.c.bf16 %v5578_v3, %v5578_v3  ;;  %v5590_v17 = vadd.f32 %v3426_v41, %v3093_v4  ;;  %v3497_v4 = vsel %vm966_vm7, %v5554_v2, 0.0  ;;  %v2170_v33 = vadd.f32 %v5757_v56, %v1988_v50 }
 0x1c7   : > { %v3494_v19 = vadd.f32 %v3493_v63, %v3492_v14  ;;  %v3060_v36 = vpop.f32.mrf.mxu1  ;;  %v3099_v26 = vadd.f32 %v4361_v21, %v2917_v1  ;;  %v2554_v43 = vadd.f32 %v5488_v18, %v2172_v20  ;;  %v3499_v40 = vsel %vm966_vm7, %v5578_v3, 0.0 }
 0x1c8   : > { %3668 = vst.msk [vmem:[%s4628_s26 + $0x1c] sm:$0xf] %vm443_vm0, %v4132_v9  ;;  %v3495_v54 = vsel %vm966_vm7, %v5590_v17, 0.0  ;;  %v4130_v16 = vpack.c.bf16 %v5590_v17, %v5590_v17  ;;  %v3097_v59 = vadd.f32 %v3060_v36, %v2915_v37  ;;  %v2918_v0 = vadd.f32 %v5492_v29, %v2551_v25 }
 0x1c9   : > { %v3496_v44 = vadd.f32 %v3495_v54, %v3494_v19  ;;  %v4378_v23 = vpop.f32.mrf.mxu0  ;;  %v4364_v24 = vpop.f32.mrf.mxu1  ;;  %v2552_v58 = vadd.f32 %v5494_v39, %v2170_v33  ;;  %v2921_v29 = vadd.f32 %v5497_v22, %v2554_v43 }
 0x1ca   : > { %3666 = vst.msk [vmem:[%s4628_s26 + $0x14] sm:$0xf] %vm443_vm0, %v4130_v16  ;;  %v5610_v27 = vadd.f32 %v4378_v23, %v3098_v15  ;;  %v3102_v57 = vadd.f32 %v4364_v24, %v2920_v53 }
 0x1cb   : > { %v3498_v49 = vadd.f32 %v3497_v4, %v3496_v44  ;;  %v3439_v10 = vpop.f32.mrf.mxu0  ;;  %v3073_v35 = vpop.f32.mrf.mxu1  ;;  %v2919_v21 = vadd.f32 %v5505_v55, %v2552_v58 }
 0x1cc   : > { %v4135_v46 = vpack.c.bf16 %v5610_v27, %v5610_v27  ;;  %v5619_v47 = vadd.f32 %v3439_v10, %v3096_v52  ;;  %v3100_v41 = vadd.f32 %v3073_v35, %v2918_v0  ;;  %v3505_v50 = vsel %vm966_vm7, %v5610_v27, 0.0 }
 0x1cd   : > { %v3500_v5 = vadd.f32 %v3499_v40, %v3498_v49  ;;  %v4379_v28 = vpop.f32.mrf.mxu0  ;;  %v4365_v18 = vpop.f32.mrf.mxu1 }
 0x1ce   : > { %3671 = vst.msk [vmem:[%s4628_s26 + $0x28] sm:$0xf] %vm443_vm0, %v4135_v46  ;;  %v3501_v51 = vsel %vm966_vm7, %v5619_v47, 0.0  ;;  %v4133_v30 = vpack.c.bf16 %v5619_v47, %v5619_v47  ;;  %v5629_v48 = vadd.f32 %v4379_v28, %v3099_v26  ;;  %v3103_v22 = vadd.f32 %v4365_v18, %v2921_v29 }
 0x1cf   : > { %v3502_v12 = vadd.f32 %v3501_v51, %v3500_v5  ;;  %v3442_v7 = vpop.f32.mrf.mxu0  ;;  %v3076_v9 = vpop.f32.mrf.mxu1 }
 0x1d0   : > { %3669 = vst.msk [vmem:[%s4628_s26 + $0x20] sm:$0xf] %vm443_vm0, %v4133_v30  ;;  %v4136_v39 = vpack.c.bf16 %v5629_v48, %v5629_v48  ;;  %v3479_v14 = vadd.f32 %v3442_v7, %v3097_v59  ;;  %v3101_v19 = vadd.f32 %v3076_v9, %v2919_v21  ;;  %v3507_v1 = vsel %vm966_vm7, %v5629_v48, 0.0 }
 0x1d1   : > { %v4382_v63 = vpop.f32.mrf.mxu0 }
 0x1d2   : > { %3672 = vst.msk [vmem:[%s4628_s26 + $0x2c] sm:$0xf] %vm443_vm0, %v4136_v39  ;;  %v3503_v15 = vsel %vm966_vm7, %v3479_v14, 0.0  ;;  %v4134_v38 = vpack.c.bf16 %v3479_v14, %v3479_v14  ;;  %v3484_v34 = vadd.f32 %v4382_v63, %v3102_v57 }
 0x1d3   : > { %v3504_v13 = vadd.f32 %v3503_v15, %v3502_v12  ;;  %v3455_v62 = vpop.f32.mrf.mxu0 }
 0x1d4   : > { %3670 = vst.msk [vmem:[%s4628_s26 + $0x24] sm:$0xf] %vm443_vm0, %v4134_v38  ;;  %v4139_v11 = vpack.c.bf16 %v3484_v34, %v3484_v34  ;;  %v3482_v55 = vadd.f32 %v3455_v62, %v3100_v41  ;;  %v3513_v4 = vsel %vm966_vm7, %v3484_v34, 0.0 }
 0x1d5   : > { %v3506_v36 = vadd.f32 %v3505_v50, %v3504_v13  ;;  %v4383_v8 = vpop.f32.mrf.mxu0 }
 0x1d6   : > { %3675 = vst.msk [vmem:[%s4628_s26 + $0x38] sm:$0xf] %vm443_vm0, %v4139_v11  ;;  %v4137_v54 = vpack.c.bf16 %v3482_v55, %v3482_v55  ;;  %v3485_v16 = vadd.f32 %v4383_v8, %v3103_v22  ;;  %v3509_v20 = vsel %vm966_vm7, %v3482_v55, 0.0 }
 0x1d7   : > { %v3508_v52 = vadd.f32 %v3507_v1, %v3506_v36  ;;  %v3458_v61 = vpop.f32.mrf.mxu0 }
 0x1d8   : > { %3673 = vst.msk [vmem:[%s4628_s26 + $0x30] sm:$0xf] %vm443_vm0, %v4137_v54  ;;  %v4140_v25 = vpack.c.bf16 %v3485_v16, %v3485_v16  ;;  %v3483_v44 = vadd.f32 %v3458_v61, %v3101_v19  ;;  %v3515_v56 = vsel %vm966_vm7, %v3485_v16, 0.0 }
 0x1d9   : > { %v3510_v23 = vadd.f32 %v3509_v20, %v3508_v52 }
 0x1da   : > { %3676 = vst.msk [vmem:[%s4628_s26 + $0x3c] sm:$0xf] %vm443_vm0, %v4140_v25  ;;  %v3511_v24 = vsel %vm966_vm7, %v3483_v44, 0.0  ;;  %v4138_v32 = vpack.c.bf16 %v3483_v44, %v3483_v44 }
 0x1db   : > { %v3512_v37 = vadd.f32 %v3511_v24, %v3510_v23 }
 0x1dc   : > { %3674 = vst.msk [vmem:[%s4628_s26 + $0x34] sm:$0xf] %vm443_vm0, %v4138_v32  ;;  %vm3593_vm0 = vcmask 1040384  }
 0x1dd   : > { %v3514_v26 = vadd.f32 %v3513_v4, %v3512_v37 }
 0x1df   : > { %v3516_v33 = vadd.f32 %v3515_v56, %v3514_v26 }
 0x1e1   : > { %v3517_v53 = vrot.slane %v3516_v33, 4 }
 0x1e3   : > { %v3518_v43 = vadd.f32 %v3517_v53, %v3516_v33 }
 0x1e5   : > { %v3519_v49 = vrot.slane %v3518_v43, 2 }
 0x1e7   : > { %v3520_v10 = vadd.f32 %v3519_v49, %v3518_v43 }
 0x1e9   : > { %v3521_v35 = vrot.slane %v3520_v10, 1 }
 0x1eb   : > { %v5658_v40 = vadd.f32 %v3521_v35, %v3520_v10 }
 0x1ed   : > { %v3523_v46 = vmul.f32 0.0078125, %v5658_v40 }
 0x1ef   : > { %v3524_v59 = vsub.f32 %v5520_v60, %v3523_v46  ;;  %v3525_v0 = vsub.f32 %v5540_v42, %v3523_v46  ;;  %v3526_v58 = vsub.f32 %v5511_v45, %v3523_v46  ;;  %v3527_v5 = vsub.f32 %v5527_v31, %v3523_v46 }
 0x1f0   : > { %v3528_v28 = vsub.f32 %v5565_v6, %v3523_v46  ;;  %v3529_v18 = vsub.f32 %v5590_v17, %v3523_v46  ;;  %v3530_v51 = vsub.f32 %v5554_v2, %v3523_v46  ;;  %v3531_v30 = vsub.f32 %v5578_v3, %v3523_v46 }
 0x1f1   : > { %v3532_v57 = vsub.f32 %v5619_v47, %v3523_v46  ;;  %v3533_v12 = vsub.f32 %v3479_v14, %v3523_v46  ;;  %v3534_v7 = vsub.f32 %v5610_v27, %v3523_v46  ;;  %v3535_v60 = vsub.f32 %v5629_v48, %v3523_v46 }
 0x1f2   : > { %v3536_v42 = vsub.f32 %v3482_v55, %v3523_v46  ;;  %v3537_v29 = vsub.f32 %v3483_v44, %v3523_v46  ;;  %v3538_v45 = vsub.f32 %v3484_v34, %v3523_v46  ;;  %v3539_v39 = vsub.f32 %v3485_v16, %v3523_v46 }
 0x1f3   : > { %v3540_v31 = vmul.f32 %v3524_v59, %v3524_v59  ;;  %v3541_v41 = vmul.f32 %v3525_v0, %v3525_v0  ;;  %v3542_v6 = vmul.f32 %v3526_v58, %v3526_v58  ;;  %v3543_v21 = vmul.f32 %v3527_v5, %v3527_v5 }
 0x1f4   : > { %v3544_v63 = vmul.f32 %v3528_v28, %v3528_v28  ;;  %v3545_v27 = vmul.f32 %v3529_v18, %v3529_v18  ;;  %v3546_v15 = vmul.f32 %v3530_v51, %v3530_v51  ;;  %v3547_v22 = vmul.f32 %v3531_v30, %v3531_v30 }
 0x1f5   : > { %v3556_v17 = vsel %vm966_vm7, %v3540_v31, 0.0  ;;  %v3557_v2 = vsel %vm966_vm7, %v3541_v41, 0.0  ;;  %v3559_v47 = vsel %vm966_vm7, %v3542_v6, 0.0  ;;  %v3561_v48 = vsel %vm966_vm7, %v3543_v21, 0.0 }
 0x1f6   : > { %v3558_v3 = vadd.f32 %v3557_v2, %v3556_v17  ;;  %v3563_v38 = vsel %vm966_vm7, %v3544_v63, 0.0  ;;  %v3565_v13 = vsel %vm966_vm7, %v3545_v27, 0.0  ;;  %v3548_v50 = vmul.f32 %v3532_v57, %v3532_v57 }
 0x1f7   : > { %v3567_v11 = vsel %vm966_vm7, %v3546_v15, 0.0  ;;  %v3549_v19 = vmul.f32 %v3533_v12, %v3533_v12  ;;  %v3569_v36 = vsel %vm966_vm7, %v3547_v22, 0.0  ;;  %v3550_v1 = vmul.f32 %v3534_v7, %v3534_v7 }
 0x1f8   : > { %v3560_v14 = vadd.f32 %v3559_v47, %v3558_v3  ;;  %v3571_v54 = vsel %vm966_vm7, %v3548_v50, 0.0  ;;  %v3551_v52 = vmul.f32 %v3535_v60, %v3535_v60  ;;  %v3552_v25 = vmul.f32 %v3536_v42, %v3536_v42 }
 0x1f9   : > { %v3573_v61 = vsel %vm966_vm7, %v3549_v19, 0.0  ;;  %v3575_v44 = vsel %vm966_vm7, %v3550_v1, 0.0  ;;  %v3553_v24 = vmul.f32 %v3537_v29, %v3537_v29  ;;  %v3554_v4 = vmul.f32 %v3538_v45, %v3538_v45 }
 0x1fa   : > { %v3562_v9 = vadd.f32 %v3561_v48, %v3560_v14  ;;  %v3577_v32 = vsel %vm966_vm7, %v3551_v52, 0.0  ;;  %v3579_v26 = vsel %vm966_vm7, %v3552_v25, 0.0  ;;  %v3555_v33 = vmul.f32 %v3539_v39, %v3539_v39 }
 0x1fb   : > { %v3581_v53 = vsel %vm966_vm7, %v3553_v24, 0.0  ;;  %v3583_v49 = vsel %vm966_vm7, %v3554_v4, 0.0 }
 0x1fc   : > { %v3564_v34 = vadd.f32 %v3563_v38, %v3562_v9  ;;  %v3585_v35 = vsel %vm966_vm7, %v3555_v33, 0.0 }
 0x1fe   : > { %v3566_v62 = vadd.f32 %v3565_v13, %v3564_v34 }
 0x200   : > { %v3568_v55 = vadd.f32 %v3567_v11, %v3566_v62 }
 0x202   : > { %v3570_v8 = vadd.f32 %v3569_v36, %v3568_v55 }
 0x204   : > { %v3572_v16 = vadd.f32 %v3571_v54, %v3570_v8 }
 0x206   : > { %v3574_v20 = vadd.f32 %v3573_v61, %v3572_v16 }
 0x208   : > { %v3576_v23 = vadd.f32 %v3575_v44, %v3574_v20 }
 0x20a   : > { %v3578_v37 = vadd.f32 %v3577_v32, %v3576_v23 }
 0x20c   : > { %v3580_v56 = vadd.f32 %v3579_v26, %v3578_v37 }
 0x20e   : > { %v3582_v43 = vadd.f32 %v3581_v53, %v3580_v56 }
 0x210   : > { %v3584_v10 = vadd.f32 %v3583_v49, %v3582_v43 }
 0x212   : > { %v3586_v46 = vadd.f32 %v3585_v35, %v3584_v10 }
 0x214   : > { %v3587_v59 = vrot.slane %v3586_v46, 4 }
 0x216   : > { %v3588_v0 = vadd.f32 %v3587_v59, %v3586_v46 }
 0x218   : > { %v3589_v58 = vrot.slane %v3588_v0, 2 }
 0x21a   : > { %v3590_v5 = vadd.f32 %v3589_v58, %v3588_v0 }
 0x21c   : > { %v3591_v28 = vrot.slane %v3590_v5, 1 }
 0x21e   : > { %v3592_v18 = vadd.f32 %v3591_v28, %v3590_v5 }
 0x220   : > { %v3594_v51 = vsel %vm3593_vm0, %v5658_v40, %v3592_v18 }
 0x221   : > { %3596 = vst.msk [vmem:[%s4669_s21] sm:$0x3] %vm3595_vm14, %v3594_v51 }
 0x222 PF: > { %s19_s9 = sadd.s32 1, %s4501_s9   ;;  %s5758_s27 = smov %s4493_s29 }
 0x223   : > { %p16_p10 = scmp.ge.s32.totalorder %s19_s9, 6   ;;  %s5759_s28 = smov %s4497_s30 }
 0x224   : > { %s5760_s29 = smov %s5763_s10  ;;  %s5761_s30 = smov %s5767_s11 }
 0x225   :  { %18 = sbr.rel (!%p16_p10) target bundleno = 3 (0x3), region = 115 }

// kernel: residual_block.4
= control target key start
LH: loop header
LB: loop body
LE: loop exit
PB: predicated region body
PF: predicated region fallthrough
CT: control target
= control target key end

     0   :  { %s4522_s27 = smov 0   ;;  %s4524_s28 = smov 0   ;;  %s5651_s0 = inlined_call_operand.vmem [shape: bf16[2,16,16,4], index: 0, kind: input, shape index: {}]   ;;  %s5652_s1 = inlined_call_operand.vmem [shape: bf16[2,2,16,4], index: 1, kind: input, shape index: {}]   ;;  %s5653_s2 = inlined_call_operand.vmem [shape: bf16[2,2,16,4], index: 2, kind: input, shape index: {}]   ;;  %s5654_s3 = inlined_call_operand.vmem [shape: bf16[9,4,4], index: 3, kind: input, shape index: {}]   ;;  %s5655_s4 = inlined_call_operand.vmem [shape: f32[1,4], index: 4, kind: input, shape index: {}]   ;;  %s5656_s5 = inlined_call_operand.vmem [shape: f32[1,4], index: 5, kind: input, shape index: {}]   ;;  %s5657_s6 = inlined_call_operand.vmem [shape: f32[1,4], index: 6, kind: input, shape index: {}]   ;;  %s5658_s7 = inlined_call_operand.vmem [shape: f32[2,16,16,4], index: 7, kind: output, shape index: {0}]   ;;  %s5659_s8 = inlined_call_operand.vmem [shape: f32[2,2,2,4], index: 8, kind: output, shape index: {1}]  }
   0x1   :  { %s4526_s29 = smov 0   ;;  %s4528_s30 = smov 0  }
   0x2   :  { %s4530_s9 = smov 0  }
   0x3 LB: > { %s28_s10 = sadd.s32 1, %s4464_s29  ;;  %s31_s11 = sadd.s32 1, %s4468_s30  ;;  %s4472_s9 = sphi %s4530_s9, %s19_s9   ;;  %s4468_s30 = sphi %s4528_s30, %s5707_s30   ;;  %s4464_s29 = sphi %s4526_s29, %s5706_s29   ;;  %s4460_s28 = sphi %s4524_s28, %s5705_s28   ;;  %s4456_s27 = sphi %s4522_s27, %s5704_s27  }
   0x4   : > { %p29_p0 = scmp.ge.s32.totalorder %s28_s10, 2  ;;  %p3825_p1 = scmp.ge.s32.totalorder %s4472_s9, 1 }
   0x5   : > { %p321_p2 = scmp.lt.s32.totalorder %s4472_s9, 5 }
   0x6   : > { %s5709_s10 = smov (%p29_p0, %s28_s10), 0  ;;  %s5711_s11 = smov (!%p29_p0, %s31_s11), %s4468_s30 }
   0x7   : > { %p322_p3 = pnand %p3825_p1, %p321_p2  ;;  %p33_p4 = scmp.ge.s32.totalorder %s5711_s11, 2 }
   0x9   : > { %s5713_s11 = smov (%p33_p4, %s5711_s11), 0  ;;  %325 = sbr.rel (%p322_p3) target bundleno = 550 (0x226), region = 48 }
   0xe   : > { %vm443_vm0 = vcmask 27648   ;;  %s3826_s12 = sshll.u32 %s4456_s27, 3  ;;  %p392_p5 = scmp.lt.s32.totalorder %s4460_s28, 1  ;;  %v4474_v0 = vmov 0   ;;  %v4599_v1 = vld [vmem:[%s5655_s4] ss:$0 sm:$0xff] }
   0xf   : > { %444 = vst.msk [vmem:[#allocation2] sm:$0xf] %vm443_vm0, %v4474_v0  ;;  %445 = vst.msk [vmem:[#allocation2 + $0x10] sm:$0xf] %vm443_vm0, %v4474_v0  ;;  %p394_p6 = scmp.lt.s32.totalorder %s3826_s12, 15  ;;  %p404_p7 = scmp.lt.s32.totalorder %s4456_s27, 1 }
  0x10   : > { %446 = vst.msk [vmem:[#allocation2 + $0x20] sm:$0xf] %vm443_vm0, %v4474_v0  ;;  %447 = vst.msk [vmem:[#allocation2 + $0x30] sm:$0xf] %vm443_vm0, %v4474_v0  ;;  %s5715_s28 = smov (!%p392_p5, %s4460_s28), 1  ;;  %p3865_p8 = scmp.ne.s32.totalorder %s4456_s27, 0 }
  0x11   : > { %448 = vst.msk [vmem:[#allocation2 + $0x40] sm:$0xf] %vm443_vm0, %v4474_v0  ;;  %449 = vst.msk [vmem:[#allocation2 + $0x50] sm:$0xf] %vm443_vm0, %v4474_v0  ;;  %s5717_s12 = smov (!%p394_p6, %s3826_s12), 15  ;;  %s3828_s13 = sshll.u32 %s5715_s28, 5 }
  0x12   : > { %450 = vst.msk [vmem:[#allocation2 + $0x60] sm:$0xf] %vm443_vm0, %v4474_v0  ;;  %451 = vst.msk [vmem:[#allocation2 + $0x70] sm:$0xf] %vm443_vm0, %v4474_v0  ;;  %s3827_s14 = sshll.u32 %s5717_s12, 1  ;;  %s3840_s16 = sshll.u32 %s5715_s28, 1 }
  0x13   : > { %452 = vst.msk [vmem:[#allocation2 + $0x80] sm:$0xf] %vm443_vm0, %v4474_v0  ;;  %453 = vst.msk [vmem:[#allocation2 + $0x90] sm:$0xf] %vm443_vm0, %v4474_v0  ;;  %s398_s15 = sadd.s32 %s3828_s13, %s3827_s14  ;;  %v4611_v10 = vld [vmem:[%s5656_s5] ss:$0 sm:$0xff] }
  0x14   : > { %454 = vst.msk [vmem:[#allocation2 + $0xc] sm:$0xf] %vm443_vm0, %v4474_v0  ;;  %455 = vst.msk [vmem:[#allocation2 + $0x1c] sm:$0xf] %vm443_vm0, %v4474_v0  ;;  %s3829_s17 = sshll.u32 %s398_s15, 2  ;;  %s3839_s18 = sshll.u32 %s398_s15, 3 }
  0x15   : > { %456 = vst.msk [vmem:[#allocation2 + $0x2c] sm:$0xf] %vm443_vm0, %v4474_v0  ;;  %457 = vst.msk [vmem:[#allocation2 + $0x3c] sm:$0xf] %vm443_vm0, %v4474_v0  ;;  %s4589_s21 = scalar_lea.vmem %s5651_s0, %s3829_s17  ;;  %s4594_s24 = scalar_lea.vmem %s5658_s7, %s3839_s18  ;;  %v4621_v19 = vld [vmem:[%s5657_s6] ss:$0 sm:$0xff] }
  0x16   : > { %458 = vst.msk [vmem:[#allocation2 + $0x4c] sm:$0xf] %vm443_vm0, %v4474_v0  ;;  %459 = vst.msk [vmem:[#allocation2 + $0x5c] sm:$0xf] %vm443_vm0, %v4474_v0  ;;  %v4066_v2 = vld [vmem:[%s4589_s21] sm:$0xff]   ;;  %v4105_v3 = vld [vmem:[%s4589_s21 + $0x8] sm:$0xff]  }
  0x17   : > { %460 = vst.msk [vmem:[#allocation2 + $0x6c] sm:$0xf] %vm443_vm0, %v4474_v0  ;;  %461 = vst.msk [vmem:[#allocation2 + $0x7c] sm:$0xf] %vm443_vm0, %v4474_v0  ;;  %v4106_v4 = vld [vmem:[%s4589_s21 + $0x10] sm:$0xff]   ;;  %s4605_s12 = scalar_select %p404_p7, %s4456_s27, 1  ;;  %v4067_v5 = vunpack.c.l.bf16 %v4066_v2  ;;  %v4068_v6 = vunpack.c.h.bf16 %v4066_v2  ;;  %v4071_v7 = vunpack.c.l.bf16 %v4105_v3  ;;  %v4072_v8 = vunpack.c.h.bf16 %v4105_v3 }
  0x18   : > { %462 = vst.msk [vmem:[#allocation2 + $0x8c] sm:$0xf] %vm443_vm0, %v4474_v0  ;;  %463 = vst.msk [vmem:[#allocation2 + $0x9c] sm:$0xf] %vm443_vm0, %v4474_v0  ;;  %v4107_v9 = vld [vmem:[%s4589_s21 + $0x18] sm:$0xff]   ;;  %v4075_v11 = vunpack.c.l.bf16 %v4106_v4  ;;  %v4076_v12 = vunpack.c.h.bf16 %v4106_v4  ;;  %v4108_v43 = vld [vmem:[%s4589_s21 + $0x20] sm:$0xff]  }
  0x19   : > { %v4079_v13 = vunpack.c.l.bf16 %v4107_v9  ;;  %v4080_v14 = vunpack.c.h.bf16 %v4107_v9  ;;  %s436_s15 = sadd.s32 %s3840_s16, %s4605_s12  ;;  %v502_v15 = vmul.f32 %v4067_v5, %v4599_v1  ;;  %v503_v16 = vmul.f32 %v4068_v6, %v4599_v1  ;;  %s3830_s23 = sshll.u32 %s4605_s12, 1  ;;  %v4109_v47 = vld [vmem:[%s4589_s21 + $0x28] sm:$0xff]   ;;  %v4110_v58 = vld [vmem:[%s4589_s21 + $0x30] sm:$0xff]   ;;  %v4111_v59 = vld [vmem:[%s4589_s21 + $0x38] sm:$0xff]  }
  0x1a   : > { %v504_v17 = vmul.f32 %v4071_v7, %v4599_v1  ;;  %v505_v18 = vmul.f32 %v4072_v8, %v4599_v1  ;;  %s3841_s17 = sshll.u32 %s436_s15, 1  ;;  %v506_v20 = vmul.f32 %v4075_v11, %v4599_v1  ;;  %v507_v21 = vmul.f32 %v4076_v12, %v4599_v1  ;;  %s3831_s25 = sshll.u32 %s5715_s28, 2 }
  0x1b   : > { %v508_v22 = vmul.f32 %v4079_v13, %v4599_v1  ;;  %v509_v23 = vmul.f32 %v4080_v14, %v4599_v1  ;;  %s4630_s22 = scalar_lea.vmem %s5659_s8, %s3841_s17  ;;  %v524_v24 = vadd.f32 %v4611_v10, %v502_v15  ;;  %v525_v25 = vadd.f32 %v4611_v10, %v503_v16  ;;  %s4656_s28 = sadd.s32 %s3831_s25, %s3830_s23 }
  0x1c   : > { %v526_v26 = vadd.f32 %v4611_v10, %v504_v17  ;;  %v527_v27 = vadd.f32 %v4611_v10, %v505_v18  ;;  %v528_v28 = vadd.f32 %v4611_v10, %v506_v20  ;;  %v529_v29 = vadd.f32 %v4611_v10, %v507_v21  ;;  %s3832_s26 = sshll.u32 %s4656_s28, 2 }
  0x1d   : > { %v530_v30 = vadd.f32 %v4611_v10, %v508_v22  ;;  %v531_v31 = vadd.f32 %v4611_v10, %v509_v23  ;;  %vm540_vm1 = vcmp.ge.f32.partialorder %v524_v24, 0.0  ;;  %v562_v32 = vmul.f32 %v4621_v19, %v524_v24  ;;  %s410_s13 = scalar_lea.vmem %s5652_s1, %s3832_s26  ;;  %s419_s17 = scalar_lea.vmem %s5653_s2, %s3832_s26 }
  0x1e   : > { %vm541_vm2 = vcmp.ge.f32.partialorder %v525_v25, 0.0  ;;  %v563_v33 = vmul.f32 %v4621_v19, %v525_v25  ;;  %vm542_vm3 = vcmp.ge.f32.partialorder %v526_v26, 0.0  ;;  %v564_v34 = vmul.f32 %v4621_v19, %v526_v26 }
  0x1f   : > { %vm543_vm4 = vcmp.ge.f32.partialorder %v527_v27, 0.0  ;;  %v565_v35 = vmul.f32 %v4621_v19, %v527_v27  ;;  %v578_v36 = vsel %vm540_vm1, %v524_v24, %v562_v32  ;;  %vm544_vm5 = vcmp.ge.f32.partialorder %v528_v28, 0.0 }
  0x20   : > { %v579_v37 = vsel %vm541_vm2, %v525_v25, %v563_v33  ;;  %v566_v38 = vmul.f32 %v4621_v19, %v528_v28  ;;  %v4045_v39 = vpack.c.bf16 %v578_v36, %v578_v36  ;;  %v580_v41 = vsel %vm542_vm3, %v526_v26, %v564_v34 }
  0x21   : > { %v4046_v40 = vpack.c.bf16 %v579_v37, %v579_v37  ;;  %v581_v42 = vsel %vm543_vm4, %v527_v27, %v565_v35  ;;  %v4047_v44 = vpack.c.bf16 %v580_v41, %v580_v41  ;;  %vm545_vm6 = vcmp.ge.f32.partialorder %v529_v29, 0.0  ;;  %v4098_v27 = vld [vmem:[%s410_s13] sm:$0xff]  }
  0x22   : > { %v4048_v45 = vpack.c.bf16 %v581_v42, %v581_v42  ;;  %v582_v46 = vsel %vm544_vm5, %v528_v28, %v566_v38  ;;  %659 = vst.msk [vmem:[#allocation2 + $0x14] sm:$0xf] %vm443_vm0, %v4045_v39  ;;  %v567_v49 = vmul.f32 %v4621_v19, %v529_v29  ;;  %vm546_vm7 = vcmp.ge.f32.partialorder %v530_v30, 0.0 }
  0x23   : > { %660 = vst.msk [vmem:[#allocation2 + $0x18] sm:$0xf] %vm443_vm0, %v4046_v40  ;;  %v4049_v48 = vpack.c.bf16 %v582_v46, %v582_v46  ;;  %v568_v50 = vmul.f32 %v4621_v19, %v530_v30  ;;  %661 = vst.msk [vmem:[#allocation2 + $0x24] sm:$0xf] %vm443_vm0, %v4047_v44  ;;  %vm547_vm8 = vcmp.ge.f32.partialorder %v531_v31, 0.0  ;;  %v569_v51 = vmul.f32 %v4621_v19, %v531_v31 }
  0x24   : > { %662 = vst.msk [vmem:[#allocation2 + $0x28] sm:$0xf] %vm443_vm0, %v4048_v45  ;;  %v4083_v52 = vunpack.c.l.bf16 %v4108_v43  ;;  %v4084_v53 = vunpack.c.h.bf16 %v4108_v43  ;;  %v583_v54 = vsel %vm545_vm6, %v529_v29, %v567_v49  ;;  %v4087_v56 = vunpack.c.l.bf16 %v4109_v47 }
  0x25   : > { %663 = vst.msk [vmem:[#allocation2 + $0x34] sm:$0xf] %vm443_vm0, %v4049_v48  ;;  %v584_v55 = vsel %vm546_vm7, %v530_v30, %v568_v50  ;;  %v4088_v57 = vunpack.c.h.bf16 %v4109_v47  ;;  %v4050_v60 = vpack.c.bf16 %v583_v54, %v583_v54  ;;  %v585_v62 = vsel %vm547_vm8, %v531_v31, %v569_v51  ;;  %v4102_v31 = vld [vmem:[%s419_s17] sm:$0xff]  }
  0x26   : > { %v4051_v61 = vpack.c.bf16 %v584_v55, %v584_v55  ;;  %v510_v63 = vmul.f32 %v4083_v52, %v4599_v1  ;;  %v4052_v0 = vpack.c.bf16 %v585_v62, %v585_v62  ;;  %v511_v2 = vmul.f32 %v4084_v53, %v4599_v1 }
  0x27   : > { %v512_v3 = vmul.f32 %v4087_v56, %v4599_v1  ;;  %v513_v4 = vmul.f32 %v4088_v57, %v4599_v1  ;;  %664 = vst.msk [vmem:[#allocation2 + $0x38] sm:$0xf] %vm443_vm0, %v4050_v60  ;;  %v4091_v6 = vunpack.c.l.bf16 %v4110_v58  ;;  %v4092_v7 = vunpack.c.h.bf16 %v4110_v58 }
  0x28   : > { %665 = vst.msk [vmem:[#allocation2 + $0x44] sm:$0xf] %vm443_vm0, %v4051_v61  ;;  %v532_v5 = vadd.f32 %v4611_v10, %v510_v63  ;;  %v4095_v8 = vunpack.c.l.bf16 %v4111_v59  ;;  %666 = vst.msk [vmem:[#allocation2 + $0x48] sm:$0xf] %vm443_vm0, %v4052_v0  ;;  %v533_v9 = vadd.f32 %v4611_v10, %v511_v2  ;;  %v4096_v13 = vunpack.c.h.bf16 %v4111_v59 }
  0x29   : > { %v534_v11 = vadd.f32 %v4611_v10, %v512_v3  ;;  %v535_v12 = vadd.f32 %v4611_v10, %v513_v4  ;;  %v514_v15 = vmul.f32 %v4091_v6, %v4599_v1  ;;  %v515_v16 = vmul.f32 %v4092_v7, %v4599_v1 }
  0x2a   : > { %vm548_vm9 = vcmp.ge.f32.partialorder %v532_v5, 0.0  ;;  %v570_v14 = vmul.f32 %v4621_v19, %v532_v5  ;;  %vm549_vm10 = vcmp.ge.f32.partialorder %v533_v9, 0.0  ;;  %v571_v17 = vmul.f32 %v4621_v19, %v533_v9 }
  0x2b   : > { %vm550_vm11 = vcmp.ge.f32.partialorder %v534_v11, 0.0  ;;  %v572_v18 = vmul.f32 %v4621_v19, %v534_v11  ;;  %vm551_vm12 = vcmp.ge.f32.partialorder %v535_v12, 0.0  ;;  %v573_v21 = vmul.f32 %v4621_v19, %v535_v12 }
  0x2c   : > { %v586_v20 = vsel %vm548_vm9, %v532_v5, %v570_v14  ;;  %v536_v22 = vadd.f32 %v4611_v10, %v514_v15  ;;  %v587_v24 = vsel %vm549_vm10, %v533_v9, %v571_v17  ;;  %v537_v26 = vadd.f32 %v4611_v10, %v515_v16 }
  0x2d   : > { %v4053_v23 = vpack.c.bf16 %v586_v20, %v586_v20  ;;  %v588_v25 = vsel %vm550_vm11, %v534_v11, %v572_v18  ;;  %v4054_v28 = vpack.c.bf16 %v587_v24, %v587_v24  ;;  %v589_v30 = vsel %vm551_vm12, %v535_v12, %v573_v21 }
  0x2e   : > { %v4055_v29 = vpack.c.bf16 %v588_v25, %v588_v25  ;;  %vm552_vm13 = vcmp.ge.f32.partialorder %v536_v22, 0.0  ;;  %v4056_v32 = vpack.c.bf16 %v589_v30, %v589_v30  ;;  %v574_v33 = vmul.f32 %v4621_v19, %v536_v22 }
  0x2f   : > { %667 = vst.msk [vmem:[#allocation2 + $0x54] sm:$0xf] %vm443_vm0, %v4053_v23  ;;  %vm553_vm14 = vcmp.ge.f32.partialorder %v537_v26, 0.0  ;;  %v575_v34 = vmul.f32 %v4621_v19, %v537_v26  ;;  %668 = vst.msk [vmem:[#allocation2 + $0x58] sm:$0xf] %vm443_vm0, %v4054_v28  ;;  %v516_v35 = vmul.f32 %v4095_v8, %v4599_v1  ;;  %v517_v36 = vmul.f32 %v4096_v13, %v4599_v1 }
  0x30   : > { %669 = vst.msk [vmem:[#allocation2 + $0x64] sm:$0xf] %vm443_vm0, %v4055_v29  ;;  %v4099_v37 = vunpack.c.l.bf16 %v4098_v27  ;;  %v4100_v38 = vunpack.c.h.bf16 %v4098_v27  ;;  %670 = vst.msk [vmem:[#allocation2 + $0x68] sm:$0xf] %vm443_vm0, %v4056_v32  ;;  %v590_v39 = vsel %vm552_vm13, %v536_v22, %v574_v33  ;;  %v4103_v41 = vunpack.c.l.bf16 %v4102_v31 }
  0x31   : > { %v591_v40 = vsel %vm553_vm14, %v537_v26, %v575_v34  ;;  %v4104_v42 = vunpack.c.h.bf16 %v4102_v31  ;;  %v4057_v43 = vpack.c.bf16 %v590_v39, %v590_v39  ;;  %v538_v45 = vadd.f32 %v4611_v10, %v516_v35 }
  0x32   : > { %v4058_v44 = vpack.c.bf16 %v591_v40, %v591_v40  ;;  %v539_v46 = vadd.f32 %v4611_v10, %v517_v36  ;;  %v679_v47 = vmul.f32 %v4099_v37, %v4599_v1  ;;  %v680_v48 = vmul.f32 %v4100_v38, %v4599_v1 }
  0x33   : > { %v703_v49 = vmul.f32 %v4103_v41, %v4599_v1  ;;  %v704_v50 = vmul.f32 %v4104_v42, %v4599_v1  ;;  %671 = vst.msk [vmem:[#allocation2 + $0x74] sm:$0xf] %vm443_vm0, %v4057_v43  ;;  %vm554_vm15 = vcmp.ge.f32.partialorder %v538_v45, 0.0  ;;  %v576_v51 = vmul.f32 %v4621_v19, %v538_v45 }
  0x34   : > { %672 = vst.msk [vmem:[#allocation2 + $0x78] sm:$0xf] %vm443_vm0, %v4058_v44  ;;  %vm555_vm1 = vcmp.ge.f32.partialorder %v539_v46, 0.0  ;;  %v577_v52 = vmul.f32 %v4621_v19, %v539_v46  ;;  %v681_v53 = vadd.f32 %v4611_v10, %v679_v47  ;;  %v682_v54 = vadd.f32 %v4611_v10, %v680_v48 }
  0x35   : > { %v705_v55 = vadd.f32 %v4611_v10, %v703_v49  ;;  %v706_v56 = vadd.f32 %v4611_v10, %v704_v50  ;;  %v592_v57 = vsel %vm554_vm15, %v538_v45, %v576_v51 }
  0x36   : > { %v593_v1 = vsel %vm555_vm1, %v539_v46, %v577_v52  ;;  %v4059_v58 = vpack.c.bf16 %v592_v57, %v592_v57  ;;  %vm683_vm2 = vcmp.ge.f32.partialorder %v681_v53, 0.0  ;;  %v685_v60 = vmul.f32 %v4621_v19, %v681_v53 }
  0x37   : > { %v4060_v59 = vpack.c.bf16 %v593_v1, %v593_v1  ;;  %vm684_vm3 = vcmp.ge.f32.partialorder %v682_v54, 0.0  ;;  %v686_v61 = vmul.f32 %v4621_v19, %v682_v54  ;;  %vm707_vm4 = vcmp.ge.f32.partialorder %v705_v55, 0.0 }
  0x38   : > { %v709_v62 = vmul.f32 %v4621_v19, %v705_v55  ;;  %673 = vst.msk [vmem:[#allocation2 + $0x84] sm:$0xf] %vm443_vm0, %v4059_v58  ;;  %v687_v63 = vsel %vm683_vm2, %v681_v53, %v685_v60  ;;  %vm708_vm5 = vcmp.ge.f32.partialorder %v706_v56, 0.0  ;;  %v710_v10 = vmul.f32 %v4621_v19, %v706_v56 }
  0x39   : > { %674 = vst.msk [vmem:[#allocation2 + $0x88] sm:$0xf] %vm443_vm0, %v4060_v59  ;;  %v4061_v0 = vpack.c.bf16 %v687_v63, %v687_v63  ;;  %v688_v2 = vsel %vm684_vm3, %v682_v54, %v686_v61  ;;  %727 = sbr.rel (%p3865_p8) target bundleno = 65 (0x41), region = 52 }
  0x3a   : > { %v711_v3 = vsel %vm707_vm4, %v705_v55, %v709_v62  ;;  %v4062_v4 = vpack.c.bf16 %v688_v2, %v688_v2  ;;  %v712_v6 = vsel %vm708_vm5, %v706_v56, %v710_v10 }
  0x3b   : > { %v4063_v5 = vpack.c.bf16 %v711_v3, %v711_v3  ;;  %697 = vst.msk [vmem:[#allocation2 + $0x4] sm:$0xf] %vm443_vm0, %v4061_v0  ;;  %v4064_v7 = vpack.c.bf16 %v712_v6, %v712_v6 }
  0x3c   : > { %698 = vst.msk [vmem:[#allocation2 + $0x8] sm:$0xf] %vm443_vm0, %v4062_v4 }
  0x3d   : > { %722 = vst.msk [vmem:[#allocation2 + $0x94] sm:$0xf] %vm443_vm0, %v4063_v5  ;;  %723 = vst.msk [vmem:[#allocation2 + $0x98] sm:$0xf] %vm443_vm0, %v4064_v7 }
  0x3e   : > { %v4475_v8 = vmov 0  }
  0x3f   : > { %728 = vst.msk [vmem:[#allocation2] sm:$0xf] %vm443_vm0, %v4475_v8  ;;  %729 = vst.msk [vmem:[#allocation2 + $0x4] sm:$0xf] %vm443_vm0, %v4475_v8 }
  0x40   : > { %730 = vst.msk [vmem:[#allocation2 + $0x8] sm:$0xf] %vm443_vm0, %v4475_v8  ;;  %731 = vst.msk [vmem:[#allocation2 + $0xc] sm:$0xf] %vm443_vm0, %v4475_v8 }
  0x41 PF: > { %p3866_p9 = scmp.ne.s32.totalorder %s4456_s27, 1 }
  0x43   : > { %735 = sbr.rel (%p3866_p9) target bundleno = 75 (0x4b), region = 56 }
  0x48   : > { %v4476_v19 = vmov 0  }
  0x49   : > { %736 = vst.msk [vmem:[#allocation2 + $0x90] sm:$0xf] %vm443_vm0, %v4476_v19  ;;  %737 = vst.msk [vmem:[#allocation2 + $0x94] sm:$0xf] %vm443_vm0, %v4476_v19 }
  0x4a   : > { %738 = vst.msk [vmem:[#allocation2 + $0x98] sm:$0xf] %vm443_vm0, %v4476_v19  ;;  %739 = vst.msk [vmem:[#allocation2 + $0x9c] sm:$0xf] %vm443_vm0, %v4476_v19 }
  0x4b PF: > { %v3875_v9 = vld [vmem:[%s5654_s3 + $0x2] sm:$0x3]  ;;  %vm1011_vm6 = vcmask 1041408   ;;  %v741_v11 = vld [vmem:[#allocation2 + $0x4] sm:$0xf]  ;;  %vm986_vm7 = vcmask 31744  }
  0x4c   : > { %4357 = vmatprep.subr.msk.bf16.mxu0 %vm1011_vm6, %v3875_v9  ;;  %4358 = vmatprep.subr.msk.bf16.mxu1 %vm1011_vm6, %v3875_v9  ;;  %v1013_v12 = vsel %vm1011_vm6, %v3875_v9, 0  ;;  %v742_v13 = vld [vmem:[#allocation2 + $0x8] sm:$0xf]  ;;  %v773_v14 = vshrl.u32 %v741_v11, 16  ;;  %v776_v15 = vshll.u32 %v741_v11, 16  ;;  %vm3613_vm13 = vcmask 1040384  }
  0x4d   : > { %4194 = vmatpush3.bf16.msra.mxu0 %v1013_v12  ;;  %4356 = vmatpush3.bf16.msra.mxu1 %v1013_v12  ;;  %v782_v16 = vshrl.u32 %v742_v13, 16  ;;  %v785_v17 = vshll.u32 %v742_v13, 16  ;;  %v3876_v18 = vcombine.low %v741_v11, %v742_v13  ;;  %v753_v20 = vld [vmem:[#allocation2 + $0x44] sm:$0xf]  ;;  %v754_v21 = vld [vmem:[#allocation2 + $0x48] sm:$0xf] }
  0x4e   : > { %v4736_v22 = vrot.slane %v773_v14, 7  ;;  %v861_v23 = vshrl.u32 %v753_v20, 16  ;;  %v864_v24 = vshll.u32 %v753_v20, 16  ;;  %v870_v25 = vshrl.u32 %v754_v21, 16  ;;  %v744_v26 = vld [vmem:[#allocation2 + $0x14] sm:$0xf] }
  0x4f   : > { %v784_v27 = vrot.slane %v782_v16, 7  ;;  %4195 = vmatprep.mubr.msk.bf16.mxu0 %vm986_vm7, %v3876_v18  ;;  %v873_v28 = vshll.u32 %v754_v21, 16  ;;  %v3880_v29 = vcombine.low %v753_v20, %v754_v21  ;;  %v745_v30 = vld [vmem:[#allocation2 + $0x18] sm:$0xf]  ;;  %v795_v31 = vshrl.u32 %v744_v26, 16 }
  0x50   : > { %v4740_v32 = vor.u32 %v776_v15, %v4736_v22  ;;  %v780_v33 = vrot.slane %v4736_v22, 4  ;;  %v4743_v34 = vrot.slane %v861_v23, 7  ;;  %v872_v35 = vrot.slane %v870_v25, 7  ;;  %v4745_v36 = vld [vmem:[#allocation2 + $0x54] sm:$0xf] }
  0x51   : > { %v4747_v37 = vor.u32 %v785_v17, %v784_v27  ;;  %4203 = vmatprep.mubr.msk.bf16.mxu1 %vm986_vm7, %v3880_v29  ;;  %v4750_v38 = vrot.slane %v795_v31, 7  ;;  %v798_v39 = vshll.u32 %v744_v26, 16  ;;  %v804_v40 = vshrl.u32 %v745_v30, 16  ;;  %v4752_v41 = vld [vmem:[#allocation2 + $0x58] sm:$0xf] }
  0x52   : > { %v4755_v42 = vor.u32 %v864_v24, %v4743_v34  ;;  %v868_v43 = vrot.slane %v4743_v34, 4  ;;  %v4758_v44 = vor.u32 %v873_v28, %v872_v35  ;;  %v807_v45 = vshll.u32 %v745_v30, 16  ;;  %v943_v46 = vld [vmem:[%s5654_s3] sm:$0x3]  ;;  %v3908_v47 = vld [vmem:[%s5654_s3 + $0x4] sm:$0x3] }
  0x53   : > { %v4767_v48 = vor.u32 %v798_v39, %v4750_v38  ;;  %v802_v49 = vrot.slane %v4750_v38, 4  ;;  %v806_v50 = vrot.slane %v804_v40, 7  ;;  %v3877_v51 = vcombine.low %v744_v26, %v745_v30  ;;  %4359 = vmatprep.subr.msk.bf16.mxu1 %vm1011_vm6, %v943_v46  ;;  %4360 = vmatprep.subr.msk.bf16.mxu0 %vm1011_vm6, %v3908_v47  ;;  %v4772_v52 = vld [vmem:[#allocation2 + $0x24] sm:$0xf]  ;;  %v4778_v57 = vld [vmem:[#allocation2 + $0x28] sm:$0xf] }
  0x54   : > { %v883_v53 = vshrl.u32 %v4745_v36, 16  ;;  %v886_v54 = vshll.u32 %v4745_v36, 16  ;;  %v892_v55 = vshrl.u32 %v4752_v41, 16  ;;  %v895_v56 = vshll.u32 %v4752_v41, 16  ;;  %v4787_v61 = vld [vmem:[#allocation2 + $0x64] sm:$0xf] }
  0x55   : > { %v4780_v1 = vor.u32 %v807_v45, %v806_v50  ;;  %4196 = vmatmul.mubr.msk.bf16.vlgmr.msra.gmra.mxu0 %vm986_vm7, %v3877_v51  ;;  %v3881_v58 = vcombine.low %v4745_v36, %v4752_v41  ;;  %v1161_v59 = vsel %vm1011_vm6, %v943_v46, 0  ;;  %v1530_v60 = vsel %vm1011_vm6, %v3908_v47, 0  ;;  %v4789_v62 = vld [vmem:[#allocation2 + $0x68] sm:$0xf]  ;;  %v4797_v3 = vld [vmem:[#allocation2 + $0x34] sm:$0xf] }
  0x56   : > { %v4791_v63 = vrot.slane %v883_v53, 7  ;;  %v4793_v10 = vrot.slane %v892_v55, 7  ;;  %4230 = vmatpush3.bf16.msra.mxu0 %v1530_v60  ;;  %v817_v0 = vshrl.u32 %v4772_v52, 16  ;;  %v820_v2 = vshll.u32 %v4772_v52, 16  ;;  %v4799_v4 = vld [vmem:[#allocation2 + $0x38] sm:$0xf] }
  0x57   : > { %4204 = vmatmul.mubr.msk.bf16.vlgmr.msra.gmra.mxu1 %vm986_vm7, %v3881_v58  ;;  %v826_v5 = vshrl.u32 %v4778_v57, 16  ;;  %v829_v6 = vshll.u32 %v4778_v57, 16  ;;  %v3878_v7 = vcombine.low %v4772_v52, %v4778_v57  ;;  %v905_v8 = vshrl.u32 %v4787_v61, 16  ;;  %v4807_v19 = vld [vmem:[#allocation2 + $0x74] sm:$0xf] }
  0x58   : > { %4212 = vmatpush3.bf16.msra.mxu1 %v1161_v59  ;;  %v4809_v9 = vrot.slane %v817_v0, 7  ;;  %v908_v11 = vshll.u32 %v4787_v61, 16  ;;  %v914_v12 = vshrl.u32 %v4789_v62, 16  ;;  %v917_v13 = vshll.u32 %v4789_v62, 16  ;;  %v4814_v14 = vld [vmem:[#allocation2 + $0x78] sm:$0xf] }
  0x59   : > { %v4816_v15 = vrot.slane %v826_v5, 7  ;;  %4199 = vmatprep.mubr.msk.bf16.mxu0 %vm986_vm7, %v3878_v7  ;;  %v4819_v16 = vrot.slane %v905_v8, 7  ;;  %v3882_v17 = vcombine.low %v4787_v61, %v4789_v62  ;;  %v839_v18 = vshrl.u32 %v4797_v3, 16  ;;  %v740_v20 = vld [vmem:[#allocation2] sm:$0x8] }
  0x5a   : > { %v4824_v21 = vrot.slane %v914_v12, 7  ;;  %v842_v23 = vshll.u32 %v4797_v3, 16  ;;  %v848_v24 = vshrl.u32 %v4799_v4, 16  ;;  %v851_v25 = vshll.u32 %v4799_v4, 16  ;;  %v1260_v26 = vld [vmem:[#allocation2 + $0x4] sm:$0xf] }
  0x5b   : > { %4207 = vmatprep.mubr.msk.bf16.mxu1 %vm986_vm7, %v3882_v17  ;;  %v4830_v27 = vrot.slane %v839_v18, 7  ;;  %v3879_v28 = vcombine.low %v4797_v3, %v4799_v4  ;;  %v927_v29 = vshrl.u32 %v4807_v19, 16  ;;  %v930_v30 = vshll.u32 %v4807_v19, 16  ;;  %v1261_v31 = vld [vmem:[#allocation2 + $0x8] sm:$0xf] }
  0x5c   : > { %v4836_v35 = vrot.slane %v848_v24, 7  ;;  %v936_v39 = vshrl.u32 %v4814_v14, 16  ;;  %v939_v40 = vshll.u32 %v4814_v14, 16  ;;  %v3883_v45 = vcombine.low %v4807_v19, %v4814_v14  ;;  %v1262_v46 = vld [vmem:[#allocation2 + $0xc] sm:$0x1] }
  0x5d   : > { %4200 = vmatmul.mubr.msk.bf16.gmra.mxu0 %vm986_vm7, %v3879_v28  ;;  %v4843_v47 = vrot.slane %v927_v29, 7  ;;  %vm764_vm0 = vsmask.f32 256  ;;  %vm765_vm8 = vsmask.f32 4368  ;;  %v768_v50 = vshrl.u32 %v740_v20, 16 }
  0x5e   : > { %v4845_v51 = vrot.slane %v936_v39, 7  ;;  %vm4847_vm9 = vmor %vm764_vm0, %vm765_vm8  ;;  %vm1284_vm10 = vsmask.f32 3328  ;;  %vm1285_vm11 = vsmask.f32 7440  ;;  %v1288_v55 = vshrl.u32 %v1260_v26, 16 }
  0x5f   : > { %4208 = vmatmul.mubr.msk.bf16.gmra.mxu1 %vm986_vm7, %v3883_v45  ;;  %v3867_v58 = vrot.slane %v768_v50, 11  ;;  %v788_v59 = vsel %vm4847_vm9, %v780_v33, %v4747_v37  ;;  %v1291_v60 = vshll.u32 %v1260_v26, 16  ;;  %v1297_v0 = vshll.u32 %v1261_v31, 16  ;;  %v743_v5 = vld [vmem:[#allocation2 + $0x10] sm:$0x8]  ;;  %vm4875_vm12 = vmor %vm1284_vm10, %vm1285_vm11 }
  0x60   : > { %v1290_v7 = vrot.slane %v1288_v55, 4  ;;  %v1301_v8 = vshrl.u32 %v1261_v31, 16  ;;  %v1307_v12 = vshll.u32 %v1262_v46, 16  ;;  %v790_v17 = vshrl.u32 %v743_v5, 16  ;;  %v1263_v18 = vld [vmem:[#allocation2 + $0x14] sm:$0xf] }
  0x61   : > { %v779_v20 = vsel %vm4847_vm9, %v3867_v58, %v4740_v32  ;;  %v1293_v24 = vrot.slane %v1291_v60, 5  ;;  %v1299_v28 = vrot.slane %v1297_v0, 5  ;;  %v810_v22 = vsel %vm4847_vm9, %v802_v49, %v4780_v1  ;;  %v1264_v33 = vld [vmem:[#allocation2 + $0x18] sm:$0xf]  ;;  %v1265_v37 = vld [vmem:[#allocation2 + $0x1c] sm:$0x1] }
  0x62   : > { %v3892_v26 = vcombine.low %v779_v20, %v788_v59  ;;  %v1303_v29 = vrot.slane %v1301_v8, 4  ;;  %v1309_v31 = vrot.slane %v1307_v12, 5  ;;  %v3868_v39 = vrot.slane %v790_v17, 11  ;;  %v3933_v45 = vld [vmem:[%s5654_s3 + $0x6] sm:$0x3] }
  0x63   : > { %v1294_v46 = vor.u32 %v1293_v24, %v1290_v7  ;;  %v1312_v32 = vshrl.u32 %v1263_v18, 16  ;;  %v1315_v50 = vshll.u32 %v1263_v18, 16  ;;  %v1321_v55 = vshll.u32 %v1264_v33, 16  ;;  %4361 = vmatprep.subr.msk.bf16.mxu1 %vm1011_vm6, %v3933_v45  ;;  %v3950_v38 = vld [vmem:[%s5654_s3 + $0x8] sm:$0x3] }
  0x64   : > { %4213 = vmatprep.mubr.msk.bf16.mxu1 %vm986_vm7, %v3892_v26  ;;  %v1304_v1 = vor.u32 %v1303_v29, %v1299_v28  ;;  %v801_v58 = vsel %vm4847_vm9, %v3868_v39, %v4767_v48  ;;  %v1325_v59 = vshrl.u32 %v1264_v33, 16  ;;  %v1331_v60 = vshll.u32 %v1265_v37, 16  ;;  %4362 = vmatprep.subr.msk.bf16.mxu0 %vm1011_vm6, %v3950_v38  ;;  %v746_v12 = vld [vmem:[#allocation2 + $0x20] sm:$0x8]  ;;  %v1266_v37 = vld [vmem:[#allocation2 + $0x24] sm:$0xf] }
  0x65   : > { %v1295_v0 = vrot.slane %v1294_v46, 4  ;;  %v3893_v5 = vcombine.low %v801_v58, %v810_v22  ;;  %v1314_v7 = vrot.slane %v1312_v32, 4  ;;  %v1317_v8 = vrot.slane %v1315_v50, 5  ;;  %v1267_v50 = vld [vmem:[#allocation2 + $0x28] sm:$0xf] }
  0x66   : > { %v1305_v17 = vrot.slane %v1304_v1, 4  ;;  %v1323_v18 = vrot.slane %v1321_v55, 5  ;;  %v1327_v20 = vrot.slane %v1325_v59, 4  ;;  %v1333_v24 = vrot.slane %v1331_v60, 5 }
  0x67   : > { %v1300_v26 = vsel %vm4875_vm12, %v1295_v0, %v1299_v28  ;;  %4214 = vmatmul.mubr.msk.bf16.vlgmr.msra.gmra.mxu1 %vm986_vm7, %v3893_v5  ;;  %v1318_v29 = vor.u32 %v1317_v8, %v1314_v7  ;;  %v1896_v48 = vsel %vm1011_vm6, %v3933_v45, 0  ;;  %v2078_v33 = vsel %vm1011_vm6, %v3950_v38, 0  ;;  %v1269_v8 = vld [vmem:[#allocation2 + $0x34] sm:$0xf] }
  0x68   : > { %v1310_v22 = vsel %vm4875_vm12, %v1305_v17, %v1309_v31  ;;  %v1328_v39 = vor.u32 %v1327_v20, %v1323_v18  ;;  %4248 = vmatpush3.bf16.msra.mxu1 %v1896_v48  ;;  %v812_v46 = vshrl.u32 %v746_v12, 16  ;;  %v822_v32 = vor.u32 %v820_v2, %v4809_v9  ;;  %v1268_v2 = vld [vmem:[#allocation2 + $0x2c] sm:$0x1] }
  0x69   : > { %v3909_v28 = vcombine.low %v1300_v26, %v1310_v22  ;;  %v1319_v55 = vrot.slane %v1318_v29, 4  ;;  %v824_v1 = vrot.slane %v4809_v9, 4  ;;  %v831_v45 = vor.u32 %v829_v6, %v4816_v15  ;;  %v749_v9 = vld [vmem:[#allocation2 + $0x30] sm:$0x8]  ;;  %v1270_v22 = vld [vmem:[#allocation2 + $0x38] sm:$0xf] }
  0x6a   : > { %v1329_v38 = vrot.slane %v1328_v39, 4  ;;  %v3869_v58 = vrot.slane %v812_v46, 11  ;;  %v1336_v59 = vshrl.u32 %v1266_v37, 16  ;;  %v1339_v31 = vshll.u32 %v1266_v37, 16 }
  0x6b   : > { %4231 = vmatprep.mubr.msk.bf16.mxu0 %vm986_vm7, %v3909_v28  ;;  %v1324_v60 = vsel %vm4875_vm12, %v1319_v55, %v1323_v18  ;;  %v832_v52 = vsel %vm4847_vm9, %v824_v1, %v831_v45  ;;  %v1345_v0 = vshll.u32 %v1267_v50, 16  ;;  %v1349_v5 = vshrl.u32 %v1267_v50, 16  ;;  %v1271_v1 = vld [vmem:[#allocation2 + $0x3c] sm:$0x1] }
  0x6c   : > { %v1334_v57 = vsel %vm4875_vm12, %v1329_v38, %v1333_v24  ;;  %v823_v6 = vsel %vm4847_vm9, %v3869_v58, %v822_v32  ;;  %v1338_v15 = vrot.slane %v1336_v59, 4  ;;  %v1341_v7 = vrot.slane %v1339_v31, 5  ;;  %v752_v59 = vld [vmem:[#allocation2 + $0x40] sm:$0x8] }
  0x6d   : > { %v3910_v12 = vcombine.low %v1324_v60, %v1334_v57  ;;  %v3894_v17 = vcombine.low %v823_v6, %v832_v52  ;;  %v1347_v20 = vrot.slane %v1345_v0, 5  ;;  %v1351_v18 = vrot.slane %v1349_v5, 4  ;;  %v1273_v0 = vld [vmem:[#allocation2 + $0x48] sm:$0xf] }
  0x6e   : > { %v1342_v26 = vor.u32 %v1341_v7, %v1338_v15  ;;  %v1355_v29 = vshll.u32 %v1268_v2, 16  ;;  %v834_v48 = vshrl.u32 %v749_v9, 16  ;;  %v844_v37 = vor.u32 %v842_v23, %v4830_v27  ;;  %v1274_v15 = vld [vmem:[#allocation2 + $0x4c] sm:$0x1] }
  0x6f   : > { %4232 = vmatmul.mubr.msk.bf16.vlgmr.msra.gmra.mxu0 %vm986_vm7, %v3910_v12  ;;  %4217 = vmatprep.mubr.msk.bf16.mxu1 %vm986_vm7, %v3894_v17  ;;  %v1352_v24 = vor.u32 %v1351_v18, %v1347_v20  ;;  %v846_v39 = vrot.slane %v4830_v27, 4  ;;  %v853_v46 = vor.u32 %v851_v25, %v4836_v35  ;;  %v1360_v32 = vshrl.u32 %v1269_v8, 16 }
  0x70   : > { %4266 = vmatpush3.bf16.msra.mxu0 %v2078_v33  ;;  %v1343_v50 = vrot.slane %v1342_v26, 4  ;;  %v1357_v28 = vrot.slane %v1355_v29, 5  ;;  %v3870_v55 = vrot.slane %v834_v48, 11  ;;  %v1363_v3 = vshll.u32 %v1269_v8, 16  ;;  %v1272_v33 = vld [vmem:[#allocation2 + $0x44] sm:$0xf] }
  0x71   : > { %v1353_v23 = vrot.slane %v1352_v24, 4  ;;  %v854_v45 = vsel %vm4847_vm9, %v846_v39, %v853_v46  ;;  %v1362_v38 = vrot.slane %v1360_v32, 4  ;;  %v1369_v58 = vshll.u32 %v1270_v22, 16 }
  0x72   : > { %v1348_v27 = vsel %vm4875_vm12, %v1343_v50, %v1347_v20  ;;  %v845_v4 = vsel %vm4847_vm9, %v3870_v55, %v844_v37  ;;  %v1365_v25 = vrot.slane %v1363_v3, 5  ;;  %v1373_v35 = vshrl.u32 %v1270_v22, 16  ;;  %v755_v20 = vld [vmem:[#allocation2 + $0x50] sm:$0x8]  ;;  %v4933_v37 = vld [vmem:[%s5654_s3 + $0xa] sm:$0x3] }
  0x73   : > { %v1358_v31 = vsel %vm4875_vm12, %v1353_v23, %v1357_v28  ;;  %v3895_v60 = vcombine.low %v845_v4, %v854_v45  ;;  %v1371_v52 = vrot.slane %v1369_v58, 5  ;;  %v1379_v2 = vshll.u32 %v1271_v1, 16  ;;  %4363 = vmatprep.subr.msk.bf16.mxu1 %vm1011_vm6, %v4933_v37  ;;  %v1275_v23 = vld [vmem:[#allocation2 + $0x54] sm:$0xf]  ;;  %v1276_v45 = vld [vmem:[#allocation2 + $0x58] sm:$0xf] }
  0x74   : > { %v3911_v5 = vcombine.low %v1348_v27, %v1358_v31  ;;  %v1366_v9 = vor.u32 %v1365_v25, %v1362_v38  ;;  %v1375_v57 = vrot.slane %v1373_v35, 4  ;;  %v856_v6 = vshrl.u32 %v752_v59, 16  ;;  %v1277_v31 = vld [vmem:[#allocation2 + $0x5c] sm:$0x1] }
  0x75   : > { %4218 = vmatmul.mubr.msk.bf16.gmra.mxu1 %vm986_vm7, %v3895_v60  ;;  %v1381_v7 = vrot.slane %v1379_v2, 5  ;;  %v876_v8 = vsel %vm4847_vm9, %v868_v43, %v4758_v44  ;;  %v1384_v12 = vshrl.u32 %v1272_v33, 16  ;;  %v1387_v17 = vshll.u32 %v1272_v33, 16  ;;  %v4940_v43 = vld [vmem:[%s5654_s3 + $0xc] sm:$0x3] }
  0x76   : > { %4235 = vmatprep.mubr.msk.bf16.mxu0 %vm986_vm7, %v3911_v5  ;;  %v1367_v18 = vrot.slane %v1366_v9, 4  ;;  %v1376_v26 = vor.u32 %v1375_v57, %v1371_v52  ;;  %v3871_v29 = vrot.slane %v856_v6, 11  ;;  %v1393_v48 = vshll.u32 %v1273_v0, 16  ;;  %4364 = vmatprep.subr.msk.bf16.mxu0 %vm1011_vm6, %v4940_v43  ;;  %v758_v5 = vld [vmem:[#allocation2 + $0x60] sm:$0x8] }
  0x77   : > { %v1386_v22 = vrot.slane %v1384_v12, 4  ;;  %v1389_v24 = vrot.slane %v1387_v17, 5  ;;  %v1397_v34 = vshrl.u32 %v1273_v0, 16  ;;  %v1403_v39 = vshll.u32 %v1274_v15, 16 }
  0x78   : > { %v1372_v44 = vsel %vm4875_vm12, %v1367_v18, %v1371_v52  ;;  %v1377_v46 = vrot.slane %v1376_v26, 4  ;;  %v867_v32 = vsel %vm4847_vm9, %v3871_v29, %v4755_v42  ;;  %v1395_v50 = vrot.slane %v1393_v48, 5  ;;  %v1279_v26 = vld [vmem:[#allocation2 + $0x68] sm:$0xf] }
  0x79   : > { %v3896_v28 = vcombine.low %v867_v32, %v876_v8  ;;  %v1390_v55 = vor.u32 %v1389_v24, %v1386_v22  ;;  %v1399_v1 = vrot.slane %v1397_v34, 4  ;;  %v1405_v3 = vrot.slane %v1403_v39, 5  ;;  %v1278_v8 = vld [vmem:[#allocation2 + $0x64] sm:$0xf] }
  0x7a   : > { %v1382_v38 = vsel %vm4875_vm12, %v1377_v46, %v1381_v7  ;;  %v878_v58 = vshrl.u32 %v755_v20, 16  ;;  %v888_v59 = vor.u32 %v886_v54, %v4791_v63  ;;  %v890_v42 = vrot.slane %v4791_v63, 4 }
  0x7b   : > { %v3912_v27 = vcombine.low %v1372_v44, %v1382_v38  ;;  %4221 = vmatprep.mubr.msk.bf16.mxu1 %vm986_vm7, %v3896_v28  ;;  %v1391_v4 = vrot.slane %v1390_v55, 4  ;;  %v1400_v25 = vor.u32 %v1399_v1, %v1395_v50  ;;  %v897_v35 = vor.u32 %v895_v56, %v4793_v10  ;;  %v1280_v44 = vld [vmem:[#allocation2 + $0x6c] sm:$0x1]  ;;  %v761_v55 = vld [vmem:[#allocation2 + $0x70] sm:$0x8] }
  0x7c   : > { %v3872_v33 = vrot.slane %v878_v58, 11  ;;  %v1408_v60 = vshrl.u32 %v1275_v23, 16  ;;  %v1411_v52 = vshll.u32 %v1275_v23, 16  ;;  %v1417_v2 = vshll.u32 %v1276_v45, 16  ;;  %v1281_v38 = vld [vmem:[#allocation2 + $0x74] sm:$0xf] }
  0x7d   : > { %4236 = vmatmul.mubr.msk.bf16.gmra.mxu0 %vm986_vm7, %v3912_v27  ;;  %v1396_v36 = vsel %vm4875_vm12, %v1391_v4, %v1395_v50  ;;  %v1401_v54 = vrot.slane %v1400_v25, 4  ;;  %v898_v63 = vsel %vm4847_vm9, %v890_v42, %v897_v35  ;;  %v1421_v0 = vshrl.u32 %v1276_v45, 16  ;;  %v1282_v4 = vld [vmem:[#allocation2 + $0x78] sm:$0xf] }
  0x7e   : > { %v889_v41 = vsel %vm4847_vm9, %v3872_v33, %v888_v59  ;;  %v1410_v56 = vrot.slane %v1408_v60, 4  ;;  %v1413_v10 = vrot.slane %v1411_v52, 5  ;;  %v1419_v9 = vrot.slane %v1417_v2, 5 }
  0x7f   : > { %v1406_v57 = vsel %vm4875_vm12, %v1401_v54, %v1405_v3  ;;  %v3897_v6 = vcombine.low %v889_v41, %v898_v63  ;;  %v1423_v15 = vrot.slane %v1421_v0, 4  ;;  %v1427_v7 = vshll.u32 %v1277_v31, 16  ;;  %v1646_v41 = vld [vmem:[#allocation2 + $0x14] sm:$0xf] }
  0x80   : > { %v3913_v12 = vcombine.low %v1396_v36, %v1406_v57  ;;  %v1414_v17 = vor.u32 %v1413_v10, %v1410_v56  ;;  %v900_v20 = vshrl.u32 %v758_v5, 16  ;;  %v910_v18 = vor.u32 %v908_v11, %v4819_v16  ;;  %v1283_v36 = vld [vmem:[#allocation2 + $0x7c] sm:$0x1]  ;;  %v1647_v56 = vld [vmem:[#allocation2 + $0x18] sm:$0xf] }
  0x81   : > { %4222 = vmatmul.mubr.msk.bf16.gmra.mxu1 %vm986_vm7, %v3897_v6  ;;  %v1424_v29 = vor.u32 %v1423_v15, %v1419_v9  ;;  %v1429_v48 = vrot.slane %v1427_v7, 5  ;;  %v912_v22 = vrot.slane %v4819_v16, 4  ;;  %v919_v24 = vor.u32 %v917_v13, %v4824_v21 }
  0x82   : > { %4239 = vmatprep.mubr.msk.bf16.mxu0 %vm986_vm7, %v3913_v12  ;;  %v1415_v34 = vrot.slane %v1414_v17, 4  ;;  %v3873_v39 = vrot.slane %v900_v20, 11  ;;  %v1432_v46 = vshrl.u32 %v1278_v8, 16  ;;  %v1435_v32 = vshll.u32 %v1278_v8, 16  ;;  %v1648_v17 = vld [vmem:[#allocation2 + $0x20] sm:$0x8] }
  0x83   : > { %v1425_v61 = vrot.slane %v1424_v29, 4  ;;  %v920_v11 = vsel %vm4847_vm9, %v912_v22, %v919_v24  ;;  %v1441_v50 = vshll.u32 %v1279_v26, 16  ;;  %v1445_v28 = vshrl.u32 %v1279_v26, 16 }
  0x84   : > { %v1420_v16 = vsel %vm4875_vm12, %v1415_v34, %v1419_v9  ;;  %v911_v62 = vsel %vm4847_vm9, %v3873_v39, %v910_v18  ;;  %v1434_v13 = vrot.slane %v1432_v46, 4  ;;  %v1437_v21 = vrot.slane %v1435_v32, 5 }
  0x85   : > { %v1430_v1 = vsel %vm4875_vm12, %v1425_v61, %v1429_v48  ;;  %v3898_v3 = vcombine.low %v911_v62, %v920_v11  ;;  %v1443_v23 = vrot.slane %v1441_v50, 5  ;;  %v1447_v45 = vrot.slane %v1445_v28, 4  ;;  %v5003_v48 = vld [vmem:[#allocation2 + $0x24] sm:$0xf]  ;;  %v5006_v11 = vld [vmem:[#allocation2 + $0x28] sm:$0xf] }
  0x86   : > { %v3914_v58 = vcombine.low %v1420_v16, %v1430_v1  ;;  %v1438_v59 = vor.u32 %v1437_v21, %v1434_v13  ;;  %v1451_v42 = vshll.u32 %v1280_v44, 16  ;;  %v922_v27 = vshrl.u32 %v761_v55, 16 }
  0x87   : > { %4225 = vmatprep.mubr.msk.bf16.mxu1 %vm986_vm7, %v3898_v3  ;;  %v1448_v25 = vor.u32 %v1447_v45, %v1443_v23  ;;  %v932_v35 = vor.u32 %v930_v30, %v4843_v47  ;;  %v934_v33 = vrot.slane %v4843_v47, 4  ;;  %v941_v31 = vor.u32 %v939_v40, %v4845_v51  ;;  %v1645_v30 = vld [vmem:[#allocation2 + $0x10] sm:$0x8] }
  0x88   : > { %4240 = vmatmul.mubr.msk.bf16.gmra.mxu0 %vm986_vm7, %v3914_v58  ;;  %v1439_v60 = vrot.slane %v1438_v59, 4  ;;  %v1453_v52 = vrot.slane %v1451_v42, 5  ;;  %v3874_v2 = vrot.slane %v922_v27, 11  ;;  %v1456_v54 = vshrl.u32 %v1281_v38, 16  ;;  %v1651_v58 = vld [vmem:[#allocation2 + $0x30] sm:$0x8] }
  0x89   : > { %v1449_v63 = vrot.slane %v1448_v25, 4  ;;  %v942_v0 = vsel %vm4847_vm9, %v934_v33, %v941_v31  ;;  %v1459_v5 = vshll.u32 %v1281_v38, 16  ;;  %v1465_v19 = vshll.u32 %v1282_v4, 16  ;;  %v1652_v25 = vld [vmem:[#allocation2 + $0x34] sm:$0xf] }
  0x8a   : > { %v1444_v47 = vsel %vm4875_vm12, %v1439_v60, %v1443_v23  ;;  %v933_v14 = vsel %vm4847_vm9, %v3874_v2, %v932_v35  ;;  %v1458_v40 = vrot.slane %v1456_v54, 4  ;;  %v1469_v51 = vshrl.u32 %v1282_v4, 16  ;;  %v1654_v2 = vld [vmem:[#allocation2 + $0x40] sm:$0x8] }
  0x8b   : > { %v1454_v10 = vsel %vm4875_vm12, %v1449_v63, %v1453_v52  ;;  %v3899_v9 = vcombine.low %v933_v14, %v942_v0  ;;  %v1461_v57 = vrot.slane %v1459_v5, 5  ;;  %v1467_v6 = vrot.slane %v1465_v19, 5  ;;  %v1653_v52 = vld [vmem:[#allocation2 + $0x38] sm:$0xf]  ;;  %v5027_v5 = vld [vmem:[#allocation2 + $0x44] sm:$0xf] }
  0x8c   : > { %v3915_v15 = vcombine.low %v1444_v47, %v1454_v10  ;;  %v1471_v7 = vrot.slane %v1469_v51, 4  ;;  %v1475_v8 = vshll.u32 %v1283_v36, 16  ;;  %v1670_v12 = vshrl.u32 %v1645_v30, 16 }
  0x8d   : > { %4226 = vmatmul.mubr.msk.bf16.gmra.mxu1 %vm986_vm7, %v3899_v9  ;;  %v1462_v20 = vor.u32 %v1461_v57, %v1458_v40  ;;  %v1675_v18 = vshrl.u32 %v1646_v41, 16  ;;  %v1678_v26 = vshll.u32 %v1646_v41, 16  ;;  %v1684_v29 = vshrl.u32 %v1647_v56, 16  ;;  %v5033_v40 = vld [vmem:[#allocation2 + $0x48] sm:$0xf] }
  0x8e   : > { %4243 = vmatprep.mubr.msk.bf16.mxu0 %vm986_vm7, %v3915_v15  ;;  %v1472_v22 = vor.u32 %v1471_v7, %v1467_v6  ;;  %v1477_v24 = vrot.slane %v1475_v8, 5  ;;  %v3925_v34 = vrot.slane %v1670_v12, 11  ;;  %v1687_v39 = vshll.u32 %v1647_v56, 16 }
  0x8f   : > { %v1463_v44 = vrot.slane %v1462_v20, 4  ;;  %v1677_v46 = vrot.slane %v1675_v18, 7  ;;  %v1686_v32 = vrot.slane %v1684_v29, 7  ;;  %v3951_v61 = vcombine.low %v1646_v41, %v1647_v56 }
  0x90   : > { %v1473_v50 = vrot.slane %v1472_v22, 4  ;;  %v1692_v28 = vshrl.u32 %v1648_v17, 16  ;;  %v1697_v55 = vshrl.u32 %v5003_v48, 16  ;;  %v1700_v16 = vshll.u32 %v5003_v48, 16  ;;  %v5040_v17 = vld [vmem:[#allocation2 + $0x54] sm:$0xf] }
  0x91   : > { %v1468_v62 = vsel %vm4875_vm12, %v1463_v44, %v1467_v6  ;;  %v1680_v13 = vor.u32 %v1678_v26, %v1677_v46  ;;  %v1682_v21 = vrot.slane %v1677_v46, 4  ;;  %v1689_v1 = vor.u32 %v1687_v39, %v1686_v32  ;;  %v1657_v6 = vld [vmem:[#allocation2 + $0x50] sm:$0x8]  ;;  %v1659_v44 = vld [vmem:[#allocation2 + $0x58] sm:$0xf] }
  0x92   : > { %v1478_v3 = vsel %vm4875_vm12, %v1473_v50, %v1477_v24  ;;  %v3926_v23 = vrot.slane %v1692_v28, 11  ;;  %v1699_v45 = vrot.slane %v1697_v55, 7  ;;  %v1706_v38 = vshrl.u32 %v5006_v11, 16  ;;  %v5056_v50 = vld [vmem:[%s5654_s3 + $0x10] sm:$0x3] }
  0x93   : > { %v3916_v59 = vcombine.low %v1468_v62, %v1478_v3  ;;  %v1681_v42 = vsel %vm4847_vm9, %v3925_v34, %v1680_v13  ;;  %v1690_v27 = vsel %vm4847_vm9, %v1682_v21, %v1689_v1  ;;  %v1709_v4 = vshll.u32 %v5006_v11, 16  ;;  %v1660_v13 = vld [vmem:[#allocation2 + $0x60] sm:$0x8]  ;;  %v5063_v21 = vld [vmem:[#allocation2 + $0x64] sm:$0xf] }
  0x94   : > { %v3934_v35 = vcombine.low %v1681_v42, %v1690_v27  ;;  %v1702_v33 = vor.u32 %v1700_v16, %v1699_v45  ;;  %v1704_v31 = vrot.slane %v1699_v45, 4  ;;  %v1708_v60 = vrot.slane %v1706_v38, 7  ;;  %v5070_v38 = vld [vmem:[#allocation2 + $0x68] sm:$0xf] }
  0x95   : > { %4244 = vmatmul.mubr.msk.bf16.gmra.mxu0 %vm986_vm7, %v3916_v59  ;;  %v3952_v36 = vcombine.low %v5003_v48, %v5006_v11  ;;  %v2460_v54 = vsel %vm1011_vm6, %v4933_v37, 0  ;;  %v2827_v63 = vsel %vm1011_vm6, %v4940_v43, 0  ;;  %v1714_v0 = vshrl.u32 %v1651_v58, 16  ;;  %v5045_v48 = vld [vmem:[%s5654_s3 + $0xe] sm:$0x3] }
  0x96   : > { %4249 = vmatprep.mubr.msk.bf16.mxu1 %vm986_vm7, %v3934_v35  ;;  %4267 = vmatprep.mubr.msk.bf16.mxu0 %vm986_vm7, %v3951_v61  ;;  %v1703_v19 = vsel %vm4847_vm9, %v3926_v23, %v1702_v33  ;;  %v1711_v30 = vor.u32 %v1709_v4, %v1708_v60  ;;  %v1719_v47 = vshrl.u32 %v1652_v25, 16  ;;  %v1722_v14 = vshll.u32 %v1652_v25, 16 }
  0x97   : > { %v3927_v51 = vrot.slane %v1714_v0, 11  ;;  %v1728_v37 = vshrl.u32 %v1653_v52, 16  ;;  %v1731_v41 = vshll.u32 %v1653_v52, 16  ;;  %v3953_v56 = vcombine.low %v1652_v25, %v1653_v52 }
  0x98   : > { %v1712_v43 = vsel %vm4847_vm9, %v1704_v31, %v1711_v30  ;;  %v1721_v10 = vrot.slane %v1719_v47, 7  ;;  %v1736_v9 = vshrl.u32 %v1654_v2, 16  ;;  %v1741_v57 = vshrl.u32 %v5027_v5, 16  ;;  %v1663_v31 = vld [vmem:[#allocation2 + $0x70] sm:$0x8] }
  0x99   : > { %v3935_v15 = vcombine.low %v1703_v19, %v1712_v43  ;;  %v1730_v7 = vrot.slane %v1728_v37, 7  ;;  %v1744_v8 = vshll.u32 %v5027_v5, 16  ;;  %v1750_v12 = vshrl.u32 %v5033_v40, 16 }
  0x9a   : > { %v1724_v20 = vor.u32 %v1722_v14, %v1721_v10  ;;  %v1726_v18 = vrot.slane %v1721_v10, 4  ;;  %v3928_v26 = vrot.slane %v1736_v9, 11  ;;  %v1743_v29 = vrot.slane %v1741_v57, 7  ;;  %v1666_v10 = vld [vmem:[#allocation2 + $0x80] sm:$0x8] }
  0x9b   : > { %4250 = vmatmul.mubr.msk.bf16.vlgmr.msra.gmra.mxu1 %vm986_vm7, %v3935_v15  ;;  %v1733_v22 = vor.u32 %v1731_v41, %v1730_v7  ;;  %v1752_v24 = vrot.slane %v1750_v12, 7  ;;  %v1753_v34 = vshll.u32 %v5033_v40, 16  ;;  %v3954_v39 = vcombine.low %v5027_v5, %v5033_v40  ;;  %v1665_v40 = vld [vmem:[#allocation2 + $0x78] sm:$0xf]  ;;  %v5092_v9 = vld [vmem:[#allocation2 + $0x84] sm:$0xf] }
  0x9c   : > { %4284 = vmatpush3.bf16.msra.mxu1 %v2460_v54  ;;  %v1725_v46 = vsel %vm4847_vm9, %v3927_v51, %v1724_v20  ;;  %v1746_v32 = vor.u32 %v1744_v8, %v1743_v29  ;;  %v1748_v61 = vrot.slane %v1743_v29, 4  ;;  %v1758_v11 = vshrl.u32 %v1657_v6, 16  ;;  %v5081_v54 = vld [vmem:[#allocation2 + $0x74] sm:$0xf] }
  0x9d   : > { %4268 = vmatmul.mubr.msk.bf16.vlgmr.msra.gmra.mxu0 %vm986_vm7, %v3952_v36  ;;  %v1734_v28 = vsel %vm4847_vm9, %v1726_v18, %v1733_v22  ;;  %v1755_v55 = vor.u32 %v1753_v34, %v1752_v24  ;;  %v1763_v16 = vshrl.u32 %v5040_v17, 16  ;;  %v1766_v62 = vshll.u32 %v5040_v17, 16  ;;  %4365 = vmatprep.subr.msk.bf16.mxu1 %vm1011_vm6, %v5045_v48  ;;  %v5099_v18 = vld [vmem:[#allocation2 + $0x88] sm:$0xf] }
  0x9e   : > { %4302 = vmatpush3.bf16.msra.mxu0 %v2827_v63  ;;  %v3936_v1 = vcombine.low %v1725_v46, %v1734_v28  ;;  %4271 = vmatprep.mubr.msk.bf16.mxu0 %vm986_vm7, %v3953_v56  ;;  %v1747_v3 = vsel %vm4847_vm9, %v3928_v26, %v1746_v32  ;;  %v3929_v23 = vrot.slane %v1758_v11, 11  ;;  %v1772_v45 = vshrl.u32 %v1659_v44, 16  ;;  %v2193_v32 = vld [vmem:[#allocation2 + $0x14] sm:$0xf] }
  0x9f   : > { %v1756_v58 = vsel %vm4847_vm9, %v1748_v61, %v1755_v55  ;;  %v1765_v59 = vrot.slane %v1763_v16, 7  ;;  %v1775_v42 = vshll.u32 %v1659_v44, 16  ;;  %v3955_v27 = vcombine.low %v5040_v17, %v1659_v44  ;;  %4366 = vmatprep.subr.msk.bf16.mxu0 %vm1011_vm6, %v5056_v50  ;;  %v2194_v16 = vld [vmem:[#allocation2 + $0x18] sm:$0xf] }
  0xa0   : > { %4253 = vmatprep.mubr.msk.bf16.mxu1 %vm986_vm7, %v3936_v1  ;;  %v3937_v4 = vcombine.low %v1747_v3, %v1756_v58  ;;  %v1774_v25 = vrot.slane %v1772_v45, 7  ;;  %v1780_v35 = vshrl.u32 %v1660_v13, 16  ;;  %v1785_v33 = vshrl.u32 %v5063_v21, 16  ;;  %v2195_v3 = vld [vmem:[#allocation2 + $0x1c] sm:$0x1] }
  0xa1   : > { %v1768_v60 = vor.u32 %v1766_v62, %v1765_v59  ;;  %v1770_v52 = vrot.slane %v1765_v59, 4  ;;  %v1788_v2 = vshll.u32 %v5063_v21, 16  ;;  %v1794_v36 = vshrl.u32 %v5070_v38, 16  ;;  %v2576_v59 = vld [vmem:[#allocation2 + $0x20] sm:$0x8] }
  0xa2   : > { %v1777_v63 = vor.u32 %v1775_v42, %v1774_v25  ;;  %v3930_v0 = vrot.slane %v1780_v35, 11  ;;  %v1787_v5 = vrot.slane %v1785_v33, 7  ;;  %v1797_v19 = vshll.u32 %v5070_v38, 16  ;;  %v5116_v35 = vld [vmem:[#allocation2 + $0x24] sm:$0xf] }
  0xa3   : > { %4254 = vmatmul.mubr.msk.bf16.gmra.mxu1 %vm986_vm7, %v3937_v4  ;;  %v1769_v30 = vsel %vm4847_vm9, %v3929_v23, %v1768_v60  ;;  %v1796_v47 = vrot.slane %v1794_v36, 7  ;;  %v3956_v14 = vcombine.low %v5063_v21, %v5070_v38  ;;  %v1802_v51 = vshrl.u32 %v1663_v31, 16 }
  0xa4   : > { %v1778_v37 = vsel %vm4847_vm9, %v1770_v52, %v1777_v63  ;;  %v1790_v41 = vor.u32 %v1788_v2, %v1787_v5  ;;  %v1792_v56 = vrot.slane %v1787_v5, 4  ;;  %v1807_v43 = vshrl.u32 %v5081_v54, 16 }
  0xa5   : > { %4272 = vmatmul.mubr.msk.bf16.gmra.mxu0 %vm986_vm7, %v3954_v39  ;;  %v3938_v57 = vcombine.low %v1769_v30, %v1778_v37  ;;  %v1799_v6 = vor.u32 %v1797_v19, %v1796_v47  ;;  %v3931_v15 = vrot.slane %v1802_v51, 11  ;;  %v1810_v7 = vshll.u32 %v5081_v54, 16 }
  0xa6   : > { %4275 = vmatprep.mubr.msk.bf16.mxu0 %vm986_vm7, %v3955_v27  ;;  %v1791_v8 = vsel %vm4847_vm9, %v3930_v0, %v1790_v41  ;;  %v1809_v12 = vrot.slane %v1807_v43, 7  ;;  %v1816_v17 = vshrl.u32 %v1665_v40, 16  ;;  %v1819_v20 = vshll.u32 %v1665_v40, 16  ;;  %v5122_v0 = vld [vmem:[#allocation2 + $0x28] sm:$0xf] }
  0xa7   : > { %4257 = vmatprep.mubr.msk.bf16.mxu1 %vm986_vm7, %v3938_v57  ;;  %v1800_v26 = vsel %vm4847_vm9, %v1792_v56, %v1799_v6  ;;  %v3957_v29 = vcombine.low %v5081_v54, %v1665_v40  ;;  %v1824_v22 = vshrl.u32 %v1666_v10, 16  ;;  %v1829_v24 = vshrl.u32 %v5092_v9, 16  ;;  %v2197_v56 = vld [vmem:[#allocation2 + $0x28] sm:$0xf] }
  0xa8   : > { %v3939_v34 = vcombine.low %v1791_v8, %v1800_v26  ;;  %v1812_v39 = vor.u32 %v1810_v7, %v1809_v12  ;;  %v1814_v44 = vrot.slane %v1809_v12, 4  ;;  %v1818_v46 = vrot.slane %v1816_v17, 7  ;;  %v2198_v7 = vld [vmem:[#allocation2 + $0x2c] sm:$0x1] }
  0xa9   : > { %v3932_v61 = vrot.slane %v1824_v22, 11  ;;  %v1831_v11 = vrot.slane %v1829_v24, 7  ;;  %v1832_v28 = vshll.u32 %v5092_v9, 16  ;;  %v1838_v55 = vshrl.u32 %v5099_v18, 16 }
  0xaa   : > { %v1813_v62 = vsel %vm4847_vm9, %v3931_v15, %v1812_v39  ;;  %v1821_v13 = vor.u32 %v1819_v20, %v1818_v46  ;;  %v1841_v21 = vshll.u32 %v5099_v18, 16  ;;  %v3958_v1 = vcombine.low %v5092_v9, %v5099_v18  ;;  %v5138_v46 = vld [vmem:[#allocation2 + $0x38] sm:$0xf] }
  0xab   : > { %4258 = vmatmul.mubr.msk.bf16.gmra.mxu1 %vm986_vm7, %v3939_v34  ;;  %v1834_v23 = vor.u32 %v1832_v28, %v1831_v11  ;;  %v1836_v45 = vrot.slane %v1831_v11, 4  ;;  %v1840_v38 = vrot.slane %v1838_v55, 7  ;;  %v2218_v58 = vshrl.u32 %v2193_v32, 16 }
  0xac   : > { %v1822_v42 = vsel %vm4847_vm9, %v1814_v44, %v1821_v13  ;;  %v2221_v27 = vshll.u32 %v2193_v32, 16  ;;  %v2227_v4 = vshll.u32 %v2194_v16, 16  ;;  %v2231_v25 = vshrl.u32 %v2194_v16, 16  ;;  %v5136_v44 = vld [vmem:[#allocation2 + $0x34] sm:$0xf] }
  0xad   : > { %4276 = vmatmul.mubr.msk.bf16.gmra.mxu0 %vm986_vm7, %v3956_v14  ;;  %v3940_v33 = vcombine.low %v1813_v62, %v1822_v42  ;;  %v1835_v31 = vsel %vm4847_vm9, %v3932_v61, %v1834_v23  ;;  %v1843_v60 = vor.u32 %v1841_v21, %v1840_v38  ;;  %v2220_v52 = vrot.slane %v2218_v58, 4  ;;  %v2196_v14 = vld [vmem:[#allocation2 + $0x24] sm:$0xf]  ;;  %v2199_v42 = vld [vmem:[#allocation2 + $0x34] sm:$0xf] }
  0xae   : > { %4279 = vmatprep.mubr.msk.bf16.mxu0 %vm986_vm7, %v3957_v29  ;;  %v2223_v2 = vrot.slane %v2221_v27, 5  ;;  %v2229_v36 = vrot.slane %v2227_v4, 5  ;;  %v2233_v54 = vrot.slane %v2231_v25, 4  ;;  %v2237_v63 = vshll.u32 %v2195_v3, 16  ;;  %v2579_v29 = vld [vmem:[#allocation2 + $0x30] sm:$0x8] }
  0xaf   : > { %4261 = vmatprep.mubr.msk.bf16.mxu1 %vm986_vm7, %v3940_v33  ;;  %v1844_v5 = vsel %vm4847_vm9, %v1836_v45, %v1843_v60  ;;  %v2601_v19 = vshrl.u32 %v2576_v59, 16  ;;  %v2606_v30 = vshrl.u32 %v5116_v35, 16  ;;  %v2609_v47 = vshll.u32 %v5116_v35, 16 }
  0xb0   : > { %v3941_v40 = vcombine.low %v1835_v31, %v1844_v5  ;;  %v2224_v51 = vor.u32 %v2223_v2, %v2220_v52  ;;  %v2234_v37 = vor.u32 %v2233_v54, %v2229_v36  ;;  %v2239_v41 = vrot.slane %v2237_v63, 5  ;;  %v2200_v31 = vld [vmem:[#allocation2 + $0x38] sm:$0xf]  ;;  %v2201_v54 = vld [vmem:[#allocation2 + $0x3c] sm:$0x1] }
  0xb1   : > { %v3984_v43 = vrot.slane %v2601_v19, 11  ;;  %v2608_v10 = vrot.slane %v2606_v30, 7  ;;  %v2615_v9 = vshrl.u32 %v5122_v0, 16  ;;  %v2618_v57 = vshll.u32 %v5122_v0, 16 }
  0xb2   : > { %v2225_v6 = vrot.slane %v2224_v51, 4  ;;  %v2235_v15 = vrot.slane %v2234_v37, 4  ;;  %v2242_v8 = vshrl.u32 %v2196_v14, 16  ;;  %v2245_v12 = vshll.u32 %v2196_v14, 16  ;;  %v2582_v37 = vld [vmem:[#allocation2 + $0x40] sm:$0x8] }
  0xb3   : > { %4262 = vmatmul.mubr.msk.bf16.gmra.mxu1 %vm986_vm7, %v3941_v40  ;;  %v2611_v17 = vor.u32 %v2609_v47, %v2608_v10  ;;  %v2613_v20 = vrot.slane %v2608_v10, 4  ;;  %v2617_v18 = vrot.slane %v2615_v9, 7  ;;  %v2251_v26 = vshll.u32 %v2197_v56, 16  ;;  %v5161_v10 = vld [vmem:[#allocation2 + $0x44] sm:$0xf] }
  0xb4   : > { %v2230_v22 = vsel %vm4875_vm12, %v2225_v6, %v2229_v36  ;;  %v2240_v24 = vsel %vm4875_vm12, %v2235_v15, %v2239_v41  ;;  %v2244_v34 = vrot.slane %v2242_v8, 4  ;;  %v2247_v39 = vrot.slane %v2245_v12, 5 }
  0xb5   : > { %4280 = vmatmul.mubr.msk.bf16.gmra.mxu0 %vm986_vm7, %v3958_v1  ;;  %v3968_v32 = vcombine.low %v2230_v22, %v2240_v24  ;;  %v2612_v61 = vsel %vm4847_vm9, %v3984_v43, %v2611_v17  ;;  %v2620_v11 = vor.u32 %v2618_v57, %v2617_v18  ;;  %v2253_v28 = vrot.slane %v2251_v26, 5  ;;  %v2203_v24 = vld [vmem:[#allocation2 + $0x48] sm:$0xf] }
  0xb6   : > { %v2248_v55 = vor.u32 %v2247_v39, %v2244_v34  ;;  %v2255_v16 = vshrl.u32 %v2197_v56, 16  ;;  %v2261_v62 = vshll.u32 %v2198_v7, 16  ;;  %v2623_v13 = vshrl.u32 %v2579_v29, 16  ;;  %v2202_v7 = vld [vmem:[#allocation2 + $0x44] sm:$0xf] }
  0xb7   : > { %4285 = vmatprep.mubr.msk.bf16.mxu1 %vm986_vm7, %v3968_v32  ;;  %v2621_v21 = vsel %vm4847_vm9, %v2613_v20, %v2620_v11  ;;  %v2628_v3 = vshrl.u32 %v5136_v44, 16  ;;  %v2631_v23 = vshll.u32 %v5136_v44, 16  ;;  %v2637_v1 = vshrl.u32 %v5138_v46, 16 }
  0xb8   : > { %v3993_v45 = vcombine.low %v2612_v61, %v2621_v21  ;;  %v2249_v38 = vrot.slane %v2248_v55, 4  ;;  %v2257_v58 = vrot.slane %v2255_v16, 4  ;;  %v2263_v59 = vrot.slane %v2261_v62, 5 }
  0xb9   : > { %v3985_v27 = vrot.slane %v2623_v13, 11  ;;  %v2630_v4 = vrot.slane %v2628_v3, 7  ;;  %v2639_v25 = vrot.slane %v2637_v1, 7  ;;  %v2640_v33 = vshll.u32 %v5138_v46, 16  ;;  %v2204_v13 = vld [vmem:[#allocation2 + $0x4c] sm:$0x1] }
  0xba   : > { %4303 = vmatprep.mubr.msk.bf16.mxu0 %vm986_vm7, %v3993_v45  ;;  %v2254_v60 = vsel %vm4875_vm12, %v2249_v38, %v2253_v28  ;;  %v2258_v52 = vor.u32 %v2257_v58, %v2253_v28  ;;  %v3009_v2 = vsel %vm1011_vm6, %v5045_v48, 0  ;;  %v3391_v36 = vsel %vm1011_vm6, %v5056_v50, 0  ;;  %v5163_v50 = vld [vmem:[#allocation2 + $0x48] sm:$0xf] }
  0xbb   : > { %v2633_v63 = vor.u32 %v2631_v23, %v2630_v4  ;;  %v2635_v5 = vrot.slane %v2630_v4, 4  ;;  %v2642_v19 = vor.u32 %v2640_v33, %v2639_v25  ;;  %v2266_v30 = vshrl.u32 %v2199_v42, 16 }
  0xbc   : > { %v2259_v47 = vrot.slane %v2258_v52, 4  ;;  %v2269_v14 = vshll.u32 %v2199_v42, 16  ;;  %v2275_v40 = vshll.u32 %v2200_v31, 16  ;;  %v2279_v51 = vshrl.u32 %v2200_v31, 16  ;;  %v5175_v42 = vld [vmem:[#allocation2 + $0x54] sm:$0xf] }
  0xbd   : > { %v2634_v41 = vsel %vm4847_vm9, %v3985_v27, %v2633_v63  ;;  %v2643_v56 = vsel %vm4847_vm9, %v2635_v5, %v2642_v19  ;;  %v2268_v48 = vrot.slane %v2266_v30, 4  ;;  %v2285_v43 = vshll.u32 %v2201_v54, 16  ;;  %v5179_v31 = vld [vmem:[#allocation2 + $0x58] sm:$0xf]  ;;  %v2205_v30 = vld [vmem:[#allocation2 + $0x54] sm:$0xf] }
  0xbe   : > { %v2264_v9 = vsel %vm4875_vm12, %v2259_v47, %v2263_v59  ;;  %v3994_v57 = vcombine.low %v2634_v41, %v2643_v56  ;;  %v2271_v6 = vrot.slane %v2269_v14, 5  ;;  %v2277_v15 = vrot.slane %v2275_v40, 5  ;;  %v2585_v59 = vld [vmem:[#allocation2 + $0x50] sm:$0x8] }
  0xbf   : > { %v3969_v8 = vcombine.low %v2254_v60, %v2264_v9  ;;  %v2281_v12 = vrot.slane %v2279_v51, 4  ;;  %v2287_v17 = vrot.slane %v2285_v43, 5  ;;  %v2645_v20 = vshrl.u32 %v2582_v37, 16  ;;  %v2206_v37 = vld [vmem:[#allocation2 + $0x58] sm:$0xf] }
  0xc0   : > { %4304 = vmatmul.mubr.msk.bf16.vlgmr.msra.gmra.mxu0 %vm986_vm7, %v3994_v57  ;;  %v2272_v18 = vor.u32 %v2271_v6, %v2268_v48  ;;  %v2650_v26 = vshrl.u32 %v5161_v10, 16  ;;  %v2653_v29 = vshll.u32 %v5161_v10, 16  ;;  %v2659_v22 = vshrl.u32 %v5163_v50, 16 }
  0xc1   : > { %4286 = vmatmul.mubr.msk.bf16.vlgmr.msra.gmra.mxu1 %vm986_vm7, %v3969_v8  ;;  %4338 = vmatpush3.bf16.msra.mxu0 %v3391_v36  ;;  %v2282_v34 = vor.u32 %v2281_v12, %v2277_v15  ;;  %v3986_v39 = vrot.slane %v2645_v20, 11  ;;  %v2662_v32 = vshll.u32 %v5163_v50, 16  ;;  %v2290_v61 = vshrl.u32 %v2202_v7, 16  ;;  %v2207_v12 = vld [vmem:[#allocation2 + $0x5c] sm:$0x1] }
  0xc2   : > { %4320 = vmatpush3.bf16.msra.mxu1 %v3009_v2  ;;  %v2273_v11 = vrot.slane %v2272_v18, 4  ;;  %v2652_v28 = vrot.slane %v2650_v26, 7  ;;  %v2661_v55 = vrot.slane %v2659_v22, 7  ;;  %v2293_v16 = vshll.u32 %v2202_v7, 16  ;;  %v2588_v18 = vld [vmem:[#allocation2 + $0x60] sm:$0x8] }
  0xc3   : > { %v2283_v62 = vrot.slane %v2282_v34, 4  ;;  %v2292_v21 = vrot.slane %v2290_v61, 4  ;;  %v2299_v3 = vshll.u32 %v2203_v24, 16  ;;  %v2303_v23 = vshrl.u32 %v2203_v24, 16  ;;  %v5195_v34 = vld [vmem:[#allocation2 + $0x64] sm:$0xf] }
  0xc4   : > { %v2278_v1 = vsel %vm4875_vm12, %v2273_v11, %v2277_v15  ;;  %v2655_v45 = vor.u32 %v2653_v29, %v2652_v28  ;;  %v2657_v38 = vrot.slane %v2652_v28, 4  ;;  %v2664_v58 = vor.u32 %v2662_v32, %v2661_v55  ;;  %v5197_v28 = vld [vmem:[#allocation2 + $0x68] sm:$0xf] }
  0xc5   : > { %v2288_v27 = vsel %vm4875_vm12, %v2283_v62, %v2287_v17  ;;  %v2295_v4 = vrot.slane %v2293_v16, 5  ;;  %v2301_v25 = vrot.slane %v2299_v3, 5  ;;  %v2305_v33 = vrot.slane %v2303_v23, 4 }
  0xc6   : > { %v3970_v60 = vcombine.low %v2278_v1, %v2288_v27  ;;  %v2656_v52 = vsel %vm4847_vm9, %v3986_v39, %v2655_v45  ;;  %v2665_v2 = vsel %vm4847_vm9, %v2657_v38, %v2664_v58  ;;  %v2309_v36 = vshll.u32 %v2204_v13, 16  ;;  %v2208_v45 = vld [vmem:[#allocation2 + $0x64] sm:$0xf]  ;;  %v2209_v38 = vld [vmem:[#allocation2 + $0x68] sm:$0xf] }
  0xc7   : > { %v3995_v54 = vcombine.low %v2656_v52, %v2665_v2  ;;  %v2296_v63 = vor.u32 %v2295_v4, %v2292_v21  ;;  %v2306_v5 = vor.u32 %v2305_v33, %v2301_v25  ;;  %v2667_v19 = vshrl.u32 %v2585_v59, 16 }
  0xc8   : > { %4289 = vmatprep.mubr.msk.bf16.mxu1 %vm986_vm7, %v3970_v60  ;;  %v2311_v47 = vrot.slane %v2309_v36, 5  ;;  %v2672_v14 = vshrl.u32 %v5175_v42, 16  ;;  %v2675_v40 = vshll.u32 %v5175_v42, 16  ;;  %v2681_v51 = vshrl.u32 %v5179_v31, 16  ;;  %v2210_v36 = vld [vmem:[#allocation2 + $0x6c] sm:$0x1] }
  0xc9   : > { %4307 = vmatprep.mubr.msk.bf16.mxu0 %vm986_vm7, %v3995_v54  ;;  %v2297_v41 = vrot.slane %v2296_v63, 4  ;;  %v2307_v56 = vrot.slane %v2306_v5, 4  ;;  %v3987_v48 = vrot.slane %v2667_v19, 11  ;;  %v2684_v43 = vshll.u32 %v5179_v31, 16 }
  0xca   : > { %v2674_v9 = vrot.slane %v2672_v14, 7  ;;  %v2683_v57 = vrot.slane %v2681_v51, 7  ;;  %v2314_v6 = vshrl.u32 %v2205_v30, 16  ;;  %v2317_v15 = vshll.u32 %v2205_v30, 16  ;;  %v5213_v51 = vld [vmem:[#allocation2 + $0x74] sm:$0xf] }
  0xcb   : > { %v2302_v7 = vsel %vm4875_vm12, %v2297_v41, %v2301_v25  ;;  %v2312_v8 = vsel %vm4875_vm12, %v2307_v56, %v2311_v47  ;;  %v2323_v17 = vshll.u32 %v2206_v37, 16  ;;  %v2327_v20 = vshrl.u32 %v2206_v37, 16 }
  0xcc   : > { %v3971_v26 = vcombine.low %v2302_v7, %v2312_v8  ;;  %v2677_v29 = vor.u32 %v2675_v40, %v2674_v9  ;;  %v2679_v22 = vrot.slane %v2674_v9, 4  ;;  %v2686_v24 = vor.u32 %v2684_v43, %v2683_v57  ;;  %v2591_v40 = vld [vmem:[#allocation2 + $0x70] sm:$0x8] }
  0xcd   : > { %v2316_v39 = vrot.slane %v2314_v6, 4  ;;  %v2319_v32 = vrot.slane %v2317_v15, 5  ;;  %v2325_v61 = vrot.slane %v2323_v17, 5  ;;  %v2329_v11 = vrot.slane %v2327_v20, 4  ;;  %v5217_v15 = vld [vmem:[#allocation2 + $0x78] sm:$0xf] }
  0xce   : > { %4290 = vmatmul.mubr.msk.bf16.gmra.mxu1 %vm986_vm7, %v3971_v26  ;;  %v2678_v55 = vsel %vm4847_vm9, %v3987_v48, %v2677_v29  ;;  %v2687_v16 = vsel %vm4847_vm9, %v2679_v22, %v2686_v24  ;;  %v2333_v62 = vshll.u32 %v2207_v12, 16  ;;  %v2689_v13 = vshrl.u32 %v2588_v18, 16  ;;  %v2211_v20 = vld [vmem:[#allocation2 + $0x74] sm:$0xf] }
  0xcf   : > { %v3996_v21 = vcombine.low %v2678_v55, %v2687_v16  ;;  %v2320_v3 = vor.u32 %v2319_v32, %v2316_v39  ;;  %v2330_v23 = vor.u32 %v2329_v11, %v2325_v61  ;;  %v2694_v1 = vshrl.u32 %v5195_v34, 16  ;;  %v2212_v11 = vld [vmem:[#allocation2 + $0x78] sm:$0xf] }
  0xd0   : > { %v2335_v58 = vrot.slane %v2333_v62, 5  ;;  %v3988_v59 = vrot.slane %v2689_v13, 11  ;;  %v2697_v27 = vshll.u32 %v5195_v34, 16  ;;  %v2703_v4 = vshrl.u32 %v5197_v28, 16  ;;  %v2213_v62 = vld [vmem:[#allocation2 + $0x7c] sm:$0x1] }
  0xd1   : > { %4308 = vmatmul.mubr.msk.bf16.gmra.mxu0 %vm986_vm7, %v3996_v21  ;;  %v2321_v25 = vrot.slane %v2320_v3, 4  ;;  %v2331_v33 = vrot.slane %v2330_v23, 4  ;;  %v2696_v60 = vrot.slane %v2694_v1, 7  ;;  %v2706_v52 = vshll.u32 %v5197_v28, 16 }
  0xd2   : > { %v2705_v2 = vrot.slane %v2703_v4, 7  ;;  %v2338_v54 = vshrl.u32 %v2208_v45, 16  ;;  %v2341_v63 = vshll.u32 %v2208_v45, 16  ;;  %v2347_v5 = vshll.u32 %v2209_v38, 16 }
  0xd3   : > { %v2326_v19 = vsel %vm4875_vm12, %v2321_v25, %v2325_v61  ;;  %v2336_v30 = vsel %vm4875_vm12, %v2331_v33, %v2335_v58  ;;  %v2699_v47 = vor.u32 %v2697_v27, %v2696_v60  ;;  %v2701_v14 = vrot.slane %v2696_v60, 4 }
  0xd4   : > { %v3972_v37 = vcombine.low %v2326_v19, %v2336_v30  ;;  %v2708_v41 = vor.u32 %v2706_v52, %v2705_v2  ;;  %v2340_v56 = vrot.slane %v2338_v54, 4  ;;  %v2343_v48 = vrot.slane %v2341_v63, 5  ;;  %v5231_v2 = vld [vmem:[#allocation2 + $0x84] sm:$0xf] }
  0xd5   : > { %v2700_v43 = vsel %vm4847_vm9, %v3988_v59, %v2699_v47  ;;  %v2349_v9 = vrot.slane %v2347_v5, 5  ;;  %v2351_v57 = vshrl.u32 %v2209_v38, 16  ;;  %v2357_v6 = vshll.u32 %v2210_v36, 16  ;;  %v2594_v38 = vld [vmem:[#allocation2 + $0x80] sm:$0x8] }
  0xd6   : > { %4293 = vmatprep.mubr.msk.bf16.mxu1 %vm986_vm7, %v3972_v37  ;;  %v2709_v7 = vsel %vm4847_vm9, %v2701_v14, %v2708_v41  ;;  %v2344_v8 = vor.u32 %v2343_v48, %v2340_v56  ;;  %v2711_v12 = vshrl.u32 %v2591_v40, 16  ;;  %v2716_v17 = vshrl.u32 %v5213_v51, 16  ;;  %v5235_v5 = vld [vmem:[#allocation2 + $0x88] sm:$0xf]  ;;  %v2214_v37 = vld [vmem:[#allocation2 + $0x84] sm:$0xf] }
  0xd7   : > { %v3997_v18 = vcombine.low %v2700_v43, %v2709_v7  ;;  %v2353_v26 = vrot.slane %v2351_v57, 4  ;;  %v2359_v29 = vrot.slane %v2357_v6, 5  ;;  %v2719_v22 = vshll.u32 %v5213_v51, 16 }
  0xd8   : > { %v2345_v24 = vrot.slane %v2344_v8, 4  ;;  %v3989_v39 = vrot.slane %v2711_v12, 11  ;;  %v2718_v32 = vrot.slane %v2716_v17, 7  ;;  %v2725_v61 = vshrl.u32 %v5217_v15, 16 }
  0xd9   : > { %4311 = vmatprep.mubr.msk.bf16.mxu0 %vm986_vm7, %v3997_v18  ;;  %v2354_v55 = vor.u32 %v2353_v26, %v2349_v9  ;;  %v2728_v16 = vshll.u32 %v5217_v15, 16  ;;  %v2362_v13 = vshrl.u32 %v2211_v20, 16  ;;  %v2365_v21 = vshll.u32 %v2211_v20, 16  ;;  %v2216_v20 = vld [vmem:[#allocation2 + $0x8c] sm:$0x1] }
  0xda   : > { %v2350_v3 = vsel %vm4875_vm12, %v2345_v24, %v2349_v9  ;;  %v2721_v23 = vor.u32 %v2719_v22, %v2718_v32  ;;  %v2723_v1 = vrot.slane %v2718_v32, 4  ;;  %v2727_v45 = vrot.slane %v2725_v61, 7  ;;  %v2215_v9 = vld [vmem:[#allocation2 + $0x88] sm:$0xf]  ;;  %v2597_v32 = vld [vmem:[#allocation2 + $0x90] sm:$0x8] }
  0xdb   : > { %v2355_v58 = vrot.slane %v2354_v55, 4  ;;  %v2364_v59 = vrot.slane %v2362_v13, 4  ;;  %v2367_v27 = vrot.slane %v2365_v21, 5  ;;  %v2371_v4 = vshll.u32 %v2212_v11, 16 }
  0xdc   : > { %v2722_v25 = vsel %vm4847_vm9, %v3989_v39, %v2721_v23  ;;  %v2730_v33 = vor.u32 %v2728_v16, %v2727_v45  ;;  %v2375_v60 = vshrl.u32 %v2212_v11, 16  ;;  %v2381_v52 = vshll.u32 %v2213_v62, 16  ;;  %v5247_v62 = vld [vmem:[#allocation2 + $0x94] sm:$0xf] }
  0xdd   : > { %v2360_v36 = vsel %vm4875_vm12, %v2355_v58, %v2359_v29  ;;  %v2368_v54 = vor.u32 %v2367_v27, %v2364_v59  ;;  %v2373_v63 = vrot.slane %v2371_v4, 5  ;;  %v2733_v19 = vshrl.u32 %v2594_v38, 16  ;;  %v5253_v59 = vld [vmem:[#allocation2 + $0x98] sm:$0xf] }
  0xde   : > { %v3973_v30 = vcombine.low %v2350_v3, %v2360_v36  ;;  %v2731_v47 = vsel %vm4847_vm9, %v2723_v1, %v2730_v33  ;;  %v2377_v14 = vrot.slane %v2375_v60, 4  ;;  %v2383_v40 = vrot.slane %v2381_v52, 5  ;;  %v3124_v60 = vld [vmem:[#allocation2 + $0x24] sm:$0xf] }
  0xdf   : > { %v3998_v41 = vcombine.low %v2722_v25, %v2731_v47  ;;  %v2369_v56 = vrot.slane %v2368_v54, 4  ;;  %v3990_v48 = vrot.slane %v2733_v19, 11  ;;  %v2738_v43 = vshrl.u32 %v5231_v2, 16 }
  0xe0   : > { %4294 = vmatmul.mubr.msk.bf16.gmra.mxu1 %vm986_vm7, %v3973_v30  ;;  %v2378_v57 = vor.u32 %v2377_v14, %v2373_v63  ;;  %v2741_v6 = vshll.u32 %v5231_v2, 16  ;;  %v2747_v7 = vshrl.u32 %v5235_v5, 16  ;;  %v2750_v8 = vshll.u32 %v5235_v5, 16 }
  0xe1   : > { %4312 = vmatmul.mubr.msk.bf16.gmra.mxu0 %vm986_vm7, %v3998_v41  ;;  %v2374_v12 = vsel %vm4875_vm12, %v2369_v56, %v2373_v63  ;;  %v2740_v17 = vrot.slane %v2738_v43, 7  ;;  %v2386_v18 = vshrl.u32 %v2214_v37, 16  ;;  %v2389_v26 = vshll.u32 %v2214_v37, 16 }
  0xe2   : > { %v2379_v29 = vrot.slane %v2378_v57, 4  ;;  %v2749_v22 = vrot.slane %v2747_v7, 7  ;;  %v2395_v24 = vshll.u32 %v2215_v9, 16  ;;  %v2399_v39 = vshrl.u32 %v2215_v9, 16 }
  0xe3   : > { %v2743_v61 = vor.u32 %v2741_v6, %v2740_v17  ;;  %v2745_v11 = vrot.slane %v2740_v17, 4  ;;  %v2388_v55 = vrot.slane %v2386_v18, 4  ;;  %v2391_v16 = vrot.slane %v2389_v26, 5 }
  0xe4   : > { %v2384_v13 = vsel %vm4875_vm12, %v2379_v29, %v2383_v40  ;;  %v2752_v21 = vor.u32 %v2750_v8, %v2749_v22  ;;  %v2397_v3 = vrot.slane %v2395_v24, 5  ;;  %v2401_v23 = vrot.slane %v2399_v39, 4  ;;  %v3125_v40 = vld [vmem:[#allocation2 + $0x28] sm:$0xf]  ;;  %v3127_v8 = vld [vmem:[#allocation2 + $0x34] sm:$0xf] }
  0xe5   : > { %v3974_v1 = vcombine.low %v2374_v12, %v2384_v13  ;;  %v2744_v45 = vsel %vm4847_vm9, %v3990_v48, %v2743_v61  ;;  %v2392_v38 = vor.u32 %v2391_v16, %v2388_v55  ;;  %v2405_v58 = vshll.u32 %v2216_v20, 16  ;;  %v3126_v48 = vld [vmem:[#allocation2 + $0x2c] sm:$0x1]  ;;  %v3129_v61 = vld [vmem:[#allocation2 + $0x3c] sm:$0x1] }
  0xe6   : > { %v2753_v27 = vsel %vm4847_vm9, %v2745_v11, %v2752_v21  ;;  %v2402_v4 = vor.u32 %v2401_v23, %v2397_v3  ;;  %v2755_v25 = vshrl.u32 %v2597_v32, 16  ;;  %v2760_v33 = vshrl.u32 %v5247_v62, 16 }
  0xe7   : > { %4297 = vmatprep.mubr.msk.bf16.mxu1 %vm986_vm7, %v3974_v1  ;;  %v3999_v52 = vcombine.low %v2744_v45, %v2753_v27  ;;  %v2393_v36 = vrot.slane %v2392_v38, 4  ;;  %v2407_v54 = vrot.slane %v2405_v58, 5  ;;  %v2763_v63 = vshll.u32 %v5247_v62, 16 }
  0xe8   : > { %v2403_v19 = vrot.slane %v2402_v4, 4  ;;  %v3991_v30 = vrot.slane %v2755_v25, 11  ;;  %v2762_v47 = vrot.slane %v2760_v33, 7  ;;  %v2769_v14 = vshrl.u32 %v5253_v59, 16 }
  0xe9   : > { %4315 = vmatprep.mubr.msk.bf16.mxu0 %vm986_vm7, %v3999_v52  ;;  %v2398_v37 = vsel %vm4875_vm12, %v2393_v36, %v2397_v3  ;;  %v2772_v41 = vshll.u32 %v5253_v59, 16  ;;  %v4010_v56 = vcombine.low %v5116_v35, %v5122_v0  ;;  %v3149_v43 = vshrl.u32 %v3124_v60, 16  ;;  %v3128_v35 = vld [vmem:[#allocation2 + $0x38] sm:$0xf]  ;;  %v3130_v3 = vld [vmem:[#allocation2 + $0x44] sm:$0xf] }
  0xea   : > { %v2408_v9 = vsel %vm4875_vm12, %v2403_v19, %v2407_v54  ;;  %v2765_v57 = vor.u32 %v2763_v63, %v2762_v47  ;;  %v2767_v6 = vrot.slane %v2762_v47, 4  ;;  %v2771_v7 = vrot.slane %v2769_v14, 7  ;;  %v3132_v19 = vld [vmem:[#allocation2 + $0x4c] sm:$0x1] }
  0xeb   : > { %v3975_v12 = vcombine.low %v2398_v37, %v2408_v9  ;;  %v3151_v17 = vrot.slane %v3149_v43, 4  ;;  %v3152_v20 = vshll.u32 %v3124_v60, 16  ;;  %v3158_v18 = vshll.u32 %v3125_v40, 16  ;;  %v3133_v43 = vld [vmem:[#allocation2 + $0x54] sm:$0xf] }
  0xec   : > { %v2766_v26 = vsel %vm4847_vm9, %v3991_v30, %v2765_v57  ;;  %v2774_v29 = vor.u32 %v2772_v41, %v2771_v7  ;;  %v3162_v22 = vshrl.u32 %v3125_v40, 16  ;;  %v3168_v24 = vshll.u32 %v3126_v48, 16 }
  0xed   : > { %4298 = vmatmul.mubr.msk.bf16.gmra.mxu1 %vm986_vm7, %v3975_v12  ;;  %v3154_v0 = vrot.slane %v3152_v20, 5  ;;  %v3160_v39 = vrot.slane %v3158_v18, 5  ;;  %v4011_v32 = vcombine.low %v5136_v44, %v5138_v46  ;;  %v3173_v11 = vshrl.u32 %v3127_v8, 16  ;;  %v3131_v44 = vld [vmem:[#allocation2 + $0x48] sm:$0xf] }
  0xee   : > { %v2775_v55 = vsel %vm4847_vm9, %v2767_v6, %v2774_v29  ;;  %4321 = vmatprep.mubr.msk.bf16.mxu1 %vm986_vm7, %v4010_v56  ;;  %v3164_v16 = vrot.slane %v3162_v22, 4  ;;  %v3170_v13 = vrot.slane %v3168_v24, 5  ;;  %v3176_v21 = vshll.u32 %v3127_v8, 16  ;;  %v3134_v6 = vld [vmem:[#allocation2 + $0x58] sm:$0xf] }
  0xef   : > { %v4000_v23 = vcombine.low %v2766_v26, %v2775_v55  ;;  %v3155_v1 = vor.u32 %v3154_v0, %v3151_v17  ;;  %v3175_v45 = vrot.slane %v3173_v11, 4  ;;  %v3182_v38 = vshll.u32 %v3128_v35, 16  ;;  %v3135_v26 = vld [vmem:[#allocation2 + $0x5c] sm:$0x1] }
  0xf0   : > { %v3165_v58 = vor.u32 %v3164_v16, %v3160_v39  ;;  %v3178_v27 = vrot.slane %v3176_v21, 5  ;;  %v3186_v4 = vshrl.u32 %v3128_v35, 16  ;;  %v3192_v25 = vshll.u32 %v3129_v61, 16 }
  0xf1   : > { %4316 = vmatmul.mubr.msk.bf16.gmra.mxu0 %vm986_vm7, %v4000_v23  ;;  %v3156_v46 = vrot.slane %v3155_v1, 4  ;;  %v3184_v53 = vrot.slane %v3182_v38, 5  ;;  %v4012_v33 = vcombine.low %v5161_v10, %v5163_v50  ;;  %v3197_v60 = vshrl.u32 %v3130_v3, 16  ;;  %v3138_v38 = vld [vmem:[#allocation2 + $0x6c] sm:$0x1] }
  0xf2   : > { %v3166_v52 = vrot.slane %v3165_v58, 4  ;;  %v3179_v36 = vor.u32 %v3178_v27, %v3175_v45  ;;  %v3188_v54 = vrot.slane %v3186_v4, 4  ;;  %v3194_v63 = vrot.slane %v3192_v25, 5 }
  0xf3   : > { %v3161_v30 = vsel %vm4875_vm12, %v3156_v46, %v3160_v39  ;;  %v3199_v47 = vrot.slane %v3197_v60, 4  ;;  %v3200_v14 = vshll.u32 %v3130_v3, 16  ;;  %v3206_v40 = vshll.u32 %v3131_v44, 16  ;;  %v3137_v3 = vld [vmem:[#allocation2 + $0x68] sm:$0xf] }
  0xf4   : > { %v3171_v37 = vsel %vm4875_vm12, %v3166_v52, %v3170_v13  ;;  %v3180_v41 = vrot.slane %v3179_v36, 4  ;;  %v3189_v56 = vor.u32 %v3188_v54, %v3184_v53  ;;  %v3210_v48 = vshrl.u32 %v3131_v44, 16  ;;  %v3139_v46 = vld [vmem:[#allocation2 + $0x74] sm:$0xf] }
  0xf5   : > { %v4027_v10 = vcombine.low %v3161_v30, %v3171_v37  ;;  %4322 = vmatmul.mubr.msk.bf16.vlgmr.msra.gmra.mxu1 %vm986_vm7, %v4011_v32  ;;  %v3202_v50 = vrot.slane %v3200_v14, 5  ;;  %v3208_v9 = vrot.slane %v3206_v40, 5  ;;  %v3216_v57 = vshll.u32 %v3132_v19, 16  ;;  %v3136_v32 = vld [vmem:[#allocation2 + $0x64] sm:$0xf] }
  0xf6   : > { %v3185_v7 = vsel %vm4875_vm12, %v3180_v41, %v3184_v53  ;;  %v3190_v8 = vrot.slane %v3189_v56, 4  ;;  %4325 = vmatprep.mubr.msk.bf16.mxu1 %vm986_vm7, %v4012_v33  ;;  %v3212_v12 = vrot.slane %v3210_v48, 4  ;;  %v4013_v17 = vcombine.low %v5175_v42, %v5179_v31  ;;  %v3141_v14 = vld [vmem:[#allocation2 + $0x7c] sm:$0x1] }
  0xf7   : > { %4339 = vmatprep.mubr.msk.bf16.mxu0 %vm986_vm7, %v4027_v10  ;;  %v3203_v20 = vor.u32 %v3202_v50, %v3199_v47  ;;  %v3218_v18 = vrot.slane %v3216_v57, 5  ;;  %v3221_v29 = vshrl.u32 %v3133_v43, 16  ;;  %v3224_v22 = vshll.u32 %v3133_v43, 16  ;;  %v3142_v43 = vld [vmem:[#allocation2 + $0x84] sm:$0xf] }
  0xf8   : > { %v3195_v24 = vsel %vm4875_vm12, %v3190_v8, %v3194_v63  ;;  %v3213_v35 = vor.u32 %v3212_v12, %v3208_v9  ;;  %v3230_v0 = vshll.u32 %v3134_v6, 16  ;;  %v3234_v39 = vshrl.u32 %v3134_v6, 16  ;;  %v3140_v63 = vld [vmem:[#allocation2 + $0x78] sm:$0xf] }
  0xf9   : > { %v4028_v61 = vcombine.low %v3185_v7, %v3195_v24  ;;  %v3204_v11 = vrot.slane %v3203_v20, 4  ;;  %v3223_v55 = vrot.slane %v3221_v29, 4  ;;  %v3226_v16 = vrot.slane %v3224_v22, 5 }
  0xfa   : > { %v3214_v13 = vrot.slane %v3213_v35, 4  ;;  %v3232_v42 = vrot.slane %v3230_v0, 5  ;;  %v3236_v31 = vrot.slane %v3234_v39, 4  ;;  %v3240_v21 = vshll.u32 %v3135_v26, 16 }
  0xfb   : > { %4340 = vmatmul.mubr.msk.bf16.vlgmr.msra.gmra.mxu0 %vm986_vm7, %v4028_v61  ;;  %v3209_v23 = vsel %vm4875_vm12, %v3204_v11, %v3208_v9  ;;  %v3227_v1 = vor.u32 %v3226_v16, %v3223_v55  ;;  %v4014_v45 = vcombine.low %v5195_v34, %v5197_v28  ;;  %v3245_v58 = vshrl.u32 %v3136_v32, 16  ;;  %v3145_v16 = vld [vmem:[#allocation2 + $0x94] sm:$0xf] }
  0xfc   : > { %v3219_v27 = vsel %vm4875_vm12, %v3214_v13, %v3218_v18  ;;  %v3237_v4 = vor.u32 %v3236_v31, %v3232_v42  ;;  %v3242_v25 = vrot.slane %v3240_v21, 5  ;;  %v3248_v44 = vshll.u32 %v3136_v32, 16  ;;  %v3144_v18 = vld [vmem:[#allocation2 + $0x8c] sm:$0x1] }
  0xfd   : > { %v4029_v53 = vcombine.low %v3209_v23, %v3219_v27  ;;  %4326 = vmatmul.mubr.msk.bf16.gmra.mxu1 %vm986_vm7, %v4013_v17  ;;  %v3228_v33 = vrot.slane %v3227_v1, 4  ;;  %v3247_v60 = vrot.slane %v3245_v58, 4  ;;  %v3254_v52 = vshll.u32 %v3137_v3, 16  ;;  %v3143_v17 = vld [vmem:[#allocation2 + $0x88] sm:$0xf] }
  0xfe   : > { %v3238_v36 = vrot.slane %v3237_v4, 4  ;;  %4329 = vmatprep.mubr.msk.bf16.mxu1 %vm986_vm7, %v4014_v45  ;;  %v3250_v54 = vrot.slane %v3248_v44, 5  ;;  %v3258_v34 = vshrl.u32 %v3137_v3, 16  ;;  %v3264_v28 = vshll.u32 %v3138_v38, 16  ;;  %v3146_v3 = vld [vmem:[#allocation2 + $0x98] sm:$0xf] }
  0xff   : > { %4343 = vmatprep.mubr.msk.bf16.mxu0 %vm986_vm7, %v4029_v53  ;;  %v3233_v19 = vsel %vm4875_vm12, %v3228_v33, %v3232_v42  ;;  %v3256_v30 = vrot.slane %v3254_v52, 5  ;;  %v4015_v47 = vcombine.low %v5213_v51, %v5217_v15  ;;  %v3269_v40 = vshrl.u32 %v3139_v46, 16  ;;  %v3147_v4 = vld [vmem:[#allocation2 + $0x9c] sm:$0x1] }
 0x100   : > { %v3243_v37 = vsel %vm4875_vm12, %v3238_v36, %v3242_v25  ;;  %v3251_v41 = vor.u32 %v3250_v54, %v3247_v60  ;;  %v3260_v56 = vrot.slane %v3258_v34, 4  ;;  %v3266_v48 = vrot.slane %v3264_v28, 5 }
 0x101   : > { %v4030_v10 = vcombine.low %v3233_v19, %v3243_v37  ;;  %v3271_v50 = vrot.slane %v3269_v40, 4  ;;  %v3272_v9 = vshll.u32 %v3139_v46, 16  ;;  %v3278_v57 = vshll.u32 %v3140_v63, 16 }
 0x102   : > { %v3252_v6 = vrot.slane %v3251_v41, 4  ;;  %v3261_v7 = vor.u32 %v3260_v56, %v3256_v30  ;;  %v3282_v8 = vshrl.u32 %v3140_v63, 16  ;;  %v3288_v12 = vshll.u32 %v3141_v14, 16 }
 0x103   : > { %4344 = vmatmul.mubr.msk.bf16.gmra.mxu0 %vm986_vm7, %v4030_v10  ;;  %v3274_v51 = vrot.slane %v3272_v9, 5  ;;  %v3280_v15 = vrot.slane %v3278_v57, 5  ;;  %v4016_v20 = vcombine.low %v5231_v2, %v5235_v5  ;;  %v3293_v26 = vshrl.u32 %v3142_v43, 16 }
 0x104   : > { %v3257_v29 = vsel %vm4875_vm12, %v3252_v6, %v3256_v30  ;;  %v3262_v22 = vrot.slane %v3261_v7, 4  ;;  %v3284_v24 = vrot.slane %v3282_v8, 4  ;;  %v3290_v35 = vrot.slane %v3288_v12, 5 }
 0x105   : > { %4330 = vmatmul.mubr.msk.bf16.gmra.mxu1 %vm986_vm7, %v4015_v47  ;;  %v3275_v0 = vor.u32 %v3274_v51, %v3271_v50  ;;  %v3295_v39 = vrot.slane %v3293_v26, 4  ;;  %v3296_v32 = vshll.u32 %v3142_v43, 16  ;;  %v3302_v61 = vshll.u32 %v3143_v17, 16 }
 0x106   : > { %v3267_v11 = vsel %vm4875_vm12, %v3262_v22, %v3266_v48  ;;  %v3285_v55 = vor.u32 %v3284_v24, %v3280_v15  ;;  %4333 = vmatprep.mubr.msk.bf16.mxu1 %vm986_vm7, %v4016_v20  ;;  %v3306_v2 = vshrl.u32 %v3143_v17, 16  ;;  %v3312_v5 = vshll.u32 %v3144_v18, 16 }
 0x107   : > { %v4031_v13 = vcombine.low %v3257_v29, %v3267_v11  ;;  %v3276_v42 = vrot.slane %v3275_v0, 4  ;;  %v3298_v31 = vrot.slane %v3296_v32, 5  ;;  %v3304_v21 = vrot.slane %v3302_v61, 5 }
 0x108   : > { %v3286_v23 = vrot.slane %v3285_v55, 4  ;;  %v3308_v1 = vrot.slane %v3306_v2, 4  ;;  %v3314_v45 = vrot.slane %v3312_v5, 5  ;;  %v4017_v38 = vcombine.low %v5247_v62, %v5253_v59 }
 0x109   : > { %4347 = vmatprep.mubr.msk.bf16.mxu0 %vm986_vm7, %v4031_v13  ;;  %v3281_v58 = vsel %vm4875_vm12, %v3276_v42, %v3280_v15  ;;  %v3299_v27 = vor.u32 %v3298_v31, %v3295_v39  ;;  %v3317_v25 = vshrl.u32 %v3145_v16, 16  ;;  %v3320_v44 = vshll.u32 %v3145_v16, 16 }
 0x10a   : > { %v3291_v46 = vsel %vm4875_vm12, %v3286_v23, %v3290_v35  ;;  %v3309_v53 = vor.u32 %v3308_v1, %v3304_v21  ;;  %v3326_v33 = vshll.u32 %v3146_v3, 16  ;;  %v3330_v60 = vshrl.u32 %v3146_v3, 16 }
 0x10b   : > { %v4032_v52 = vcombine.low %v3281_v58, %v3291_v46  ;;  %v3300_v36 = vrot.slane %v3299_v27, 4  ;;  %v3319_v54 = vrot.slane %v3317_v25, 4  ;;  %v3322_v34 = vrot.slane %v3320_v44, 5 }
 0x10c   : > { %v3310_v62 = vrot.slane %v3309_v53, 4  ;;  %v3328_v59 = vrot.slane %v3326_v33, 5  ;;  %v3332_v28 = vrot.slane %v3330_v60, 4  ;;  %v3336_v63 = vshll.u32 %v3147_v4, 16 }
 0x10d   : > { %4348 = vmatmul.mubr.msk.bf16.gmra.mxu0 %vm986_vm7, %v4032_v52  ;;  %v3305_v19 = vsel %vm4875_vm12, %v3300_v36, %v3304_v21  ;;  %4334 = vmatmul.mubr.msk.bf16.gmra.mxu1 %vm986_vm7, %v4017_v38  ;;  %v3323_v30 = vor.u32 %v3322_v34, %v3319_v54  ;;  %vm3615_vm14 = vcmask 25600  }
 0x10e   : > { %v3315_v47 = vsel %vm4875_vm12, %v3310_v62, %v3314_v45  ;;  %v3333_v14 = vor.u32 %v3332_v28, %v3328_v59  ;;  %v3338_v40 = vrot.slane %v3336_v63, 5 }
 0x10f   : > { %v4033_v37 = vcombine.low %v3305_v19, %v3315_v47  ;;  %v3324_v41 = vrot.slane %v3323_v30, 4 }
 0x110   : > { %v3334_v56 = vrot.slane %v3333_v14, 4 }
 0x111   : > { %4351 = vmatprep.mubr.msk.bf16.mxu0 %vm986_vm7, %v4033_v37  ;;  %v3329_v48 = vsel %vm4875_vm12, %v3324_v41, %v3328_v59 }
 0x112   : > { %v3339_v43 = vsel %vm4875_vm12, %v3334_v56, %v3338_v40 }
 0x113   : > { %v4034_v10 = vcombine.low %v3329_v48, %v3339_v43 }
 0x115   : > { %4352 = vmatmul.mubr.msk.bf16.gmra.mxu0 %vm986_vm7, %v4034_v10  ;;  %v4197_v50 = vpop.f32.mrf.mxu0 }
 0x117   : > { %v4205_v9 = vpop.f32.mrf.mxu1  ;;  %v1049_v57 = vpop.f32.mrf.mxu0 }
 0x119   : > { %v1081_v6 = vpop.f32.mrf.mxu1  ;;  %v4198_v7 = vpop.f32.mrf.mxu0 }
 0x11b   : > { %v4206_v8 = vpop.f32.mrf.mxu1  ;;  %v1052_v12 = vpop.f32.mrf.mxu0 }
 0x11d   : > { %v1084_v17 = vpop.f32.mrf.mxu1  ;;  %v4201_v51 = vpop.f32.mrf.mxu0 }
 0x11f   : > { %v4209_v15 = vpop.f32.mrf.mxu1  ;;  %v1065_v18 = vpop.f32.mrf.mxu0 }
 0x121   : > { %v1097_v20 = vpop.f32.mrf.mxu1  ;;  %v4202_v22 = vpop.f32.mrf.mxu0 }
 0x123   : > { %v4210_v26 = vpop.f32.mrf.mxu1  ;;  %v1068_v39 = vpop.f32.mrf.mxu0 }
 0x125   : > { %v1100_v29 = vpop.f32.mrf.mxu1 }
 0x127   : > { %v4215_v49 = vpop.f32.mrf.mxu1 }
 0x128   : > { %v1206_v24 = vadd.f32 %v4215_v49, %v4197_v50 }
 0x129   : > { %v1197_v35 = vpop.f32.mrf.mxu1 }
 0x12a   : > { %v1198_v0 = vadd.f32 %v1197_v35, %v1049_v57 }
 0x12b   : > { %v4216_v32 = vpop.f32.mrf.mxu1 }
 0x12c   : > { %v1209_v61 = vadd.f32 %v4216_v32, %v4198_v7 }
 0x12d   : > { %v1200_v11 = vpop.f32.mrf.mxu1 }
 0x12e   : > { %v1201_v55 = vadd.f32 %v1200_v11, %v1052_v12 }
 0x12f   : > { %v4233_v2 = vpop.f32.mrf.mxu0 }
 0x130   : > { %v5337_v5 = vadd.f32 %v4233_v2, %v1206_v24 }
 0x131   : > { %v1566_v16 = vpop.f32.mrf.mxu0 }
 0x132   : > { %v5339_v13 = vadd.f32 %v1566_v16, %v1198_v0 }
 0x133   : > { %v4234_v42 = vpop.f32.mrf.mxu0 }
 0x134   : > { %v5341_v31 = vadd.f32 %v4234_v42, %v1209_v61 }
 0x135   : > { %v1569_v21 = vpop.f32.mrf.mxu0  ;;  %v4219_v3 = vpop.f32.mrf.mxu1 }
 0x136   : > { %v5343_v23 = vadd.f32 %v1569_v21, %v1201_v55  ;;  %v1222_v1 = vadd.f32 %v4219_v3, %v4201_v51 }
 0x137   : > { %v1213_v45 = vpop.f32.mrf.mxu1 }
 0x138   : > { %v1214_v38 = vadd.f32 %v1213_v45, %v1065_v18 }
 0x139   : > { %v4220_v58 = vpop.f32.mrf.mxu1 }
 0x13a   : > { %v1225_v27 = vadd.f32 %v4220_v58, %v4202_v22 }
 0x13b   : > { %v1216_v4 = vpop.f32.mrf.mxu1 }
 0x13c   : > { %v1217_v25 = vadd.f32 %v1216_v4, %v1068_v39 }
 0x13d   : > { %v4237_v44 = vpop.f32.mrf.mxu0 }
 0x13e   : > { %v5345_v46 = vadd.f32 %v4237_v44, %v1222_v1 }
 0x13f   : > { %v1582_v53 = vpop.f32.mrf.mxu0 }
 0x140   : > { %v5347_v33 = vadd.f32 %v1582_v53, %v1214_v38 }
 0x141   : > { %v4238_v60 = vpop.f32.mrf.mxu0  ;;  %v4223_v52 = vpop.f32.mrf.mxu1 }
 0x142   : > { %v5349_v36 = vadd.f32 %v4238_v60, %v1225_v27  ;;  %v1238_v54 = vadd.f32 %v4223_v52, %v4205_v9 }
 0x143   : > { %v1585_v34 = vpop.f32.mrf.mxu0  ;;  %v1229_v62 = vpop.f32.mrf.mxu1 }
 0x144   : > { %v5351_v59 = vadd.f32 %v1585_v34, %v1217_v25  ;;  %v1230_v28 = vadd.f32 %v1229_v62, %v1081_v6 }
 0x145   : > { %v4224_v63 = vpop.f32.mrf.mxu1 }
 0x146   : > { %v1241_v19 = vadd.f32 %v4224_v63, %v4206_v8 }
 0x147   : > { %v1232_v30 = vpop.f32.mrf.mxu1 }
 0x148   : > { %v4241_v47 = vpop.f32.mrf.mxu0  ;;  %v1233_v14 = vadd.f32 %v1232_v30, %v1084_v17 }
 0x149   : > { %v5353_v40 = vadd.f32 %v4241_v47, %v1238_v54 }
 0x14a   : > { %v1598_v37 = vpop.f32.mrf.mxu0 }
 0x14b   : > { %v5355_v41 = vadd.f32 %v1598_v37, %v1230_v28 }
 0x14c   : > { %v4242_v56 = vpop.f32.mrf.mxu0 }
 0x14d   : > { %v5357_v48 = vadd.f32 %v4242_v56, %v1241_v19  ;;  %v4227_v43 = vpop.f32.mrf.mxu1 }
 0x14e   : > { %v1601_v10 = vpop.f32.mrf.mxu0  ;;  %v1254_v50 = vadd.f32 %v4227_v43, %v4209_v15 }
 0x14f   : > { %v5359_v9 = vadd.f32 %v1601_v10, %v1233_v14  ;;  %v1245_v57 = vpop.f32.mrf.mxu1 }
 0x150   : > { %v1246_v6 = vadd.f32 %v1245_v57, %v1097_v20 }
 0x151   : > { %v4228_v7 = vpop.f32.mrf.mxu1 }
 0x152   : > { %v1257_v8 = vadd.f32 %v4228_v7, %v4210_v26 }
 0x153   : > { %v1248_v12 = vpop.f32.mrf.mxu1 }
 0x154   : > { %v1249_v51 = vadd.f32 %v1248_v12, %v1100_v29 }
 0x155   : > { %v4245_v17 = vpop.f32.mrf.mxu0 }
 0x156   : > { %v5361_v18 = vadd.f32 %v4245_v17, %v1254_v50 }
 0x157   : > { %v1614_v22 = vpop.f32.mrf.mxu0 }
 0x158   : > { %v5363_v49 = vadd.f32 %v1614_v22, %v1246_v6 }
 0x159   : > { %v4246_v24 = vpop.f32.mrf.mxu0 }
 0x15a   : > { %5664 = vst [vmem:[#allocation3_spill] sm:$0xff] %v5363_v49  ;;  %v5365_v35 = vadd.f32 %v4246_v24, %v1257_v8 }
 0x15b   : > { %v1617_v0 = vpop.f32.mrf.mxu0  ;;  %v4251_v39 = vpop.f32.mrf.mxu1 }
 0x15c   : > { %5665 = vst [vmem:[#allocation4_spill] sm:$0xff] %v5365_v35  ;;  %v5367_v15 = vadd.f32 %v1617_v0, %v1249_v51 }
 0x15d   : > { %v4269_v32 = vpop.f32.mrf.mxu0  ;;  %v1932_v61 = vpop.f32.mrf.mxu1 }
 0x15e   : > { %5666 = vst [vmem:[#allocation5_spill] sm:$0xff] %v5367_v15 }
 0x15f   : > { %v2114_v20 = vpop.f32.mrf.mxu0  ;;  %v4252_v11 = vpop.f32.mrf.mxu1 }
 0x161   : > { %v5369_v26 = vpop.f32.mrf.mxu0  ;;  %v1935_v29 = vpop.f32.mrf.mxu1 }
 0x163   : > { %v5371_v55 = vpop.f32.mrf.mxu0  ;;  %v4255_v2 = vpop.f32.mrf.mxu1 }
 0x165   : > { %v5373_v16 = vpop.f32.mrf.mxu0  ;;  %v5375_v42 = vpop.f32.mrf.mxu1 }
 0x167   : > { %v5377_v21 = vpop.f32.mrf.mxu0  ;;  %v5379_v3 = vpop.f32.mrf.mxu1 }
 0x169   : > { %v5381_v1 = vpop.f32.mrf.mxu0  ;;  %v5383_v45 = vpop.f32.mrf.mxu1 }
 0x16b   : > { %v5385_v38 = vpop.f32.mrf.mxu0  ;;  %v5387_v58 = vpop.f32.mrf.mxu1 }
 0x16d   : > { %v5389_v27 = vpop.f32.mrf.mxu0  ;;  %v5391_v4 = vpop.f32.mrf.mxu1 }
 0x16f   : > { %v5393_v25 = vpop.f32.mrf.mxu0  ;;  %v5395_v44 = vpop.f32.mrf.mxu1 }
 0x171   : > { %v5397_v53 = vpop.f32.mrf.mxu0  ;;  %v5399_v60 = vpop.f32.mrf.mxu1 }
 0x172   : > { %5667 = vst [vmem:[#allocation6_spill] sm:$0xff] %v5397_v53 }
 0x173   : > { %v5401_v52 = vpop.f32.mrf.mxu0  ;;  %v5403_v54 = vpop.f32.mrf.mxu1 }
 0x174   : > { %5668 = vst [vmem:[#allocation7_spill] sm:$0xff] %v5401_v52  ;;  %5669 = vst [vmem:[#allocation8_spill] sm:$0xff] %v5403_v54  ;;  %v1995_v52 = vadd.f32 %v1932_v61, %v5339_v13  ;;  %v2001_v13 = vadd.f32 %v4255_v2, %v5345_v46 }
 0x175   : > { %v5405_v34 = vpop.f32.mrf.mxu0  ;;  %v5407_v62 = vpop.f32.mrf.mxu1 }
 0x176   : > { %5670 = vst [vmem:[#allocation9_spill] sm:$0xff] %v5405_v34  ;;  %5671 = vst [vmem:[#allocation10_spill] sm:$0xff] %v5407_v62  ;;  %v1997_v34 = vadd.f32 %v4251_v39, %v5337_v5 }
 0x177   : > { %v5409_v28 = vpop.f32.mrf.mxu0  ;;  %v5411_v63 = vpop.f32.mrf.mxu1 }
 0x178   : > { %5672 = vst [vmem:[#allocation11_spill] sm:$0xff] %v5409_v28  ;;  %5673 = vst [vmem:[#allocation12_spill] sm:$0xff] %v5411_v63 }
 0x179   : > { %v5413_v19 = vpop.f32.mrf.mxu0  ;;  %v5415_v30 = vpop.f32.mrf.mxu1 }
 0x17a   : > { %5674 = vst [vmem:[#allocation13_spill] sm:$0xff] %v5413_v19  ;;  %5675 = vst [vmem:[#allocation14_spill] sm:$0xff] %v5415_v30 }
 0x17b   : > { %v5417_v47 = vpop.f32.mrf.mxu0 }
 0x17c   : > { %5676 = vst [vmem:[#allocation15_spill] sm:$0xff] %v5417_v47 }
 0x180   : > { %v4305_v37 = vpop.f32.mrf.mxu0 }
 0x181   : > { %v4287_v14 = vpop.f32.mrf.mxu1 }
 0x182   : > { %v2863_v43 = vpop.f32.mrf.mxu0 }
 0x183   : > { %v2496_v56 = vpop.f32.mrf.mxu1 }
 0x184   : > { %v4306_v50 = vpop.f32.mrf.mxu0 }
 0x185   : > { %v4288_v10 = vpop.f32.mrf.mxu1 }
 0x186   : > { %v2866_v6 = vpop.f32.mrf.mxu0 }
 0x187   : > { %v2499_v57 = vpop.f32.mrf.mxu1 }
 0x18e   : > { %v4291_v7 = vpop.f32.mrf.mxu1 }
 0x190   : > { %v2512_v12 = vpop.f32.mrf.mxu1 }
 0x191   : > { %v4309_v8 = vpop.f32.mrf.mxu0 }
 0x192   : > { %v4292_v17 = vpop.f32.mrf.mxu1 }
 0x193   : > { %v5419_v51 = vpop.f32.mrf.mxu0 }
 0x194   : > { %v2515_v24 = vpop.f32.mrf.mxu1 }
 0x195   : > { %v5421_v22 = vpop.f32.mrf.mxu0 }
 0x197   : > { %v5423_v0 = vpop.f32.mrf.mxu0 }
 0x1a0   : > { %v5425_v47 = vpop.f32.mrf.mxu1 }
 0x1a1   : > { %v5427_v19 = vpop.f32.mrf.mxu0 }
 0x1a2   : > { %5677 = vst [vmem:[#allocation16_spill] sm:$0xff] %v5427_v19  ;;  %v5429_v30 = vpop.f32.mrf.mxu1  ;;  %v2179_v19 = vadd.f32 %v4269_v32, %v1997_v34 }
 0x1a3   : > { %5678 = vst [vmem:[#allocation17_spill] sm:$0xff] %v5429_v30  ;;  %v5431_v15 = vpop.f32.mrf.mxu0  ;;  %v1998_v30 = vadd.f32 %v4252_v11, %v5341_v31 }
 0x1a4   : > { %5679 = vst [vmem:[#allocation18_spill] sm:$0xff] %v5431_v15  ;;  %v5433_v28 = vpop.f32.mrf.mxu1  ;;  %v2561_v54 = vadd.f32 %v4287_v14, %v2179_v19 }
 0x1a5   : > { %5680 = vst [vmem:[#allocation19_spill] sm:$0xff] %v5433_v28  ;;  %v5435_v63 = vpop.f32.mrf.mxu0 }
 0x1a6   : > { %5681 = vst [vmem:[#allocation20_spill] sm:$0xff] %v5435_v63  ;;  %v5437_v35 = vpop.f32.mrf.mxu1  ;;  %v2177_v63 = vadd.f32 %v2114_v20, %v1995_v52  ;;  %v1999_v20 = vadd.f32 %v5375_v42, %v5347_v33  ;;  %v2928_v52 = vadd.f32 %v4305_v37, %v2561_v54 }
 0x1a7   : > { %5682 = vst [vmem:[#allocation21_spill] sm:$0xff] %v5437_v35  ;;  %v5440_v62 = vpop.f32.mrf.mxu0  ;;  %v1996_v35 = vadd.f32 %v1935_v29, %v5343_v23  ;;  %v2002_v29 = vadd.f32 %v5379_v3, %v5349_v36 }
 0x1a8   : > { %5683 = vst [vmem:[#allocation22_spill] sm:$0xff] %v5440_v62  ;;  %v2180_v62 = vadd.f32 %v5369_v26, %v1998_v30  ;;  %v2559_v61 = vadd.f32 %v2496_v56, %v2177_v63  ;;  %v2183_v26 = vadd.f32 %v5373_v16, %v2001_v13  ;;  %v2000_v30 = vadd.f32 %v5383_v45, %v5351_v59 }
 0x1a9   : > { %v2178_v11 = vadd.f32 %v5371_v55, %v1996_v35  ;;  %v2181_v55 = vadd.f32 %v5377_v21, %v1999_v20  ;;  %v2184_v36 = vadd.f32 %v5381_v1, %v2002_v29  ;;  %v2005_v59 = vadd.f32 %v5387_v58, %v5353_v40 }
 0x1aa   : > { %v2562_v23 = vadd.f32 %v4288_v10, %v2180_v62  ;;  %v2926_v46 = vadd.f32 %v2863_v43, %v2559_v61  ;;  %v2565_v42 = vadd.f32 %v4291_v7, %v2183_v26  ;;  %v2182_v43 = vadd.f32 %v5385_v38, %v2000_v30 }
 0x1ab   : > { %v2560_v2 = vadd.f32 %v2499_v57, %v2178_v11  ;;  %v2563_v37 = vadd.f32 %v2512_v12, %v2181_v55  ;;  %v2004_v11 = vadd.f32 %v5399_v60, %v5359_v9  ;;  %v5684_v9 = vld [vmem:[#allocation8_spill] sm:$0xff]  ;;  %v5687_v55 = vld [vmem:[#allocation7_spill] sm:$0xff] }
 0x1ac   : > { %v2929_v33 = vadd.f32 %v4306_v50, %v2562_v23  ;;  %v2932_v10 = vadd.f32 %v4309_v8, %v2565_v42  ;;  %v2566_v50 = vadd.f32 %v4292_v17, %v2184_v36  ;;  %v2564_v7 = vadd.f32 %v2515_v24, %v2182_v43  ;;  %v5689_v42 = vld [vmem:[#allocation10_spill] sm:$0xff] }
 0x1ad   : > { %v5442_v49 = vpop.f32.mrf.mxu1  ;;  %v2927_v14 = vadd.f32 %v2866_v6, %v2560_v2  ;;  %v2003_v6 = vadd.f32 %v5391_v4, %v5355_v41  ;;  %v2930_v13 = vadd.f32 %v5419_v51, %v2563_v37  ;;  %v2187_v8 = vadd.f32 %v5389_v27, %v2005_v59 }
 0x1ae   : > { %v2933_v41 = vadd.f32 %v5421_v22, %v2566_v50  ;;  %v2931_v27 = vadd.f32 %v5423_v0, %v2564_v7  ;;  %v2009_v60 = vadd.f32 %v5684_v9, %v5361_v18  ;;  %v5685_v0 = vld [vmem:[#allocation17_spill] sm:$0xff]  ;;  %v5688_v18 = vld [vmem:[#allocation3_spill] sm:$0xff]  ;;  %v5693_v50 = vld [vmem:[#allocation4_spill] sm:$0xff] }
 0x1af   : > { %v5445_v53 = vpop.f32.mrf.mxu1  ;;  %v2185_v24 = vadd.f32 %v5393_v25, %v2003_v6  ;;  %v2569_v20 = vadd.f32 %v5425_v47, %v2187_v8  ;;  %v5695_v7 = vld [vmem:[#allocation18_spill] sm:$0xff]  ;;  %v5696_v8 = vld [vmem:[#allocation21_spill] sm:$0xff] }
 0x1b1   : > { %v5448_v15 = vpop.f32.mrf.mxu0  ;;  %v5450_v28 = vpop.f32.mrf.mxu1  ;;  %v2567_v29 = vadd.f32 %v5685_v0, %v2185_v24  ;;  %v5701_v0 = vld [vmem:[#allocation13_spill] sm:$0xff] }
 0x1b3   : > { %v5453_v5 = vpop.f32.mrf.mxu0  ;;  %v5455_v39 = vpop.f32.mrf.mxu1 }
 0x1b5   : > { %v5459_v32 = vpop.f32.mrf.mxu0  ;;  %v4323_v31 = vpop.f32.mrf.mxu1 }
 0x1b6   : > { %v3110_v63 = vadd.f32 %v4323_v31, %v2928_v52  ;;  %v2006_v31 = vadd.f32 %v5395_v44, %v5357_v48 }
 0x1b7   : > { %v5466_v34 = vpop.f32.mrf.mxu0  ;;  %v3045_v19 = vpop.f32.mrf.mxu1 }
 0x1b8   : > { %v3108_v54 = vadd.f32 %v3045_v19, %v2926_v46  ;;  %v5686_v46 = vld [vmem:[#allocation6_spill] sm:$0xff] }
 0x1b9   : > { %v4324_v35 = vpop.f32.mrf.mxu1  ;;  %v2188_v2 = vadd.f32 %v5686_v46, %v2006_v31 }
 0x1ba   : > { %v3111_v56 = vadd.f32 %v4324_v35, %v2929_v33  ;;  %v2186_v33 = vadd.f32 %v5687_v55, %v2004_v11  ;;  %v5698_v11 = vld [vmem:[#allocation5_spill] sm:$0xff] }
 0x1bb   : > { %v4341_v3 = vpop.f32.mrf.mxu0  ;;  %v3048_v62 = vpop.f32.mrf.mxu1 }
 0x1bc   : > { %v5473_v16 = vadd.f32 %v4341_v3, %v3110_v63  ;;  %v3109_v57 = vadd.f32 %v3048_v62, %v2927_v14  ;;  %v5690_v14 = vld [vmem:[#allocation16_spill] sm:$0xff] }
 0x1bd   : > { %v3427_v21 = vpop.f32.mrf.mxu0  ;;  %v4327_v45 = vpop.f32.mrf.mxu1  ;;  %v2936_v37 = vadd.f32 %v5690_v14, %v2569_v20 }
 0x1be   : > { %3619 = vst.msk [vmem:[%s4594_s24 + $0x10] sm:$0xff] %vm986_vm7, %v5473_v16  ;;  %v5481_v1 = vadd.f32 %v3427_v21, %v3108_v54  ;;  %v3114_v58 = vadd.f32 %v4327_v45, %v2932_v10  ;;  %v3509_v63 = vsel %vm986_vm7, %v5473_v16, 0.0  ;;  %v2007_v54 = vadd.f32 %v5689_v42, %v5688_v18  ;;  %v5692_v45 = vld [vmem:[#allocation9_spill] sm:$0xff] }
 0x1bf   : > { %v4342_v12 = vpop.f32.mrf.mxu0  ;;  %v3061_v38 = vpop.f32.mrf.mxu1  ;;  %v2191_v10 = vadd.f32 %v5692_v45, %v2009_v60 }
 0x1c0   : > { %3617 = vst.msk [vmem:[%s4594_s24] sm:$0xff] %vm986_vm7, %v5481_v1  ;;  %v5489_v40 = vadd.f32 %v4342_v12, %v3111_v56  ;;  %v3112_v51 = vadd.f32 %v3061_v38, %v2930_v13  ;;  %v3506_v44 = vsel %vm986_vm7, %v5481_v1, 0.0  ;;  %v5691_v56 = vld [vmem:[#allocation19_spill] sm:$0xff]  ;;  %v2934_v12 = vadd.f32 %v5695_v7, %v2567_v29 }
 0x1c1   : > { %v3430_v17 = vpop.f32.mrf.mxu0  ;;  %v4328_v61 = vpop.f32.mrf.mxu1  ;;  %v2570_v43 = vadd.f32 %v5691_v56, %v2188_v2 }
 0x1c2   : > { %3620 = vst.msk [vmem:[%s4594_s24 + $0x18] sm:$0xff] %vm986_vm7, %v5489_v40  ;;  %v5498_v4 = vadd.f32 %v3430_v17, %v3109_v57  ;;  %v3115_v23 = vadd.f32 %v4328_v61, %v2933_v41  ;;  %v3511_v59 = vsel %vm986_vm7, %v5489_v40, 0.0  ;;  %v5694_v57 = vld [vmem:[#allocation12_spill] sm:$0xff]  ;;  %v2568_v17 = vadd.f32 %v5696_v8, %v2186_v33  ;;  %v5703_v33 = vld [vmem:[#allocation15_spill] sm:$0xff] }
 0x1c3   : > { %v4345_v52 = vpop.f32.mrf.mxu0  ;;  %v3064_v48 = vpop.f32.mrf.mxu1  ;;  %v2010_v6 = vadd.f32 %v5694_v57, %v5693_v50 }
 0x1c4   : > { %v3507_v22 = vsel %vm986_vm7, %v5498_v4, 0.0  ;;  %3618 = vst.msk [vmem:[%s4594_s24 + $0x8] sm:$0xff] %vm986_vm7, %v5498_v4  ;;  %v5512_v25 = vadd.f32 %v4345_v52, %v3114_v58  ;;  %v3113_v35 = vadd.f32 %v3064_v48, %v2931_v27  ;;  %v5699_v27 = vld [vmem:[#allocation14_spill] sm:$0xff]  ;;  %v2573_v52 = vadd.f32 %v5442_v49, %v2191_v10 }
 0x1c5   : > { %v3508_v47 = vadd.f32 %v3507_v22, %v3506_v44  ;;  %v3443_v19 = vpop.f32.mrf.mxu0  ;;  %v4331_v26 = vpop.f32.mrf.mxu1  ;;  %v2008_v20 = vadd.f32 %v5699_v27, %v5698_v11  ;;  %v5700_v22 = vld [vmem:[#allocation20_spill] sm:$0xff]  ;;  %v2192_v29 = vadd.f32 %v5701_v0, %v2010_v6  ;;  %v5702_v49 = vld [vmem:[#allocation22_spill] sm:$0xff] }
 0x1c6   : > { %3623 = vst.msk [vmem:[%s4594_s24 + $0x30] sm:$0xff] %vm986_vm7, %v5512_v25  ;;  %v5523_v30 = vadd.f32 %v3443_v19, %v3112_v51  ;;  %v3118_v41 = vadd.f32 %v4331_v26, %v2936_v37  ;;  %v5697_v51 = vld [vmem:[#allocation11_spill] sm:$0xff]  ;;  %v2935_v2 = vadd.f32 %v5702_v49, %v2568_v17  ;;  %v2940_v42 = vadd.f32 %v5448_v15, %v2573_v52 }
 0x1c7   : > { %v3510_v36 = vadd.f32 %v3509_v63, %v3508_v47  ;;  %v4346_v3 = vpop.f32.mrf.mxu0  ;;  %v3077_v62 = vpop.f32.mrf.mxu1  ;;  %v2189_v24 = vadd.f32 %v5697_v51, %v2007_v54  ;;  %v3517_v63 = vsel %vm986_vm7, %v5512_v25, 0.0  ;;  %v2190_v18 = vadd.f32 %v5703_v33, %v2008_v20 }
 0x1c8   : > { %3621 = vst.msk [vmem:[%s4594_s24 + $0x20] sm:$0xff] %vm986_vm7, %v5523_v30  ;;  %v5535_v21 = vadd.f32 %v4346_v3, %v3115_v23  ;;  %v3513_v61 = vsel %vm986_vm7, %v5523_v30, 0.0  ;;  %v2937_v23 = vadd.f32 %v5700_v22, %v2570_v43  ;;  %v3116_v60 = vadd.f32 %v3077_v62, %v2934_v12 }
 0x1c9   : > { %v3512_v38 = vadd.f32 %v3511_v59, %v3510_v36  ;;  %v3446_v13 = vpop.f32.mrf.mxu0  ;;  %v4332_v58 = vpop.f32.mrf.mxu1  ;;  %v2571_v47 = vadd.f32 %v5445_v53, %v2189_v24  ;;  %v2574_v53 = vadd.f32 %v5450_v28, %v2192_v29  ;;  %v2572_v45 = vadd.f32 %v5455_v39, %v2190_v18 }
 0x1ca   : > { %3624 = vst.msk [vmem:[%s4594_s24 + $0x38] sm:$0xff] %vm986_vm7, %v5535_v21  ;;  %v5547_v31 = vadd.f32 %v3446_v13, %v3113_v35  ;;  %v3119_v55 = vadd.f32 %v4332_v58, %v2937_v23  ;;  %v3519_v62 = vsel %vm986_vm7, %v5535_v21, 0.0 }
 0x1cb   : > { %v3514_v48 = vadd.f32 %v3513_v61, %v3512_v38  ;;  %v3080_v44 = vpop.f32.mrf.mxu1  ;;  %v2938_v56 = vadd.f32 %v5453_v5, %v2571_v47  ;;  %v2941_v7 = vadd.f32 %v5459_v32, %v2574_v53  ;;  %v2939_v13 = vadd.f32 %v5466_v34, %v2572_v45 }
 0x1cc   : > { %v3515_v9 = vsel %vm986_vm7, %v5547_v31, 0.0  ;;  %3622 = vst.msk [vmem:[%s4594_s24 + $0x28] sm:$0xff] %vm986_vm7, %v5547_v31  ;;  %v3117_v37 = vadd.f32 %v3080_v44, %v2935_v2 }
 0x1cd   : > { %v3516_v19 = vadd.f32 %v3515_v9, %v3514_v48  ;;  %v4349_v26 = vpop.f32.mrf.mxu0  ;;  %v4335_v46 = vpop.f32.mrf.mxu1 }
 0x1ce   : > { %v5564_v35 = vadd.f32 %v4349_v26, %v3118_v41  ;;  %v3122_v50 = vadd.f32 %v4335_v46, %v2940_v42 }
 0x1cf   : > { %v3518_v54 = vadd.f32 %v3517_v63, %v3516_v19  ;;  %v3459_v36 = vpop.f32.mrf.mxu0  ;;  %v3093_v3 = vpop.f32.mrf.mxu1 }
 0x1d0   : > { %3627 = vst.msk [vmem:[%s4594_s24 + $0x50] sm:$0xff] %vm986_vm7, %v5564_v35  ;;  %v5574_v14 = vadd.f32 %v3459_v36, %v3116_v60  ;;  %v3120_v12 = vadd.f32 %v3093_v3, %v2938_v56  ;;  %v3525_v32 = vsel %vm986_vm7, %v5564_v35, 0.0 }
 0x1d1   : > { %v3520_v43 = vadd.f32 %v3519_v62, %v3518_v54  ;;  %v4350_v59 = vpop.f32.mrf.mxu0  ;;  %v4336_v15 = vpop.f32.mrf.mxu1 }
 0x1d2   : > { %v3521_v28 = vsel %vm986_vm7, %v5574_v14, 0.0  ;;  %3625 = vst.msk [vmem:[%s4594_s24 + $0x40] sm:$0xff] %vm986_vm7, %v5574_v14  ;;  %v3501_v10 = vadd.f32 %v4350_v59, %v3119_v55  ;;  %v3123_v17 = vadd.f32 %v4336_v15, %v2941_v7 }
 0x1d3   : > { %v3522_v57 = vadd.f32 %v3521_v28, %v3520_v43  ;;  %v3462_v6 = vpop.f32.mrf.mxu0  ;;  %v3096_v39 = vpop.f32.mrf.mxu1 }
 0x1d4   : > { %3628 = vst.msk [vmem:[%s4594_s24 + $0x58] sm:$0xff] %vm986_vm7, %v3501_v10  ;;  %v3499_v5 = vadd.f32 %v3462_v6, %v3117_v37  ;;  %v3121_v24 = vadd.f32 %v3096_v39, %v2939_v13  ;;  %v3527_v34 = vsel %vm986_vm7, %v3501_v10, 0.0 }
 0x1d5   : > { %v4353_v38 = vpop.f32.mrf.mxu0 }
 0x1d6   : > { %v3523_v58 = vsel %vm986_vm7, %v3499_v5, 0.0  ;;  %3626 = vst.msk [vmem:[%s4594_s24 + $0x48] sm:$0xff] %vm986_vm7, %v3499_v5  ;;  %v3504_v8 = vadd.f32 %v4353_v38, %v3122_v50 }
 0x1d7   : > { %v3524_v61 = vadd.f32 %v3523_v58, %v3522_v57  ;;  %v3475_v41 = vpop.f32.mrf.mxu0 }
 0x1d8   : > { %3631 = vst.msk [vmem:[%s4594_s24 + $0x70] sm:$0xff] %vm986_vm7, %v3504_v8  ;;  %v3502_v51 = vadd.f32 %v3475_v41, %v3120_v12  ;;  %v3533_v0 = vsel %vm986_vm7, %v3504_v8, 0.0 }
 0x1d9   : > { %v3526_v11 = vadd.f32 %v3525_v32, %v3524_v61  ;;  %v4354_v27 = vpop.f32.mrf.mxu0 }
 0x1da   : > { %3629 = vst.msk [vmem:[%s4594_s24 + $0x60] sm:$0xff] %vm986_vm7, %v3502_v51  ;;  %v3505_v20 = vadd.f32 %v4354_v27, %v3123_v17  ;;  %v3529_v44 = vsel %vm986_vm7, %v3502_v51, 0.0 }
 0x1db   : > { %v3528_v52 = vadd.f32 %v3527_v34, %v3526_v11  ;;  %v3478_v48 = vpop.f32.mrf.mxu0 }
 0x1dc   : > { %3632 = vst.msk [vmem:[%s4594_s24 + $0x78] sm:$0xff] %vm986_vm7, %v3505_v20  ;;  %v3503_v22 = vadd.f32 %v3478_v48, %v3121_v24  ;;  %v3535_v47 = vsel %vm986_vm7, %v3505_v20, 0.0 }
 0x1dd   : > { %v3530_v23 = vadd.f32 %v3529_v44, %v3528_v52 }
 0x1de   : > { %v3531_v9 = vsel %vm986_vm7, %v3503_v22, 0.0  ;;  %3630 = vst.msk [vmem:[%s4594_s24 + $0x68] sm:$0xff] %vm986_vm7, %v3503_v22 }
 0x1df   : > { %v3532_v60 = vadd.f32 %v3531_v9, %v3530_v23 }
 0x1e1   : > { %v3534_v29 = vadd.f32 %v3533_v0, %v3532_v60 }
 0x1e3   : > { %v3536_v19 = vadd.f32 %v3535_v47, %v3534_v29 }
 0x1e5   : > { %v3537_v26 = vrot.slane %v3536_v19, 4 }
 0x1e7   : > { %v3538_v46 = vadd.f32 %v3537_v26, %v3536_v19 }
 0x1e9   : > { %v3539_v49 = vrot.slane %v3538_v46, 2 }
 0x1eb   : > { %v3540_v2 = vadd.f32 %v3539_v49, %v3538_v46 }
 0x1ed   : > { %v3541_v63 = vrot.slane %v3540_v2, 1 }
 0x1ef   : > { %v5605_v55 = vadd.f32 %v3541_v63, %v3540_v2 }
 0x1f1   : > { %v3543_v33 = vmul.f32 0.0078125, %v5605_v55 }
 0x1f3   : > { %v3544_v18 = vsub.f32 %v5481_v1, %v3543_v33  ;;  %v3545_v42 = vsub.f32 %v5498_v4, %v3543_v33  ;;  %v3546_v54 = vsub.f32 %v5473_v16, %v3543_v33  ;;  %v3547_v36 = vsub.f32 %v5489_v40, %v3543_v33 }
 0x1f4   : > { %v3548_v3 = vsub.f32 %v5523_v30, %v3543_v33  ;;  %v3549_v53 = vsub.f32 %v5547_v31, %v3543_v33  ;;  %v3550_v62 = vsub.f32 %v5512_v25, %v3543_v33  ;;  %v3551_v37 = vsub.f32 %v5535_v21, %v3543_v33 }
 0x1f5   : > { %v3552_v56 = vsub.f32 %v5574_v14, %v3543_v33  ;;  %v3553_v43 = vsub.f32 %v3499_v5, %v3543_v33  ;;  %v3554_v59 = vsub.f32 %v5564_v35, %v3543_v33  ;;  %v3555_v1 = vsub.f32 %v3501_v10, %v3543_v33 }
 0x1f6   : > { %v3556_v15 = vsub.f32 %v3502_v51, %v3543_v33  ;;  %v3557_v4 = vsub.f32 %v3503_v22, %v3543_v33  ;;  %v3558_v45 = vsub.f32 %v3504_v8, %v3543_v33  ;;  %v3559_v16 = vsub.f32 %v3505_v20, %v3543_v33 }
 0x1f7   : > { %v3560_v28 = vmul.f32 %v3544_v18, %v3544_v18  ;;  %v3561_v40 = vmul.f32 %v3545_v42, %v3545_v42  ;;  %v3562_v50 = vmul.f32 %v3546_v54, %v3546_v54  ;;  %v3563_v30 = vmul.f32 %v3547_v36, %v3547_v36 }
 0x1f8   : > { %v3564_v21 = vmul.f32 %v3548_v3, %v3548_v3  ;;  %v3565_v7 = vmul.f32 %v3549_v53, %v3549_v53  ;;  %v3566_v5 = vmul.f32 %v3550_v62, %v3550_v62  ;;  %v3567_v39 = vmul.f32 %v3551_v37, %v3551_v37 }
 0x1f9   : > { %v3576_v31 = vsel %vm986_vm7, %v3560_v28, 0.0  ;;  %v3577_v25 = vsel %vm986_vm7, %v3561_v40, 0.0  ;;  %v3579_v14 = vsel %vm986_vm7, %v3562_v50, 0.0  ;;  %v3581_v35 = vsel %vm986_vm7, %v3563_v30, 0.0 }
 0x1fa   : > { %v3578_v57 = vadd.f32 %v3577_v25, %v3576_v31  ;;  %v3583_v12 = vsel %vm986_vm7, %v3564_v21, 0.0  ;;  %v3585_v13 = vsel %vm986_vm7, %v3565_v7, 0.0  ;;  %v3568_v8 = vmul.f32 %v3552_v56, %v3552_v56 }
 0x1fb   : > { %v3587_v17 = vsel %vm986_vm7, %v3566_v5, 0.0  ;;  %v3569_v41 = vmul.f32 %v3553_v43, %v3553_v43  ;;  %v3589_v32 = vsel %vm986_vm7, %v3567_v39, 0.0  ;;  %v3570_v24 = vmul.f32 %v3554_v59, %v3554_v59 }
 0x1fc   : > { %v3580_v6 = vadd.f32 %v3579_v14, %v3578_v57  ;;  %v3591_v11 = vsel %vm986_vm7, %v3568_v8, 0.0  ;;  %v3571_v34 = vmul.f32 %v3555_v1, %v3555_v1  ;;  %v3572_v48 = vmul.f32 %v3556_v15, %v3556_v15 }
 0x1fd   : > { %v3593_v20 = vsel %vm986_vm7, %v3569_v41, 0.0  ;;  %v3595_v44 = vsel %vm986_vm7, %v3570_v24, 0.0  ;;  %v3573_v23 = vmul.f32 %v3557_v4, %v3557_v4  ;;  %v3574_v0 = vmul.f32 %v3558_v45, %v3558_v45 }
 0x1fe   : > { %v3582_v10 = vadd.f32 %v3581_v35, %v3580_v6  ;;  %v3597_v9 = vsel %vm986_vm7, %v3571_v34, 0.0  ;;  %v3599_v29 = vsel %vm986_vm7, %v3572_v48, 0.0  ;;  %v3575_v19 = vmul.f32 %v3559_v16, %v3559_v16 }
 0x1ff   : > { %v3601_v26 = vsel %vm986_vm7, %v3573_v23, 0.0  ;;  %v3603_v49 = vsel %vm986_vm7, %v3574_v0, 0.0 }
 0x200   : > { %v3584_v38 = vadd.f32 %v3583_v12, %v3582_v10  ;;  %v3605_v63 = vsel %vm986_vm7, %v3575_v19, 0.0 }
 0x202   : > { %v3586_v58 = vadd.f32 %v3585_v13, %v3584_v38 }
 0x204   : > { %v3588_v61 = vadd.f32 %v3587_v17, %v3586_v58 }
 0x206   : > { %v3590_v51 = vadd.f32 %v3589_v32, %v3588_v61 }
 0x208   : > { %v3592_v27 = vadd.f32 %v3591_v11, %v3590_v51 }
 0x20a   : > { %v3594_v52 = vadd.f32 %v3593_v20, %v3592_v27 }
 0x20c   : > { %v3596_v22 = vadd.f32 %v3595_v44, %v3594_v52 }
 0x20e   : > { %v3598_v60 = vadd.f32 %v3597_v9, %v3596_v22 }
 0x210   : > { %v3600_v47 = vadd.f32 %v3599_v29, %v3598_v60 }
 0x212   : > { %v3602_v46 = vadd.f32 %v3601_v26, %v3600_v47 }
 0x214   : > { %v3604_v2 = vadd.f32 %v3603_v49, %v3602_v46 }
 0x216   : > { %v3606_v33 = vadd.f32 %v3605_v63, %v3604_v2 }
 0x218   : > { %v3607_v18 = vrot.slane %v3606_v33, 4 }
 0x21a   : > { %v3608_v42 = vadd.f32 %v3607_v18, %v3606_v33 }
 0x21c   : > { %v3609_v54 = vrot.slane %v3608_v42, 2 }
 0x21e   : > { %v3610_v36 = vadd.f32 %v3609_v54, %v3608_v42 }
 0x220   : > { %v3611_v3 = vrot.slane %v3610_v36, 1 }
 0x222   : > { %v3612_v53 = vadd.f32 %v3611_v3, %v3610_v36 }
 0x224   : > { %v3614_v62 = vsel %vm3613_vm13, %v5605_v55, %v3612_v53 }
 0x225   : > { %3616 = vst.msk [vmem:[%s4630_s22] sm:$0x3] %vm3615_vm14, %v3614_v62 }
 0x226 PF: > { %s19_s9 = sadd.s32 1, %s4472_s9   ;;  %s5704_s27 = smov %s4464_s29 }
 0x227   : > { %p16_p10 = scmp.ge.s32.totalorder %s19_s9, 6   ;;  %s5705_s28 = smov %s4468_s30 }
 0x228   : > { %s5706_s29 = smov %s5709_s10  ;;  %s5707_s30 = smov %s5713_s11 }
 0x229   :  { %18 = sbr.rel (!%p16_p10) target bundleno = 3 (0x3), region = 115 }

</bundles_post_ra>
